<compile_context>
chip_gen: v7x
topology: tpu7x:2x2x1
jax: 0.10.0
libtpu: 0.0.40
codegen_flags: <defaults>
</compile_context>

<pallas_src>
import math

import numpy as np
import jax
import jax.numpy as jnp
from jax.experimental import pallas as pl
from jax.experimental.pallas import tpu as pltpu

# ----------------------------------------------------------------------------
# demo configuration (reference values in comments)
SCALE = 8
INPUT_NC = 3
INPUT_SIZE = 64                        # reference: 256
BATCH = 2
C64, C128, C256, C512 = 64 // SCALE, 128 // SCALE, 256 // SCALE, 512 // SCALE
STYLE_COUNT = 18                       # opts.n_styles
COARSE_IND = 3
MIDDLE_IND = 7
BN_EPS = 1e-5

LANE = 128
TM_MAX = 256                           # MXU-aligned M tile cap
TK_MAX = 512                           # K tile when the contraction is large
VMEM_LIMIT = 32 * 1024 * 1024          # explicit scoped-VMEM budget (safe v5e..v7x)


def _round_up(x, m):
    return (x + m - 1) // m * m


# ----------------------------------------------------------------------------
# Pallas kernels
# ----------------------------------------------------------------------------
def _affine_act(acc, scale_ref, shift_ref, alpha_ref):
    # per-output-channel affine + parametric leaky activation (f32 epilogue)
    t = acc * scale_ref[...] + shift_ref[...]
    return jnp.where(t >= 0.0, t, t * alpha_ref[...])


def _mm_kernel(a_ref, b_ref, scale_ref, shift_ref, alpha_ref, o_ref, acc_ref):
    # (tm, tk) @ (tk, Np) bf16 on the MXU, f32 accumulation over the K grid axis.
    @pl.when(pl.program_id(1) == 0)
    def _():
        acc_ref[...] = jnp.zeros_like(acc_ref)

    acc_ref[...] += jnp.dot(a_ref[...], b_ref[...],
                            preferred_element_type=jnp.float32)

    @pl.when(pl.program_id(1) == pl.num_programs(1) - 1)
    def _():
        o_ref[...] = _affine_act(acc_ref[...], scale_ref, shift_ref, alpha_ref)


def _mm_res_kernel(a_ref, b_ref, scale_ref, shift_ref, alpha_ref, res_ref,
                   o_ref, acc_ref):
    # Same as _mm_kernel but fuses the residual (shortcut) add into the epilogue.
    @pl.when(pl.program_id(1) == 0)
    def _():
        acc_ref[...] = jnp.zeros_like(acc_ref)

    acc_ref[...] += jnp.dot(a_ref[...], b_ref[...],
                            preferred_element_type=jnp.float32)

    @pl.when(pl.program_id(1) == pl.num_programs(1) - 1)
    def _():
        o_ref[...] = (_affine_act(acc_ref[...], scale_ref, shift_ref, alpha_ref)
                      + res_ref[...])


def _upsample_add_kernel(r0_ref, r1_ref, top_ref, bot_ref, wmat_ref, fy_ref,
                         y_ref, o_ref):
    # One output row per grid step.  top/bot are the two source rows (DMA'd via
    # scalar-prefetch row indices), fy is the vertical lerp weight (SMEM scalar)
    # and wmat (Wo, Wi) implements the horizontal align_corners interpolation.
    del r0_ref, r1_ref
    fy = fy_ref[pl.program_id(0)]
    v = top_ref[...] + (bot_ref[...] - top_ref[...]) * fy          # (Wi, C)
    o_ref[...] = jnp.dot(wmat_ref[...], v,
                         preferred_element_type=jnp.float32) + y_ref[...]


# ----------------------------------------------------------------------------
# Pallas wrappers
# ----------------------------------------------------------------------------
def _to_vec(v, n):
    return jnp.broadcast_to(jnp.asarray(v, jnp.float32), (n,))


def matmul_affine_act(a, b, scale, shift, alpha, residual=None):
    """act((a @ b) * scale + shift) [+ residual];  a:(M,K), b:(K,N).
    A/B are fed to the MXU as bf16; accumulation and epilogue are f32."""
    M, K = a.shape
    _, N = b.shape
    Np = _round_up(N, LANE)
    Kp = _round_up(K, LANE)
    if Kp > 2 * TK_MAX:                       # tile K only when it is large
        tk = TK_MAX
        Kp = _round_up(K, tk)
    else:
        tk = Kp
    nk = Kp // tk
    tm = min(TM_MAX, _round_up(M, 16))
    Mp = _round_up(M, tm)
    nm = Mp // tm

    a = a.astype(jnp.bfloat16)
    b = b.astype(jnp.bfloat16)
    if (Mp, Kp) != (M, K):
        a = jnp.zeros((Mp, Kp), jnp.bfloat16).at[:M, :K].set(a)
    if (Kp, Np) != (K, N):
        b = jnp.zeros((Kp, Np), jnp.bfloat16).at[:K, :N].set(b)
    sc = jnp.zeros((1, Np), jnp.float32).at[0, :N].set(_to_vec(scale, N))
    sh = jnp.zeros((1, Np), jnp.float32).at[0, :N].set(_to_vec(shift, N))
    al = jnp.ones((1, Np), jnp.float32).at[0, :N].set(_to_vec(alpha, N))

    in_specs = [
        pl.BlockSpec((tm, tk), lambda i, k: (i, k)),
        pl.BlockSpec((tk, Np), lambda i, k: (k, 0)),
        pl.BlockSpec((1, Np), lambda i, k: (0, 0)),
        pl.BlockSpec((1, Np), lambda i, k: (0, 0)),
        pl.BlockSpec((1, Np), lambda i, k: (0, 0)),
    ]
    args = [a, b, sc, sh, al]
    kernel = _mm_kernel
    if residual is not None:
        r = residual.astype(jnp.float32)
        if (Mp, Np) != (M, N):
            r = jnp.zeros((Mp, Np), jnp.float32).at[:M, :N].set(r)
        in_specs.append(pl.BlockSpec((tm, Np), lambda i, k: (i, 0)))
        args.append(r)
        kernel = _mm_res_kernel

    out = pl.pallas_call(
        kernel,
        out_shape=jax.ShapeDtypeStruct((Mp, Np), jnp.float32),
        grid_spec=pltpu.PrefetchScalarGridSpec(
            num_scalar_prefetch=0,
            grid=(nm, nk),
            in_specs=in_specs,
            out_specs=pl.BlockSpec((tm, Np), lambda i, k: (i, 0)),
            scratch_shapes=[pltpu.VMEM((tm, Np), jnp.float32)],
        ),
        compiler_params=pltpu.CompilerParams(
            dimension_semantics=("parallel", "arbitrary"),
            vmem_limit_bytes=VMEM_LIMIT),
    )(*args)
    if (Mp, Np) != (M, N):
        out = out[:M, :N]
    return out


def conv2d(x, w, stride, padding, scale, shift, alpha,
           residual=None, pre_scale=None, pre_shift=None):
    """x: NHWC f32, w: PyTorch layout (Cout, Cin, kh, kw).
    Optionally applies a per-channel affine to x first (folds the BatchNorm that
    precedes the conv inside bottleneck_IR; this elementwise op fuses into the
    im2col gather under the outer jit).  Then computes
        act(conv(x, w) * scale + shift) [+ residual]
    with parametric-leaky `alpha`, all inside ONE fused Pallas matmul."""
    N, H, Wd, Cin = x.shape
    Cout, _, kh, kw = w.shape
    if pre_scale is not None:
        x = x * pre_scale + pre_shift
    Ho = (H + 2 * padding - kh) // stride + 1
    Wo = (Wd + 2 * padding - kw) // stride + 1
    if kh == 1 and kw == 1 and padding == 0:
        a = x[:, ::stride, ::stride, :].reshape(N * Ho * Wo, Cin)
    else:
        xp = jnp.pad(x, ((0, 0), (padding, padding), (padding, padding), (0, 0)))
        patches = []
        for dy in range(kh):
            for dx in range(kw):
                patches.append(xp[:, dy:dy + stride * (Ho - 1) + 1:stride,
                                  dx:dx + stride * (Wo - 1) + 1:stride, :])
        a = jnp.stack(patches, axis=3).reshape(N * Ho * Wo, kh * kw * Cin)
    b = jnp.transpose(w, (2, 3, 1, 0)).reshape(kh * kw * Cin, Cout)
    res2d = None if residual is None else residual.reshape(N * Ho * Wo, Cout)
    out = matmul_affine_act(a, b, scale, shift, alpha, residual=res2d)
    return out.reshape(N, Ho, Wo, Cout)


def _src_idx_np(out_size, in_size):
    # F.interpolate(..., mode='bilinear', align_corners=True) source coordinates.
    if out_size == 1:
        src = np.zeros((1,), np.float64)
    else:
        src = np.arange(out_size, dtype=np.float64) * ((in_size - 1) / (out_size - 1))
    i0 = np.clip(np.floor(src).astype(np.int64), 0, in_size - 1)
    i1 = np.clip(i0 + 1, 0, in_size - 1)
    f = (src - i0).astype(np.float32)
    return i0.astype(np.int32), i1.astype(np.int32), f


def upsample_add(x, y):
    """F.interpolate(x, size=y.spatial, mode='bilinear', align_corners=True) + y,
    both NHWC.  One Pallas kernel; x rows are fetched directly via scalar-prefetch
    row indices (no HBM gather copies)."""
    N, Hi, Wi, C = x.shape
    _, Ho, Wo, _ = y.shape
    y0, y1, fy = _src_idx_np(Ho, Hi)                  # vertical sources / weight
    x0, x1, fx = _src_idx_np(Wo, Wi)                  # horizontal sources / weight
    wmat = np.zeros((Wo, Wi), np.float32)             # horizontal interp matrix
    wmat[np.arange(Wo), x0] += 1.0 - fx
    wmat[np.arange(Wo), x1] += fx
    n_idx = np.repeat(np.arange(N, dtype=np.int32), Ho)
    r0 = (n_idx * Hi + np.tile(y0, N)).astype(np.int32)
    r1 = (n_idx * Hi + np.tile(y1, N)).astype(np.int32)
    fyv = np.tile(fy, N).astype(np.float32)

    x3 = x.reshape(N * Hi, Wi, C).astype(jnp.float32)
    y3 = y.reshape(N * Ho, Wo, C).astype(jnp.float32)
    out = pl.pallas_call(
        _upsample_add_kernel,
        out_shape=jax.ShapeDtypeStruct((N * Ho, Wo, C), jnp.float32),
        grid_spec=pltpu.PrefetchScalarGridSpec(
            num_scalar_prefetch=2,                    # r0, r1 row-index tables
            grid=(N * Ho,),
            in_specs=[
                pl.BlockSpec((None, Wi, C), lambda g, r0_s, r1_s: (r0_s[g], 0, 0)),
                pl.BlockSpec((None, Wi, C), lambda g, r0_s, r1_s: (r1_s[g], 0, 0)),
                pl.BlockSpec((Wo, Wi), lambda g, r0_s, r1_s: (0, 0)),
                pl.BlockSpec(memory_space=pltpu.MemorySpace.SMEM),   # fy per row
                pl.BlockSpec((None, Wo, C), lambda g, r0_s, r1_s: (g, 0, 0)),
            ],
            out_specs=pl.BlockSpec((None, Wo, C), lambda g, r0_s, r1_s: (g, 0, 0)),
        ),
        compiler_params=pltpu.CompilerParams(
            dimension_semantics=("arbitrary",),
            vmem_limit_bytes=VMEM_LIMIT),
    )(jnp.asarray(r0), jnp.asarray(r1), x3, x3,
      jnp.asarray(wmat), jnp.asarray(fyv), y3)
    return out.reshape(N, Ho, Wo, C)


# ----------------------------------------------------------------------------
# deterministic parameter construction
# ----------------------------------------------------------------------------
_PKEY = jax.random.PRNGKey(1234)
_KCOUNT = [0]


def _next_key():
    _KCOUNT[0] += 1
    return jax.random.fold_in(_PKEY, _KCOUNT[0])


def conv_w(cout, cin, kh, kw):
    std = 1.0 / math.sqrt(cin * kh * kw)
    return jax.random.normal(_next_key(), (cout, cin, kh, kw), jnp.float32) * std


def vec(c, std=0.05):
    return jax.random.normal(_next_key(), (c,), jnp.float32) * std


def bn_params(c):
    return dict(
        gamma=1.0 + 0.1 * jax.random.normal(_next_key(), (c,), jnp.float32),
        beta=0.1 * jax.random.normal(_next_key(), (c,), jnp.float32),
        mean=0.1 * jax.random.normal(_next_key(), (c,), jnp.float32),
        var=1.0 + 0.1 * jnp.abs(jax.random.normal(_next_key(), (c,), jnp.float32)),
    )


def bn_scale_shift(bn):
    # TODO(synk): eval-mode BatchNorm (running stats); train-mode batch statistics
    #   are not implemented.
    s = bn['gamma'] * jax.lax.rsqrt(bn['var'] + BN_EPS)
    return s, bn['beta'] - bn['mean'] * s


def get_blocks_ir50(c64, c128, c256, c512):
    def blk(ic, d, n):
        return [(ic, d, 2)] + [(d, d, 1)] * (n - 1)
    return blk(c64, c64, 3) + blk(c64, c128, 4) + blk(c128, c256, 14) + blk(c256, c512, 3)


BLOCKS_CFG = get_blocks_ir50(C64, C128, C256, C512)   # static (in_c, depth, stride)


def make_bottleneck(in_c, depth, stride):
    p = {}
    if in_c == depth:
        p['shortcut'] = None                               # MaxPool2d(1, stride)
    else:
        p['shortcut'] = dict(w=conv_w(depth, in_c, 1, 1), bn=bn_params(depth))
    p['bn1'] = bn_params(in_c)
    p['conv1'] = conv_w(depth, in_c, 3, 3)
    p['prelu'] = jnp.full((depth,), 0.25, jnp.float32)
    p['conv2'] = conv_w(depth, depth, 3, 3)
    p['bn2'] = bn_params(depth)
    return p


def make_style_block(in_c, out_c, spatial):
    num_pools = int(math.log2(spatial))
    convs = [dict(w=conv_w(out_c, in_c, 3, 3), b=vec(out_c))]
    for _ in range(num_pools - 1):
        convs.append(dict(w=conv_w(out_c, out_c, 3, 3), b=vec(out_c)))
    lin_w = jax.random.normal(_next_key(), (out_c, out_c), jnp.float32)  # EqualLinear
    lin_b = jnp.zeros((out_c,), jnp.float32)
    return dict(convs=convs, lin_w=lin_w, lin_b=lin_b)


def build_params():
    s3 = INPUT_SIZE // 16                                  # reference: 16
    p = {}
    p['input_layer'] = dict(w=conv_w(C64, INPUT_NC, 3, 3), bn=bn_params(C64),
                            prelu=jnp.full((C64,), 0.25, jnp.float32))
    p['body'] = [make_bottleneck(ic, d, s) for (ic, d, s) in BLOCKS_CFG]
    styles = []
    for i in range(STYLE_COUNT):
        if i < COARSE_IND:
            spatial = s3
        elif i < MIDDLE_IND:
            spatial = 2 * s3
        else:
            spatial = 4 * s3
        styles.append(make_style_block(C512, C512, spatial))
    p['styles'] = styles
    p['latlayer1'] = dict(w=conv_w(C512, C256, 1, 1), b=vec(C512))
    p['latlayer2'] = dict(w=conv_w(C512, C128, 1, 1), b=vec(C512))
    return p


# ----------------------------------------------------------------------------
# module forward passes
# ----------------------------------------------------------------------------
def bottleneck_forward(p, x, stride):
    if p['shortcut'] is None:
        shortcut = x[:, ::stride, ::stride, :] if stride > 1 else x   # MaxPool2d(1, s)
    else:
        ss, ssh = bn_scale_shift(p['shortcut']['bn'])
        shortcut = conv2d(x, p['shortcut']['w'], stride, 0, ss, ssh, 1.0)
    # res layer: BN -> conv3x3 s1 -> PReLU -> conv3x3 stride -> BN (+ shortcut fused)
    s1, sh1 = bn_scale_shift(p['bn1'])
    r = conv2d(x, p['conv1'], 1, 1, 1.0, 0.0, p['prelu'],
               pre_scale=s1, pre_shift=sh1)
    s2, sh2 = bn_scale_shift(p['bn2'])
    return conv2d(r, p['conv2'], stride, 1, s2, sh2, 1.0, residual=shortcut)


def style_block_forward(p, x):
    for c in p['convs']:
        # Conv2d(k=3, stride=2, pad=1, bias) + nn.LeakyReLU()  (slope 0.01)
        x = conv2d(x, c['w'], 2, 1, 1.0, c['b'], 0.01)
    out_c = p['lin_w'].shape[0]
    x2 = x.reshape(-1, out_c)                              # view(-1, out_c)
    eq_scale = 1.0 / math.sqrt(p['lin_w'].shape[1])        # EqualLinear, lr_mul=1
    return matmul_affine_act(x2, (p['lin_w'] * eq_scale).T, 1.0, p['lin_b'], 1.0)


def latconv(lp, x):
    return conv2d(x, lp['w'], 1, 0, 1.0, lp['b'], 1.0)


def encoder_forward(params, x_nchw):
    x = jnp.transpose(x_nchw, (0, 2, 3, 1)).astype(jnp.float32)      # NCHW -> NHWC
    il = params['input_layer']
    bs, bsh = bn_scale_shift(il['bn'])
    x = conv2d(x, il['w'], 1, 1, bs, bsh, il['prelu'])               # conv+BN+PReLU

    c1 = c2 = c3 = None
    for i, bp in enumerate(params['body']):
        x = bottleneck_forward(bp, x, BLOCKS_CFG[i][2])
        if i == 6:
            c1 = x
        elif i == 20:
            c2 = x
        elif i == 23:
            c3 = x

    latents = []
    for j in range(COARSE_IND):
        latents.append(style_block_forward(params['styles'][j], c3))
    p2 = upsample_add(c3, latconv(params['latlayer1'], c2))
    for j in range(COARSE_IND, MIDDLE_IND):
        latents.append(style_block_forward(params['styles'][j], p2))
    p1 = upsample_add(p2, latconv(params['latlayer2'], c1))
    for j in range(MIDDLE_IND, STYLE_COUNT):
        latents.append(style_block_forward(params['styles'][j], p1))
    return jnp.stack(latents, axis=1)                                # (N, n_styles, 512)


# ----------------------------------------------------------------------------
if __name__ == "__main__":
    params = build_params()
    x = jax.random.normal(jax.random.PRNGKey(0),
                          (BATCH, INPUT_NC, INPUT_SIZE, INPUT_SIZE), jnp.float32)  # NCHW
    fwd = jax.jit(encoder_forward)                 # single jit over the whole forward
    out = fwd(params, x)
    out = jax.block_until_ready(out)
    assert out.shape == (BATCH, STYLE_COUNT, C512)
    assert bool(jnp.all(jnp.isfinite(out)))
    print("KERNEL_OK")
</pallas_src>

<mosaic_0001>
module attributes {stable_mosaic.version = 11 : i64} {
  func.func @_mm_kernel(%arg0: i32, %arg1: i32, %arg2: memref<256x128xbf16, #tpu.memory_space<vmem>>, %arg3: memref<128x128xbf16, #tpu.memory_space<vmem>>, %arg4: memref<1x128xf32, #tpu.memory_space<vmem>>, %arg5: memref<1x128xf32, #tpu.memory_space<vmem>>, %arg6: memref<1x128xf32, #tpu.memory_space<vmem>>, %arg7: memref<256x128xf32, #tpu.memory_space<vmem>>, %arg8: memref<256x128xf32, #tpu.memory_space<vmem>>) attributes {dimension_semantics = [#tpu.dimension_semantics<parallel>, #tpu.dimension_semantics<arbitrary>], iteration_bounds = array<i64: 32, 1>, scalar_prefetch = 0 : i64, scratch_operands = 1 : i64, tpu.core_type = #tpu.core_type<tc>, window_params = [{transform_indices = @transform_0, window_bounds = array<i64: 256, 128>}, {transform_indices = @transform_1, window_bounds = array<i64: 128, 128>}, {pipeline_mode = #tpu.pipeline_mode<synchronous>, transform_indices = @transform_2, window_bounds = array<i64: 1, 128>}, {pipeline_mode = #tpu.pipeline_mode<synchronous>, transform_indices = @transform_3, window_bounds = array<i64: 1, 128>}, {pipeline_mode = #tpu.pipeline_mode<synchronous>, transform_indices = @transform_4, window_bounds = array<i64: 1, 128>}, {transform_indices = @transform_5, window_bounds = array<i64: 256, 128>}]} {
    %c0_i32 = arith.constant 0 : i32
    %0 = arith.cmpi eq, %arg1, %c0_i32 : i32
    %1 = arith.extui %0 : i1 to i32
    %c0_i32_0 = arith.constant 0 : i32
    %2 = arith.cmpi ne, %1, %c0_i32_0 : i32
    scf.if %2 {
      %cst_10 = arith.constant 0.000000e+00 : f32
      %12 = vector.broadcast %cst_10 : f32 to vector<256x128xf32>
      %c0_11 = arith.constant 0 : index
      %c0_12 = arith.constant 0 : index
      %13 = vector.load %arg8[%c0_11, %c0_12] : memref<256x128xf32, #tpu.memory_space<vmem>>, vector<256x128xf32>
      tpu.vector_store %arg8[%c0_11, %c0_12], %12 {strides = array<i32>} : memref<256x128xf32, #tpu.memory_space<vmem>>, vector<256x128xf32>,
    } else {
    }
    %c0 = arith.constant 0 : index
    %c0_1 = arith.constant 0 : index
    %3 = vector.load %arg8[%c0, %c0_1] : memref<256x128xf32, #tpu.memory_space<vmem>>, vector<256x128xf32>
    %c0_2 = arith.constant 0 : index
    %c0_3 = arith.constant 0 : index
    %4 = vector.load %arg2[%c0_2, %c0_3] : memref<256x128xbf16, #tpu.memory_space<vmem>>, vector<256x128xbf16>
    %c0_4 = arith.constant 0 : index
    %c0_5 = arith.constant 0 : index
    %5 = vector.load %arg3[%c0_4, %c0_5] : memref<128x128xbf16, #tpu.memory_space<vmem>>, vector<128x128xbf16>
    %cst = arith.constant dense<0.000000e+00> : vector<256x128xf32>
    %6 = tpu.matmul %4, %5, %cst {dimension_numbers = #tpu.dot_dimension_numbers<[1], [0], [0], [1], [0, 0, 1, 1], [], []>} : vector<256x128xbf16>, vector<128x128xbf16>, vector<256x128xf32> -> vector<256x128xf32>
    %7 = arith.addf %3, %6 : vector<256x128xf32>
    %c0_6 = arith.constant 0 : index
    %c0_7 = arith.constant 0 : index
    %8 = vector.load %arg8[%c0_6, %c0_7] : memref<256x128xf32, #tpu.memory_space<vmem>>, vector<256x128xf32>
    tpu.vector_store %arg8[%c0_6, %c0_7], %7 {strides = array<i32>} : memref<256x128xf32, #tpu.memory_space<vmem>>, vector<256x128xf32>,
    %c0_i32_8 = arith.constant 0 : i32
    %9 = arith.cmpi eq, %arg1, %c0_i32_8 : i32
    %10 = arith.extui %9 : i1 to i32
    %c0_i32_9 = arith.constant 0 : i32
    %11 = arith.cmpi ne, %10, %c0_i32_9 : i32
    scf.if %11 {
      %c0_10 = arith.constant 0 : index
      %c0_11 = arith.constant 0 : index
      %12 = vector.load %arg8[%c0_10, %c0_11] : memref<256x128xf32, #tpu.memory_space<vmem>>, vector<256x128xf32>
      %c0_12 = arith.constant 0 : index
      %c0_13 = arith.constant 0 : index
      %13 = vector.load %arg4[%c0_12, %c0_13] : memref<1x128xf32, #tpu.memory_space<vmem>>, vector<1x128xf32>
      %14 = vector.broadcast %13 : vector<1x128xf32> to vector<256x128xf32>
      %15 = arith.mulf %12, %14 : vector<256x128xf32>
      %c0_14 = arith.constant 0 : index
      %c0_15 = arith.constant 0 : index
      %16 = vector.load %arg5[%c0_14, %c0_15] : memref<1x128xf32, #tpu.memory_space<vmem>>, vector<1x128xf32>
      %17 = vector.broadcast %16 : vector<1x128xf32> to vector<256x128xf32>
      %18 = arith.addf %15, %17 : vector<256x128xf32>
      %cst_16 = arith.constant 0.000000e+00 : f32
      %19 = vector.broadcast %cst_16 : f32 to vector<256x128xf32>
      %20 = arith.cmpf oge, %18, %19 : vector<256x128xf32>
      %c0_17 = arith.constant 0 : index
      %c0_18 = arith.constant 0 : index
      %21 = vector.load %arg6[%c0_17, %c0_18] : memref<1x128xf32, #tpu.memory_space<vmem>>, vector<1x128xf32>
      %22 = vector.broadcast %21 : vector<1x128xf32> to vector<256x128xf32>
      %23 = arith.mulf %18, %22 : vector<256x128xf32>
      %24 = arith.select %20, %18, %23 : vector<256x128xi1>, vector<256x128xf32>
      %c0_19 = arith.constant 0 : index
      %c0_20 = arith.constant 0 : index
      %25 = vector.load %arg7[%c0_19, %c0_20] : memref<256x128xf32, #tpu.memory_space<vmem>>, vector<256x128xf32>
      tpu.vector_store %arg7[%c0_19, %c0_20], %24 {strides = array<i32>} : memref<256x128xf32, #tpu.memory_space<vmem>>, vector<256x128xf32>,
    } else {
    }
    return
  }
  func.func @transform_0(%arg0: i32, %arg1: i32) -> (i32, i32) {
    %c0_i32 = arith.constant 0 : i32
    return %arg0, %arg1 : i32, i32
  }
  func.func @transform_1(%arg0: i32, %arg1: i32) -> (i32, i32) {
    %c0_i32 = arith.constant 0 : i32
    %c0_i32_0 = arith.constant 0 : i32
    return %arg1, %c0_i32 : i32, i32
  }
  func.func @transform_2(%arg0: i32, %arg1: i32) -> (i32, i32) {
    %c0_i32 = arith.constant 0 : i32
    %c0_i32_0 = arith.constant 0 : i32
    %c0_i32_1 = arith.constant 0 : i32
    return %c0_i32, %c0_i32_0 : i32, i32
  }
  func.func @transform_3(%arg0: i32, %arg1: i32) -> (i32, i32) {
    %c0_i32 = arith.constant 0 : i32
    %c0_i32_0 = arith.constant 0 : i32
    %c0_i32_1 = arith.constant 0 : i32
    return %c0_i32, %c0_i32_0 : i32, i32
  }
  func.func @transform_4(%arg0: i32, %arg1: i32) -> (i32, i32) {
    %c0_i32 = arith.constant 0 : i32
    %c0_i32_0 = arith.constant 0 : i32
    %c0_i32_1 = arith.constant 0 : i32
    return %c0_i32, %c0_i32_0 : i32, i32
  }
  func.func @transform_5(%arg0: i32, %arg1: i32) -> (i32, i32) {
    %c0_i32 = arith.constant 0 : i32
    %c0_i32_0 = arith.constant 0 : i32
    return %arg0, %c0_i32 : i32, i32
  }
}

module attributes {stable_mosaic.version = 11 : i64} {
  func.func @_mm_res_kernel(%arg0: i32, %arg1: i32, %arg2: memref<256x128xbf16, #tpu.memory_space<vmem>>, %arg3: memref<128x128xbf16, #tpu.memory_space<vmem>>, %arg4: memref<1x128xf32, #tpu.memory_space<vmem>>, %arg5: memref<1x128xf32, #tpu.memory_space<vmem>>, %arg6: memref<1x128xf32, #tpu.memory_space<vmem>>, %arg7: memref<256x128xf32, #tpu.memory_space<vmem>>, %arg8: memref<256x128xf32, #tpu.memory_space<vmem>>, %arg9: memref<256x128xf32, #tpu.memory_space<vmem>>) attributes {dimension_semantics = [#tpu.dimension_semantics<parallel>, #tpu.dimension_semantics<arbitrary>], iteration_bounds = array<i64: 8, 1>, scalar_prefetch = 0 : i64, scratch_operands = 1 : i64, tpu.core_type = #tpu.core_type<tc>, window_params = [{transform_indices = @transform_0, window_bounds = array<i64: 256, 128>}, {transform_indices = @transform_1, window_bounds = array<i64: 128, 128>}, {pipeline_mode = #tpu.pipeline_mode<synchronous>, transform_indices = @transform_2, window_bounds = array<i64: 1, 128>}, {pipeline_mode = #tpu.pipeline_mode<synchronous>, transform_indices = @transform_3, window_bounds = array<i64: 1, 128>}, {pipeline_mode = #tpu.pipeline_mode<synchronous>, transform_indices = @transform_4, window_bounds = array<i64: 1, 128>}, {transform_indices = @transform_5, window_bounds = array<i64: 256, 128>}, {transform_indices = @transform_6, window_bounds = array<i64: 256, 128>}]} {
    %c0_i32 = arith.constant 0 : i32
    %0 = arith.cmpi eq, %arg1, %c0_i32 : i32
    %1 = arith.extui %0 : i1 to i32
    %c0_i32_0 = arith.constant 0 : i32
    %2 = arith.cmpi ne, %1, %c0_i32_0 : i32
    scf.if %2 {
      %cst_10 = arith.constant 0.000000e+00 : f32
      %12 = vector.broadcast %cst_10 : f32 to vector<256x128xf32>
      %c0_11 = arith.constant 0 : index
      %c0_12 = arith.constant 0 : index
      %13 = vector.load %arg9[%c0_11, %c0_12] : memref<256x128xf32, #tpu.memory_space<vmem>>, vector<256x128xf32>
      tpu.vector_store %arg9[%c0_11, %c0_12], %12 {strides = array<i32>} : memref<256x128xf32, #tpu.memory_space<vmem>>, vector<256x128xf32>,
    } else {
    }
    %c0 = arith.constant 0 : index
    %c0_1 = arith.constant 0 : index
    %3 = vector.load %arg9[%c0, %c0_1] : memref<256x128xf32, #tpu.memory_space<vmem>>, vector<256x128xf32>
    %c0_2 = arith.constant 0 : index
    %c0_3 = arith.constant 0 : index
    %4 = vector.load %arg2[%c0_2, %c0_3] : memref<256x128xbf16, #tpu.memory_space<vmem>>, vector<256x128xbf16>
    %c0_4 = arith.constant 0 : index
    %c0_5 = arith.constant 0 : index
    %5 = vector.load %arg3[%c0_4, %c0_5] : memref<128x128xbf16, #tpu.memory_space<vmem>>, vector<128x128xbf16>
    %cst = arith.constant dense<0.000000e+00> : vector<256x128xf32>
    %6 = tpu.matmul %4, %5, %cst {dimension_numbers = #tpu.dot_dimension_numbers<[1], [0], [0], [1], [0, 0, 1, 1], [], []>} : vector<256x128xbf16>, vector<128x128xbf16>, vector<256x128xf32> -> vector<256x128xf32>
    %7 = arith.addf %3, %6 : vector<256x128xf32>
    %c0_6 = arith.constant 0 : index
    %c0_7 = arith.constant 0 : index
    %8 = vector.load %arg9[%c0_6, %c0_7] : memref<256x128xf32, #tpu.memory_space<vmem>>, vector<256x128xf32>
    tpu.vector_store %arg9[%c0_6, %c0_7], %7 {strides = array<i32>} : memref<256x128xf32, #tpu.memory_space<vmem>>, vector<256x128xf32>,
    %c0_i32_8 = arith.constant 0 : i32
    %9 = arith.cmpi eq, %arg1, %c0_i32_8 : i32
    %10 = arith.extui %9 : i1 to i32
    %c0_i32_9 = arith.constant 0 : i32
    %11 = arith.cmpi ne, %10, %c0_i32_9 : i32
    scf.if %11 {
      %c0_10 = arith.constant 0 : index
      %c0_11 = arith.constant 0 : index
      %12 = vector.load %arg9[%c0_10, %c0_11] : memref<256x128xf32, #tpu.memory_space<vmem>>, vector<256x128xf32>
      %c0_12 = arith.constant 0 : index
      %c0_13 = arith.constant 0 : index
      %13 = vector.load %arg4[%c0_12, %c0_13] : memref<1x128xf32, #tpu.memory_space<vmem>>, vector<1x128xf32>
      %14 = vector.broadcast %13 : vector<1x128xf32> to vector<256x128xf32>
      %15 = arith.mulf %12, %14 : vector<256x128xf32>
      %c0_14 = arith.constant 0 : index
      %c0_15 = arith.constant 0 : index
      %16 = vector.load %arg5[%c0_14, %c0_15] : memref<1x128xf32, #tpu.memory_space<vmem>>, vector<1x128xf32>
      %17 = vector.broadcast %16 : vector<1x128xf32> to vector<256x128xf32>
      %18 = arith.addf %15, %17 : vector<256x128xf32>
      %cst_16 = arith.constant 0.000000e+00 : f32
      %19 = vector.broadcast %cst_16 : f32 to vector<256x128xf32>
      %20 = arith.cmpf oge, %18, %19 : vector<256x128xf32>
      %c0_17 = arith.constant 0 : index
      %c0_18 = arith.constant 0 : index
      %21 = vector.load %arg6[%c0_17, %c0_18] : memref<1x128xf32, #tpu.memory_space<vmem>>, vector<1x128xf32>
      %22 = vector.broadcast %21 : vector<1x128xf32> to vector<256x128xf32>
      %23 = arith.mulf %18, %22 : vector<256x128xf32>
      %24 = arith.select %20, %18, %23 : vector<256x128xi1>, vector<256x128xf32>
      %c0_19 = arith.constant 0 : index
      %c0_20 = arith.constant 0 : index
      %25 = vector.load %arg7[%c0_19, %c0_20] : memref<256x128xf32, #tpu.memory_space<vmem>>, vector<256x128xf32>
      %26 = arith.addf %24, %25 : vector<256x128xf32>
      %c0_21 = arith.constant 0 : index
      %c0_22 = arith.constant 0 : index
      %27 = vector.load %arg8[%c0_21, %c0_22] : memref<256x128xf32, #tpu.memory_space<vmem>>, vector<256x128xf32>
      tpu.vector_store %arg8[%c0_21, %c0_22], %26 {strides = array<i32>} : memref<256x128xf32, #tpu.memory_space<vmem>>, vector<256x128xf32>,
    } else {
    }
    return
  }
  func.func @transform_0(%arg0: i32, %arg1: i32) -> (i32, i32) {
    %c0_i32 = arith.constant 0 : i32
    return %arg0, %arg1 : i32, i32
  }
  func.func @transform_1(%arg0: i32, %arg1: i32) -> (i32, i32) {
    %c0_i32 = arith.constant 0 : i32
    %c0_i32_0 = arith.constant 0 : i32
    return %arg1, %c0_i32 : i32, i32
  }
  func.func @transform_2(%arg0: i32, %arg1: i32) -> (i32, i32) {
    %c0_i32 = arith.constant 0 : i32
    %c0_i32_0 = arith.constant 0 : i32
    %c0_i32_1 = arith.constant 0 : i32
    return %c0_i32, %c0_i32_0 : i32, i32
  }
  func.func @transform_3(%arg0: i32, %arg1: i32) -> (i32, i32) {
    %c0_i32 = arith.constant 0 : i32
    %c0_i32_0 = arith.constant 0 : i32
    %c0_i32_1 = arith.constant 0 : i32
    return %c0_i32, %c0_i32_0 : i32, i32
  }
  func.func @transform_4(%arg0: i32, %arg1: i32) -> (i32, i32) {
    %c0_i32 = arith.constant 0 : i32
    %c0_i32_0 = arith.constant 0 : i32
    %c0_i32_1 = arith.constant 0 : i32
    return %c0_i32, %c0_i32_0 : i32, i32
  }
  func.func @transform_5(%arg0: i32, %arg1: i32) -> (i32, i32) {
    %c0_i32 = arith.constant 0 : i32
    %c0_i32_0 = arith.constant 0 : i32
    return %arg0, %c0_i32 : i32, i32
  }
  func.func @transform_6(%arg0: i32, %arg1: i32) -> (i32, i32) {
    %c0_i32 = arith.constant 0 : i32
    %c0_i32_0 = arith.constant 0 : i32
    return %arg0, %c0_i32 : i32, i32
  }
}

module attributes {stable_mosaic.version = 11 : i64} {
  func.func @_mm_kernel(%arg0: i32, %arg1: i32, %arg2: memref<256x128xbf16, #tpu.memory_space<vmem>>, %arg3: memref<128x128xbf16, #tpu.memory_space<vmem>>, %arg4: memref<1x128xf32, #tpu.memory_space<vmem>>, %arg5: memref<1x128xf32, #tpu.memory_space<vmem>>, %arg6: memref<1x128xf32, #tpu.memory_space<vmem>>, %arg7: memref<256x128xf32, #tpu.memory_space<vmem>>, %arg8: memref<256x128xf32, #tpu.memory_space<vmem>>) attributes {dimension_semantics = [#tpu.dimension_semantics<parallel>, #tpu.dimension_semantics<arbitrary>], iteration_bounds = array<i64: 8, 1>, scalar_prefetch = 0 : i64, scratch_operands = 1 : i64, tpu.core_type = #tpu.core_type<tc>, window_params = [{transform_indices = @transform_0, window_bounds = array<i64: 256, 128>}, {transform_indices = @transform_1, window_bounds = array<i64: 128, 128>}, {pipeline_mode = #tpu.pipeline_mode<synchronous>, transform_indices = @transform_2, window_bounds = array<i64: 1, 128>}, {pipeline_mode = #tpu.pipeline_mode<synchronous>, transform_indices = @transform_3, window_bounds = array<i64: 1, 128>}, {pipeline_mode = #tpu.pipeline_mode<synchronous>, transform_indices = @transform_4, window_bounds = array<i64: 1, 128>}, {transform_indices = @transform_5, window_bounds = array<i64: 256, 128>}]} {
    %c0_i32 = arith.constant 0 : i32
    %0 = arith.cmpi eq, %arg1, %c0_i32 : i32
    %1 = arith.extui %0 : i1 to i32
    %c0_i32_0 = arith.constant 0 : i32
    %2 = arith.cmpi ne, %1, %c0_i32_0 : i32
    scf.if %2 {
      %cst_10 = arith.constant 0.000000e+00 : f32
      %12 = vector.broadcast %cst_10 : f32 to vector<256x128xf32>
      %c0_11 = arith.constant 0 : index
      %c0_12 = arith.constant 0 : index
      %13 = vector.load %arg8[%c0_11, %c0_12] : memref<256x128xf32, #tpu.memory_space<vmem>>, vector<256x128xf32>
      tpu.vector_store %arg8[%c0_11, %c0_12], %12 {strides = array<i32>} : memref<256x128xf32, #tpu.memory_space<vmem>>, vector<256x128xf32>,
    } else {
    }
    %c0 = arith.constant 0 : index
    %c0_1 = arith.constant 0 : index
    %3 = vector.load %arg8[%c0, %c0_1] : memref<256x128xf32, #tpu.memory_space<vmem>>, vector<256x128xf32>
    %c0_2 = arith.constant 0 : index
    %c0_3 = arith.constant 0 : index
    %4 = vector.load %arg2[%c0_2, %c0_3] : memref<256x128xbf16, #tpu.memory_space<vmem>>, vector<256x128xbf16>
    %c0_4 = arith.constant 0 : index
    %c0_5 = arith.constant 0 : index
    %5 = vector.load %arg3[%c0_4, %c0_5] : memref<128x128xbf16, #tpu.memory_space<vmem>>, vector<128x128xbf16>
    %cst = arith.constant dense<0.000000e+00> : vector<256x128xf32>
    %6 = tpu.matmul %4, %5, %cst {dimension_numbers = #tpu.dot_dimension_numbers<[1], [0], [0], [1], [0, 0, 1, 1], [], []>} : vector<256x128xbf16>, vector<128x128xbf16>, vector<256x128xf32> -> vector<256x128xf32>
    %7 = arith.addf %3, %6 : vector<256x128xf32>
    %c0_6 = arith.constant 0 : index
    %c0_7 = arith.constant 0 : index
    %8 = vector.load %arg8[%c0_6, %c0_7] : memref<256x128xf32, #tpu.memory_space<vmem>>, vector<256x128xf32>
    tpu.vector_store %arg8[%c0_6, %c0_7], %7 {strides = array<i32>} : memref<256x128xf32, #tpu.memory_space<vmem>>, vector<256x128xf32>,
    %c0_i32_8 = arith.constant 0 : i32
    %9 = arith.cmpi eq, %arg1, %c0_i32_8 : i32
    %10 = arith.extui %9 : i1 to i32
    %c0_i32_9 = arith.constant 0 : i32
    %11 = arith.cmpi ne, %10, %c0_i32_9 : i32
    scf.if %11 {
      %c0_10 = arith.constant 0 : index
      %c0_11 = arith.constant 0 : index
      %12 = vector.load %arg8[%c0_10, %c0_11] : memref<256x128xf32, #tpu.memory_space<vmem>>, vector<256x128xf32>
      %c0_12 = arith.constant 0 : index
      %c0_13 = arith.constant 0 : index
      %13 = vector.load %arg4[%c0_12, %c0_13] : memref<1x128xf32, #tpu.memory_space<vmem>>, vector<1x128xf32>
      %14 = vector.broadcast %13 : vector<1x128xf32> to vector<256x128xf32>
      %15 = arith.mulf %12, %14 : vector<256x128xf32>
      %c0_14 = arith.constant 0 : index
      %c0_15 = arith.constant 0 : index
      %16 = vector.load %arg5[%c0_14, %c0_15] : memref<1x128xf32, #tpu.memory_space<vmem>>, vector<1x128xf32>
      %17 = vector.broadcast %16 : vector<1x128xf32> to vector<256x128xf32>
      %18 = arith.addf %15, %17 : vector<256x128xf32>
      %cst_16 = arith.constant 0.000000e+00 : f32
      %19 = vector.broadcast %cst_16 : f32 to vector<256x128xf32>
      %20 = arith.cmpf oge, %18, %19 : vector<256x128xf32>
      %c0_17 = arith.constant 0 : index
      %c0_18 = arith.constant 0 : index
      %21 = vector.load %arg6[%c0_17, %c0_18] : memref<1x128xf32, #tpu.memory_space<vmem>>, vector<1x128xf32>
      %22 = vector.broadcast %21 : vector<1x128xf32> to vector<256x128xf32>
      %23 = arith.mulf %18, %22 : vector<256x128xf32>
      %24 = arith.select %20, %18, %23 : vector<256x128xi1>, vector<256x128xf32>
      %c0_19 = arith.constant 0 : index
      %c0_20 = arith.constant 0 : index
      %25 = vector.load %arg7[%c0_19, %c0_20] : memref<256x128xf32, #tpu.memory_space<vmem>>, vector<256x128xf32>
      tpu.vector_store %arg7[%c0_19, %c0_20], %24 {strides = array<i32>} : memref<256x128xf32, #tpu.memory_space<vmem>>, vector<256x128xf32>,
    } else {
    }
    return
  }
  func.func @transform_0(%arg0: i32, %arg1: i32) -> (i32, i32) {
    %c0_i32 = arith.constant 0 : i32
    return %arg0, %arg1 : i32, i32
  }
  func.func @transform_1(%arg0: i32, %arg1: i32) -> (i32, i32) {
    %c0_i32 = arith.constant 0 : i32
    %c0_i32_0 = arith.constant 0 : i32
    return %arg1, %c0_i32 : i32, i32
  }
  func.func @transform_2(%arg0: i32, %arg1: i32) -> (i32, i32) {
    %c0_i32 = arith.constant 0 : i32
    %c0_i32_0 = arith.constant 0 : i32
    %c0_i32_1 = arith.constant 0 : i32
    return %c0_i32, %c0_i32_0 : i32, i32
  }
  func.func @transform_3(%arg0: i32, %arg1: i32) -> (i32, i32) {
    %c0_i32 = arith.constant 0 : i32
    %c0_i32_0 = arith.constant 0 : i32
    %c0_i32_1 = arith.constant 0 : i32
    return %c0_i32, %c0_i32_0 : i32, i32
  }
  func.func @transform_4(%arg0: i32, %arg1: i32) -> (i32, i32) {
    %c0_i32 = arith.constant 0 : i32
    %c0_i32_0 = arith.constant 0 : i32
    %c0_i32_1 = arith.constant 0 : i32
    return %c0_i32, %c0_i32_0 : i32, i32
  }
  func.func @transform_5(%arg0: i32, %arg1: i32) -> (i32, i32) {
    %c0_i32 = arith.constant 0 : i32
    %c0_i32_0 = arith.constant 0 : i32
    return %arg0, %c0_i32 : i32, i32
  }
}

module attributes {stable_mosaic.version = 11 : i64} {
  func.func @_mm_kernel(%arg0: i32, %arg1: i32, %arg2: memref<256x128xbf16, #tpu.memory_space<vmem>>, %arg3: memref<128x128xbf16, #tpu.memory_space<vmem>>, %arg4: memref<1x128xf32, #tpu.memory_space<vmem>>, %arg5: memref<1x128xf32, #tpu.memory_space<vmem>>, %arg6: memref<1x128xf32, #tpu.memory_space<vmem>>, %arg7: memref<256x128xf32, #tpu.memory_space<vmem>>, %arg8: memref<256x128xf32, #tpu.memory_space<vmem>>) attributes {dimension_semantics = [#tpu.dimension_semantics<parallel>, #tpu.dimension_semantics<arbitrary>], iteration_bounds = array<i64: 2, 1>, scalar_prefetch = 0 : i64, scratch_operands = 1 : i64, tpu.core_type = #tpu.core_type<tc>, window_params = [{transform_indices = @transform_0, window_bounds = array<i64: 256, 128>}, {transform_indices = @transform_1, window_bounds = array<i64: 128, 128>}, {pipeline_mode = #tpu.pipeline_mode<synchronous>, transform_indices = @transform_2, window_bounds = array<i64: 1, 128>}, {pipeline_mode = #tpu.pipeline_mode<synchronous>, transform_indices = @transform_3, window_bounds = array<i64: 1, 128>}, {pipeline_mode = #tpu.pipeline_mode<synchronous>, transform_indices = @transform_4, window_bounds = array<i64: 1, 128>}, {transform_indices = @transform_5, window_bounds = array<i64: 256, 128>}]} {
    %c0_i32 = arith.constant 0 : i32
    %0 = arith.cmpi eq, %arg1, %c0_i32 : i32
    %1 = arith.extui %0 : i1 to i32
    %c0_i32_0 = arith.constant 0 : i32
    %2 = arith.cmpi ne, %1, %c0_i32_0 : i32
    scf.if %2 {
      %cst_10 = arith.constant 0.000000e+00 : f32
      %12 = vector.broadcast %cst_10 : f32 to vector<256x128xf32>
      %c0_11 = arith.constant 0 : index
      %c0_12 = arith.constant 0 : index
      %13 = vector.load %arg8[%c0_11, %c0_12] : memref<256x128xf32, #tpu.memory_space<vmem>>, vector<256x128xf32>
      tpu.vector_store %arg8[%c0_11, %c0_12], %12 {strides = array<i32>} : memref<256x128xf32, #tpu.memory_space<vmem>>, vector<256x128xf32>,
    } else {
    }
    %c0 = arith.constant 0 : index
    %c0_1 = arith.constant 0 : index
    %3 = vector.load %arg8[%c0, %c0_1] : memref<256x128xf32, #tpu.memory_space<vmem>>, vector<256x128xf32>
    %c0_2 = arith.constant 0 : index
    %c0_3 = arith.constant 0 : index
    %4 = vector.load %arg2[%c0_2, %c0_3] : memref<256x128xbf16, #tpu.memory_space<vmem>>, vector<256x128xbf16>
    %c0_4 = arith.constant 0 : index
    %c0_5 = arith.constant 0 : index
    %5 = vector.load %arg3[%c0_4, %c0_5] : memref<128x128xbf16, #tpu.memory_space<vmem>>, vector<128x128xbf16>
    %cst = arith.constant dense<0.000000e+00> : vector<256x128xf32>
    %6 = tpu.matmul %4, %5, %cst {dimension_numbers = #tpu.dot_dimension_numbers<[1], [0], [0], [1], [0, 0, 1, 1], [], []>} : vector<256x128xbf16>, vector<128x128xbf16>, vector<256x128xf32> -> vector<256x128xf32>
    %7 = arith.addf %3, %6 : vector<256x128xf32>
    %c0_6 = arith.constant 0 : index
    %c0_7 = arith.constant 0 : index
    %8 = vector.load %arg8[%c0_6, %c0_7] : memref<256x128xf32, #tpu.memory_space<vmem>>, vector<256x128xf32>
    tpu.vector_store %arg8[%c0_6, %c0_7], %7 {strides = array<i32>} : memref<256x128xf32, #tpu.memory_space<vmem>>, vector<256x128xf32>,
    %c0_i32_8 = arith.constant 0 : i32
    %9 = arith.cmpi eq, %arg1, %c0_i32_8 : i32
    %10 = arith.extui %9 : i1 to i32
    %c0_i32_9 = arith.constant 0 : i32
    %11 = arith.cmpi ne, %10, %c0_i32_9 : i32
    scf.if %11 {
      %c0_10 = arith.constant 0 : index
      %c0_11 = arith.constant 0 : index
      %12 = vector.load %arg8[%c0_10, %c0_11] : memref<256x128xf32, #tpu.memory_space<vmem>>, vector<256x128xf32>
      %c0_12 = arith.constant 0 : index
      %c0_13 = arith.constant 0 : index
      %13 = vector.load %arg4[%c0_12, %c0_13] : memref<1x128xf32, #tpu.memory_space<vmem>>, vector<1x128xf32>
      %14 = vector.broadcast %13 : vector<1x128xf32> to vector<256x128xf32>
      %15 = arith.mulf %12, %14 : vector<256x128xf32>
      %c0_14 = arith.constant 0 : index
      %c0_15 = arith.constant 0 : index
      %16 = vector.load %arg5[%c0_14, %c0_15] : memref<1x128xf32, #tpu.memory_space<vmem>>, vector<1x128xf32>
      %17 = vector.broadcast %16 : vector<1x128xf32> to vector<256x128xf32>
      %18 = arith.addf %15, %17 : vector<256x128xf32>
      %cst_16 = arith.constant 0.000000e+00 : f32
      %19 = vector.broadcast %cst_16 : f32 to vector<256x128xf32>
      %20 = arith.cmpf oge, %18, %19 : vector<256x128xf32>
      %c0_17 = arith.constant 0 : index
      %c0_18 = arith.constant 0 : index
      %21 = vector.load %arg6[%c0_17, %c0_18] : memref<1x128xf32, #tpu.memory_space<vmem>>, vector<1x128xf32>
      %22 = vector.broadcast %21 : vector<1x128xf32> to vector<256x128xf32>
      %23 = arith.mulf %18, %22 : vector<256x128xf32>
      %24 = arith.select %20, %18, %23 : vector<256x128xi1>, vector<256x128xf32>
      %c0_19 = arith.constant 0 : index
      %c0_20 = arith.constant 0 : index
      %25 = vector.load %arg7[%c0_19, %c0_20] : memref<256x128xf32, #tpu.memory_space<vmem>>, vector<256x128xf32>
      tpu.vector_store %arg7[%c0_19, %c0_20], %24 {strides = array<i32>} : memref<256x128xf32, #tpu.memory_space<vmem>>, vector<256x128xf32>,
    } else {
    }
    return
  }
  func.func @transform_0(%arg0: i32, %arg1: i32) -> (i32, i32) {
    %c0_i32 = arith.constant 0 : i32
    return %arg0, %arg1 : i32, i32
  }
  func.func @transform_1(%arg0: i32, %arg1: i32) -> (i32, i32) {
    %c0_i32 = arith.constant 0 : i32
    %c0_i32_0 = arith.constant 0 : i32
    return %arg1, %c0_i32 : i32, i32
  }
  func.func @transform_2(%arg0: i32, %arg1: i32) -> (i32, i32) {
    %c0_i32 = arith.constant 0 : i32
    %c0_i32_0 = arith.constant 0 : i32
    %c0_i32_1 = arith.constant 0 : i32
    return %c0_i32, %c0_i32_0 : i32, i32
  }
  func.func @transform_3(%arg0: i32, %arg1: i32) -> (i32, i32) {
    %c0_i32 = arith.constant 0 : i32
    %c0_i32_0 = arith.constant 0 : i32
    %c0_i32_1 = arith.constant 0 : i32
    return %c0_i32, %c0_i32_0 : i32, i32
  }
  func.func @transform_4(%arg0: i32, %arg1: i32) -> (i32, i32) {
    %c0_i32 = arith.constant 0 : i32
    %c0_i32_0 = arith.constant 0 : i32
    %c0_i32_1 = arith.constant 0 : i32
    return %c0_i32, %c0_i32_0 : i32, i32
  }
  func.func @transform_5(%arg0: i32, %arg1: i32) -> (i32, i32) {
    %c0_i32 = arith.constant 0 : i32
    %c0_i32_0 = arith.constant 0 : i32
    return %arg0, %c0_i32 : i32, i32
  }
}

module attributes {stable_mosaic.version = 11 : i64} {
  func.func @_mm_res_kernel(%arg0: i32, %arg1: i32, %arg2: memref<256x256xbf16, #tpu.memory_space<vmem>>, %arg3: memref<256x128xbf16, #tpu.memory_space<vmem>>, %arg4: memref<1x128xf32, #tpu.memory_space<vmem>>, %arg5: memref<1x128xf32, #tpu.memory_space<vmem>>, %arg6: memref<1x128xf32, #tpu.memory_space<vmem>>, %arg7: memref<256x128xf32, #tpu.memory_space<vmem>>, %arg8: memref<256x128xf32, #tpu.memory_space<vmem>>, %arg9: memref<256x128xf32, #tpu.memory_space<vmem>>) attributes {dimension_semantics = [#tpu.dimension_semantics<parallel>, #tpu.dimension_semantics<arbitrary>], iteration_bounds = array<i64: 2, 1>, scalar_prefetch = 0 : i64, scratch_operands = 1 : i64, tpu.core_type = #tpu.core_type<tc>, window_params = [{transform_indices = @transform_0, window_bounds = array<i64: 256, 256>}, {transform_indices = @transform_1, window_bounds = array<i64: 256, 128>}, {pipeline_mode = #tpu.pipeline_mode<synchronous>, transform_indices = @transform_2, window_bounds = array<i64: 1, 128>}, {pipeline_mode = #tpu.pipeline_mode<synchronous>, transform_indices = @transform_3, window_bounds = array<i64: 1, 128>}, {pipeline_mode = #tpu.pipeline_mode<synchronous>, transform_indices = @transform_4, window_bounds = array<i64: 1, 128>}, {transform_indices = @transform_5, window_bounds = array<i64: 256, 128>}, {transform_indices = @transform_6, window_bounds = array<i64: 256, 128>}]} {
    %c0_i32 = arith.constant 0 : i32
    %0 = arith.cmpi eq, %arg1, %c0_i32 : i32
    %1 = arith.extui %0 : i1 to i32
    %c0_i32_0 = arith.constant 0 : i32
    %2 = arith.cmpi ne, %1, %c0_i32_0 : i32
    scf.if %2 {
      %cst_10 = arith.constant 0.000000e+00 : f32
      %12 = vector.broadcast %cst_10 : f32 to vector<256x128xf32>
      %c0_11 = arith.constant 0 : index
      %c0_12 = arith.constant 0 : index
      %13 = vector.load %arg9[%c0_11, %c0_12] : memref<256x128xf32, #tpu.memory_space<vmem>>, vector<256x128xf32>
      tpu.vector_store %arg9[%c0_11, %c0_12], %12 {strides = array<i32>} : memref<256x128xf32, #tpu.memory_space<vmem>>, vector<256x128xf32>,
    } else {
    }
    %c0 = arith.constant 0 : index
    %c0_1 = arith.constant 0 : index
    %3 = vector.load %arg9[%c0, %c0_1] : memref<256x128xf32, #tpu.memory_space<vmem>>, vector<256x128xf32>
    %c0_2 = arith.constant 0 : index
    %c0_3 = arith.constant 0 : index
    %4 = vector.load %arg2[%c0_2, %c0_3] : memref<256x256xbf16, #tpu.memory_space<vmem>>, vector<256x256xbf16>
    %c0_4 = arith.constant 0 : index
    %c0_5 = arith.constant 0 : index
    %5 = vector.load %arg3[%c0_4, %c0_5] : memref<256x128xbf16, #tpu.memory_space<vmem>>, vector<256x128xbf16>
    %cst = arith.constant dense<0.000000e+00> : vector<256x128xf32>
    %6 = tpu.matmul %4, %5, %cst {dimension_numbers = #tpu.dot_dimension_numbers<[1], [0], [0], [1], [0, 0, 1, 1], [], []>} : vector<256x256xbf16>, vector<256x128xbf16>, vector<256x128xf32> -> vector<256x128xf32>
    %7 = arith.addf %3, %6 : vector<256x128xf32>
    %c0_6 = arith.constant 0 : index
    %c0_7 = arith.constant 0 : index
    %8 = vector.load %arg9[%c0_6, %c0_7] : memref<256x128xf32, #tpu.memory_space<vmem>>, vector<256x128xf32>
    tpu.vector_store %arg9[%c0_6, %c0_7], %7 {strides = array<i32>} : memref<256x128xf32, #tpu.memory_space<vmem>>, vector<256x128xf32>,
    %c0_i32_8 = arith.constant 0 : i32
    %9 = arith.cmpi eq, %arg1, %c0_i32_8 : i32
    %10 = arith.extui %9 : i1 to i32
    %c0_i32_9 = arith.constant 0 : i32
    %11 = arith.cmpi ne, %10, %c0_i32_9 : i32
    scf.if %11 {
      %c0_10 = arith.constant 0 : index
      %c0_11 = arith.constant 0 : index
      %12 = vector.load %arg9[%c0_10, %c0_11] : memref<256x128xf32, #tpu.memory_space<vmem>>, vector<256x128xf32>
      %c0_12 = arith.constant 0 : index
      %c0_13 = arith.constant 0 : index
      %13 = vector.load %arg4[%c0_12, %c0_13] : memref<1x128xf32, #tpu.memory_space<vmem>>, vector<1x128xf32>
      %14 = vector.broadcast %13 : vector<1x128xf32> to vector<256x128xf32>
      %15 = arith.mulf %12, %14 : vector<256x128xf32>
      %c0_14 = arith.constant 0 : index
      %c0_15 = arith.constant 0 : index
      %16 = vector.load %arg5[%c0_14, %c0_15] : memref<1x128xf32, #tpu.memory_space<vmem>>, vector<1x128xf32>
      %17 = vector.broadcast %16 : vector<1x128xf32> to vector<256x128xf32>
      %18 = arith.addf %15, %17 : vector<256x128xf32>
      %cst_16 = arith.constant 0.000000e+00 : f32
      %19 = vector.broadcast %cst_16 : f32 to vector<256x128xf32>
      %20 = arith.cmpf oge, %18, %19 : vector<256x128xf32>
      %c0_17 = arith.constant 0 : index
      %c0_18 = arith.constant 0 : index
      %21 = vector.load %arg6[%c0_17, %c0_18] : memref<1x128xf32, #tpu.memory_space<vmem>>, vector<1x128xf32>
      %22 = vector.broadcast %21 : vector<1x128xf32> to vector<256x128xf32>
      %23 = arith.mulf %18, %22 : vector<256x128xf32>
      %24 = arith.select %20, %18, %23 : vector<256x128xi1>, vector<256x128xf32>
      %c0_19 = arith.constant 0 : index
      %c0_20 = arith.constant 0 : index
      %25 = vector.load %arg7[%c0_19, %c0_20] : memref<256x128xf32, #tpu.memory_space<vmem>>, vector<256x128xf32>
      %26 = arith.addf %24, %25 : vector<256x128xf32>
      %c0_21 = arith.constant 0 : index
      %c0_22 = arith.constant 0 : index
      %27 = vector.load %arg8[%c0_21, %c0_22] : memref<256x128xf32, #tpu.memory_space<vmem>>, vector<256x128xf32>
      tpu.vector_store %arg8[%c0_21, %c0_22], %26 {strides = array<i32>} : memref<256x128xf32, #tpu.memory_space<vmem>>, vector<256x128xf32>,
    } else {
    }
    return
  }
  func.func @transform_0(%arg0: i32, %arg1: i32) -> (i32, i32) {
    %c0_i32 = arith.constant 0 : i32
    return %arg0, %arg1 : i32, i32
  }
  func.func @transform_1(%arg0: i32, %arg1: i32) -> (i32, i32) {
    %c0_i32 = arith.constant 0 : i32
    %c0_i32_0 = arith.constant 0 : i32
    return %arg1, %c0_i32 : i32, i32
  }
  func.func @transform_2(%arg0: i32, %arg1: i32) -> (i32, i32) {
    %c0_i32 = arith.constant 0 : i32
    %c0_i32_0 = arith.constant 0 : i32
    %c0_i32_1 = arith.constant 0 : i32
    return %c0_i32, %c0_i32_0 : i32, i32
  }
  func.func @transform_3(%arg0: i32, %arg1: i32) -> (i32, i32) {
    %c0_i32 = arith.constant 0 : i32
    %c0_i32_0 = arith.constant 0 : i32
    %c0_i32_1 = arith.constant 0 : i32
    return %c0_i32, %c0_i32_0 : i32, i32
  }
  func.func @transform_4(%arg0: i32, %arg1: i32) -> (i32, i32) {
    %c0_i32 = arith.constant 0 : i32
    %c0_i32_0 = arith.constant 0 : i32
    %c0_i32_1 = arith.constant 0 : i32
    return %c0_i32, %c0_i32_0 : i32, i32
  }
  func.func @transform_5(%arg0: i32, %arg1: i32) -> (i32, i32) {
    %c0_i32 = arith.constant 0 : i32
    %c0_i32_0 = arith.constant 0 : i32
    return %arg0, %c0_i32 : i32, i32
  }
  func.func @transform_6(%arg0: i32, %arg1: i32) -> (i32, i32) {
    %c0_i32 = arith.constant 0 : i32
    %c0_i32_0 = arith.constant 0 : i32
    return %arg0, %c0_i32 : i32, i32
  }
}

module attributes {stable_mosaic.version = 11 : i64} {
  func.func @_mm_kernel(%arg0: i32, %arg1: i32, %arg2: memref<256x256xbf16, #tpu.memory_space<vmem>>, %arg3: memref<256x128xbf16, #tpu.memory_space<vmem>>, %arg4: memref<1x128xf32, #tpu.memory_space<vmem>>, %arg5: memref<1x128xf32, #tpu.memory_space<vmem>>, %arg6: memref<1x128xf32, #tpu.memory_space<vmem>>, %arg7: memref<256x128xf32, #tpu.memory_space<vmem>>, %arg8: memref<256x128xf32, #tpu.memory_space<vmem>>) attributes {dimension_semantics = [#tpu.dimension_semantics<parallel>, #tpu.dimension_semantics<arbitrary>], iteration_bounds = array<i64: 2, 1>, scalar_prefetch = 0 : i64, scratch_operands = 1 : i64, tpu.core_type = #tpu.core_type<tc>, window_params = [{transform_indices = @transform_0, window_bounds = array<i64: 256, 256>}, {transform_indices = @transform_1, window_bounds = array<i64: 256, 128>}, {pipeline_mode = #tpu.pipeline_mode<synchronous>, transform_indices = @transform_2, window_bounds = array<i64: 1, 128>}, {pipeline_mode = #tpu.pipeline_mode<synchronous>, transform_indices = @transform_3, window_bounds = array<i64: 1, 128>}, {pipeline_mode = #tpu.pipeline_mode<synchronous>, transform_indices = @transform_4, window_bounds = array<i64: 1, 128>}, {transform_indices = @transform_5, window_bounds = array<i64: 256, 128>}]} {
    %c0_i32 = arith.constant 0 : i32
    %0 = arith.cmpi eq, %arg1, %c0_i32 : i32
    %1 = arith.extui %0 : i1 to i32
    %c0_i32_0 = arith.constant 0 : i32
    %2 = arith.cmpi ne, %1, %c0_i32_0 : i32
    scf.if %2 {
      %cst_10 = arith.constant 0.000000e+00 : f32
      %12 = vector.broadcast %cst_10 : f32 to vector<256x128xf32>
      %c0_11 = arith.constant 0 : index
      %c0_12 = arith.constant 0 : index
      %13 = vector.load %arg8[%c0_11, %c0_12] : memref<256x128xf32, #tpu.memory_space<vmem>>, vector<256x128xf32>
      tpu.vector_store %arg8[%c0_11, %c0_12], %12 {strides = array<i32>} : memref<256x128xf32, #tpu.memory_space<vmem>>, vector<256x128xf32>,
    } else {
    }
    %c0 = arith.constant 0 : index
    %c0_1 = arith.constant 0 : index
    %3 = vector.load %arg8[%c0, %c0_1] : memref<256x128xf32, #tpu.memory_space<vmem>>, vector<256x128xf32>
    %c0_2 = arith.constant 0 : index
    %c0_3 = arith.constant 0 : index
    %4 = vector.load %arg2[%c0_2, %c0_3] : memref<256x256xbf16, #tpu.memory_space<vmem>>, vector<256x256xbf16>
    %c0_4 = arith.constant 0 : index
    %c0_5 = arith.constant 0 : index
    %5 = vector.load %arg3[%c0_4, %c0_5] : memref<256x128xbf16, #tpu.memory_space<vmem>>, vector<256x128xbf16>
    %cst = arith.constant dense<0.000000e+00> : vector<256x128xf32>
    %6 = tpu.matmul %4, %5, %cst {dimension_numbers = #tpu.dot_dimension_numbers<[1], [0], [0], [1], [0, 0, 1, 1], [], []>} : vector<256x256xbf16>, vector<256x128xbf16>, vector<256x128xf32> -> vector<256x128xf32>
    %7 = arith.addf %3, %6 : vector<256x128xf32>
    %c0_6 = arith.constant 0 : index
    %c0_7 = arith.constant 0 : index
    %8 = vector.load %arg8[%c0_6, %c0_7] : memref<256x128xf32, #tpu.memory_space<vmem>>, vector<256x128xf32>
    tpu.vector_store %arg8[%c0_6, %c0_7], %7 {strides = array<i32>} : memref<256x128xf32, #tpu.memory_space<vmem>>, vector<256x128xf32>,
    %c0_i32_8 = arith.constant 0 : i32
    %9 = arith.cmpi eq, %arg1, %c0_i32_8 : i32
    %10 = arith.extui %9 : i1 to i32
    %c0_i32_9 = arith.constant 0 : i32
    %11 = arith.cmpi ne, %10, %c0_i32_9 : i32
    scf.if %11 {
      %c0_10 = arith.constant 0 : index
      %c0_11 = arith.constant 0 : index
      %12 = vector.load %arg8[%c0_10, %c0_11] : memref<256x128xf32, #tpu.memory_space<vmem>>, vector<256x128xf32>
      %c0_12 = arith.constant 0 : index
      %c0_13 = arith.constant 0 : index
      %13 = vector.load %arg4[%c0_12, %c0_13] : memref<1x128xf32, #tpu.memory_space<vmem>>, vector<1x128xf32>
      %14 = vector.broadcast %13 : vector<1x128xf32> to vector<256x128xf32>
      %15 = arith.mulf %12, %14 : vector<256x128xf32>
      %c0_14 = arith.constant 0 : index
      %c0_15 = arith.constant 0 : index
      %16 = vector.load %arg5[%c0_14, %c0_15] : memref<1x128xf32, #tpu.memory_space<vmem>>, vector<1x128xf32>
      %17 = vector.broadcast %16 : vector<1x128xf32> to vector<256x128xf32>
      %18 = arith.addf %15, %17 : vector<256x128xf32>
      %cst_16 = arith.constant 0.000000e+00 : f32
      %19 = vector.broadcast %cst_16 : f32 to vector<256x128xf32>
      %20 = arith.cmpf oge, %18, %19 : vector<256x128xf32>
      %c0_17 = arith.constant 0 : index
      %c0_18 = arith.constant 0 : index
      %21 = vector.load %arg6[%c0_17, %c0_18] : memref<1x128xf32, #tpu.memory_space<vmem>>, vector<1x128xf32>
      %22 = vector.broadcast %21 : vector<1x128xf32> to vector<256x128xf32>
      %23 = arith.mulf %18, %22 : vector<256x128xf32>
      %24 = arith.select %20, %18, %23 : vector<256x128xi1>, vector<256x128xf32>
      %c0_19 = arith.constant 0 : index
      %c0_20 = arith.constant 0 : index
      %25 = vector.load %arg7[%c0_19, %c0_20] : memref<256x128xf32, #tpu.memory_space<vmem>>, vector<256x128xf32>
      tpu.vector_store %arg7[%c0_19, %c0_20], %24 {strides = array<i32>} : memref<256x128xf32, #tpu.memory_space<vmem>>, vector<256x128xf32>,
    } else {
    }
    return
  }
  func.func @transform_0(%arg0: i32, %arg1: i32) -> (i32, i32) {
    %c0_i32 = arith.constant 0 : i32
    return %arg0, %arg1 : i32, i32
  }
  func.func @transform_1(%arg0: i32, %arg1: i32) -> (i32, i32) {
    %c0_i32 = arith.constant 0 : i32
    %c0_i32_0 = arith.constant 0 : i32
    return %arg1, %c0_i32 : i32, i32
  }
  func.func @transform_2(%arg0: i32, %arg1: i32) -> (i32, i32) {
    %c0_i32 = arith.constant 0 : i32
    %c0_i32_0 = arith.constant 0 : i32
    %c0_i32_1 = arith.constant 0 : i32
    return %c0_i32, %c0_i32_0 : i32, i32
  }
  func.func @transform_3(%arg0: i32, %arg1: i32) -> (i32, i32) {
    %c0_i32 = arith.constant 0 : i32
    %c0_i32_0 = arith.constant 0 : i32
    %c0_i32_1 = arith.constant 0 : i32
    return %c0_i32, %c0_i32_0 : i32, i32
  }
  func.func @transform_4(%arg0: i32, %arg1: i32) -> (i32, i32) {
    %c0_i32 = arith.constant 0 : i32
    %c0_i32_0 = arith.constant 0 : i32
    %c0_i32_1 = arith.constant 0 : i32
    return %c0_i32, %c0_i32_0 : i32, i32
  }
  func.func @transform_5(%arg0: i32, %arg1: i32) -> (i32, i32) {
    %c0_i32 = arith.constant 0 : i32
    %c0_i32_0 = arith.constant 0 : i32
    return %arg0, %c0_i32 : i32, i32
  }
}

module attributes {stable_mosaic.version = 11 : i64} {
  func.func @_mm_kernel(%arg0: i32, %arg1: i32, %arg2: memref<128x128xbf16, #tpu.memory_space<vmem>>, %arg3: memref<128x128xbf16, #tpu.memory_space<vmem>>, %arg4: memref<1x128xf32, #tpu.memory_space<vmem>>, %arg5: memref<1x128xf32, #tpu.memory_space<vmem>>, %arg6: memref<1x128xf32, #tpu.memory_space<vmem>>, %arg7: memref<128x128xf32, #tpu.memory_space<vmem>>, %arg8: memref<128x128xf32, #tpu.memory_space<vmem>>) attributes {dimension_semantics = [#tpu.dimension_semantics<parallel>, #tpu.dimension_semantics<arbitrary>], iteration_bounds = array<i64: 1, 1>, scalar_prefetch = 0 : i64, scratch_operands = 1 : i64, tpu.core_type = #tpu.core_type<tc>, window_params = [{transform_indices = @transform_0, window_bounds = array<i64: 128, 128>}, {transform_indices = @transform_1, window_bounds = array<i64: 128, 128>}, {pipeline_mode = #tpu.pipeline_mode<synchronous>, transform_indices = @transform_2, window_bounds = array<i64: 1, 128>}, {pipeline_mode = #tpu.pipeline_mode<synchronous>, transform_indices = @transform_3, window_bounds = array<i64: 1, 128>}, {pipeline_mode = #tpu.pipeline_mode<synchronous>, transform_indices = @transform_4, window_bounds = array<i64: 1, 128>}, {transform_indices = @transform_5, window_bounds = array<i64: 128, 128>}]} {
    %c0_i32 = arith.constant 0 : i32
    %0 = arith.cmpi eq, %arg1, %c0_i32 : i32
    %1 = arith.extui %0 : i1 to i32
    %c0_i32_0 = arith.constant 0 : i32
    %2 = arith.cmpi ne, %1, %c0_i32_0 : i32
    scf.if %2 {
      %cst_10 = arith.constant 0.000000e+00 : f32
      %12 = vector.broadcast %cst_10 : f32 to vector<128x128xf32>
      %c0_11 = arith.constant 0 : index
      %c0_12 = arith.constant 0 : index
      %13 = vector.load %arg8[%c0_11, %c0_12] : memref<128x128xf32, #tpu.memory_space<vmem>>, vector<128x128xf32>
      tpu.vector_store %arg8[%c0_11, %c0_12], %12 {strides = array<i32>} : memref<128x128xf32, #tpu.memory_space<vmem>>, vector<128x128xf32>,
    } else {
    }
    %c0 = arith.constant 0 : index
    %c0_1 = arith.constant 0 : index
    %3 = vector.load %arg8[%c0, %c0_1] : memref<128x128xf32, #tpu.memory_space<vmem>>, vector<128x128xf32>
    %c0_2 = arith.constant 0 : index
    %c0_3 = arith.constant 0 : index
    %4 = vector.load %arg2[%c0_2, %c0_3] : memref<128x128xbf16, #tpu.memory_space<vmem>>, vector<128x128xbf16>
    %c0_4 = arith.constant 0 : index
    %c0_5 = arith.constant 0 : index
    %5 = vector.load %arg3[%c0_4, %c0_5] : memref<128x128xbf16, #tpu.memory_space<vmem>>, vector<128x128xbf16>
    %cst = arith.constant dense<0.000000e+00> : vector<128x128xf32>
    %6 = tpu.matmul %4, %5, %cst {dimension_numbers = #tpu.dot_dimension_numbers<[1], [0], [0], [1], [0, 0, 1, 1], [], []>} : vector<128x128xbf16>, vector<128x128xbf16>, vector<128x128xf32> -> vector<128x128xf32>
    %7 = arith.addf %3, %6 : vector<128x128xf32>
    %c0_6 = arith.constant 0 : index
    %c0_7 = arith.constant 0 : index
    %8 = vector.load %arg8[%c0_6, %c0_7] : memref<128x128xf32, #tpu.memory_space<vmem>>, vector<128x128xf32>
    tpu.vector_store %arg8[%c0_6, %c0_7], %7 {strides = array<i32>} : memref<128x128xf32, #tpu.memory_space<vmem>>, vector<128x128xf32>,
    %c0_i32_8 = arith.constant 0 : i32
    %9 = arith.cmpi eq, %arg1, %c0_i32_8 : i32
    %10 = arith.extui %9 : i1 to i32
    %c0_i32_9 = arith.constant 0 : i32
    %11 = arith.cmpi ne, %10, %c0_i32_9 : i32
    scf.if %11 {
      %c0_10 = arith.constant 0 : index
      %c0_11 = arith.constant 0 : index
      %12 = vector.load %arg8[%c0_10, %c0_11] : memref<128x128xf32, #tpu.memory_space<vmem>>, vector<128x128xf32>
      %c0_12 = arith.constant 0 : index
      %c0_13 = arith.constant 0 : index
      %13 = vector.load %arg4[%c0_12, %c0_13] : memref<1x128xf32, #tpu.memory_space<vmem>>, vector<1x128xf32>
      %14 = vector.broadcast %13 : vector<1x128xf32> to vector<128x128xf32>
      %15 = arith.mulf %12, %14 : vector<128x128xf32>
      %c0_14 = arith.constant 0 : index
      %c0_15 = arith.constant 0 : index
      %16 = vector.load %arg5[%c0_14, %c0_15] : memref<1x128xf32, #tpu.memory_space<vmem>>, vector<1x128xf32>
      %17 = vector.broadcast %16 : vector<1x128xf32> to vector<128x128xf32>
      %18 = arith.addf %15, %17 : vector<128x128xf32>
      %cst_16 = arith.constant 0.000000e+00 : f32
      %19 = vector.broadcast %cst_16 : f32 to vector<128x128xf32>
      %20 = arith.cmpf oge, %18, %19 : vector<128x128xf32>
      %c0_17 = arith.constant 0 : index
      %c0_18 = arith.constant 0 : index
      %21 = vector.load %arg6[%c0_17, %c0_18] : memref<1x128xf32, #tpu.memory_space<vmem>>, vector<1x128xf32>
      %22 = vector.broadcast %21 : vector<1x128xf32> to vector<128x128xf32>
      %23 = arith.mulf %18, %22 : vector<128x128xf32>
      %24 = arith.select %20, %18, %23 : vector<128x128xi1>, vector<128x128xf32>
      %c0_19 = arith.constant 0 : index
      %c0_20 = arith.constant 0 : index
      %25 = vector.load %arg7[%c0_19, %c0_20] : memref<128x128xf32, #tpu.memory_space<vmem>>, vector<128x128xf32>
      tpu.vector_store %arg7[%c0_19, %c0_20], %24 {strides = array<i32>} : memref<128x128xf32, #tpu.memory_space<vmem>>, vector<128x128xf32>,
    } else {
    }
    return
  }
  func.func @transform_0(%arg0: i32, %arg1: i32) -> (i32, i32) {
    %c0_i32 = arith.constant 0 : i32
    return %arg0, %arg1 : i32, i32
  }
  func.func @transform_1(%arg0: i32, %arg1: i32) -> (i32, i32) {
    %c0_i32 = arith.constant 0 : i32
    %c0_i32_0 = arith.constant 0 : i32
    return %arg1, %c0_i32 : i32, i32
  }
  func.func @transform_2(%arg0: i32, %arg1: i32) -> (i32, i32) {
    %c0_i32 = arith.constant 0 : i32
    %c0_i32_0 = arith.constant 0 : i32
    %c0_i32_1 = arith.constant 0 : i32
    return %c0_i32, %c0_i32_0 : i32, i32
  }
  func.func @transform_3(%arg0: i32, %arg1: i32) -> (i32, i32) {
    %c0_i32 = arith.constant 0 : i32
    %c0_i32_0 = arith.constant 0 : i32
    %c0_i32_1 = arith.constant 0 : i32
    return %c0_i32, %c0_i32_0 : i32, i32
  }
  func.func @transform_4(%arg0: i32, %arg1: i32) -> (i32, i32) {
    %c0_i32 = arith.constant 0 : i32
    %c0_i32_0 = arith.constant 0 : i32
    %c0_i32_1 = arith.constant 0 : i32
    return %c0_i32, %c0_i32_0 : i32, i32
  }
  func.func @transform_5(%arg0: i32, %arg1: i32) -> (i32, i32) {
    %c0_i32 = arith.constant 0 : i32
    %c0_i32_0 = arith.constant 0 : i32
    return %arg0, %c0_i32 : i32, i32
  }
}

module attributes {stable_mosaic.version = 11 : i64} {
  func.func @_mm_res_kernel(%arg0: i32, %arg1: i32, %arg2: memref<128x384xbf16, #tpu.memory_space<vmem>>, %arg3: memref<384x128xbf16, #tpu.memory_space<vmem>>, %arg4: memref<1x128xf32, #tpu.memory_space<vmem>>, %arg5: memref<1x128xf32, #tpu.memory_space<vmem>>, %arg6: memref<1x128xf32, #tpu.memory_space<vmem>>, %arg7: memref<128x128xf32, #tpu.memory_space<vmem>>, %arg8: memref<128x128xf32, #tpu.memory_space<vmem>>, %arg9: memref<128x128xf32, #tpu.memory_space<vmem>>) attributes {dimension_semantics = [#tpu.dimension_semantics<parallel>, #tpu.dimension_semantics<arbitrary>], iteration_bounds = array<i64: 1, 1>, scalar_prefetch = 0 : i64, scratch_operands = 1 : i64, tpu.core_type = #tpu.core_type<tc>, window_params = [{transform_indices = @transform_0, window_bounds = array<i64: 128, 384>}, {transform_indices = @transform_1, window_bounds = array<i64: 384, 128>}, {pipeline_mode = #tpu.pipeline_mode<synchronous>, transform_indices = @transform_2, window_bounds = array<i64: 1, 128>}, {pipeline_mode = #tpu.pipeline_mode<synchronous>, transform_indices = @transform_3, window_bounds = array<i64: 1, 128>}, {pipeline_mode = #tpu.pipeline_mode<synchronous>, transform_indices = @transform_4, window_bounds = array<i64: 1, 128>}, {transform_indices = @transform_5, window_bounds = array<i64: 128, 128>}, {transform_indices = @transform_6, window_bounds = array<i64: 128, 128>}]} {
    %c0_i32 = arith.constant 0 : i32
    %0 = arith.cmpi eq, %arg1, %c0_i32 : i32
    %1 = arith.extui %0 : i1 to i32
    %c0_i32_0 = arith.constant 0 : i32
    %2 = arith.cmpi ne, %1, %c0_i32_0 : i32
    scf.if %2 {
      %cst_10 = arith.constant 0.000000e+00 : f32
      %12 = vector.broadcast %cst_10 : f32 to vector<128x128xf32>
      %c0_11 = arith.constant 0 : index
      %c0_12 = arith.constant 0 : index
      %13 = vector.load %arg9[%c0_11, %c0_12] : memref<128x128xf32, #tpu.memory_space<vmem>>, vector<128x128xf32>
      tpu.vector_store %arg9[%c0_11, %c0_12], %12 {strides = array<i32>} : memref<128x128xf32, #tpu.memory_space<vmem>>, vector<128x128xf32>,
    } else {
    }
    %c0 = arith.constant 0 : index
    %c0_1 = arith.constant 0 : index
    %3 = vector.load %arg9[%c0, %c0_1] : memref<128x128xf32, #tpu.memory_space<vmem>>, vector<128x128xf32>
    %c0_2 = arith.constant 0 : index
    %c0_3 = arith.constant 0 : index
    %4 = vector.load %arg2[%c0_2, %c0_3] : memref<128x384xbf16, #tpu.memory_space<vmem>>, vector<128x384xbf16>
    %c0_4 = arith.constant 0 : index
    %c0_5 = arith.constant 0 : index
    %5 = vector.load %arg3[%c0_4, %c0_5] : memref<384x128xbf16, #tpu.memory_space<vmem>>, vector<384x128xbf16>
    %cst = arith.constant dense<0.000000e+00> : vector<128x128xf32>
    %6 = tpu.matmul %4, %5, %cst {dimension_numbers = #tpu.dot_dimension_numbers<[1], [0], [0], [1], [0, 0, 1, 1], [], []>} : vector<128x384xbf16>, vector<384x128xbf16>, vector<128x128xf32> -> vector<128x128xf32>
    %7 = arith.addf %3, %6 : vector<128x128xf32>
    %c0_6 = arith.constant 0 : index
    %c0_7 = arith.constant 0 : index
    %8 = vector.load %arg9[%c0_6, %c0_7] : memref<128x128xf32, #tpu.memory_space<vmem>>, vector<128x128xf32>
    tpu.vector_store %arg9[%c0_6, %c0_7], %7 {strides = array<i32>} : memref<128x128xf32, #tpu.memory_space<vmem>>, vector<128x128xf32>,
    %c0_i32_8 = arith.constant 0 : i32
    %9 = arith.cmpi eq, %arg1, %c0_i32_8 : i32
    %10 = arith.extui %9 : i1 to i32
    %c0_i32_9 = arith.constant 0 : i32
    %11 = arith.cmpi ne, %10, %c0_i32_9 : i32
    scf.if %11 {
      %c0_10 = arith.constant 0 : index
      %c0_11 = arith.constant 0 : index
      %12 = vector.load %arg9[%c0_10, %c0_11] : memref<128x128xf32, #tpu.memory_space<vmem>>, vector<128x128xf32>
      %c0_12 = arith.constant 0 : index
      %c0_13 = arith.constant 0 : index
      %13 = vector.load %arg4[%c0_12, %c0_13] : memref<1x128xf32, #tpu.memory_space<vmem>>, vector<1x128xf32>
      %14 = vector.broadcast %13 : vector<1x128xf32> to vector<128x128xf32>
      %15 = arith.mulf %12, %14 : vector<128x128xf32>
      %c0_14 = arith.constant 0 : index
      %c0_15 = arith.constant 0 : index
      %16 = vector.load %arg5[%c0_14, %c0_15] : memref<1x128xf32, #tpu.memory_space<vmem>>, vector<1x128xf32>
      %17 = vector.broadcast %16 : vector<1x128xf32> to vector<128x128xf32>
      %18 = arith.addf %15, %17 : vector<128x128xf32>
      %cst_16 = arith.constant 0.000000e+00 : f32
      %19 = vector.broadcast %cst_16 : f32 to vector<128x128xf32>
      %20 = arith.cmpf oge, %18, %19 : vector<128x128xf32>
      %c0_17 = arith.constant 0 : index
      %c0_18 = arith.constant 0 : index
      %21 = vector.load %arg6[%c0_17, %c0_18] : memref<1x128xf32, #tpu.memory_space<vmem>>, vector<1x128xf32>
      %22 = vector.broadcast %21 : vector<1x128xf32> to vector<128x128xf32>
      %23 = arith.mulf %18, %22 : vector<128x128xf32>
      %24 = arith.select %20, %18, %23 : vector<128x128xi1>, vector<128x128xf32>
      %c0_19 = arith.constant 0 : index
      %c0_20 = arith.constant 0 : index
      %25 = vector.load %arg7[%c0_19, %c0_20] : memref<128x128xf32, #tpu.memory_space<vmem>>, vector<128x128xf32>
      %26 = arith.addf %24, %25 : vector<128x128xf32>
      %c0_21 = arith.constant 0 : index
      %c0_22 = arith.constant 0 : index
      %27 = vector.load %arg8[%c0_21, %c0_22] : memref<128x128xf32, #tpu.memory_space<vmem>>, vector<128x128xf32>
      tpu.vector_store %arg8[%c0_21, %c0_22], %26 {strides = array<i32>} : memref<128x128xf32, #tpu.memory_space<vmem>>, vector<128x128xf32>,
    } else {
    }
    return
  }
  func.func @transform_0(%arg0: i32, %arg1: i32) -> (i32, i32) {
    %c0_i32 = arith.constant 0 : i32
    return %arg0, %arg1 : i32, i32
  }
  func.func @transform_1(%arg0: i32, %arg1: i32) -> (i32, i32) {
    %c0_i32 = arith.constant 0 : i32
    %c0_i32_0 = arith.constant 0 : i32
    return %arg1, %c0_i32 : i32, i32
  }
  func.func @transform_2(%arg0: i32, %arg1: i32) -> (i32, i32) {
    %c0_i32 = arith.constant 0 : i32
    %c0_i32_0 = arith.constant 0 : i32
    %c0_i32_1 = arith.constant 0 : i32
    return %c0_i32, %c0_i32_0 : i32, i32
  }
  func.func @transform_3(%arg0: i32, %arg1: i32) -> (i32, i32) {
    %c0_i32 = arith.constant 0 : i32
    %c0_i32_0 = arith.constant 0 : i32
    %c0_i32_1 = arith.constant 0 : i32
    return %c0_i32, %c0_i32_0 : i32, i32
  }
  func.func @transform_4(%arg0: i32, %arg1: i32) -> (i32, i32) {
    %c0_i32 = arith.constant 0 : i32
    %c0_i32_0 = arith.constant 0 : i32
    %c0_i32_1 = arith.constant 0 : i32
    return %c0_i32, %c0_i32_0 : i32, i32
  }
  func.func @transform_5(%arg0: i32, %arg1: i32) -> (i32, i32) {
    %c0_i32 = arith.constant 0 : i32
    %c0_i32_0 = arith.constant 0 : i32
    return %arg0, %c0_i32 : i32, i32
  }
  func.func @transform_6(%arg0: i32, %arg1: i32) -> (i32, i32) {
    %c0_i32 = arith.constant 0 : i32
    %c0_i32_0 = arith.constant 0 : i32
    return %arg0, %c0_i32 : i32, i32
  }
}

module attributes {stable_mosaic.version = 11 : i64} {
  func.func @_mm_kernel(%arg0: i32, %arg1: i32, %arg2: memref<128x384xbf16, #tpu.memory_space<vmem>>, %arg3: memref<384x128xbf16, #tpu.memory_space<vmem>>, %arg4: memref<1x128xf32, #tpu.memory_space<vmem>>, %arg5: memref<1x128xf32, #tpu.memory_space<vmem>>, %arg6: memref<1x128xf32, #tpu.memory_space<vmem>>, %arg7: memref<128x128xf32, #tpu.memory_space<vmem>>, %arg8: memref<128x128xf32, #tpu.memory_space<vmem>>) attributes {dimension_semantics = [#tpu.dimension_semantics<parallel>, #tpu.dimension_semantics<arbitrary>], iteration_bounds = array<i64: 1, 1>, scalar_prefetch = 0 : i64, scratch_operands = 1 : i64, tpu.core_type = #tpu.core_type<tc>, window_params = [{transform_indices = @transform_0, window_bounds = array<i64: 128, 384>}, {transform_indices = @transform_1, window_bounds = array<i64: 384, 128>}, {pipeline_mode = #tpu.pipeline_mode<synchronous>, transform_indices = @transform_2, window_bounds = array<i64: 1, 128>}, {pipeline_mode = #tpu.pipeline_mode<synchronous>, transform_indices = @transform_3, window_bounds = array<i64: 1, 128>}, {pipeline_mode = #tpu.pipeline_mode<synchronous>, transform_indices = @transform_4, window_bounds = array<i64: 1, 128>}, {transform_indices = @transform_5, window_bounds = array<i64: 128, 128>}]} {
    %c0_i32 = arith.constant 0 : i32
    %0 = arith.cmpi eq, %arg1, %c0_i32 : i32
    %1 = arith.extui %0 : i1 to i32
    %c0_i32_0 = arith.constant 0 : i32
    %2 = arith.cmpi ne, %1, %c0_i32_0 : i32
    scf.if %2 {
      %cst_10 = arith.constant 0.000000e+00 : f32
      %12 = vector.broadcast %cst_10 : f32 to vector<128x128xf32>
      %c0_11 = arith.constant 0 : index
      %c0_12 = arith.constant 0 : index
      %13 = vector.load %arg8[%c0_11, %c0_12] : memref<128x128xf32, #tpu.memory_space<vmem>>, vector<128x128xf32>
      tpu.vector_store %arg8[%c0_11, %c0_12], %12 {strides = array<i32>} : memref<128x128xf32, #tpu.memory_space<vmem>>, vector<128x128xf32>,
    } else {
    }
    %c0 = arith.constant 0 : index
    %c0_1 = arith.constant 0 : index
    %3 = vector.load %arg8[%c0, %c0_1] : memref<128x128xf32, #tpu.memory_space<vmem>>, vector<128x128xf32>
    %c0_2 = arith.constant 0 : index
    %c0_3 = arith.constant 0 : index
    %4 = vector.load %arg2[%c0_2, %c0_3] : memref<128x384xbf16, #tpu.memory_space<vmem>>, vector<128x384xbf16>
    %c0_4 = arith.constant 0 : index
    %c0_5 = arith.constant 0 : index
    %5 = vector.load %arg3[%c0_4, %c0_5] : memref<384x128xbf16, #tpu.memory_space<vmem>>, vector<384x128xbf16>
    %cst = arith.constant dense<0.000000e+00> : vector<128x128xf32>
    %6 = tpu.matmul %4, %5, %cst {dimension_numbers = #tpu.dot_dimension_numbers<[1], [0], [0], [1], [0, 0, 1, 1], [], []>} : vector<128x384xbf16>, vector<384x128xbf16>, vector<128x128xf32> -> vector<128x128xf32>
    %7 = arith.addf %3, %6 : vector<128x128xf32>
    %c0_6 = arith.constant 0 : index
    %c0_7 = arith.constant 0 : index
    %8 = vector.load %arg8[%c0_6, %c0_7] : memref<128x128xf32, #tpu.memory_space<vmem>>, vector<128x128xf32>
    tpu.vector_store %arg8[%c0_6, %c0_7], %7 {strides = array<i32>} : memref<128x128xf32, #tpu.memory_space<vmem>>, vector<128x128xf32>,
    %c0_i32_8 = arith.constant 0 : i32
    %9 = arith.cmpi eq, %arg1, %c0_i32_8 : i32
    %10 = arith.extui %9 : i1 to i32
    %c0_i32_9 = arith.constant 0 : i32
    %11 = arith.cmpi ne, %10, %c0_i32_9 : i32
    scf.if %11 {
      %c0_10 = arith.constant 0 : index
      %c0_11 = arith.constant 0 : index
      %12 = vector.load %arg8[%c0_10, %c0_11] : memref<128x128xf32, #tpu.memory_space<vmem>>, vector<128x128xf32>
      %c0_12 = arith.constant 0 : index
      %c0_13 = arith.constant 0 : index
      %13 = vector.load %arg4[%c0_12, %c0_13] : memref<1x128xf32, #tpu.memory_space<vmem>>, vector<1x128xf32>
      %14 = vector.broadcast %13 : vector<1x128xf32> to vector<128x128xf32>
      %15 = arith.mulf %12, %14 : vector<128x128xf32>
      %c0_14 = arith.constant 0 : index
      %c0_15 = arith.constant 0 : index
      %16 = vector.load %arg5[%c0_14, %c0_15] : memref<1x128xf32, #tpu.memory_space<vmem>>, vector<1x128xf32>
      %17 = vector.broadcast %16 : vector<1x128xf32> to vector<128x128xf32>
      %18 = arith.addf %15, %17 : vector<128x128xf32>
      %cst_16 = arith.constant 0.000000e+00 : f32
      %19 = vector.broadcast %cst_16 : f32 to vector<128x128xf32>
      %20 = arith.cmpf oge, %18, %19 : vector<128x128xf32>
      %c0_17 = arith.constant 0 : index
      %c0_18 = arith.constant 0 : index
      %21 = vector.load %arg6[%c0_17, %c0_18] : memref<1x128xf32, #tpu.memory_space<vmem>>, vector<1x128xf32>
      %22 = vector.broadcast %21 : vector<1x128xf32> to vector<128x128xf32>
      %23 = arith.mulf %18, %22 : vector<128x128xf32>
      %24 = arith.select %20, %18, %23 : vector<128x128xi1>, vector<128x128xf32>
      %c0_19 = arith.constant 0 : index
      %c0_20 = arith.constant 0 : index
      %25 = vector.load %arg7[%c0_19, %c0_20] : memref<128x128xf32, #tpu.memory_space<vmem>>, vector<128x128xf32>
      tpu.vector_store %arg7[%c0_19, %c0_20], %24 {strides = array<i32>} : memref<128x128xf32, #tpu.memory_space<vmem>>, vector<128x128xf32>,
    } else {
    }
    return
  }
  func.func @transform_0(%arg0: i32, %arg1: i32) -> (i32, i32) {
    %c0_i32 = arith.constant 0 : i32
    return %arg0, %arg1 : i32, i32
  }
  func.func @transform_1(%arg0: i32, %arg1: i32) -> (i32, i32) {
    %c0_i32 = arith.constant 0 : i32
    %c0_i32_0 = arith.constant 0 : i32
    return %arg1, %c0_i32 : i32, i32
  }
  func.func @transform_2(%arg0: i32, %arg1: i32) -> (i32, i32) {
    %c0_i32 = arith.constant 0 : i32
    %c0_i32_0 = arith.constant 0 : i32
    %c0_i32_1 = arith.constant 0 : i32
    return %c0_i32, %c0_i32_0 : i32, i32
  }
  func.func @transform_3(%arg0: i32, %arg1: i32) -> (i32, i32) {
    %c0_i32 = arith.constant 0 : i32
    %c0_i32_0 = arith.constant 0 : i32
    %c0_i32_1 = arith.constant 0 : i32
    return %c0_i32, %c0_i32_0 : i32, i32
  }
  func.func @transform_4(%arg0: i32, %arg1: i32) -> (i32, i32) {
    %c0_i32 = arith.constant 0 : i32
    %c0_i32_0 = arith.constant 0 : i32
    %c0_i32_1 = arith.constant 0 : i32
    return %c0_i32, %c0_i32_0 : i32, i32
  }
  func.func @transform_5(%arg0: i32, %arg1: i32) -> (i32, i32) {
    %c0_i32 = arith.constant 0 : i32
    %c0_i32_0 = arith.constant 0 : i32
    return %arg0, %c0_i32 : i32, i32
  }
}

module attributes {stable_mosaic.version = 11 : i64} {
  func.func @_mm_kernel(%arg0: i32, %arg1: i32, %arg2: memref<32x128xbf16, #tpu.memory_space<vmem>>, %arg3: memref<128x128xbf16, #tpu.memory_space<vmem>>, %arg4: memref<1x128xf32, #tpu.memory_space<vmem>>, %arg5: memref<1x128xf32, #tpu.memory_space<vmem>>, %arg6: memref<1x128xf32, #tpu.memory_space<vmem>>, %arg7: memref<32x128xf32, #tpu.memory_space<vmem>>, %arg8: memref<32x128xf32, #tpu.memory_space<vmem>>) attributes {dimension_semantics = [#tpu.dimension_semantics<parallel>, #tpu.dimension_semantics<arbitrary>], iteration_bounds = array<i64: 1, 1>, scalar_prefetch = 0 : i64, scratch_operands = 1 : i64, tpu.core_type = #tpu.core_type<tc>, window_params = [{transform_indices = @transform_0, window_bounds = array<i64: 32, 128>}, {transform_indices = @transform_1, window_bounds = array<i64: 128, 128>}, {pipeline_mode = #tpu.pipeline_mode<synchronous>, transform_indices = @transform_2, window_bounds = array<i64: 1, 128>}, {pipeline_mode = #tpu.pipeline_mode<synchronous>, transform_indices = @transform_3, window_bounds = array<i64: 1, 128>}, {pipeline_mode = #tpu.pipeline_mode<synchronous>, transform_indices = @transform_4, window_bounds = array<i64: 1, 128>}, {transform_indices = @transform_5, window_bounds = array<i64: 32, 128>}]} {
    %c0_i32 = arith.constant 0 : i32
    %0 = arith.cmpi eq, %arg1, %c0_i32 : i32
    %1 = arith.extui %0 : i1 to i32
    %c0_i32_0 = arith.constant 0 : i32
    %2 = arith.cmpi ne, %1, %c0_i32_0 : i32
    scf.if %2 {
      %cst_10 = arith.constant 0.000000e+00 : f32
      %12 = vector.broadcast %cst_10 : f32 to vector<32x128xf32>
      %c0_11 = arith.constant 0 : index
      %c0_12 = arith.constant 0 : index
      %13 = vector.load %arg8[%c0_11, %c0_12] : memref<32x128xf32, #tpu.memory_space<vmem>>, vector<32x128xf32>
      tpu.vector_store %arg8[%c0_11, %c0_12], %12 {strides = array<i32>} : memref<32x128xf32, #tpu.memory_space<vmem>>, vector<32x128xf32>,
    } else {
    }
    %c0 = arith.constant 0 : index
    %c0_1 = arith.constant 0 : index
    %3 = vector.load %arg8[%c0, %c0_1] : memref<32x128xf32, #tpu.memory_space<vmem>>, vector<32x128xf32>
    %c0_2 = arith.constant 0 : index
    %c0_3 = arith.constant 0 : index
    %4 = vector.load %arg2[%c0_2, %c0_3] : memref<32x128xbf16, #tpu.memory_space<vmem>>, vector<32x128xbf16>
    %c0_4 = arith.constant 0 : index
    %c0_5 = arith.constant 0 : index
    %5 = vector.load %arg3[%c0_4, %c0_5] : memref<128x128xbf16, #tpu.memory_space<vmem>>, vector<128x128xbf16>
    %cst = arith.constant dense<0.000000e+00> : vector<32x128xf32>
    %6 = tpu.matmul %4, %5, %cst {dimension_numbers = #tpu.dot_dimension_numbers<[1], [0], [0], [1], [0, 0, 1, 1], [], []>} : vector<32x128xbf16>, vector<128x128xbf16>, vector<32x128xf32> -> vector<32x128xf32>
    %7 = arith.addf %3, %6 : vector<32x128xf32>
    %c0_6 = arith.constant 0 : index
    %c0_7 = arith.constant 0 : index
    %8 = vector.load %arg8[%c0_6, %c0_7] : memref<32x128xf32, #tpu.memory_space<vmem>>, vector<32x128xf32>
    tpu.vector_store %arg8[%c0_6, %c0_7], %7 {strides = array<i32>} : memref<32x128xf32, #tpu.memory_space<vmem>>, vector<32x128xf32>,
    %c0_i32_8 = arith.constant 0 : i32
    %9 = arith.cmpi eq, %arg1, %c0_i32_8 : i32
    %10 = arith.extui %9 : i1 to i32
    %c0_i32_9 = arith.constant 0 : i32
    %11 = arith.cmpi ne, %10, %c0_i32_9 : i32
    scf.if %11 {
      %c0_10 = arith.constant 0 : index
      %c0_11 = arith.constant 0 : index
      %12 = vector.load %arg8[%c0_10, %c0_11] : memref<32x128xf32, #tpu.memory_space<vmem>>, vector<32x128xf32>
      %c0_12 = arith.constant 0 : index
      %c0_13 = arith.constant 0 : index
      %13 = vector.load %arg4[%c0_12, %c0_13] : memref<1x128xf32, #tpu.memory_space<vmem>>, vector<1x128xf32>
      %14 = vector.broadcast %13 : vector<1x128xf32> to vector<32x128xf32>
      %15 = arith.mulf %12, %14 : vector<32x128xf32>
      %c0_14 = arith.constant 0 : index
      %c0_15 = arith.constant 0 : index
      %16 = vector.load %arg5[%c0_14, %c0_15] : memref<1x128xf32, #tpu.memory_space<vmem>>, vector<1x128xf32>
      %17 = vector.broadcast %16 : vector<1x128xf32> to vector<32x128xf32>
      %18 = arith.addf %15, %17 : vector<32x128xf32>
      %cst_16 = arith.constant 0.000000e+00 : f32
      %19 = vector.broadcast %cst_16 : f32 to vector<32x128xf32>
      %20 = arith.cmpf oge, %18, %19 : vector<32x128xf32>
      %c0_17 = arith.constant 0 : index
      %c0_18 = arith.constant 0 : index
      %21 = vector.load %arg6[%c0_17, %c0_18] : memref<1x128xf32, #tpu.memory_space<vmem>>, vector<1x128xf32>
      %22 = vector.broadcast %21 : vector<1x128xf32> to vector<32x128xf32>
      %23 = arith.mulf %18, %22 : vector<32x128xf32>
      %24 = arith.select %20, %18, %23 : vector<32x128xi1>, vector<32x128xf32>
      %c0_19 = arith.constant 0 : index
      %c0_20 = arith.constant 0 : index
      %25 = vector.load %arg7[%c0_19, %c0_20] : memref<32x128xf32, #tpu.memory_space<vmem>>, vector<32x128xf32>
      tpu.vector_store %arg7[%c0_19, %c0_20], %24 {strides = array<i32>} : memref<32x128xf32, #tpu.memory_space<vmem>>, vector<32x128xf32>,
    } else {
    }
    return
  }
  func.func @transform_0(%arg0: i32, %arg1: i32) -> (i32, i32) {
    %c0_i32 = arith.constant 0 : i32
    return %arg0, %arg1 : i32, i32
  }
  func.func @transform_1(%arg0: i32, %arg1: i32) -> (i32, i32) {
    %c0_i32 = arith.constant 0 : i32
    %c0_i32_0 = arith.constant 0 : i32
    return %arg1, %c0_i32 : i32, i32
  }
  func.func @transform_2(%arg0: i32, %arg1: i32) -> (i32, i32) {
    %c0_i32 = arith.constant 0 : i32
    %c0_i32_0 = arith.constant 0 : i32
    %c0_i32_1 = arith.constant 0 : i32
    return %c0_i32, %c0_i32_0 : i32, i32
  }
  func.func @transform_3(%arg0: i32, %arg1: i32) -> (i32, i32) {
    %c0_i32 = arith.constant 0 : i32
    %c0_i32_0 = arith.constant 0 : i32
    %c0_i32_1 = arith.constant 0 : i32
    return %c0_i32, %c0_i32_0 : i32, i32
  }
  func.func @transform_4(%arg0: i32, %arg1: i32) -> (i32, i32) {
    %c0_i32 = arith.constant 0 : i32
    %c0_i32_0 = arith.constant 0 : i32
    %c0_i32_1 = arith.constant 0 : i32
    return %c0_i32, %c0_i32_0 : i32, i32
  }
  func.func @transform_5(%arg0: i32, %arg1: i32) -> (i32, i32) {
    %c0_i32 = arith.constant 0 : i32
    %c0_i32_0 = arith.constant 0 : i32
    return %arg0, %c0_i32 : i32, i32
  }
}

module attributes {stable_mosaic.version = 11 : i64} {
  func.func @_mm_res_kernel(%arg0: i32, %arg1: i32, %arg2: memref<32x640xbf16, #tpu.memory_space<vmem>>, %arg3: memref<640x128xbf16, #tpu.memory_space<vmem>>, %arg4: memref<1x128xf32, #tpu.memory_space<vmem>>, %arg5: memref<1x128xf32, #tpu.memory_space<vmem>>, %arg6: memref<1x128xf32, #tpu.memory_space<vmem>>, %arg7: memref<32x128xf32, #tpu.memory_space<vmem>>, %arg8: memref<32x128xf32, #tpu.memory_space<vmem>>, %arg9: memref<32x128xf32, #tpu.memory_space<vmem>>) attributes {dimension_semantics = [#tpu.dimension_semantics<parallel>, #tpu.dimension_semantics<arbitrary>], iteration_bounds = array<i64: 1, 1>, scalar_prefetch = 0 : i64, scratch_operands = 1 : i64, tpu.core_type = #tpu.core_type<tc>, window_params = [{transform_indices = @transform_0, window_bounds = array<i64: 32, 640>}, {transform_indices = @transform_1, window_bounds = array<i64: 640, 128>}, {pipeline_mode = #tpu.pipeline_mode<synchronous>, transform_indices = @transform_2, window_bounds = array<i64: 1, 128>}, {pipeline_mode = #tpu.pipeline_mode<synchronous>, transform_indices = @transform_3, window_bounds = array<i64: 1, 128>}, {pipeline_mode = #tpu.pipeline_mode<synchronous>, transform_indices = @transform_4, window_bounds = array<i64: 1, 128>}, {transform_indices = @transform_5, window_bounds = array<i64: 32, 128>}, {transform_indices = @transform_6, window_bounds = array<i64: 32, 128>}]} {
    %c0_i32 = arith.constant 0 : i32
    %0 = arith.cmpi eq, %arg1, %c0_i32 : i32
    %1 = arith.extui %0 : i1 to i32
    %c0_i32_0 = arith.constant 0 : i32
    %2 = arith.cmpi ne, %1, %c0_i32_0 : i32
    scf.if %2 {
      %cst_10 = arith.constant 0.000000e+00 : f32
      %12 = vector.broadcast %cst_10 : f32 to vector<32x128xf32>
      %c0_11 = arith.constant 0 : index
      %c0_12 = arith.constant 0 : index
      %13 = vector.load %arg9[%c0_11, %c0_12] : memref<32x128xf32, #tpu.memory_space<vmem>>, vector<32x128xf32>
      tpu.vector_store %arg9[%c0_11, %c0_12], %12 {strides = array<i32>} : memref<32x128xf32, #tpu.memory_space<vmem>>, vector<32x128xf32>,
    } else {
    }
    %c0 = arith.constant 0 : index
    %c0_1 = arith.constant 0 : index
    %3 = vector.load %arg9[%c0, %c0_1] : memref<32x128xf32, #tpu.memory_space<vmem>>, vector<32x128xf32>
    %c0_2 = arith.constant 0 : index
    %c0_3 = arith.constant 0 : index
    %4 = vector.load %arg2[%c0_2, %c0_3] : memref<32x640xbf16, #tpu.memory_space<vmem>>, vector<32x640xbf16>
    %c0_4 = arith.constant 0 : index
    %c0_5 = arith.constant 0 : index
    %5 = vector.load %arg3[%c0_4, %c0_5] : memref<640x128xbf16, #tpu.memory_space<vmem>>, vector<640x128xbf16>
    %cst = arith.constant dense<0.000000e+00> : vector<32x128xf32>
    %6 = tpu.matmul %4, %5, %cst {dimension_numbers = #tpu.dot_dimension_numbers<[1], [0], [0], [1], [0, 0, 1, 1], [], []>} : vector<32x640xbf16>, vector<640x128xbf16>, vector<32x128xf32> -> vector<32x128xf32>
    %7 = arith.addf %3, %6 : vector<32x128xf32>
    %c0_6 = arith.constant 0 : index
    %c0_7 = arith.constant 0 : index
    %8 = vector.load %arg9[%c0_6, %c0_7] : memref<32x128xf32, #tpu.memory_space<vmem>>, vector<32x128xf32>
    tpu.vector_store %arg9[%c0_6, %c0_7], %7 {strides = array<i32>} : memref<32x128xf32, #tpu.memory_space<vmem>>, vector<32x128xf32>,
    %c0_i32_8 = arith.constant 0 : i32
    %9 = arith.cmpi eq, %arg1, %c0_i32_8 : i32
    %10 = arith.extui %9 : i1 to i32
    %c0_i32_9 = arith.constant 0 : i32
    %11 = arith.cmpi ne, %10, %c0_i32_9 : i32
    scf.if %11 {
      %c0_10 = arith.constant 0 : index
      %c0_11 = arith.constant 0 : index
      %12 = vector.load %arg9[%c0_10, %c0_11] : memref<32x128xf32, #tpu.memory_space<vmem>>, vector<32x128xf32>
      %c0_12 = arith.constant 0 : index
      %c0_13 = arith.constant 0 : index
      %13 = vector.load %arg4[%c0_12, %c0_13] : memref<1x128xf32, #tpu.memory_space<vmem>>, vector<1x128xf32>
      %14 = vector.broadcast %13 : vector<1x128xf32> to vector<32x128xf32>
      %15 = arith.mulf %12, %14 : vector<32x128xf32>
      %c0_14 = arith.constant 0 : index
      %c0_15 = arith.constant 0 : index
      %16 = vector.load %arg5[%c0_14, %c0_15] : memref<1x128xf32, #tpu.memory_space<vmem>>, vector<1x128xf32>
      %17 = vector.broadcast %16 : vector<1x128xf32> to vector<32x128xf32>
      %18 = arith.addf %15, %17 : vector<32x128xf32>
      %cst_16 = arith.constant 0.000000e+00 : f32
      %19 = vector.broadcast %cst_16 : f32 to vector<32x128xf32>
      %20 = arith.cmpf oge, %18, %19 : vector<32x128xf32>
      %c0_17 = arith.constant 0 : index
      %c0_18 = arith.constant 0 : index
      %21 = vector.load %arg6[%c0_17, %c0_18] : memref<1x128xf32, #tpu.memory_space<vmem>>, vector<1x128xf32>
      %22 = vector.broadcast %21 : vector<1x128xf32> to vector<32x128xf32>
      %23 = arith.mulf %18, %22 : vector<32x128xf32>
      %24 = arith.select %20, %18, %23 : vector<32x128xi1>, vector<32x128xf32>
      %c0_19 = arith.constant 0 : index
      %c0_20 = arith.constant 0 : index
      %25 = vector.load %arg7[%c0_19, %c0_20] : memref<32x128xf32, #tpu.memory_space<vmem>>, vector<32x128xf32>
      %26 = arith.addf %24, %25 : vector<32x128xf32>
      %c0_21 = arith.constant 0 : index
      %c0_22 = arith.constant 0 : index
      %27 = vector.load %arg8[%c0_21, %c0_22] : memref<32x128xf32, #tpu.memory_space<vmem>>, vector<32x128xf32>
      tpu.vector_store %arg8[%c0_21, %c0_22], %26 {strides = array<i32>} : memref<32x128xf32, #tpu.memory_space<vmem>>, vector<32x128xf32>,
    } else {
    }
    return
  }
  func.func @transform_0(%arg0: i32, %arg1: i32) -> (i32, i32) {
    %c0_i32 = arith.constant 0 : i32
    return %arg0, %arg1 : i32, i32
  }
  func.func @transform_1(%arg0: i32, %arg1: i32) -> (i32, i32) {
    %c0_i32 = arith.constant 0 : i32
    %c0_i32_0 = arith.constant 0 : i32
    return %arg1, %c0_i32 : i32, i32
  }
  func.func @transform_2(%arg0: i32, %arg1: i32) -> (i32, i32) {
    %c0_i32 = arith.constant 0 : i32
    %c0_i32_0 = arith.constant 0 : i32
    %c0_i32_1 = arith.constant 0 : i32
    return %c0_i32, %c0_i32_0 : i32, i32
  }
  func.func @transform_3(%arg0: i32, %arg1: i32) -> (i32, i32) {
    %c0_i32 = arith.constant 0 : i32
    %c0_i32_0 = arith.constant 0 : i32
    %c0_i32_1 = arith.constant 0 : i32
    return %c0_i32, %c0_i32_0 : i32, i32
  }
  func.func @transform_4(%arg0: i32, %arg1: i32) -> (i32, i32) {
    %c0_i32 = arith.constant 0 : i32
    %c0_i32_0 = arith.constant 0 : i32
    %c0_i32_1 = arith.constant 0 : i32
    return %c0_i32, %c0_i32_0 : i32, i32
  }
  func.func @transform_5(%arg0: i32, %arg1: i32) -> (i32, i32) {
    %c0_i32 = arith.constant 0 : i32
    %c0_i32_0 = arith.constant 0 : i32
    return %arg0, %c0_i32 : i32, i32
  }
  func.func @transform_6(%arg0: i32, %arg1: i32) -> (i32, i32) {
    %c0_i32 = arith.constant 0 : i32
    %c0_i32_0 = arith.constant 0 : i32
    return %arg0, %c0_i32 : i32, i32
  }
}

module attributes {stable_mosaic.version = 11 : i64} {
  func.func @_mm_kernel(%arg0: i32, %arg1: i32, %arg2: memref<32x640xbf16, #tpu.memory_space<vmem>>, %arg3: memref<640x128xbf16, #tpu.memory_space<vmem>>, %arg4: memref<1x128xf32, #tpu.memory_space<vmem>>, %arg5: memref<1x128xf32, #tpu.memory_space<vmem>>, %arg6: memref<1x128xf32, #tpu.memory_space<vmem>>, %arg7: memref<32x128xf32, #tpu.memory_space<vmem>>, %arg8: memref<32x128xf32, #tpu.memory_space<vmem>>) attributes {dimension_semantics = [#tpu.dimension_semantics<parallel>, #tpu.dimension_semantics<arbitrary>], iteration_bounds = array<i64: 1, 1>, scalar_prefetch = 0 : i64, scratch_operands = 1 : i64, tpu.core_type = #tpu.core_type<tc>, window_params = [{transform_indices = @transform_0, window_bounds = array<i64: 32, 640>}, {transform_indices = @transform_1, window_bounds = array<i64: 640, 128>}, {pipeline_mode = #tpu.pipeline_mode<synchronous>, transform_indices = @transform_2, window_bounds = array<i64: 1, 128>}, {pipeline_mode = #tpu.pipeline_mode<synchronous>, transform_indices = @transform_3, window_bounds = array<i64: 1, 128>}, {pipeline_mode = #tpu.pipeline_mode<synchronous>, transform_indices = @transform_4, window_bounds = array<i64: 1, 128>}, {transform_indices = @transform_5, window_bounds = array<i64: 32, 128>}]} {
    %c0_i32 = arith.constant 0 : i32
    %0 = arith.cmpi eq, %arg1, %c0_i32 : i32
    %1 = arith.extui %0 : i1 to i32
    %c0_i32_0 = arith.constant 0 : i32
    %2 = arith.cmpi ne, %1, %c0_i32_0 : i32
    scf.if %2 {
      %cst_10 = arith.constant 0.000000e+00 : f32
      %12 = vector.broadcast %cst_10 : f32 to vector<32x128xf32>
      %c0_11 = arith.constant 0 : index
      %c0_12 = arith.constant 0 : index
      %13 = vector.load %arg8[%c0_11, %c0_12] : memref<32x128xf32, #tpu.memory_space<vmem>>, vector<32x128xf32>
      tpu.vector_store %arg8[%c0_11, %c0_12], %12 {strides = array<i32>} : memref<32x128xf32, #tpu.memory_space<vmem>>, vector<32x128xf32>,
    } else {
    }
    %c0 = arith.constant 0 : index
    %c0_1 = arith.constant 0 : index
    %3 = vector.load %arg8[%c0, %c0_1] : memref<32x128xf32, #tpu.memory_space<vmem>>, vector<32x128xf32>
    %c0_2 = arith.constant 0 : index
    %c0_3 = arith.constant 0 : index
    %4 = vector.load %arg2[%c0_2, %c0_3] : memref<32x640xbf16, #tpu.memory_space<vmem>>, vector<32x640xbf16>
    %c0_4 = arith.constant 0 : index
    %c0_5 = arith.constant 0 : index
    %5 = vector.load %arg3[%c0_4, %c0_5] : memref<640x128xbf16, #tpu.memory_space<vmem>>, vector<640x128xbf16>
    %cst = arith.constant dense<0.000000e+00> : vector<32x128xf32>
    %6 = tpu.matmul %4, %5, %cst {dimension_numbers = #tpu.dot_dimension_numbers<[1], [0], [0], [1], [0, 0, 1, 1], [], []>} : vector<32x640xbf16>, vector<640x128xbf16>, vector<32x128xf32> -> vector<32x128xf32>
    %7 = arith.addf %3, %6 : vector<32x128xf32>
    %c0_6 = arith.constant 0 : index
    %c0_7 = arith.constant 0 : index
    %8 = vector.load %arg8[%c0_6, %c0_7] : memref<32x128xf32, #tpu.memory_space<vmem>>, vector<32x128xf32>
    tpu.vector_store %arg8[%c0_6, %c0_7], %7 {strides = array<i32>} : memref<32x128xf32, #tpu.memory_space<vmem>>, vector<32x128xf32>,
    %c0_i32_8 = arith.constant 0 : i32
    %9 = arith.cmpi eq, %arg1, %c0_i32_8 : i32
    %10 = arith.extui %9 : i1 to i32
    %c0_i32_9 = arith.constant 0 : i32
    %11 = arith.cmpi ne, %10, %c0_i32_9 : i32
    scf.if %11 {
      %c0_10 = arith.constant 0 : index
      %c0_11 = arith.constant 0 : index
      %12 = vector.load %arg8[%c0_10, %c0_11] : memref<32x128xf32, #tpu.memory_space<vmem>>, vector<32x128xf32>
      %c0_12 = arith.constant 0 : index
      %c0_13 = arith.constant 0 : index
      %13 = vector.load %arg4[%c0_12, %c0_13] : memref<1x128xf32, #tpu.memory_space<vmem>>, vector<1x128xf32>
      %14 = vector.broadcast %13 : vector<1x128xf32> to vector<32x128xf32>
      %15 = arith.mulf %12, %14 : vector<32x128xf32>
      %c0_14 = arith.constant 0 : index
      %c0_15 = arith.constant 0 : index
      %16 = vector.load %arg5[%c0_14, %c0_15] : memref<1x128xf32, #tpu.memory_space<vmem>>, vector<1x128xf32>
      %17 = vector.broadcast %16 : vector<1x128xf32> to vector<32x128xf32>
      %18 = arith.addf %15, %17 : vector<32x128xf32>
      %cst_16 = arith.constant 0.000000e+00 : f32
      %19 = vector.broadcast %cst_16 : f32 to vector<32x128xf32>
      %20 = arith.cmpf oge, %18, %19 : vector<32x128xf32>
      %c0_17 = arith.constant 0 : index
      %c0_18 = arith.constant 0 : index
      %21 = vector.load %arg6[%c0_17, %c0_18] : memref<1x128xf32, #tpu.memory_space<vmem>>, vector<1x128xf32>
      %22 = vector.broadcast %21 : vector<1x128xf32> to vector<32x128xf32>
      %23 = arith.mulf %18, %22 : vector<32x128xf32>
      %24 = arith.select %20, %18, %23 : vector<32x128xi1>, vector<32x128xf32>
      %c0_19 = arith.constant 0 : index
      %c0_20 = arith.constant 0 : index
      %25 = vector.load %arg7[%c0_19, %c0_20] : memref<32x128xf32, #tpu.memory_space<vmem>>, vector<32x128xf32>
      tpu.vector_store %arg7[%c0_19, %c0_20], %24 {strides = array<i32>} : memref<32x128xf32, #tpu.memory_space<vmem>>, vector<32x128xf32>,
    } else {
    }
    return
  }
  func.func @transform_0(%arg0: i32, %arg1: i32) -> (i32, i32) {
    %c0_i32 = arith.constant 0 : i32
    return %arg0, %arg1 : i32, i32
  }
  func.func @transform_1(%arg0: i32, %arg1: i32) -> (i32, i32) {
    %c0_i32 = arith.constant 0 : i32
    %c0_i32_0 = arith.constant 0 : i32
    return %arg1, %c0_i32 : i32, i32
  }
  func.func @transform_2(%arg0: i32, %arg1: i32) -> (i32, i32) {
    %c0_i32 = arith.constant 0 : i32
    %c0_i32_0 = arith.constant 0 : i32
    %c0_i32_1 = arith.constant 0 : i32
    return %c0_i32, %c0_i32_0 : i32, i32
  }
  func.func @transform_3(%arg0: i32, %arg1: i32) -> (i32, i32) {
    %c0_i32 = arith.constant 0 : i32
    %c0_i32_0 = arith.constant 0 : i32
    %c0_i32_1 = arith.constant 0 : i32
    return %c0_i32, %c0_i32_0 : i32, i32
  }
  func.func @transform_4(%arg0: i32, %arg1: i32) -> (i32, i32) {
    %c0_i32 = arith.constant 0 : i32
    %c0_i32_0 = arith.constant 0 : i32
    %c0_i32_1 = arith.constant 0 : i32
    return %c0_i32, %c0_i32_0 : i32, i32
  }
  func.func @transform_5(%arg0: i32, %arg1: i32) -> (i32, i32) {
    %c0_i32 = arith.constant 0 : i32
    %c0_i32_0 = arith.constant 0 : i32
    return %arg0, %c0_i32 : i32, i32
  }
}

module attributes {stable_mosaic.version = 11 : i64} {
  func.func @_upsample_add_kernel(%arg0: i32, %arg1: memref<16xi32, #tpu.memory_space<smem>>, %arg2: memref<16xi32, #tpu.memory_space<smem>>, %arg3: memref<1x4x64xf32, #tpu.memory_space<vmem>>, %arg4: memref<1x4x64xf32, #tpu.memory_space<vmem>>, %arg5: memref<8x4xf32, #tpu.memory_space<vmem>>, %arg6: memref<16xf32, #tpu.memory_space<smem>>, %arg7: memref<1x8x64xf32, #tpu.memory_space<vmem>>, %arg8: memref<1x8x64xf32, #tpu.memory_space<vmem>>) attributes {dimension_semantics = [#tpu.dimension_semantics<arbitrary>], iteration_bounds = array<i64: 16>, scalar_prefetch = 2 : i64, scratch_operands = 0 : i64, tpu.core_type = #tpu.core_type<tc>, window_params = [{transform_indices = @transform_0, window_bounds = array<i64: 1, 4, 64>}, {transform_indices = @transform_1, window_bounds = array<i64: 1, 4, 64>}, {pipeline_mode = #tpu.pipeline_mode<synchronous>, transform_indices = @transform_2, window_bounds = array<i64: 8, 4>}, {transform_indices = @transform_3, window_bounds = array<i64: 16>}, {transform_indices = @transform_4, window_bounds = array<i64: 1, 8, 64>}, {transform_indices = @transform_5, window_bounds = array<i64: 1, 8, 64>}]} {
    %0 = arith.index_cast %arg0 : i32 to index
    %1 = memref.load %arg6[%0] : memref<16xf32, #tpu.memory_space<smem>>
    %c0 = arith.constant 0 : index
    %c0_0 = arith.constant 0 : index
    %c0_1 = arith.constant 0 : index
    %2 = vector.load %arg3[%c0, %c0_0, %c0_1] : memref<1x4x64xf32, #tpu.memory_space<vmem>>, vector<1x4x64xf32>
    %3 = vector.shape_cast %2 : vector<1x4x64xf32> to vector<4x64xf32>
    %c0_2 = arith.constant 0 : index
    %c0_3 = arith.constant 0 : index
    %c0_4 = arith.constant 0 : index
    %4 = vector.load %arg4[%c0_2, %c0_3, %c0_4] : memref<1x4x64xf32, #tpu.memory_space<vmem>>, vector<1x4x64xf32>
    %5 = vector.shape_cast %4 : vector<1x4x64xf32> to vector<4x64xf32>
    %c0_5 = arith.constant 0 : index
    %c0_6 = arith.constant 0 : index
    %c0_7 = arith.constant 0 : index
    %6 = vector.load %arg3[%c0_5, %c0_6, %c0_7] : memref<1x4x64xf32, #tpu.memory_space<vmem>>, vector<1x4x64xf32>
    %7 = vector.shape_cast %6 : vector<1x4x64xf32> to vector<4x64xf32>
    %8 = arith.subf %5, %7 : vector<4x64xf32>
    %9 = vector.broadcast %1 : f32 to vector<4x64xf32>
    %10 = arith.mulf %8, %9 : vector<4x64xf32>
    %11 = arith.addf %3, %10 : vector<4x64xf32>
    %c0_8 = arith.constant 0 : index
    %c0_9 = arith.constant 0 : index
    %12 = vector.load %arg5[%c0_8, %c0_9] : memref<8x4xf32, #tpu.memory_space<vmem>>, vector<8x4xf32>
    %cst = arith.constant dense<0.000000e+00> : vector<8x64xf32>
    %13 = tpu.matmul %12, %11, %cst {dimension_numbers = #tpu.dot_dimension_numbers<[1], [0], [0], [1], [0, 0, 1, 1], [], []>} : vector<8x4xf32>, vector<4x64xf32>, vector<8x64xf32> -> vector<8x64xf32>
    %c0_10 = arith.constant 0 : index
    %c0_11 = arith.constant 0 : index
    %c0_12 = arith.constant 0 : index
    %14 = vector.load %arg7[%c0_10, %c0_11, %c0_12] : memref<1x8x64xf32, #tpu.memory_space<vmem>>, vector<1x8x64xf32>
    %15 = vector.shape_cast %14 : vector<1x8x64xf32> to vector<8x64xf32>
    %16 = arith.addf %13, %15 : vector<8x64xf32>
    %c0_13 = arith.constant 0 : index
    %c0_14 = arith.constant 0 : index
    %c0_15 = arith.constant 0 : index
    %17 = vector.load %arg8[%c0_13, %c0_14, %c0_15] : memref<1x8x64xf32, #tpu.memory_space<vmem>>, vector<1x8x64xf32>
    %18 = vector.shape_cast %17 : vector<1x8x64xf32> to vector<8x64xf32>
    %19 = vector.shape_cast %16 : vector<8x64xf32> to vector<1x8x64xf32>
    tpu.vector_store %arg8[%c0_13, %c0_14, %c0_15], %19 {strides = array<i32>} : memref<1x8x64xf32, #tpu.memory_space<vmem>>, vector<1x8x64xf32>,
    return
  }
  func.func @transform_0(%arg0: i32, %arg1: memref<16xi32, #tpu.memory_space<smem>>, %arg2: memref<16xi32, #tpu.memory_space<smem>>) -> (i32, i32, i32) {
    %0 = arith.index_cast %arg0 : i32 to index
    %1 = memref.load %arg1[%0] : memref<16xi32, #tpu.memory_space<smem>>
    %c0_i32 = arith.constant 0 : i32
    %c0_i32_0 = arith.constant 0 : i32
    %c0_i32_1 = arith.constant 0 : i32
    return %1, %c0_i32, %c0_i32_0 : i32, i32, i32
  }
  func.func @transform_1(%arg0: i32, %arg1: memref<16xi32, #tpu.memory_space<smem>>, %arg2: memref<16xi32, #tpu.memory_space<smem>>) -> (i32, i32, i32) {
    %0 = arith.index_cast %arg0 : i32 to index
    %1 = memref.load %arg2[%0] : memref<16xi32, #tpu.memory_space<smem>>
    %c0_i32 = arith.constant 0 : i32
    %c0_i32_0 = arith.constant 0 : i32
    %c0_i32_1 = arith.constant 0 : i32
    return %1, %c0_i32, %c0_i32_0 : i32, i32, i32
  }
  func.func @transform_2(%arg0: i32, %arg1: memref<16xi32, #tpu.memory_space<smem>>, %arg2: memref<16xi32, #tpu.memory_space<smem>>) -> (i32, i32) {
    %c0_i32 = arith.constant 0 : i32
    %c0_i32_0 = arith.constant 0 : i32
    %c0_i32_1 = arith.constant 0 : i32
    return %c0_i32, %c0_i32_0 : i32, i32
  }
  func.func @transform_3(%arg0: i32, %arg1: memref<16xi32, #tpu.memory_space<smem>>, %arg2: memref<16xi32, #tpu.memory_space<smem>>) -> i32 {
    %c0_i32 = arith.constant 0 : i32
    %c0_i32_0 = arith.constant 0 : i32
    return %c0_i32 : i32
  }
  func.func @transform_4(%arg0: i32, %arg1: memref<16xi32, #tpu.memory_space<smem>>, %arg2: memref<16xi32, #tpu.memory_space<smem>>) -> (i32, i32, i32) {
    %c0_i32 = arith.constant 0 : i32
    %c0_i32_0 = arith.constant 0 : i32
    %c0_i32_1 = arith.constant 0 : i32
    return %arg0, %c0_i32, %c0_i32_0 : i32, i32, i32
  }
  func.func @transform_5(%arg0: i32, %arg1: memref<16xi32, #tpu.memory_space<smem>>, %arg2: memref<16xi32, #tpu.memory_space<smem>>) -> (i32, i32, i32) {
    %c0_i32 = arith.constant 0 : i32
    %c0_i32_0 = arith.constant 0 : i32
    %c0_i32_1 = arith.constant 0 : i32
    return %arg0, %c0_i32, %c0_i32_0 : i32, i32, i32
  }
}

module attributes {stable_mosaic.version = 11 : i64} {
  func.func @_upsample_add_kernel(%arg0: i32, %arg1: memref<32xi32, #tpu.memory_space<smem>>, %arg2: memref<32xi32, #tpu.memory_space<smem>>, %arg3: memref<1x8x64xf32, #tpu.memory_space<vmem>>, %arg4: memref<1x8x64xf32, #tpu.memory_space<vmem>>, %arg5: memref<16x8xf32, #tpu.memory_space<vmem>>, %arg6: memref<32xf32, #tpu.memory_space<smem>>, %arg7: memref<1x16x64xf32, #tpu.memory_space<vmem>>, %arg8: memref<1x16x64xf32, #tpu.memory_space<vmem>>) attributes {dimension_semantics = [#tpu.dimension_semantics<arbitrary>], iteration_bounds = array<i64: 32>, scalar_prefetch = 2 : i64, scratch_operands = 0 : i64, tpu.core_type = #tpu.core_type<tc>, window_params = [{transform_indices = @transform_0, window_bounds = array<i64: 1, 8, 64>}, {transform_indices = @transform_1, window_bounds = array<i64: 1, 8, 64>}, {pipeline_mode = #tpu.pipeline_mode<synchronous>, transform_indices = @transform_2, window_bounds = array<i64: 16, 8>}, {transform_indices = @transform_3, window_bounds = array<i64: 32>}, {transform_indices = @transform_4, window_bounds = array<i64: 1, 16, 64>}, {transform_indices = @transform_5, window_bounds = array<i64: 1, 16, 64>}]} {
    %0 = arith.index_cast %arg0 : i32 to index
    %1 = memref.load %arg6[%0] : memref<32xf32, #tpu.memory_space<smem>>
    %c0 = arith.constant 0 : index
    %c0_0 = arith.constant 0 : index
    %c0_1 = arith.constant 0 : index
    %2 = vector.load %arg3[%c0, %c0_0, %c0_1] : memref<1x8x64xf32, #tpu.memory_space<vmem>>, vector<1x8x64xf32>
    %3 = vector.shape_cast %2 : vector<1x8x64xf32> to vector<8x64xf32>
    %c0_2 = arith.constant 0 : index
    %c0_3 = arith.constant 0 : index
    %c0_4 = arith.constant 0 : index
    %4 = vector.load %arg4[%c0_2, %c0_3, %c0_4] : memref<1x8x64xf32, #tpu.memory_space<vmem>>, vector<1x8x64xf32>
    %5 = vector.shape_cast %4 : vector<1x8x64xf32> to vector<8x64xf32>
    %c0_5 = arith.constant 0 : index
    %c0_6 = arith.constant 0 : index
    %c0_7 = arith.constant 0 : index
    %6 = vector.load %arg3[%c0_5, %c0_6, %c0_7] : memref<1x8x64xf32, #tpu.memory_space<vmem>>, vector<1x8x64xf32>
    %7 = vector.shape_cast %6 : vector<1x8x64xf32> to vector<8x64xf32>
    %8 = arith.subf %5, %7 : vector<8x64xf32>
    %9 = vector.broadcast %1 : f32 to vector<8x64xf32>
    %10 = arith.mulf %8, %9 : vector<8x64xf32>
    %11 = arith.addf %3, %10 : vector<8x64xf32>
    %c0_8 = arith.constant 0 : index
    %c0_9 = arith.constant 0 : index
    %12 = vector.load %arg5[%c0_8, %c0_9] : memref<16x8xf32, #tpu.memory_space<vmem>>, vector<16x8xf32>
    %cst = arith.constant dense<0.000000e+00> : vector<16x64xf32>
    %13 = tpu.matmul %12, %11, %cst {dimension_numbers = #tpu.dot_dimension_numbers<[1], [0], [0], [1], [0, 0, 1, 1], [], []>} : vector<16x8xf32>, vector<8x64xf32>, vector<16x64xf32> -> vector<16x64xf32>
    %c0_10 = arith.constant 0 : index
    %c0_11 = arith.constant 0 : index
    %c0_12 = arith.constant 0 : index
    %14 = vector.load %arg7[%c0_10, %c0_11, %c0_12] : memref<1x16x64xf32, #tpu.memory_space<vmem>>, vector<1x16x64xf32>
    %15 = vector.shape_cast %14 : vector<1x16x64xf32> to vector<16x64xf32>
    %16 = arith.addf %13, %15 : vector<16x64xf32>
    %c0_13 = arith.constant 0 : index
    %c0_14 = arith.constant 0 : index
    %c0_15 = arith.constant 0 : index
    %17 = vector.load %arg8[%c0_13, %c0_14, %c0_15] : memref<1x16x64xf32, #tpu.memory_space<vmem>>, vector<1x16x64xf32>
    %18 = vector.shape_cast %17 : vector<1x16x64xf32> to vector<16x64xf32>
    %19 = vector.shape_cast %16 : vector<16x64xf32> to vector<1x16x64xf32>
    tpu.vector_store %arg8[%c0_13, %c0_14, %c0_15], %19 {strides = array<i32>} : memref<1x16x64xf32, #tpu.memory_space<vmem>>, vector<1x16x64xf32>,
    return
  }
  func.func @transform_0(%arg0: i32, %arg1: memref<32xi32, #tpu.memory_space<smem>>, %arg2: memref<32xi32, #tpu.memory_space<smem>>) -> (i32, i32, i32) {
    %0 = arith.index_cast %arg0 : i32 to index
    %1 = memref.load %arg1[%0] : memref<32xi32, #tpu.memory_space<smem>>
    %c0_i32 = arith.constant 0 : i32
    %c0_i32_0 = arith.constant 0 : i32
    %c0_i32_1 = arith.constant 0 : i32
    return %1, %c0_i32, %c0_i32_0 : i32, i32, i32
  }
  func.func @transform_1(%arg0: i32, %arg1: memref<32xi32, #tpu.memory_space<smem>>, %arg2: memref<32xi32, #tpu.memory_space<smem>>) -> (i32, i32, i32) {
    %0 = arith.index_cast %arg0 : i32 to index
    %1 = memref.load %arg2[%0] : memref<32xi32, #tpu.memory_space<smem>>
    %c0_i32 = arith.constant 0 : i32
    %c0_i32_0 = arith.constant 0 : i32
    %c0_i32_1 = arith.constant 0 : i32
    return %1, %c0_i32, %c0_i32_0 : i32, i32, i32
  }
  func.func @transform_2(%arg0: i32, %arg1: memref<32xi32, #tpu.memory_space<smem>>, %arg2: memref<32xi32, #tpu.memory_space<smem>>) -> (i32, i32) {
    %c0_i32 = arith.constant 0 : i32
    %c0_i32_0 = arith.constant 0 : i32
    %c0_i32_1 = arith.constant 0 : i32
    return %c0_i32, %c0_i32_0 : i32, i32
  }
  func.func @transform_3(%arg0: i32, %arg1: memref<32xi32, #tpu.memory_space<smem>>, %arg2: memref<32xi32, #tpu.memory_space<smem>>) -> i32 {
    %c0_i32 = arith.constant 0 : i32
    %c0_i32_0 = arith.constant 0 : i32
    return %c0_i32 : i32
  }
  func.func @transform_4(%arg0: i32, %arg1: memref<32xi32, #tpu.memory_space<smem>>, %arg2: memref<32xi32, #tpu.memory_space<smem>>) -> (i32, i32, i32) {
    %c0_i32 = arith.constant 0 : i32
    %c0_i32_0 = arith.constant 0 : i32
    %c0_i32_1 = arith.constant 0 : i32
    return %arg0, %c0_i32, %c0_i32_0 : i32, i32, i32
  }
  func.func @transform_5(%arg0: i32, %arg1: memref<32xi32, #tpu.memory_space<smem>>, %arg2: memref<32xi32, #tpu.memory_space<smem>>) -> (i32, i32, i32) {
    %c0_i32 = arith.constant 0 : i32
    %c0_i32_0 = arith.constant 0 : i32
    %c0_i32_1 = arith.constant 0 : i32
    return %arg0, %c0_i32, %c0_i32_0 : i32, i32, i32
  }
}

module attributes {stable_mosaic.version = 11 : i64} {
  func.func @_mm_kernel(%arg0: i32, %arg1: i32, %arg2: memref<128x640xbf16, #tpu.memory_space<vmem>>, %arg3: memref<640x128xbf16, #tpu.memory_space<vmem>>, %arg4: memref<1x128xf32, #tpu.memory_space<vmem>>, %arg5: memref<1x128xf32, #tpu.memory_space<vmem>>, %arg6: memref<1x128xf32, #tpu.memory_space<vmem>>, %arg7: memref<128x128xf32, #tpu.memory_space<vmem>>, %arg8: memref<128x128xf32, #tpu.memory_space<vmem>>) attributes {dimension_semantics = [#tpu.dimension_semantics<parallel>, #tpu.dimension_semantics<arbitrary>], iteration_bounds = array<i64: 1, 1>, scalar_prefetch = 0 : i64, scratch_operands = 1 : i64, tpu.core_type = #tpu.core_type<tc>, window_params = [{transform_indices = @transform_0, window_bounds = array<i64: 128, 640>}, {transform_indices = @transform_1, window_bounds = array<i64: 640, 128>}, {pipeline_mode = #tpu.pipeline_mode<synchronous>, transform_indices = @transform_2, window_bounds = array<i64: 1, 128>}, {pipeline_mode = #tpu.pipeline_mode<synchronous>, transform_indices = @transform_3, window_bounds = array<i64: 1, 128>}, {pipeline_mode = #tpu.pipeline_mode<synchronous>, transform_indices = @transform_4, window_bounds = array<i64: 1, 128>}, {transform_indices = @transform_5, window_bounds = array<i64: 128, 128>}]} {
    %c0_i32 = arith.constant 0 : i32
    %0 = arith.cmpi eq, %arg1, %c0_i32 : i32
    %1 = arith.extui %0 : i1 to i32
    %c0_i32_0 = arith.constant 0 : i32
    %2 = arith.cmpi ne, %1, %c0_i32_0 : i32
    scf.if %2 {
      %cst_10 = arith.constant 0.000000e+00 : f32
      %12 = vector.broadcast %cst_10 : f32 to vector<128x128xf32>
      %c0_11 = arith.constant 0 : index
      %c0_12 = arith.constant 0 : index
      %13 = vector.load %arg8[%c0_11, %c0_12] : memref<128x128xf32, #tpu.memory_space<vmem>>, vector<128x128xf32>
      tpu.vector_store %arg8[%c0_11, %c0_12], %12 {strides = array<i32>} : memref<128x128xf32, #tpu.memory_space<vmem>>, vector<128x128xf32>,
    } else {
    }
    %c0 = arith.constant 0 : index
    %c0_1 = arith.constant 0 : index
    %3 = vector.load %arg8[%c0, %c0_1] : memref<128x128xf32, #tpu.memory_space<vmem>>, vector<128x128xf32>
    %c0_2 = arith.constant 0 : index
    %c0_3 = arith.constant 0 : index
    %4 = vector.load %arg2[%c0_2, %c0_3] : memref<128x640xbf16, #tpu.memory_space<vmem>>, vector<128x640xbf16>
    %c0_4 = arith.constant 0 : index
    %c0_5 = arith.constant 0 : index
    %5 = vector.load %arg3[%c0_4, %c0_5] : memref<640x128xbf16, #tpu.memory_space<vmem>>, vector<640x128xbf16>
    %cst = arith.constant dense<0.000000e+00> : vector<128x128xf32>
    %6 = tpu.matmul %4, %5, %cst {dimension_numbers = #tpu.dot_dimension_numbers<[1], [0], [0], [1], [0, 0, 1, 1], [], []>} : vector<128x640xbf16>, vector<640x128xbf16>, vector<128x128xf32> -> vector<128x128xf32>
    %7 = arith.addf %3, %6 : vector<128x128xf32>
    %c0_6 = arith.constant 0 : index
    %c0_7 = arith.constant 0 : index
    %8 = vector.load %arg8[%c0_6, %c0_7] : memref<128x128xf32, #tpu.memory_space<vmem>>, vector<128x128xf32>
    tpu.vector_store %arg8[%c0_6, %c0_7], %7 {strides = array<i32>} : memref<128x128xf32, #tpu.memory_space<vmem>>, vector<128x128xf32>,
    %c0_i32_8 = arith.constant 0 : i32
    %9 = arith.cmpi eq, %arg1, %c0_i32_8 : i32
    %10 = arith.extui %9 : i1 to i32
    %c0_i32_9 = arith.constant 0 : i32
    %11 = arith.cmpi ne, %10, %c0_i32_9 : i32
    scf.if %11 {
      %c0_10 = arith.constant 0 : index
      %c0_11 = arith.constant 0 : index
      %12 = vector.load %arg8[%c0_10, %c0_11] : memref<128x128xf32, #tpu.memory_space<vmem>>, vector<128x128xf32>
      %c0_12 = arith.constant 0 : index
      %c0_13 = arith.constant 0 : index
      %13 = vector.load %arg4[%c0_12, %c0_13] : memref<1x128xf32, #tpu.memory_space<vmem>>, vector<1x128xf32>
      %14 = vector.broadcast %13 : vector<1x128xf32> to vector<128x128xf32>
      %15 = arith.mulf %12, %14 : vector<128x128xf32>
      %c0_14 = arith.constant 0 : index
      %c0_15 = arith.constant 0 : index
      %16 = vector.load %arg5[%c0_14, %c0_15] : memref<1x128xf32, #tpu.memory_space<vmem>>, vector<1x128xf32>
      %17 = vector.broadcast %16 : vector<1x128xf32> to vector<128x128xf32>
      %18 = arith.addf %15, %17 : vector<128x128xf32>
      %cst_16 = arith.constant 0.000000e+00 : f32
      %19 = vector.broadcast %cst_16 : f32 to vector<128x128xf32>
      %20 = arith.cmpf oge, %18, %19 : vector<128x128xf32>
      %c0_17 = arith.constant 0 : index
      %c0_18 = arith.constant 0 : index
      %21 = vector.load %arg6[%c0_17, %c0_18] : memref<1x128xf32, #tpu.memory_space<vmem>>, vector<1x128xf32>
      %22 = vector.broadcast %21 : vector<1x128xf32> to vector<128x128xf32>
      %23 = arith.mulf %18, %22 : vector<128x128xf32>
      %24 = arith.select %20, %18, %23 : vector<128x128xi1>, vector<128x128xf32>
      %c0_19 = arith.constant 0 : index
      %c0_20 = arith.constant 0 : index
      %25 = vector.load %arg7[%c0_19, %c0_20] : memref<128x128xf32, #tpu.memory_space<vmem>>, vector<128x128xf32>
      tpu.vector_store %arg7[%c0_19, %c0_20], %24 {strides = array<i32>} : memref<128x128xf32, #tpu.memory_space<vmem>>, vector<128x128xf32>,
    } else {
    }
    return
  }
  func.func @transform_0(%arg0: i32, %arg1: i32) -> (i32, i32) {
    %c0_i32 = arith.constant 0 : i32
    return %arg0, %arg1 : i32, i32
  }
  func.func @transform_1(%arg0: i32, %arg1: i32) -> (i32, i32) {
    %c0_i32 = arith.constant 0 : i32
    %c0_i32_0 = arith.constant 0 : i32
    return %arg1, %c0_i32 : i32, i32
  }
  func.func @transform_2(%arg0: i32, %arg1: i32) -> (i32, i32) {
    %c0_i32 = arith.constant 0 : i32
    %c0_i32_0 = arith.constant 0 : i32
    %c0_i32_1 = arith.constant 0 : i32
    return %c0_i32, %c0_i32_0 : i32, i32
  }
  func.func @transform_3(%arg0: i32, %arg1: i32) -> (i32, i32) {
    %c0_i32 = arith.constant 0 : i32
    %c0_i32_0 = arith.constant 0 : i32
    %c0_i32_1 = arith.constant 0 : i32
    return %c0_i32, %c0_i32_0 : i32, i32
  }
  func.func @transform_4(%arg0: i32, %arg1: i32) -> (i32, i32) {
    %c0_i32 = arith.constant 0 : i32
    %c0_i32_0 = arith.constant 0 : i32
    %c0_i32_1 = arith.constant 0 : i32
    return %c0_i32, %c0_i32_0 : i32, i32
  }
  func.func @transform_5(%arg0: i32, %arg1: i32) -> (i32, i32) {
    %c0_i32 = arith.constant 0 : i32
    %c0_i32_0 = arith.constant 0 : i32
    return %arg0, %c0_i32 : i32, i32
  }
}

module attributes {stable_mosaic.version = 11 : i64} {
  func.func @_mm_kernel(%arg0: i32, %arg1: i32, %arg2: memref<16x640xbf16, #tpu.memory_space<vmem>>, %arg3: memref<640x128xbf16, #tpu.memory_space<vmem>>, %arg4: memref<1x128xf32, #tpu.memory_space<vmem>>, %arg5: memref<1x128xf32, #tpu.memory_space<vmem>>, %arg6: memref<1x128xf32, #tpu.memory_space<vmem>>, %arg7: memref<16x128xf32, #tpu.memory_space<vmem>>, %arg8: memref<16x128xf32, #tpu.memory_space<vmem>>) attributes {dimension_semantics = [#tpu.dimension_semantics<parallel>, #tpu.dimension_semantics<arbitrary>], iteration_bounds = array<i64: 1, 1>, scalar_prefetch = 0 : i64, scratch_operands = 1 : i64, tpu.core_type = #tpu.core_type<tc>, window_params = [{transform_indices = @transform_0, window_bounds = array<i64: 16, 640>}, {transform_indices = @transform_1, window_bounds = array<i64: 640, 128>}, {pipeline_mode = #tpu.pipeline_mode<synchronous>, transform_indices = @transform_2, window_bounds = array<i64: 1, 128>}, {pipeline_mode = #tpu.pipeline_mode<synchronous>, transform_indices = @transform_3, window_bounds = array<i64: 1, 128>}, {pipeline_mode = #tpu.pipeline_mode<synchronous>, transform_indices = @transform_4, window_bounds = array<i64: 1, 128>}, {transform_indices = @transform_5, window_bounds = array<i64: 16, 128>}]} {
    %c0_i32 = arith.constant 0 : i32
    %0 = arith.cmpi eq, %arg1, %c0_i32 : i32
    %1 = arith.extui %0 : i1 to i32
    %c0_i32_0 = arith.constant 0 : i32
    %2 = arith.cmpi ne, %1, %c0_i32_0 : i32
    scf.if %2 {
      %cst_10 = arith.constant 0.000000e+00 : f32
      %12 = vector.broadcast %cst_10 : f32 to vector<16x128xf32>
      %c0_11 = arith.constant 0 : index
      %c0_12 = arith.constant 0 : index
      %13 = vector.load %arg8[%c0_11, %c0_12] : memref<16x128xf32, #tpu.memory_space<vmem>>, vector<16x128xf32>
      tpu.vector_store %arg8[%c0_11, %c0_12], %12 {strides = array<i32>} : memref<16x128xf32, #tpu.memory_space<vmem>>, vector<16x128xf32>,
    } else {
    }
    %c0 = arith.constant 0 : index
    %c0_1 = arith.constant 0 : index
    %3 = vector.load %arg8[%c0, %c0_1] : memref<16x128xf32, #tpu.memory_space<vmem>>, vector<16x128xf32>
    %c0_2 = arith.constant 0 : index
    %c0_3 = arith.constant 0 : index
    %4 = vector.load %arg2[%c0_2, %c0_3] : memref<16x640xbf16, #tpu.memory_space<vmem>>, vector<16x640xbf16>
    %c0_4 = arith.constant 0 : index
    %c0_5 = arith.constant 0 : index
    %5 = vector.load %arg3[%c0_4, %c0_5] : memref<640x128xbf16, #tpu.memory_space<vmem>>, vector<640x128xbf16>
    %cst = arith.constant dense<0.000000e+00> : vector<16x128xf32>
    %6 = tpu.matmul %4, %5, %cst {dimension_numbers = #tpu.dot_dimension_numbers<[1], [0], [0], [1], [0, 0, 1, 1], [], []>} : vector<16x640xbf16>, vector<640x128xbf16>, vector<16x128xf32> -> vector<16x128xf32>
    %7 = arith.addf %3, %6 : vector<16x128xf32>
    %c0_6 = arith.constant 0 : index
    %c0_7 = arith.constant 0 : index
    %8 = vector.load %arg8[%c0_6, %c0_7] : memref<16x128xf32, #tpu.memory_space<vmem>>, vector<16x128xf32>
    tpu.vector_store %arg8[%c0_6, %c0_7], %7 {strides = array<i32>} : memref<16x128xf32, #tpu.memory_space<vmem>>, vector<16x128xf32>,
    %c0_i32_8 = arith.constant 0 : i32
    %9 = arith.cmpi eq, %arg1, %c0_i32_8 : i32
    %10 = arith.extui %9 : i1 to i32
    %c0_i32_9 = arith.constant 0 : i32
    %11 = arith.cmpi ne, %10, %c0_i32_9 : i32
    scf.if %11 {
      %c0_10 = arith.constant 0 : index
      %c0_11 = arith.constant 0 : index
      %12 = vector.load %arg8[%c0_10, %c0_11] : memref<16x128xf32, #tpu.memory_space<vmem>>, vector<16x128xf32>
      %c0_12 = arith.constant 0 : index
      %c0_13 = arith.constant 0 : index
      %13 = vector.load %arg4[%c0_12, %c0_13] : memref<1x128xf32, #tpu.memory_space<vmem>>, vector<1x128xf32>
      %14 = vector.broadcast %13 : vector<1x128xf32> to vector<16x128xf32>
      %15 = arith.mulf %12, %14 : vector<16x128xf32>
      %c0_14 = arith.constant 0 : index
      %c0_15 = arith.constant 0 : index
      %16 = vector.load %arg5[%c0_14, %c0_15] : memref<1x128xf32, #tpu.memory_space<vmem>>, vector<1x128xf32>
      %17 = vector.broadcast %16 : vector<1x128xf32> to vector<16x128xf32>
      %18 = arith.addf %15, %17 : vector<16x128xf32>
      %cst_16 = arith.constant 0.000000e+00 : f32
      %19 = vector.broadcast %cst_16 : f32 to vector<16x128xf32>
      %20 = arith.cmpf oge, %18, %19 : vector<16x128xf32>
      %c0_17 = arith.constant 0 : index
      %c0_18 = arith.constant 0 : index
      %21 = vector.load %arg6[%c0_17, %c0_18] : memref<1x128xf32, #tpu.memory_space<vmem>>, vector<1x128xf32>
      %22 = vector.broadcast %21 : vector<1x128xf32> to vector<16x128xf32>
      %23 = arith.mulf %18, %22 : vector<16x128xf32>
      %24 = arith.select %20, %18, %23 : vector<16x128xi1>, vector<16x128xf32>
      %c0_19 = arith.constant 0 : index
      %c0_20 = arith.constant 0 : index
      %25 = vector.load %arg7[%c0_19, %c0_20] : memref<16x128xf32, #tpu.memory_space<vmem>>, vector<16x128xf32>
      tpu.vector_store %arg7[%c0_19, %c0_20], %24 {strides = array<i32>} : memref<16x128xf32, #tpu.memory_space<vmem>>, vector<16x128xf32>,
    } else {
    }
    return
  }
  func.func @transform_0(%arg0: i32, %arg1: i32) -> (i32, i32) {
    %c0_i32 = arith.constant 0 : i32
    return %arg0, %arg1 : i32, i32
  }
  func.func @transform_1(%arg0: i32, %arg1: i32) -> (i32, i32) {
    %c0_i32 = arith.constant 0 : i32
    %c0_i32_0 = arith.constant 0 : i32
    return %arg1, %c0_i32 : i32, i32
  }
  func.func @transform_2(%arg0: i32, %arg1: i32) -> (i32, i32) {
    %c0_i32 = arith.constant 0 : i32
    %c0_i32_0 = arith.constant 0 : i32
    %c0_i32_1 = arith.constant 0 : i32
    return %c0_i32, %c0_i32_0 : i32, i32
  }
  func.func @transform_3(%arg0: i32, %arg1: i32) -> (i32, i32) {
    %c0_i32 = arith.constant 0 : i32
    %c0_i32_0 = arith.constant 0 : i32
    %c0_i32_1 = arith.constant 0 : i32
    return %c0_i32, %c0_i32_0 : i32, i32
  }
  func.func @transform_4(%arg0: i32, %arg1: i32) -> (i32, i32) {
    %c0_i32 = arith.constant 0 : i32
    %c0_i32_0 = arith.constant 0 : i32
    %c0_i32_1 = arith.constant 0 : i32
    return %c0_i32, %c0_i32_0 : i32, i32
  }
  func.func @transform_5(%arg0: i32, %arg1: i32) -> (i32, i32) {
    %c0_i32 = arith.constant 0 : i32
    %c0_i32_0 = arith.constant 0 : i32
    return %arg0, %c0_i32 : i32, i32
  }
}

module attributes {stable_mosaic.version = 11 : i64} {
  func.func @_mm_kernel(%arg0: i32, %arg1: i32, %arg2: memref<16x128xbf16, #tpu.memory_space<vmem>>, %arg3: memref<128x128xbf16, #tpu.memory_space<vmem>>, %arg4: memref<1x128xf32, #tpu.memory_space<vmem>>, %arg5: memref<1x128xf32, #tpu.memory_space<vmem>>, %arg6: memref<1x128xf32, #tpu.memory_space<vmem>>, %arg7: memref<16x128xf32, #tpu.memory_space<vmem>>, %arg8: memref<16x128xf32, #tpu.memory_space<vmem>>) attributes {dimension_semantics = [#tpu.dimension_semantics<parallel>, #tpu.dimension_semantics<arbitrary>], iteration_bounds = array<i64: 1, 1>, scalar_prefetch = 0 : i64, scratch_operands = 1 : i64, tpu.core_type = #tpu.core_type<tc>, window_params = [{transform_indices = @transform_0, window_bounds = array<i64: 16, 128>}, {transform_indices = @transform_1, window_bounds = array<i64: 128, 128>}, {pipeline_mode = #tpu.pipeline_mode<synchronous>, transform_indices = @transform_2, window_bounds = array<i64: 1, 128>}, {pipeline_mode = #tpu.pipeline_mode<synchronous>, transform_indices = @transform_3, window_bounds = array<i64: 1, 128>}, {pipeline_mode = #tpu.pipeline_mode<synchronous>, transform_indices = @transform_4, window_bounds = array<i64: 1, 128>}, {transform_indices = @transform_5, window_bounds = array<i64: 16, 128>}]} {
    %c0_i32 = arith.constant 0 : i32
    %0 = arith.cmpi eq, %arg1, %c0_i32 : i32
    %1 = arith.extui %0 : i1 to i32
    %c0_i32_0 = arith.constant 0 : i32
    %2 = arith.cmpi ne, %1, %c0_i32_0 : i32
    scf.if %2 {
      %cst_10 = arith.constant 0.000000e+00 : f32
      %12 = vector.broadcast %cst_10 : f32 to vector<16x128xf32>
      %c0_11 = arith.constant 0 : index
      %c0_12 = arith.constant 0 : index
      %13 = vector.load %arg8[%c0_11, %c0_12] : memref<16x128xf32, #tpu.memory_space<vmem>>, vector<16x128xf32>
      tpu.vector_store %arg8[%c0_11, %c0_12], %12 {strides = array<i32>} : memref<16x128xf32, #tpu.memory_space<vmem>>, vector<16x128xf32>,
    } else {
    }
    %c0 = arith.constant 0 : index
    %c0_1 = arith.constant 0 : index
    %3 = vector.load %arg8[%c0, %c0_1] : memref<16x128xf32, #tpu.memory_space<vmem>>, vector<16x128xf32>
    %c0_2 = arith.constant 0 : index
    %c0_3 = arith.constant 0 : index
    %4 = vector.load %arg2[%c0_2, %c0_3] : memref<16x128xbf16, #tpu.memory_space<vmem>>, vector<16x128xbf16>
    %c0_4 = arith.constant 0 : index
    %c0_5 = arith.constant 0 : index
    %5 = vector.load %arg3[%c0_4, %c0_5] : memref<128x128xbf16, #tpu.memory_space<vmem>>, vector<128x128xbf16>
    %cst = arith.constant dense<0.000000e+00> : vector<16x128xf32>
    %6 = tpu.matmul %4, %5, %cst {dimension_numbers = #tpu.dot_dimension_numbers<[1], [0], [0], [1], [0, 0, 1, 1], [], []>} : vector<16x128xbf16>, vector<128x128xbf16>, vector<16x128xf32> -> vector<16x128xf32>
    %7 = arith.addf %3, %6 : vector<16x128xf32>
    %c0_6 = arith.constant 0 : index
    %c0_7 = arith.constant 0 : index
    %8 = vector.load %arg8[%c0_6, %c0_7] : memref<16x128xf32, #tpu.memory_space<vmem>>, vector<16x128xf32>
    tpu.vector_store %arg8[%c0_6, %c0_7], %7 {strides = array<i32>} : memref<16x128xf32, #tpu.memory_space<vmem>>, vector<16x128xf32>,
    %c0_i32_8 = arith.constant 0 : i32
    %9 = arith.cmpi eq, %arg1, %c0_i32_8 : i32
    %10 = arith.extui %9 : i1 to i32
    %c0_i32_9 = arith.constant 0 : i32
    %11 = arith.cmpi ne, %10, %c0_i32_9 : i32
    scf.if %11 {
      %c0_10 = arith.constant 0 : index
      %c0_11 = arith.constant 0 : index
      %12 = vector.load %arg8[%c0_10, %c0_11] : memref<16x128xf32, #tpu.memory_space<vmem>>, vector<16x128xf32>
      %c0_12 = arith.constant 0 : index
      %c0_13 = arith.constant 0 : index
      %13 = vector.load %arg4[%c0_12, %c0_13] : memref<1x128xf32, #tpu.memory_space<vmem>>, vector<1x128xf32>
      %14 = vector.broadcast %13 : vector<1x128xf32> to vector<16x128xf32>
      %15 = arith.mulf %12, %14 : vector<16x128xf32>
      %c0_14 = arith.constant 0 : index
      %c0_15 = arith.constant 0 : index
      %16 = vector.load %arg5[%c0_14, %c0_15] : memref<1x128xf32, #tpu.memory_space<vmem>>, vector<1x128xf32>
      %17 = vector.broadcast %16 : vector<1x128xf32> to vector<16x128xf32>
      %18 = arith.addf %15, %17 : vector<16x128xf32>
      %cst_16 = arith.constant 0.000000e+00 : f32
      %19 = vector.broadcast %cst_16 : f32 to vector<16x128xf32>
      %20 = arith.cmpf oge, %18, %19 : vector<16x128xf32>
      %c0_17 = arith.constant 0 : index
      %c0_18 = arith.constant 0 : index
      %21 = vector.load %arg6[%c0_17, %c0_18] : memref<1x128xf32, #tpu.memory_space<vmem>>, vector<1x128xf32>
      %22 = vector.broadcast %21 : vector<1x128xf32> to vector<16x128xf32>
      %23 = arith.mulf %18, %22 : vector<16x128xf32>
      %24 = arith.select %20, %18, %23 : vector<16x128xi1>, vector<16x128xf32>
      %c0_19 = arith.constant 0 : index
      %c0_20 = arith.constant 0 : index
      %25 = vector.load %arg7[%c0_19, %c0_20] : memref<16x128xf32, #tpu.memory_space<vmem>>, vector<16x128xf32>
      tpu.vector_store %arg7[%c0_19, %c0_20], %24 {strides = array<i32>} : memref<16x128xf32, #tpu.memory_space<vmem>>, vector<16x128xf32>,
    } else {
    }
    return
  }
  func.func @transform_0(%arg0: i32, %arg1: i32) -> (i32, i32) {
    %c0_i32 = arith.constant 0 : i32
    return %arg0, %arg1 : i32, i32
  }
  func.func @transform_1(%arg0: i32, %arg1: i32) -> (i32, i32) {
    %c0_i32 = arith.constant 0 : i32
    %c0_i32_0 = arith.constant 0 : i32
    return %arg1, %c0_i32 : i32, i32
  }
  func.func @transform_2(%arg0: i32, %arg1: i32) -> (i32, i32) {
    %c0_i32 = arith.constant 0 : i32
    %c0_i32_0 = arith.constant 0 : i32
    %c0_i32_1 = arith.constant 0 : i32
    return %c0_i32, %c0_i32_0 : i32, i32
  }
  func.func @transform_3(%arg0: i32, %arg1: i32) -> (i32, i32) {
    %c0_i32 = arith.constant 0 : i32
    %c0_i32_0 = arith.constant 0 : i32
    %c0_i32_1 = arith.constant 0 : i32
    return %c0_i32, %c0_i32_0 : i32, i32
  }
  func.func @transform_4(%arg0: i32, %arg1: i32) -> (i32, i32) {
    %c0_i32 = arith.constant 0 : i32
    %c0_i32_0 = arith.constant 0 : i32
    %c0_i32_1 = arith.constant 0 : i32
    return %c0_i32, %c0_i32_0 : i32, i32
  }
  func.func @transform_5(%arg0: i32, %arg1: i32) -> (i32, i32) {
    %c0_i32 = arith.constant 0 : i32
    %c0_i32_0 = arith.constant 0 : i32
    return %arg0, %c0_i32 : i32, i32
  }
}

</mosaic_0001>

<bundles_post_ra>
// kernel: encoder_forward.136
= control target key start
LH: loop header
LB: loop body
LE: loop exit
PB: predicated region body
PF: predicated region fallthrough
CT: control target
= control target key end

     0   :  { %s1319_s18 = smov 0   ;;  %s1321_s19 = smov 0   ;;  %s1543_s0 = inlined_call_operand.vmem [shape: bf16[8192,128], index: 0, kind: input, shape index: {}]   ;;  %s1544_s1 = inlined_call_operand.vmem [shape: bf16[128,128], index: 1, kind: input, shape index: {}]   ;;  %s1545_s2 = inlined_call_operand.vmem [shape: f32[1,128], index: 2, kind: input, shape index: {}]   ;;  %s1546_s3 = inlined_call_operand.vmem [shape: f32[1,128], index: 3, kind: input, shape index: {}]   ;;  %s1547_s4 = inlined_call_operand.vmem [shape: f32[1,128], index: 4, kind: input, shape index: {}]   ;;  %s1548_s5 = inlined_call_operand.vmem [shape: f32[8192,128], index: 5, kind: output, shape index: {}]  }
   0x1   :  { %s1323_s20 = smov 0  }
   0x2 LB: > { %s27_s21 = sadd.s32 1, %s1283_s19  ;;  %p1095_p0 = scmp.ge.s32.totalorder %s1287_s20, 1  ;;  %s1287_s20 = sphi %s1323_s20, %s15_s20   ;;  %s1283_s19 = sphi %s1321_s19, %s1550_s19   ;;  %s1279_s18 = sphi %s1319_s18, %s1549_s18  }
   0x3   : > { %p29_p1 = scmp.ge.s32.totalorder %s27_s21, 32  ;;  %p216_p2 = scmp.lt.s32.totalorder %s1287_s20, 33 }
   0x5   : > { %s1552_s21 = smov (%p29_p1, %s27_s21), 0  ;;  %p217_p3 = pnand %p1095_p0, %p216_p2 }
   0x6   : > { %v1241_v0 = vld [vmem:[%s1544_s1] sm:$0xff] (!%p217_p3)   ;;  %s1096_s24 = sshll.u32 (!%p217_p3), %s1279_s18, 5  ;;  %v1242_v1 = vld [vmem:[%s1544_s1 + $0x8] sm:$0xff] (!%p217_p3)   ;;  %v1243_v2 = vld [vmem:[%s1544_s1 + $0x10] sm:$0xff] (!%p217_p3)  }
   0x7   : > { %220 = sbr.rel (%p217_p3) target bundleno = 296 (0x128), region = 40  ;;  %p253_p4 = scmp.lt.s32.totalorder (!%p217_p3), %s1096_s24, 1023  ;;  %1153 = vmatprep.subr.bf16.mxu0 (!%p217_p3), %v1241_v0  ;;  %1201 = vmatprep.subr.bf16.mxu1 (!%p217_p3), %v1241_v0  ;;  %v1244_v3 = vld [vmem:[%s1544_s1 + $0x18] sm:$0xff] (!%p217_p3)   ;;  %v1245_v6 = vld [vmem:[%s1544_s1 + $0x20] sm:$0xff] (!%p217_p3)   ;;  %v1246_v7 = vld [vmem:[%s1544_s1 + $0x28] sm:$0xff] (!%p217_p3)  }
   0x8   : > { %1154 = vmatpush3.bf16.msra.mxu0 (!%p217_p3), %v1241_v0  ;;  %1209 = vmatpush3.bf16.msra.mxu1 (!%p217_p3), %v1241_v0  ;;  %v1247_v8 = vld [vmem:[%s1544_s1 + $0x30] sm:$0xff] (!%p217_p3)   ;;  %v1248_v9 = vld [vmem:[%s1544_s1 + $0x38] sm:$0xff] (!%p217_p3)   ;;  %v1388_v24 = vld [vmem:[%s1545_s2] ss:$0 sm:$0xff] (!%p217_p3) }
   0x9   : > { %1155 = vmatprep.subr.bf16.mxu0 (!%p217_p3), %v1242_v1  ;;  %1202 = vmatprep.subr.bf16.mxu1 (!%p217_p3), %v1242_v1  ;;  %v1393_v26 = vld [vmem:[%s1546_s3] ss:$0 sm:$0xff] (!%p217_p3) }
   0xa   : > { %v1401_v32 = vld [vmem:[%s1547_s4] ss:$0 sm:$0xff] (!%p217_p3) }
   0xc   : > { %1156 = vmatpush3.bf16.msra.mxu0 (!%p217_p3), %v1242_v1  ;;  %1210 = vmatpush3.bf16.msra.mxu1 (!%p217_p3), %v1242_v1 }
   0xd   : > { %1157 = vmatprep.subr.bf16.mxu0 (!%p217_p3), %v1243_v2  ;;  %1203 = vmatprep.subr.bf16.mxu1 (!%p217_p3), %v1243_v2 }
   0xe   : > { %s1554_s24 = smov (!%p253_p4, %s1096_s24), 1023 }
   0xf   : > { %s1097_s29 = sshll.u32 %s1554_s24, 2  ;;  %s1099_s26 = sshll.u32 %s1554_s24, 3 }
  0x10   : > { %s1352_s7 = scalar_lea.vmem %s1543_s0, %s1097_s29  ;;  %1158 = vmatpush3.bf16.msra.mxu0 %v1243_v2  ;;  %1211 = vmatpush3.bf16.msra.mxu1 %v1243_v2  ;;  %s1416_s30 = scalar_lea.vmem %s1548_s5, %s1099_s26 }
  0x11   : > { %v1249_v4 = vld [vmem:[%s1352_s7] sm:$0xff]   ;;  %1159 = vmatprep.subr.bf16.mxu0 %v1244_v3  ;;  %1204 = vmatprep.subr.bf16.mxu1 %v1244_v3  ;;  %v1251_v10 = vld [vmem:[%s1352_s7 + $0x8] sm:$0xff]   ;;  %v1253_v12 = vld [vmem:[%s1352_s7 + $0x10] sm:$0xff]  }
  0x12   : > { %v1250_v5 = vld [vmem:[%s1352_s7 + $0x40] sm:$0xff]   ;;  %1169 = vmatprep.mubr.bf16.mxu0 %v1249_v4  ;;  %v1252_v11 = vld [vmem:[%s1352_s7 + $0x48] sm:$0xff]   ;;  %v1254_v13 = vld [vmem:[%s1352_s7 + $0x50] sm:$0xff]  }
  0x13   : > { %1185 = vmatprep.mubr.bf16.mxu1 %v1250_v5  ;;  %v1255_v14 = vld [vmem:[%s1352_s7 + $0x18] sm:$0xff]   ;;  %v1257_v16 = vld [vmem:[%s1352_s7 + $0x20] sm:$0xff]   ;;  %v1259_v18 = vld [vmem:[%s1352_s7 + $0x28] sm:$0xff]  }
  0x14   : > { %1160 = vmatpush3.bf16.msra.mxu0 %v1244_v3  ;;  %1212 = vmatpush3.bf16.msra.mxu1 %v1244_v3  ;;  %v1256_v15 = vld [vmem:[%s1352_s7 + $0x58] sm:$0xff]   ;;  %v1258_v17 = vld [vmem:[%s1352_s7 + $0x60] sm:$0xff]   ;;  %v1260_v19 = vld [vmem:[%s1352_s7 + $0x68] sm:$0xff]  }
  0x15   : > { %1161 = vmatprep.subr.bf16.mxu0 %v1245_v6  ;;  %1205 = vmatprep.subr.bf16.mxu1 %v1245_v6  ;;  %v1261_v20 = vld [vmem:[%s1352_s7 + $0x30] sm:$0xff]   ;;  %v1263_v22 = vld [vmem:[%s1352_s7 + $0x38] sm:$0xff]  }
  0x16   : > { %v1262_v21 = vld [vmem:[%s1352_s7 + $0x70] sm:$0xff]   ;;  %v1264_v23 = vld [vmem:[%s1352_s7 + $0x78] sm:$0xff]  }
  0x18   : > { %1162 = vmatpush3.bf16.msra.mxu0 %v1245_v6  ;;  %1213 = vmatpush3.bf16.msra.mxu1 %v1245_v6 }
  0x19   : > { %1163 = vmatprep.subr.bf16.mxu0 %v1246_v7  ;;  %1206 = vmatprep.subr.bf16.mxu1 %v1246_v7 }
  0x1c   : > { %1164 = vmatpush3.bf16.msra.mxu0 %v1246_v7  ;;  %1214 = vmatpush3.bf16.msra.mxu1 %v1246_v7 }
  0x1d   : > { %1165 = vmatprep.subr.bf16.mxu0 %v1247_v8  ;;  %1207 = vmatprep.subr.bf16.mxu1 %v1247_v8 }
  0x20   : > { %1166 = vmatpush3.bf16.msra.mxu0 %v1247_v8  ;;  %1215 = vmatpush3.bf16.msra.mxu1 %v1247_v8 }
  0x21   : > { %1167 = vmatprep.subr.bf16.mxu0 %v1248_v9  ;;  %1208 = vmatprep.subr.bf16.mxu1 %v1248_v9 }
  0x24   : > { %1168 = vmatpush3.bf16.msra.mxu0 %v1248_v9  ;;  %1216 = vmatpush3.bf16.msra.mxu1 %v1248_v9 }
  0x27   : > { %1170 = vmatmul.mubr.bf16.vlgmr.msra.gmra.mrb[0].mxu0 %v1251_v10  ;;  %1186 = vmatmul.mubr.bf16.vlgmr.msra.gmra.mrb[0].mxu1 %v1252_v11 }
  0x28   : > { %1173 = vmatprep.mubr.bf16.mxu0 %v1253_v12  ;;  %1189 = vmatprep.mubr.bf16.mxu1 %v1254_v13 }
  0x2f   : > { %1174 = vmatmul.mubr.bf16.gmra.mrb[4].mxu0 %v1255_v14  ;;  %1190 = vmatmul.mubr.bf16.gmra.mrb[4].mxu1 %v1256_v15 }
  0x30   : > { %1177 = vmatprep.mubr.bf16.mxu0 %v1257_v16  ;;  %1193 = vmatprep.mubr.bf16.mxu1 %v1258_v17 }
  0x37   : > { %1178 = vmatmul.mubr.bf16.gmra.mrb[8].mxu0 %v1259_v18  ;;  %1194 = vmatmul.mubr.bf16.gmra.mrb[8].mxu1 %v1260_v19 }
  0x38   : > { %1181 = vmatprep.mubr.bf16.mxu0 %v1261_v20  ;;  %1197 = vmatprep.mubr.bf16.mxu1 %v1262_v21 }
  0x3f   : > { %1182 = vmatmul.mubr.bf16.gmra.mrb[12].mxu0 %v1263_v22  ;;  %1198 = vmatmul.mubr.bf16.gmra.mrb[12].mxu1 %v1264_v23 }
  0xfa   : > { %v1171_v25 = vpop.f32.mrb[0].mxu0  ;;  %v1187_v27 = vpop.f32.mrb[0].mxu1 }
  0xfb   : > { %v803_v28 = vmul.f32 %v1171_v25, %v1388_v24  ;;  %v819_v29 = vmul.f32 %v1187_v27, %v1388_v24  ;;  %v568_v30 = vpop.f32.mrb[1].mxu0  ;;  %v632_v31 = vpop.f32.mrb[1].mxu1 }
  0xfc   : > { %v801_v33 = vmul.f32 %v1388_v24, %v568_v30  ;;  %v817_v34 = vmul.f32 %v1388_v24, %v632_v31  ;;  %v1172_v35 = vpop.f32.mrb[2].mxu0  ;;  %v1188_v36 = vpop.f32.mrb[2].mxu1 }
  0xfd   : > { %v842_v37 = vadd.f32 %v1393_v26, %v803_v28  ;;  %v858_v38 = vadd.f32 %v1393_v26, %v819_v29  ;;  %v804_v39 = vmul.f32 %v1172_v35, %v1388_v24  ;;  %v820_v40 = vmul.f32 %v1188_v36, %v1388_v24  ;;  %v571_v41 = vpop.f32.mrb[3].mxu0  ;;  %v635_v42 = vpop.f32.mrb[3].mxu1 }
  0xfe   : > { %v840_v43 = vadd.f32 %v1393_v26, %v801_v33  ;;  %v856_v44 = vadd.f32 %v1393_v26, %v817_v34  ;;  %v802_v45 = vmul.f32 %v1388_v24, %v571_v41  ;;  %v818_v46 = vmul.f32 %v1388_v24, %v635_v42 }
  0xff   : > { %vm874_vm0 = vcmp.ge.f32.partialorder %v842_v37, 0.0  ;;  %v913_v47 = vmul.f32 %v1401_v32, %v842_v37  ;;  %vm890_vm1 = vcmp.ge.f32.partialorder %v858_v38, 0.0  ;;  %v929_v48 = vmul.f32 %v1401_v32, %v858_v38 }
 0x100   : > { %vm872_vm2 = vcmp.ge.f32.partialorder %v840_v43, 0.0  ;;  %v911_v49 = vmul.f32 %v1401_v32, %v840_v43  ;;  %vm888_vm3 = vcmp.ge.f32.partialorder %v856_v44, 0.0  ;;  %v927_v50 = vmul.f32 %v1401_v32, %v856_v44 }
 0x101   : > { %v945_v51 = vsel %vm874_vm0, %v842_v37, %v913_v47  ;;  %v961_v52 = vsel %vm890_vm1, %v858_v38, %v929_v48  ;;  %v843_v53 = vadd.f32 %v1393_v26, %v804_v39  ;;  %v859_v54 = vadd.f32 %v1393_v26, %v820_v40 }
 0x102   : > { %977 = vst [vmem:[%s1416_s30 + $0x10] sm:$0xff] %v945_v51  ;;  %993 = vst [vmem:[%s1416_s30 + $0x90] sm:$0xff] %v961_v52  ;;  %v943_v55 = vsel %vm872_vm2, %v840_v43, %v911_v49  ;;  %v959_v56 = vsel %vm888_vm3, %v856_v44, %v927_v50  ;;  %v841_v57 = vadd.f32 %v1393_v26, %v802_v45  ;;  %v1175_v59 = vpop.f32.mrb[4].mxu0  ;;  %v1191_v60 = vpop.f32.mrb[4].mxu1 }
 0x103   : > { %v857_v58 = vadd.f32 %v1393_v26, %v818_v46  ;;  %975 = vst [vmem:[%s1416_s30] sm:$0xff] %v943_v55  ;;  %991 = vst [vmem:[%s1416_s30 + $0x80] sm:$0xff] %v959_v56  ;;  %vm875_vm4 = vcmp.ge.f32.partialorder %v843_v53, 0.0  ;;  %v914_v61 = vmul.f32 %v1401_v32, %v843_v53  ;;  %vm891_vm5 = vcmp.ge.f32.partialorder %v859_v54, 0.0  ;;  %v584_v63 = vpop.f32.mrb[5].mxu0  ;;  %v648_v0 = vpop.f32.mrb[5].mxu1 }
 0x104   : > { %v930_v62 = vmul.f32 %v1401_v32, %v859_v54  ;;  %vm873_vm6 = vcmp.ge.f32.partialorder %v841_v57, 0.0  ;;  %v912_v1 = vmul.f32 %v1401_v32, %v841_v57  ;;  %v1176_v3 = vpop.f32.mrb[6].mxu0  ;;  %v1192_v4 = vpop.f32.mrb[6].mxu1  ;;  %v807_v7 = vmul.f32 %v1175_v59, %v1388_v24 }
 0x105   : > { %vm889_vm7 = vcmp.ge.f32.partialorder %v857_v58, 0.0  ;;  %v928_v2 = vmul.f32 %v1401_v32, %v857_v58  ;;  %v946_v5 = vsel %vm875_vm4, %v843_v53, %v914_v61  ;;  %v823_v8 = vmul.f32 %v1191_v60, %v1388_v24  ;;  %v587_v9 = vpop.f32.mrb[7].mxu0  ;;  %v651_v10 = vpop.f32.mrb[7].mxu1 }
 0x106   : > { %v962_v6 = vsel %vm891_vm5, %v859_v54, %v930_v62  ;;  %978 = vst [vmem:[%s1416_s30 + $0x18] sm:$0xff] %v946_v5  ;;  %v944_v11 = vsel %vm873_vm6, %v841_v57, %v912_v1  ;;  %v805_v13 = vmul.f32 %v1388_v24, %v584_v63  ;;  %v821_v14 = vmul.f32 %v1388_v24, %v648_v0 }
 0x107   : > { %994 = vst [vmem:[%s1416_s30 + $0x98] sm:$0xff] %v962_v6  ;;  %v960_v12 = vsel %vm889_vm7, %v857_v58, %v928_v2  ;;  %976 = vst [vmem:[%s1416_s30 + $0x8] sm:$0xff] %v944_v11  ;;  %v846_v15 = vadd.f32 %v1393_v26, %v807_v7  ;;  %v862_v16 = vadd.f32 %v1393_v26, %v823_v8 }
 0x108   : > { %992 = vst [vmem:[%s1416_s30 + $0x88] sm:$0xff] %v960_v12  ;;  %v808_v17 = vmul.f32 %v1176_v3, %v1388_v24  ;;  %v824_v18 = vmul.f32 %v1192_v4, %v1388_v24  ;;  %v844_v19 = vadd.f32 %v1393_v26, %v805_v13  ;;  %v860_v20 = vadd.f32 %v1393_v26, %v821_v14 }
 0x109   : > { %v806_v21 = vmul.f32 %v1388_v24, %v587_v9  ;;  %v822_v22 = vmul.f32 %v1388_v24, %v651_v10  ;;  %vm878_vm8 = vcmp.ge.f32.partialorder %v846_v15, 0.0  ;;  %v917_v23 = vmul.f32 %v1401_v32, %v846_v15 }
 0x10a   : > { %vm894_vm9 = vcmp.ge.f32.partialorder %v862_v16, 0.0  ;;  %v933_v25 = vmul.f32 %v1401_v32, %v862_v16  ;;  %vm876_vm10 = vcmp.ge.f32.partialorder %v844_v19, 0.0  ;;  %v915_v27 = vmul.f32 %v1401_v32, %v844_v19  ;;  %v1179_v29 = vpop.f32.mrb[8].mxu0  ;;  %v1195_v30 = vpop.f32.mrb[8].mxu1 }
 0x10b   : > { %vm892_vm11 = vcmp.ge.f32.partialorder %v860_v20, 0.0  ;;  %v931_v28 = vmul.f32 %v1401_v32, %v860_v20  ;;  %v949_v31 = vsel %vm878_vm8, %v846_v15, %v917_v23  ;;  %v847_v34 = vadd.f32 %v1393_v26, %v808_v17  ;;  %v600_v36 = vpop.f32.mrb[9].mxu0  ;;  %v664_v37 = vpop.f32.mrb[9].mxu1 }
 0x10c   : > { %v965_v33 = vsel %vm894_vm9, %v862_v16, %v933_v25  ;;  %v863_v35 = vadd.f32 %v1393_v26, %v824_v18  ;;  %981 = vst [vmem:[%s1416_s30 + $0x30] sm:$0xff] %v949_v31  ;;  %v947_v38 = vsel %vm876_vm10, %v844_v19, %v915_v27  ;;  %v845_v40 = vadd.f32 %v1393_v26, %v806_v21  ;;  %v1180_v42 = vpop.f32.mrb[10].mxu0  ;;  %v1196_v43 = vpop.f32.mrb[10].mxu1 }
 0x10d   : > { %997 = vst [vmem:[%s1416_s30 + $0xb0] sm:$0xff] %v965_v33  ;;  %v963_v39 = vsel %vm892_vm11, %v860_v20, %v931_v28  ;;  %v861_v41 = vadd.f32 %v1393_v26, %v822_v22  ;;  %979 = vst [vmem:[%s1416_s30 + $0x20] sm:$0xff] %v947_v38  ;;  %vm879_vm12 = vcmp.ge.f32.partialorder %v847_v34, 0.0  ;;  %v918_v44 = vmul.f32 %v1401_v32, %v847_v34  ;;  %v603_v46 = vpop.f32.mrb[11].mxu0  ;;  %v667_v47 = vpop.f32.mrb[11].mxu1 }
 0x10e   : > { %995 = vst [vmem:[%s1416_s30 + $0xa0] sm:$0xff] %v963_v39  ;;  %vm895_vm13 = vcmp.ge.f32.partialorder %v863_v35, 0.0  ;;  %v934_v45 = vmul.f32 %v1401_v32, %v863_v35  ;;  %vm877_vm14 = vcmp.ge.f32.partialorder %v845_v40, 0.0  ;;  %v916_v48 = vmul.f32 %v1401_v32, %v845_v40 }
 0x10f   : > { %vm893_vm15 = vcmp.ge.f32.partialorder %v861_v41, 0.0  ;;  %v932_v49 = vmul.f32 %v1401_v32, %v861_v41  ;;  %v950_v50 = vsel %vm879_vm12, %v847_v34, %v918_v44  ;;  %v811_v52 = vmul.f32 %v1179_v29, %v1388_v24 }
 0x110   : > { %v966_v51 = vsel %vm895_vm13, %v863_v35, %v934_v45  ;;  %v827_v53 = vmul.f32 %v1195_v30, %v1388_v24  ;;  %982 = vst [vmem:[%s1416_s30 + $0x38] sm:$0xff] %v950_v50  ;;  %v948_v54 = vsel %vm877_vm14, %v845_v40, %v916_v48  ;;  %v809_v56 = vmul.f32 %v1388_v24, %v600_v36 }
 0x111   : > { %998 = vst [vmem:[%s1416_s30 + $0xb8] sm:$0xff] %v966_v51  ;;  %v964_v55 = vsel %vm893_vm15, %v861_v41, %v932_v49  ;;  %v825_v57 = vmul.f32 %v1388_v24, %v664_v37  ;;  %980 = vst [vmem:[%s1416_s30 + $0x28] sm:$0xff] %v948_v54  ;;  %v850_v58 = vadd.f32 %v1393_v26, %v811_v52 }
 0x112   : > { %996 = vst [vmem:[%s1416_s30 + $0xa8] sm:$0xff] %v964_v55  ;;  %v866_v59 = vadd.f32 %v1393_v26, %v827_v53  ;;  %v812_v60 = vmul.f32 %v1180_v42, %v1388_v24  ;;  %v828_v61 = vmul.f32 %v1196_v43, %v1388_v24  ;;  %v848_v62 = vadd.f32 %v1393_v26, %v809_v56  ;;  %v1183_v2 = vpop.f32.mrb[12].mxu0  ;;  %v1199_v3 = vpop.f32.mrb[12].mxu1 }
 0x113   : > { %v864_v63 = vadd.f32 %v1393_v26, %v825_v57  ;;  %v810_v0 = vmul.f32 %v1388_v24, %v603_v46  ;;  %v826_v1 = vmul.f32 %v1388_v24, %v667_v47  ;;  %vm882_vm0 = vcmp.ge.f32.partialorder %v850_v58, 0.0  ;;  %v616_v6 = vpop.f32.mrb[13].mxu0  ;;  %v680_v7 = vpop.f32.mrb[13].mxu1 }
 0x114   : > { %v921_v4 = vmul.f32 %v1401_v32, %v850_v58  ;;  %vm898_vm1 = vcmp.ge.f32.partialorder %v866_v59, 0.0  ;;  %v937_v5 = vmul.f32 %v1401_v32, %v866_v59  ;;  %vm880_vm2 = vcmp.ge.f32.partialorder %v848_v62, 0.0  ;;  %v1184_v10 = vpop.f32.mrb[14].mxu0  ;;  %v1200_v11 = vpop.f32.mrb[14].mxu1 }
 0x115   : > { %v919_v8 = vmul.f32 %v1401_v32, %v848_v62  ;;  %vm896_vm3 = vcmp.ge.f32.partialorder %v864_v63, 0.0  ;;  %v935_v9 = vmul.f32 %v1401_v32, %v864_v63  ;;  %v851_v14 = vadd.f32 %v1393_v26, %v812_v60  ;;  %v619_v16 = vpop.f32.mrb[15].mxu0  ;;  %v683_v17 = vpop.f32.mrb[15].mxu1 }
 0x116   : > { %v953_v12 = vsel %vm882_vm0, %v850_v58, %v921_v4  ;;  %v969_v13 = vsel %vm898_vm1, %v866_v59, %v937_v5  ;;  %v867_v15 = vadd.f32 %v1393_v26, %v828_v61  ;;  %v849_v20 = vadd.f32 %v1393_v26, %v810_v0 }
 0x117   : > { %985 = vst [vmem:[%s1416_s30 + $0x50] sm:$0xff] %v953_v12  ;;  %1001 = vst [vmem:[%s1416_s30 + $0xd0] sm:$0xff] %v969_v13  ;;  %v951_v18 = vsel %vm880_vm2, %v848_v62, %v919_v8  ;;  %v967_v19 = vsel %vm896_vm3, %v864_v63, %v935_v9  ;;  %v865_v21 = vadd.f32 %v1393_v26, %v826_v1  ;;  %vm883_vm4 = vcmp.ge.f32.partialorder %v851_v14, 0.0 }
 0x118   : > { %983 = vst [vmem:[%s1416_s30 + $0x40] sm:$0xff] %v951_v18  ;;  %999 = vst [vmem:[%s1416_s30 + $0xc0] sm:$0xff] %v967_v19  ;;  %v922_v22 = vmul.f32 %v1401_v32, %v851_v14  ;;  %vm899_vm5 = vcmp.ge.f32.partialorder %v867_v15, 0.0  ;;  %v938_v23 = vmul.f32 %v1401_v32, %v867_v15  ;;  %vm881_vm6 = vcmp.ge.f32.partialorder %v849_v20, 0.0 }
 0x119   : > { %v920_v25 = vmul.f32 %v1401_v32, %v849_v20  ;;  %vm897_vm7 = vcmp.ge.f32.partialorder %v865_v21, 0.0  ;;  %v936_v27 = vmul.f32 %v1401_v32, %v865_v21  ;;  %v815_v30 = vmul.f32 %v1183_v2, %v1388_v24 }
 0x11a   : > { %v954_v28 = vsel %vm883_vm4, %v851_v14, %v922_v22  ;;  %v970_v29 = vsel %vm899_vm5, %v867_v15, %v938_v23  ;;  %v831_v31 = vmul.f32 %v1199_v3, %v1388_v24  ;;  %v813_v35 = vmul.f32 %v1388_v24, %v616_v6 }
 0x11b   : > { %986 = vst [vmem:[%s1416_s30 + $0x58] sm:$0xff] %v954_v28  ;;  %1002 = vst [vmem:[%s1416_s30 + $0xd8] sm:$0xff] %v970_v29  ;;  %v952_v33 = vsel %vm881_vm6, %v849_v20, %v920_v25  ;;  %v968_v34 = vsel %vm897_vm7, %v865_v21, %v936_v27  ;;  %v829_v36 = vmul.f32 %v1388_v24, %v680_v7 }
 0x11c   : > { %984 = vst [vmem:[%s1416_s30 + $0x48] sm:$0xff] %v952_v33  ;;  %1000 = vst [vmem:[%s1416_s30 + $0xc8] sm:$0xff] %v968_v34  ;;  %v854_v37 = vadd.f32 %v1393_v26, %v815_v30  ;;  %v870_v38 = vadd.f32 %v1393_v26, %v831_v31  ;;  %v816_v39 = vmul.f32 %v1184_v10, %v1388_v24 }
 0x11d   : > { %v832_v40 = vmul.f32 %v1200_v11, %v1388_v24  ;;  %v852_v41 = vadd.f32 %v1393_v26, %v813_v35  ;;  %v868_v42 = vadd.f32 %v1393_v26, %v829_v36  ;;  %v814_v43 = vmul.f32 %v1388_v24, %v619_v16 }
 0x11e   : > { %v830_v44 = vmul.f32 %v1388_v24, %v683_v17  ;;  %vm886_vm8 = vcmp.ge.f32.partialorder %v854_v37, 0.0  ;;  %v925_v45 = vmul.f32 %v1401_v32, %v854_v37  ;;  %vm902_vm9 = vcmp.ge.f32.partialorder %v870_v38, 0.0 }
 0x11f   : > { %v941_v46 = vmul.f32 %v1401_v32, %v870_v38  ;;  %vm884_vm10 = vcmp.ge.f32.partialorder %v852_v41, 0.0  ;;  %v923_v47 = vmul.f32 %v1401_v32, %v852_v41  ;;  %vm900_vm11 = vcmp.ge.f32.partialorder %v868_v42, 0.0 }
 0x120   : > { %v939_v48 = vmul.f32 %v1401_v32, %v868_v42  ;;  %v957_v49 = vsel %vm886_vm8, %v854_v37, %v925_v45  ;;  %v855_v51 = vadd.f32 %v1393_v26, %v816_v39  ;;  %v871_v24 = vadd.f32 %v1393_v26, %v832_v40 }
 0x121   : > { %v973_v50 = vsel %vm902_vm9, %v870_v38, %v941_v46  ;;  %989 = vst [vmem:[%s1416_s30 + $0x70] sm:$0xff] %v957_v49  ;;  %v955_v52 = vsel %vm884_vm10, %v852_v41, %v923_v47  ;;  %v853_v54 = vadd.f32 %v1393_v26, %v814_v43  ;;  %v869_v55 = vadd.f32 %v1393_v26, %v830_v44 }
 0x122   : > { %1005 = vst [vmem:[%s1416_s30 + $0xf0] sm:$0xff] %v973_v50  ;;  %v971_v53 = vsel %vm900_vm11, %v868_v42, %v939_v48  ;;  %987 = vst [vmem:[%s1416_s30 + $0x60] sm:$0xff] %v955_v52  ;;  %vm887_vm12 = vcmp.ge.f32.partialorder %v855_v51, 0.0  ;;  %v926_v56 = vmul.f32 %v1401_v32, %v855_v51  ;;  %vm903_vm13 = vcmp.ge.f32.partialorder %v871_v24, 0.0 }
 0x123   : > { %1003 = vst [vmem:[%s1416_s30 + $0xe0] sm:$0xff] %v971_v53  ;;  %v942_v57 = vmul.f32 %v1401_v32, %v871_v24  ;;  %vm885_vm14 = vcmp.ge.f32.partialorder %v853_v54, 0.0  ;;  %v924_v58 = vmul.f32 %v1401_v32, %v853_v54  ;;  %vm901_vm15 = vcmp.ge.f32.partialorder %v869_v55, 0.0 }
 0x124   : > { %v940_v59 = vmul.f32 %v1401_v32, %v869_v55  ;;  %v958_v60 = vsel %vm887_vm12, %v855_v51, %v926_v56 }
 0x125   : > { %v974_v61 = vsel %vm903_vm13, %v871_v24, %v942_v57  ;;  %990 = vst [vmem:[%s1416_s30 + $0x78] sm:$0xff] %v958_v60  ;;  %v956_v26 = vsel %vm885_vm14, %v853_v54, %v924_v58 }
 0x126   : > { %1006 = vst [vmem:[%s1416_s30 + $0xf8] sm:$0xff] %v974_v61  ;;  %v972_v62 = vsel %vm901_vm15, %v869_v55, %v940_v59  ;;  %988 = vst [vmem:[%s1416_s30 + $0x68] sm:$0xff] %v956_v26 }
 0x127   : > { %1004 = vst [vmem:[%s1416_s30 + $0xe8] sm:$0xff] %v972_v62 }
 0x128 PF: > { %s15_s20 = sadd.s32 1, %s1287_s20   ;;  %s1549_s18 = smov %s1283_s19 }
 0x129   : > { %p12_p5 = scmp.ge.s32.totalorder %s15_s20, 34   ;;  %s1550_s19 = smov %s1552_s21 }
 0x12b   :  { %14 = sbr.rel (!%p12_p5) target bundleno = 2 (0x2), region = 81 }

// kernel: encoder_forward.138
= control target key start
LH: loop header
LB: loop body
LE: loop exit
PB: predicated region body
PF: predicated region fallthrough
CT: control target
= control target key end

     0   :  { %s1451_s21 = smov 0   ;;  %s1453_s22 = smov 0   ;;  %s1758_s0 = inlined_call_operand.vmem [shape: bf16[2048,128], index: 0, kind: input, shape index: {}]   ;;  %s1759_s1 = inlined_call_operand.vmem [shape: bf16[128,128], index: 1, kind: input, shape index: {}]   ;;  %s1760_s2 = inlined_call_operand.vmem [shape: f32[1,128], index: 2, kind: input, shape index: {}]   ;;  %s1761_s3 = inlined_call_operand.vmem [shape: f32[1,128], index: 3, kind: input, shape index: {}]   ;;  %s1762_s4 = inlined_call_operand.vmem [shape: f32[1,128], index: 4, kind: input, shape index: {}]   ;;  %s1763_s5 = inlined_call_operand.vmem [shape: f32[2048,128], index: 5, kind: input, shape index: {}]   ;;  %s1764_s6 = inlined_call_operand.vmem [shape: f32[2048,128], index: 6, kind: output, shape index: {}]  }
   0x1   :  { %s1455_s23 = smov 0  }
   0x2 LB: > { %s28_s24 = sadd.s32 1, %s1410_s22  ;;  %p1220_p0 = scmp.ge.s32.totalorder %s1414_s23, 1  ;;  %s1414_s23 = sphi %s1455_s23, %s16_s23   ;;  %s1410_s22 = sphi %s1453_s22, %s1766_s22   ;;  %s1406_s21 = sphi %s1451_s21, %s1765_s21  }
   0x3   : > { %p30_p1 = scmp.ge.s32.totalorder %s28_s24, 8  ;;  %p252_p2 = scmp.lt.s32.totalorder %s1414_s23, 9 }
   0x5   : > { %s1768_s24 = smov (%p30_p1, %s28_s24), 0  ;;  %p253_p3 = pnand %p1220_p0, %p252_p2 }
   0x6   : > { %v1368_v0 = vld [vmem:[%s1759_s1] sm:$0xff] (!%p253_p3)   ;;  %s1221_s27 = sshll.u32 (!%p253_p3), %s1406_s21, 5  ;;  %v1369_v1 = vld [vmem:[%s1759_s1 + $0x8] sm:$0xff] (!%p253_p3)   ;;  %v1370_v2 = vld [vmem:[%s1759_s1 + $0x10] sm:$0xff] (!%p253_p3)  }
   0x7   : > { %256 = sbr.rel (%p253_p3) target bundleno = 305 (0x131), region = 44  ;;  %p296_p4 = scmp.lt.s32.totalorder (!%p253_p3), %s1221_s27, 255  ;;  %1280 = vmatprep.subr.bf16.mxu0 (!%p253_p3), %v1368_v0  ;;  %1328 = vmatprep.subr.bf16.mxu1 (!%p253_p3), %v1368_v0  ;;  %v1371_v3 = vld [vmem:[%s1759_s1 + $0x18] sm:$0xff] (!%p253_p3)   ;;  %v1372_v6 = vld [vmem:[%s1759_s1 + $0x20] sm:$0xff] (!%p253_p3)   ;;  %v1373_v7 = vld [vmem:[%s1759_s1 + $0x28] sm:$0xff] (!%p253_p3)  }
   0x8   : > { %1281 = vmatpush3.bf16.msra.mxu0 (!%p253_p3), %v1368_v0  ;;  %1336 = vmatpush3.bf16.msra.mxu1 (!%p253_p3), %v1368_v0  ;;  %v1374_v8 = vld [vmem:[%s1759_s1 + $0x30] sm:$0xff] (!%p253_p3)   ;;  %v1375_v9 = vld [vmem:[%s1759_s1 + $0x38] sm:$0xff] (!%p253_p3)   ;;  %v1520_v24 = vld [vmem:[%s1760_s2] ss:$0 sm:$0xff] (!%p253_p3) }
   0x9   : > { %1282 = vmatprep.subr.bf16.mxu0 (!%p253_p3), %v1369_v1  ;;  %1329 = vmatprep.subr.bf16.mxu1 (!%p253_p3), %v1369_v1  ;;  %v1526_v26 = vld [vmem:[%s1761_s3] ss:$0 sm:$0xff] (!%p253_p3) }
   0xa   : > { %v1540_v32 = vld [vmem:[%s1762_s4] ss:$0 sm:$0xff] (!%p253_p3) }
   0xc   : > { %1283 = vmatpush3.bf16.msra.mxu0 (!%p253_p3), %v1369_v1  ;;  %1337 = vmatpush3.bf16.msra.mxu1 (!%p253_p3), %v1369_v1 }
   0xd   : > { %1284 = vmatprep.subr.bf16.mxu0 (!%p253_p3), %v1370_v2  ;;  %1330 = vmatprep.subr.bf16.mxu1 (!%p253_p3), %v1370_v2 }
   0xe   : > { %s1770_s27 = smov (!%p296_p4, %s1221_s27), 255 }
   0xf   : > { %s1222_s8 = sshll.u32 %s1770_s27, 2  ;;  %s1224_s28 = sshll.u32 %s1770_s27, 3 }
  0x10   : > { %s1484_s11 = scalar_lea.vmem %s1758_s0, %s1222_s8  ;;  %1285 = vmatpush3.bf16.msra.mxu0 %v1370_v2  ;;  %1338 = vmatpush3.bf16.msra.mxu1 %v1370_v2  ;;  %s1535_s9 = scalar_lea.vmem %s1763_s5, %s1224_s28 }
  0x11   : > { %v1376_v4 = vld [vmem:[%s1484_s11] sm:$0xff]   ;;  %1286 = vmatprep.subr.bf16.mxu0 %v1371_v3  ;;  %1331 = vmatprep.subr.bf16.mxu1 %v1371_v3  ;;  %v1378_v10 = vld [vmem:[%s1484_s11 + $0x8] sm:$0xff]   ;;  %v1380_v12 = vld [vmem:[%s1484_s11 + $0x10] sm:$0xff]   ;;  %s1565_s14 = scalar_lea.vmem %s1764_s6, %s1224_s28 }
  0x12   : > { %v1377_v5 = vld [vmem:[%s1484_s11 + $0x40] sm:$0xff]   ;;  %1296 = vmatprep.mubr.bf16.mxu0 %v1376_v4  ;;  %v1379_v11 = vld [vmem:[%s1484_s11 + $0x48] sm:$0xff]   ;;  %v1381_v13 = vld [vmem:[%s1484_s11 + $0x50] sm:$0xff]  }
  0x13   : > { %1312 = vmatprep.mubr.bf16.mxu1 %v1377_v5  ;;  %v1382_v14 = vld [vmem:[%s1484_s11 + $0x18] sm:$0xff]   ;;  %v1384_v16 = vld [vmem:[%s1484_s11 + $0x20] sm:$0xff]   ;;  %v1386_v18 = vld [vmem:[%s1484_s11 + $0x28] sm:$0xff]  }
  0x14   : > { %1287 = vmatpush3.bf16.msra.mxu0 %v1371_v3  ;;  %1339 = vmatpush3.bf16.msra.mxu1 %v1371_v3  ;;  %v1383_v15 = vld [vmem:[%s1484_s11 + $0x58] sm:$0xff]   ;;  %v1385_v17 = vld [vmem:[%s1484_s11 + $0x60] sm:$0xff]   ;;  %v1387_v19 = vld [vmem:[%s1484_s11 + $0x68] sm:$0xff]  }
  0x15   : > { %1288 = vmatprep.subr.bf16.mxu0 %v1372_v6  ;;  %1332 = vmatprep.subr.bf16.mxu1 %v1372_v6  ;;  %v1388_v20 = vld [vmem:[%s1484_s11 + $0x30] sm:$0xff]   ;;  %v1390_v22 = vld [vmem:[%s1484_s11 + $0x38] sm:$0xff]   ;;  %v1024_v52 = vld [vmem:[%s1535_s9] sm:$0xff] }
  0x16   : > { %v1389_v21 = vld [vmem:[%s1484_s11 + $0x70] sm:$0xff]   ;;  %v1391_v23 = vld [vmem:[%s1484_s11 + $0x78] sm:$0xff]   ;;  %v1040_v54 = vld [vmem:[%s1535_s9 + $0x80] sm:$0xff] }
  0x17   : > { %v1026_v48 = vld [vmem:[%s1535_s9 + $0x10] sm:$0xff]  ;;  %v1027_v4 = vld [vmem:[%s1535_s9 + $0x18] sm:$0xff] }
  0x18   : > { %1289 = vmatpush3.bf16.msra.mxu0 %v1372_v6  ;;  %1340 = vmatpush3.bf16.msra.mxu1 %v1372_v6  ;;  %v1042_v50 = vld [vmem:[%s1535_s9 + $0x90] sm:$0xff] }
  0x19   : > { %1290 = vmatprep.subr.bf16.mxu0 %v1373_v7  ;;  %1333 = vmatprep.subr.bf16.mxu1 %v1373_v7 }
  0x1c   : > { %1291 = vmatpush3.bf16.msra.mxu0 %v1373_v7  ;;  %1341 = vmatpush3.bf16.msra.mxu1 %v1373_v7 }
  0x1d   : > { %1292 = vmatprep.subr.bf16.mxu0 %v1374_v8  ;;  %1334 = vmatprep.subr.bf16.mxu1 %v1374_v8 }
  0x20   : > { %1293 = vmatpush3.bf16.msra.mxu0 %v1374_v8  ;;  %1342 = vmatpush3.bf16.msra.mxu1 %v1374_v8  ;;  %v1043_v8 = vld [vmem:[%s1535_s9 + $0x98] sm:$0xff] }
  0x21   : > { %1294 = vmatprep.subr.bf16.mxu0 %v1375_v9  ;;  %1335 = vmatprep.subr.bf16.mxu1 %v1375_v9 }
  0x24   : > { %1295 = vmatpush3.bf16.msra.mxu0 %v1375_v9  ;;  %1343 = vmatpush3.bf16.msra.mxu1 %v1375_v9 }
  0x27   : > { %1297 = vmatmul.mubr.bf16.vlgmr.msra.gmra.mrb[0].mxu0 %v1378_v10  ;;  %1313 = vmatmul.mubr.bf16.vlgmr.msra.gmra.mrb[0].mxu1 %v1379_v11 }
  0x28   : > { %1300 = vmatprep.mubr.bf16.mxu0 %v1380_v12  ;;  %1316 = vmatprep.mubr.bf16.mxu1 %v1381_v13 }
  0x2f   : > { %1301 = vmatmul.mubr.bf16.gmra.mrb[4].mxu0 %v1382_v14  ;;  %1317 = vmatmul.mubr.bf16.gmra.mrb[4].mxu1 %v1383_v15 }
  0x30   : > { %1304 = vmatprep.mubr.bf16.mxu0 %v1384_v16  ;;  %1320 = vmatprep.mubr.bf16.mxu1 %v1385_v17 }
  0x37   : > { %1305 = vmatmul.mubr.bf16.gmra.mrb[8].mxu0 %v1386_v18  ;;  %1321 = vmatmul.mubr.bf16.gmra.mrb[8].mxu1 %v1387_v19 }
  0x38   : > { %1308 = vmatprep.mubr.bf16.mxu0 %v1388_v20  ;;  %1324 = vmatprep.mubr.bf16.mxu1 %v1389_v21 }
  0x3f   : > { %1309 = vmatmul.mubr.bf16.gmra.mrb[12].mxu0 %v1390_v22  ;;  %1325 = vmatmul.mubr.bf16.gmra.mrb[12].mxu1 %v1391_v23  ;;  %v1025_v22 = vld [vmem:[%s1535_s9 + $0x8] sm:$0xff] }
  0xfa   : > { %v1298_v25 = vpop.f32.mrb[0].mxu0  ;;  %v1314_v27 = vpop.f32.mrb[0].mxu1 }
  0xfb   : > { %v852_v28 = vmul.f32 %v1298_v25, %v1520_v24  ;;  %v868_v29 = vmul.f32 %v1314_v27, %v1520_v24  ;;  %v617_v30 = vpop.f32.mrb[1].mxu0  ;;  %v681_v31 = vpop.f32.mrb[1].mxu1  ;;  %v1041_v27 = vld [vmem:[%s1535_s9 + $0x88] sm:$0xff] }
  0xfc   : > { %v850_v33 = vmul.f32 %v1520_v24, %v617_v30  ;;  %v866_v34 = vmul.f32 %v1520_v24, %v681_v31  ;;  %v1299_v35 = vpop.f32.mrb[2].mxu0  ;;  %v1315_v36 = vpop.f32.mrb[2].mxu1 }
  0xfd   : > { %v891_v37 = vadd.f32 %v1526_v26, %v852_v28  ;;  %v907_v38 = vadd.f32 %v1526_v26, %v868_v29  ;;  %v853_v39 = vmul.f32 %v1299_v35, %v1520_v24  ;;  %v869_v40 = vmul.f32 %v1315_v36, %v1520_v24  ;;  %v620_v41 = vpop.f32.mrb[3].mxu0  ;;  %v684_v42 = vpop.f32.mrb[3].mxu1 }
  0xfe   : > { %v889_v43 = vadd.f32 %v1526_v26, %v850_v33  ;;  %v905_v44 = vadd.f32 %v1526_v26, %v866_v34  ;;  %v851_v45 = vmul.f32 %v1520_v24, %v620_v41  ;;  %v867_v46 = vmul.f32 %v1520_v24, %v684_v42 }
  0xff   : > { %vm923_vm0 = vcmp.ge.f32.partialorder %v891_v37, 0.0  ;;  %v962_v47 = vmul.f32 %v1540_v32, %v891_v37  ;;  %vm939_vm1 = vcmp.ge.f32.partialorder %v907_v38, 0.0  ;;  %v978_v49 = vmul.f32 %v1540_v32, %v907_v38 }
 0x100   : > { %vm921_vm2 = vcmp.ge.f32.partialorder %v889_v43, 0.0  ;;  %v960_v51 = vmul.f32 %v1540_v32, %v889_v43  ;;  %vm937_vm3 = vcmp.ge.f32.partialorder %v905_v44, 0.0  ;;  %v976_v53 = vmul.f32 %v1540_v32, %v905_v44 }
 0x101   : > { %v994_v55 = vsel %vm923_vm0, %v891_v37, %v962_v47  ;;  %v1010_v56 = vsel %vm939_vm1, %v907_v38, %v978_v49  ;;  %v892_v57 = vadd.f32 %v1526_v26, %v853_v39  ;;  %v908_v58 = vadd.f32 %v1526_v26, %v869_v40  ;;  %v1030_v37 = vld [vmem:[%s1535_s9 + $0x30] sm:$0xff] }
 0x102   : > { %v1058_v59 = vadd.f32 %v1026_v48, %v994_v55  ;;  %v1074_v60 = vadd.f32 %v1042_v50, %v1010_v56  ;;  %v992_v61 = vsel %vm921_vm2, %v889_v43, %v960_v51  ;;  %v1008_v62 = vsel %vm937_vm3, %v905_v44, %v976_v53  ;;  %v1302_v63 = vpop.f32.mrb[4].mxu0  ;;  %v1318_v0 = vpop.f32.mrb[4].mxu1  ;;  %v1046_v40 = vld [vmem:[%s1535_s9 + $0xb0] sm:$0xff] }
 0x103   : > { %v1056_v1 = vadd.f32 %v1024_v52, %v992_v61  ;;  %v1072_v2 = vadd.f32 %v1040_v54, %v1008_v62  ;;  %vm924_vm4 = vcmp.ge.f32.partialorder %v892_v57, 0.0  ;;  %v963_v3 = vmul.f32 %v1540_v32, %v892_v57  ;;  %v633_v5 = vpop.f32.mrb[5].mxu0  ;;  %v697_v6 = vpop.f32.mrb[5].mxu1 }
 0x104   : > { %1090 = vst [vmem:[%s1565_s14 + $0x10] sm:$0xff] %v1058_v59  ;;  %1106 = vst [vmem:[%s1565_s14 + $0x90] sm:$0xff] %v1074_v60  ;;  %vm940_vm5 = vcmp.ge.f32.partialorder %v908_v58, 0.0  ;;  %v979_v7 = vmul.f32 %v1540_v32, %v908_v58  ;;  %v890_v9 = vadd.f32 %v1526_v26, %v851_v45  ;;  %v906_v10 = vadd.f32 %v1526_v26, %v867_v46  ;;  %v1303_v11 = vpop.f32.mrb[6].mxu0  ;;  %v1319_v12 = vpop.f32.mrb[6].mxu1  ;;  %v1028_v45 = vld [vmem:[%s1535_s9 + $0x20] sm:$0xff] }
 0x105   : > { %1088 = vst [vmem:[%s1565_s14] sm:$0xff] %v1056_v1  ;;  %1104 = vst [vmem:[%s1565_s14 + $0x80] sm:$0xff] %v1072_v2  ;;  %v995_v13 = vsel %vm924_vm4, %v892_v57, %v963_v3  ;;  %v856_v14 = vmul.f32 %v1302_v63, %v1520_v24  ;;  %v872_v15 = vmul.f32 %v1318_v0, %v1520_v24  ;;  %v636_v17 = vpop.f32.mrb[7].mxu0  ;;  %v700_v18 = vpop.f32.mrb[7].mxu1  ;;  %v1044_v59 = vld [vmem:[%s1535_s9 + $0xa0] sm:$0xff] }
 0x106   : > { %v854_v16 = vmul.f32 %v1520_v24, %v633_v5  ;;  %v1059_v19 = vadd.f32 %v1027_v4, %v995_v13  ;;  %v1011_v20 = vsel %vm940_vm5, %v908_v58, %v979_v7  ;;  %vm922_vm6 = vcmp.ge.f32.partialorder %v890_v9, 0.0 }
 0x107   : > { %v961_v21 = vmul.f32 %v1540_v32, %v890_v9  ;;  %v1075_v23 = vadd.f32 %v1043_v8, %v1011_v20  ;;  %vm938_vm7 = vcmp.ge.f32.partialorder %v906_v10, 0.0  ;;  %v977_v25 = vmul.f32 %v1540_v32, %v906_v10  ;;  %v1031_v8 = vld [vmem:[%s1535_s9 + $0x38] sm:$0xff] }
 0x108   : > { %v895_v28 = vadd.f32 %v1526_v26, %v856_v14  ;;  %1091 = vst [vmem:[%s1565_s14 + $0x18] sm:$0xff] %v1059_v19  ;;  %v911_v30 = vadd.f32 %v1526_v26, %v872_v15  ;;  %v893_v31 = vadd.f32 %v1526_v26, %v854_v16  ;;  %v870_v33 = vmul.f32 %v1520_v24, %v697_v6 }
 0x109   : > { %v993_v29 = vsel %vm922_vm6, %v890_v9, %v961_v21  ;;  %1107 = vst [vmem:[%s1565_s14 + $0x98] sm:$0xff] %v1075_v23  ;;  %v1009_v35 = vsel %vm938_vm7, %v906_v10, %v977_v25  ;;  %v857_v47 = vmul.f32 %v1303_v11, %v1520_v24  ;;  %v873_v52 = vmul.f32 %v1319_v12, %v1520_v24  ;;  %v1047_v10 = vld [vmem:[%s1535_s9 + $0xb8] sm:$0xff]  ;;  %v1029_v12 = vld [vmem:[%s1535_s9 + $0x28] sm:$0xff] }
 0x10a   : > { %v1057_v34 = vadd.f32 %v1025_v22, %v993_v29  ;;  %vm927_vm8 = vcmp.ge.f32.partialorder %v895_v28, 0.0  ;;  %v966_v36 = vmul.f32 %v1540_v32, %v895_v28  ;;  %v1073_v38 = vadd.f32 %v1041_v27, %v1009_v35  ;;  %v1306_v41 = vpop.f32.mrb[8].mxu0  ;;  %v1322_v42 = vpop.f32.mrb[8].mxu1  ;;  %v1034_v35 = vld [vmem:[%s1535_s9 + $0x50] sm:$0xff] }
 0x10b   : > { %vm943_vm9 = vcmp.ge.f32.partialorder %v911_v30, 0.0  ;;  %v982_v39 = vmul.f32 %v1540_v32, %v911_v30  ;;  %vm925_vm10 = vcmp.ge.f32.partialorder %v893_v31, 0.0  ;;  %v964_v44 = vmul.f32 %v1540_v32, %v893_v31  ;;  %v649_v48 = vpop.f32.mrb[9].mxu0  ;;  %v1603_v49 = vpop.f32.mrb[9].mxu1 }
 0x10c   : > { %1089 = vst [vmem:[%s1565_s14 + $0x8] sm:$0xff] %v1057_v34  ;;  %v998_v43 = vsel %vm927_vm8, %v895_v28, %v966_v36  ;;  %v909_v46 = vadd.f32 %v1526_v26, %v870_v33  ;;  %1105 = vst [vmem:[%s1565_s14 + $0x88] sm:$0xff] %v1073_v38  ;;  %v855_v53 = vmul.f32 %v1520_v24, %v636_v17  ;;  %v1609_v54 = vpop.f32.mrb[10].mxu0  ;;  %v1611_v55 = vpop.f32.mrb[10].mxu1 }
 0x10d   : > { %v1062_v50 = vadd.f32 %v1030_v37, %v998_v43  ;;  %v1014_v51 = vsel %vm943_vm9, %v911_v30, %v982_v39  ;;  %v996_v57 = vsel %vm925_vm10, %v893_v31, %v964_v44  ;;  %v1616_v60 = vpop.f32.mrb[11].mxu0  ;;  %v1618_v61 = vpop.f32.mrb[11].mxu1  ;;  %v896_v63 = vadd.f32 %v1526_v26, %v857_v47  ;;  %v1045_v30 = vld [vmem:[%s1535_s9 + $0xa8] sm:$0xff]  ;;  %v1050_v37 = vld [vmem:[%s1535_s9 + $0xd0] sm:$0xff] }
 0x10e   : > { %v1078_v56 = vadd.f32 %v1046_v40, %v1014_v51  ;;  %vm941_vm11 = vcmp.ge.f32.partialorder %v909_v46, 0.0  ;;  %v980_v58 = vmul.f32 %v1540_v32, %v909_v46  ;;  %v1060_v62 = vadd.f32 %v1028_v45, %v996_v57 }
 0x10f   : > { %1094 = vst [vmem:[%s1565_s14 + $0x30] sm:$0xff] %v1062_v50  ;;  %v912_v0 = vadd.f32 %v1526_v26, %v873_v52  ;;  %v894_v1 = vadd.f32 %v1526_v26, %v855_v53  ;;  %v871_v3 = vmul.f32 %v1520_v24, %v700_v18  ;;  %v860_v4 = vmul.f32 %v1306_v41, %v1520_v24  ;;  %v1032_v52 = vld [vmem:[%s1535_s9 + $0x40] sm:$0xff] }
 0x110   : > { %1110 = vst [vmem:[%s1565_s14 + $0xb0] sm:$0xff] %v1078_v56  ;;  %v1012_v2 = vsel %vm941_vm11, %v909_v46, %v980_v58  ;;  %v876_v5 = vmul.f32 %v1322_v42, %v1520_v24  ;;  %1092 = vst [vmem:[%s1565_s14 + $0x20] sm:$0xff] %v1060_v62  ;;  %vm928_vm12 = vcmp.ge.f32.partialorder %v896_v63, 0.0  ;;  %v967_v7 = vmul.f32 %v1540_v32, %v896_v63 }
 0x111   : > { %v1076_v6 = vadd.f32 %v1044_v59, %v1012_v2  ;;  %vm944_vm13 = vcmp.ge.f32.partialorder %v912_v0, 0.0  ;;  %v983_v9 = vmul.f32 %v1540_v32, %v912_v0  ;;  %vm926_vm14 = vcmp.ge.f32.partialorder %v894_v1, 0.0  ;;  %v1048_v59 = vld [vmem:[%s1535_s9 + $0xc0] sm:$0xff]  ;;  %v1051_v2 = vld [vmem:[%s1535_s9 + $0xd8] sm:$0xff] }
 0x112   : > { %v965_v11 = vmul.f32 %v1540_v32, %v894_v1  ;;  %v910_v13 = vadd.f32 %v1526_v26, %v871_v3  ;;  %v999_v14 = vsel %vm928_vm12, %v896_v63, %v967_v7  ;;  %v899_v15 = vadd.f32 %v1526_v26, %v860_v4  ;;  %v1310_v18 = vpop.f32.mrb[12].mxu0  ;;  %v1640_v19 = vpop.f32.mrb[12].mxu1 }
 0x113   : > { %1108 = vst [vmem:[%s1565_s14 + $0xa0] sm:$0xff] %v1076_v6  ;;  %v915_v16 = vadd.f32 %v1526_v26, %v876_v5  ;;  %v858_v17 = vmul.f32 %v1520_v24, %v649_v48  ;;  %v1063_v20 = vadd.f32 %v1031_v8, %v999_v14  ;;  %v1015_v21 = vsel %vm944_vm13, %v912_v0, %v983_v9  ;;  %v1642_v23 = vpop.f32.mrb[13].mxu0  ;;  %v1644_v25 = vpop.f32.mrb[13].mxu1 }
 0x114   : > { %v997_v22 = vsel %vm926_vm14, %v894_v1, %v965_v11  ;;  %vm942_vm15 = vcmp.ge.f32.partialorder %v910_v13, 0.0  ;;  %v1079_v27 = vadd.f32 %v1047_v10, %v1015_v21  ;;  %v981_v29 = vmul.f32 %v1540_v32, %v910_v13  ;;  %v1648_v31 = vpop.f32.mrb[14].mxu0  ;;  %v1650_v33 = vpop.f32.mrb[14].mxu1  ;;  %v1035_v1 = vld [vmem:[%s1535_s9 + $0x58] sm:$0xff] }
 0x115   : > { %v1061_v28 = vadd.f32 %v1029_v12, %v997_v22  ;;  %vm931_vm0 = vcmp.ge.f32.partialorder %v899_v15, 0.0  ;;  %1095 = vst [vmem:[%s1565_s14 + $0x38] sm:$0xff] %v1063_v20  ;;  %v970_v34 = vmul.f32 %v1540_v32, %v899_v15  ;;  %vm947_vm1 = vcmp.ge.f32.partialorder %v915_v16, 0.0  ;;  %v1658_v39 = vpop.f32.mrb[15].mxu0  ;;  %v1660_v40 = vpop.f32.mrb[15].mxu1  ;;  %v1033_v12 = vld [vmem:[%s1535_s9 + $0x48] sm:$0xff] }
 0x116   : > { %v986_v36 = vmul.f32 %v1540_v32, %v915_v16  ;;  %v897_v38 = vadd.f32 %v1526_v26, %v858_v17  ;;  %1111 = vst [vmem:[%s1565_s14 + $0xb8] sm:$0xff] %v1079_v27  ;;  %v1013_v41 = vsel %vm942_vm15, %v910_v13, %v981_v29  ;;  %v874_v42 = vmul.f32 %v1520_v24, %v1603_v49 }
 0x117   : > { %1093 = vst [vmem:[%s1565_s14 + $0x28] sm:$0xff] %v1061_v28  ;;  %v861_v43 = vmul.f32 %v1609_v54, %v1520_v24  ;;  %v877_v44 = vmul.f32 %v1611_v55, %v1520_v24  ;;  %v1077_v45 = vadd.f32 %v1045_v30, %v1013_v41  ;;  %v1002_v46 = vsel %vm931_vm0, %v899_v15, %v970_v34  ;;  %v1049_v15 = vld [vmem:[%s1535_s9 + $0xc8] sm:$0xff] }
 0x118   : > { %v1018_v47 = vsel %vm947_vm1, %v915_v16, %v986_v36  ;;  %vm929_vm2 = vcmp.ge.f32.partialorder %v897_v38, 0.0  ;;  %v1066_v48 = vadd.f32 %v1034_v35, %v1002_v46  ;;  %v968_v51 = vmul.f32 %v1540_v32, %v897_v38  ;;  %v1054_v35 = vld [vmem:[%s1535_s9 + $0xf0] sm:$0xff] }
 0x119   : > { %v1082_v50 = vadd.f32 %v1050_v37, %v1018_v47  ;;  %v913_v49 = vadd.f32 %v1526_v26, %v874_v42  ;;  %1109 = vst [vmem:[%s1565_s14 + $0xa8] sm:$0xff] %v1077_v45  ;;  %v900_v53 = vadd.f32 %v1526_v26, %v861_v43  ;;  %v916_v54 = vadd.f32 %v1526_v26, %v877_v44  ;;  %v1036_v45 = vld [vmem:[%s1535_s9 + $0x60] sm:$0xff] }
 0x11a   : > { %v859_v55 = vmul.f32 %v1520_v24, %v1616_v60  ;;  %v875_v56 = vmul.f32 %v1520_v24, %v1618_v61  ;;  %1098 = vst [vmem:[%s1565_s14 + $0x50] sm:$0xff] %v1066_v48  ;;  %v1000_v57 = vsel %vm929_vm2, %v897_v38, %v968_v51  ;;  %v864_v62 = vmul.f32 %v1310_v18, %v1520_v24  ;;  %v1038_v18 = vld [vmem:[%s1535_s9 + $0x70] sm:$0xff]  ;;  %v1052_v47 = vld [vmem:[%s1535_s9 + $0xe0] sm:$0xff]  ;;  %v1039_v48 = vld [vmem:[%s1535_s9 + $0x78] sm:$0xff] }
 0x11b   : > { %1114 = vst [vmem:[%s1565_s14 + $0xd0] sm:$0xff] %v1082_v50  ;;  %vm945_vm3 = vcmp.ge.f32.partialorder %v913_v49, 0.0  ;;  %v984_v58 = vmul.f32 %v1540_v32, %v913_v49  ;;  %v1064_v63 = vadd.f32 %v1032_v52, %v1000_v57  ;;  %vm932_vm4 = vcmp.ge.f32.partialorder %v900_v53, 0.0 }
 0x11c   : > { %v971_v0 = vmul.f32 %v1540_v32, %v900_v53  ;;  %vm948_vm5 = vcmp.ge.f32.partialorder %v916_v54, 0.0  ;;  %v987_v61 = vmul.f32 %v1540_v32, %v916_v54  ;;  %v898_v3 = vadd.f32 %v1526_v26, %v859_v55 }
 0x11d   : > { %v1016_v60 = vsel %vm945_vm3, %v913_v49, %v984_v58  ;;  %v914_v4 = vadd.f32 %v1526_v26, %v875_v56  ;;  %1096 = vst [vmem:[%s1565_s14 + $0x40] sm:$0xff] %v1064_v63  ;;  %v903_v7 = vadd.f32 %v1526_v26, %v864_v62  ;;  %v880_v8 = vmul.f32 %v1640_v19, %v1520_v24  ;;  %v1055_v56 = vld [vmem:[%s1535_s9 + $0xf8] sm:$0xff]  ;;  %v1037_v58 = vld [vmem:[%s1535_s9 + $0x68] sm:$0xff] }
 0x11e   : > { %v1080_v5 = vadd.f32 %v1048_v59, %v1016_v60  ;;  %v1003_v6 = vsel %vm932_vm4, %v900_v53, %v971_v0  ;;  %v1019_v10 = vsel %vm948_vm5, %v916_v54, %v987_v61  ;;  %vm930_vm6 = vcmp.ge.f32.partialorder %v898_v3, 0.0  ;;  %v1053_v59 = vld [vmem:[%s1535_s9 + $0xe8] sm:$0xff] }
 0x11f   : > { %v1067_v9 = vadd.f32 %v1035_v1, %v1003_v6  ;;  %v969_v11 = vmul.f32 %v1540_v32, %v898_v3  ;;  %v1083_v13 = vadd.f32 %v1051_v2, %v1019_v10  ;;  %vm946_vm7 = vcmp.ge.f32.partialorder %v914_v4, 0.0 }
 0x120   : > { %1112 = vst [vmem:[%s1565_s14 + $0xc0] sm:$0xff] %v1080_v5  ;;  %v985_v14 = vmul.f32 %v1540_v32, %v914_v4  ;;  %vm935_vm8 = vcmp.ge.f32.partialorder %v903_v7, 0.0  ;;  %v974_v17 = vmul.f32 %v1540_v32, %v903_v7  ;;  %v919_v19 = vadd.f32 %v1526_v26, %v880_v8 }
 0x121   : > { %1099 = vst [vmem:[%s1565_s14 + $0x58] sm:$0xff] %v1067_v9  ;;  %v1001_v16 = vsel %vm930_vm6, %v898_v3, %v969_v11  ;;  %v862_v20 = vmul.f32 %v1520_v24, %v1642_v23  ;;  %1115 = vst [vmem:[%s1565_s14 + $0xd8] sm:$0xff] %v1083_v13  ;;  %v878_v27 = vmul.f32 %v1520_v24, %v1644_v25 }
 0x122   : > { %v1065_v21 = vadd.f32 %v1033_v12, %v1001_v16  ;;  %v1017_v22 = vsel %vm946_vm7, %v914_v4, %v985_v14  ;;  %v865_v28 = vmul.f32 %v1648_v31, %v1520_v24  ;;  %v1006_v30 = vsel %vm935_vm8, %v903_v7, %v974_v17 }
 0x123   : > { %v1081_v29 = vadd.f32 %v1049_v15, %v1017_v22  ;;  %vm951_vm9 = vcmp.ge.f32.partialorder %v919_v19, 0.0  ;;  %v990_v34 = vmul.f32 %v1540_v32, %v919_v19  ;;  %v1070_v23 = vadd.f32 %v1038_v18, %v1006_v30 }
 0x124   : > { %1097 = vst [vmem:[%s1565_s14 + $0x48] sm:$0xff] %v1065_v21  ;;  %v901_v36 = vadd.f32 %v1526_v26, %v862_v20  ;;  %v917_v37 = vadd.f32 %v1526_v26, %v878_v27  ;;  %v904_v25 = vadd.f32 %v1526_v26, %v865_v28  ;;  %v881_v38 = vmul.f32 %v1650_v33, %v1520_v24 }
 0x125   : > { %1113 = vst [vmem:[%s1565_s14 + $0xc8] sm:$0xff] %v1081_v29  ;;  %v1022_v31 = vsel %vm951_vm9, %v919_v19, %v990_v34  ;;  %v863_v41 = vmul.f32 %v1520_v24, %v1658_v39  ;;  %v879_v42 = vmul.f32 %v1520_v24, %v1660_v40  ;;  %1102 = vst [vmem:[%s1565_s14 + $0x70] sm:$0xff] %v1070_v23 }
 0x126   : > { %v1086_v43 = vadd.f32 %v1054_v35, %v1022_v31  ;;  %vm933_vm10 = vcmp.ge.f32.partialorder %v901_v36, 0.0  ;;  %v972_v44 = vmul.f32 %v1540_v32, %v901_v36  ;;  %vm949_vm11 = vcmp.ge.f32.partialorder %v917_v37, 0.0 }
 0x127   : > { %v988_v46 = vmul.f32 %v1540_v32, %v917_v37  ;;  %vm936_vm12 = vcmp.ge.f32.partialorder %v904_v25, 0.0  ;;  %v975_v33 = vmul.f32 %v1540_v32, %v904_v25  ;;  %v920_v39 = vadd.f32 %v1526_v26, %v881_v38 }
 0x128   : > { %1118 = vst [vmem:[%s1565_s14 + $0xf0] sm:$0xff] %v1086_v43  ;;  %v1004_v24 = vsel %vm933_vm10, %v901_v36, %v972_v44  ;;  %v902_v40 = vadd.f32 %v1526_v26, %v863_v41  ;;  %v918_v50 = vadd.f32 %v1526_v26, %v879_v42 }
 0x129   : > { %v1068_v51 = vadd.f32 %v1036_v45, %v1004_v24  ;;  %v1020_v52 = vsel %vm949_vm11, %v917_v37, %v988_v46  ;;  %v1007_v49 = vsel %vm936_vm12, %v904_v25, %v975_v33  ;;  %vm952_vm13 = vcmp.ge.f32.partialorder %v920_v39, 0.0 }
 0x12a   : > { %v1084_v53 = vadd.f32 %v1052_v47, %v1020_v52  ;;  %v1071_v54 = vadd.f32 %v1039_v48, %v1007_v49  ;;  %v991_v55 = vmul.f32 %v1540_v32, %v920_v39  ;;  %vm934_vm14 = vcmp.ge.f32.partialorder %v902_v40, 0.0 }
 0x12b   : > { %1100 = vst [vmem:[%s1565_s14 + $0x60] sm:$0xff] %v1068_v51  ;;  %v973_v57 = vmul.f32 %v1540_v32, %v902_v40  ;;  %vm950_vm15 = vcmp.ge.f32.partialorder %v918_v50, 0.0  ;;  %v989_v26 = vmul.f32 %v1540_v32, %v918_v50 }
 0x12c   : > { %1116 = vst [vmem:[%s1565_s14 + $0xe0] sm:$0xff] %v1084_v53  ;;  %1103 = vst [vmem:[%s1565_s14 + $0x78] sm:$0xff] %v1071_v54  ;;  %v1023_v62 = vsel %vm952_vm13, %v920_v39, %v991_v55 }
 0x12d   : > { %v1087_v63 = vadd.f32 %v1055_v56, %v1023_v62  ;;  %v1005_v0 = vsel %vm934_vm14, %v902_v40, %v973_v57  ;;  %v1021_v1 = vsel %vm950_vm15, %v918_v50, %v989_v26 }
 0x12e   : > { %v1069_v60 = vadd.f32 %v1037_v58, %v1005_v0  ;;  %v1085_v61 = vadd.f32 %v1053_v59, %v1021_v1 }
 0x12f   : > { %1119 = vst [vmem:[%s1565_s14 + $0xf8] sm:$0xff] %v1087_v63 }
 0x130   : > { %1101 = vst [vmem:[%s1565_s14 + $0x68] sm:$0xff] %v1069_v60  ;;  %1117 = vst [vmem:[%s1565_s14 + $0xe8] sm:$0xff] %v1085_v61 }
 0x131 PF: > { %s16_s23 = sadd.s32 1, %s1414_s23   ;;  %s1765_s21 = smov %s1410_s22 }
 0x132   : > { %p13_p5 = scmp.ge.s32.totalorder %s16_s23, 10   ;;  %s1766_s22 = smov %s1768_s24 }
 0x134   :  { %15 = sbr.rel (!%p13_p5) target bundleno = 2 (0x2), region = 88 }

// kernel: encoder_forward.139
= control target key start
LH: loop header
LB: loop body
LE: loop exit
PB: predicated region body
PF: predicated region fallthrough
CT: control target
= control target key end

     0   :  { %s1319_s18 = smov 0   ;;  %s1321_s19 = smov 0   ;;  %s1543_s0 = inlined_call_operand.vmem [shape: bf16[2048,128], index: 0, kind: input, shape index: {}]   ;;  %s1544_s1 = inlined_call_operand.vmem [shape: bf16[128,128], index: 1, kind: input, shape index: {}]   ;;  %s1545_s2 = inlined_call_operand.vmem [shape: f32[1,128], index: 2, kind: input, shape index: {}]   ;;  %s1546_s3 = inlined_call_operand.vmem [shape: f32[1,128], index: 3, kind: input, shape index: {}]   ;;  %s1547_s4 = inlined_call_operand.vmem [shape: f32[1,128], index: 4, kind: input, shape index: {}]   ;;  %s1548_s5 = inlined_call_operand.vmem [shape: f32[2048,128], index: 5, kind: output, shape index: {}]  }
   0x1   :  { %s1323_s20 = smov 0  }
   0x2 LB: > { %s27_s21 = sadd.s32 1, %s1283_s19  ;;  %p1095_p0 = scmp.ge.s32.totalorder %s1287_s20, 1  ;;  %s1287_s20 = sphi %s1323_s20, %s15_s20   ;;  %s1283_s19 = sphi %s1321_s19, %s1550_s19   ;;  %s1279_s18 = sphi %s1319_s18, %s1549_s18  }
   0x3   : > { %p29_p1 = scmp.ge.s32.totalorder %s27_s21, 8  ;;  %p216_p2 = scmp.lt.s32.totalorder %s1287_s20, 9 }
   0x5   : > { %s1552_s21 = smov (%p29_p1, %s27_s21), 0  ;;  %p217_p3 = pnand %p1095_p0, %p216_p2 }
   0x6   : > { %v1241_v0 = vld [vmem:[%s1544_s1] sm:$0xff] (!%p217_p3)   ;;  %s1096_s24 = sshll.u32 (!%p217_p3), %s1279_s18, 5  ;;  %v1242_v1 = vld [vmem:[%s1544_s1 + $0x8] sm:$0xff] (!%p217_p3)   ;;  %v1243_v2 = vld [vmem:[%s1544_s1 + $0x10] sm:$0xff] (!%p217_p3)  }
   0x7   : > { %220 = sbr.rel (%p217_p3) target bundleno = 296 (0x128), region = 40  ;;  %p253_p4 = scmp.lt.s32.totalorder (!%p217_p3), %s1096_s24, 255  ;;  %1153 = vmatprep.subr.bf16.mxu0 (!%p217_p3), %v1241_v0  ;;  %1201 = vmatprep.subr.bf16.mxu1 (!%p217_p3), %v1241_v0  ;;  %v1244_v3 = vld [vmem:[%s1544_s1 + $0x18] sm:$0xff] (!%p217_p3)   ;;  %v1245_v6 = vld [vmem:[%s1544_s1 + $0x20] sm:$0xff] (!%p217_p3)   ;;  %v1246_v7 = vld [vmem:[%s1544_s1 + $0x28] sm:$0xff] (!%p217_p3)  }
   0x8   : > { %1154 = vmatpush3.bf16.msra.mxu0 (!%p217_p3), %v1241_v0  ;;  %1209 = vmatpush3.bf16.msra.mxu1 (!%p217_p3), %v1241_v0  ;;  %v1247_v8 = vld [vmem:[%s1544_s1 + $0x30] sm:$0xff] (!%p217_p3)   ;;  %v1248_v9 = vld [vmem:[%s1544_s1 + $0x38] sm:$0xff] (!%p217_p3)   ;;  %v1388_v24 = vld [vmem:[%s1545_s2] ss:$0 sm:$0xff] (!%p217_p3) }
   0x9   : > { %1155 = vmatprep.subr.bf16.mxu0 (!%p217_p3), %v1242_v1  ;;  %1202 = vmatprep.subr.bf16.mxu1 (!%p217_p3), %v1242_v1  ;;  %v1393_v26 = vld [vmem:[%s1546_s3] ss:$0 sm:$0xff] (!%p217_p3) }
   0xa   : > { %v1401_v32 = vld [vmem:[%s1547_s4] ss:$0 sm:$0xff] (!%p217_p3) }
   0xc   : > { %1156 = vmatpush3.bf16.msra.mxu0 (!%p217_p3), %v1242_v1  ;;  %1210 = vmatpush3.bf16.msra.mxu1 (!%p217_p3), %v1242_v1 }
   0xd   : > { %1157 = vmatprep.subr.bf16.mxu0 (!%p217_p3), %v1243_v2  ;;  %1203 = vmatprep.subr.bf16.mxu1 (!%p217_p3), %v1243_v2 }
   0xe   : > { %s1554_s24 = smov (!%p253_p4, %s1096_s24), 255 }
   0xf   : > { %s1097_s29 = sshll.u32 %s1554_s24, 2  ;;  %s1099_s26 = sshll.u32 %s1554_s24, 3 }
  0x10   : > { %s1352_s7 = scalar_lea.vmem %s1543_s0, %s1097_s29  ;;  %1158 = vmatpush3.bf16.msra.mxu0 %v1243_v2  ;;  %1211 = vmatpush3.bf16.msra.mxu1 %v1243_v2  ;;  %s1416_s30 = scalar_lea.vmem %s1548_s5, %s1099_s26 }
  0x11   : > { %v1249_v4 = vld [vmem:[%s1352_s7] sm:$0xff]   ;;  %1159 = vmatprep.subr.bf16.mxu0 %v1244_v3  ;;  %1204 = vmatprep.subr.bf16.mxu1 %v1244_v3  ;;  %v1251_v10 = vld [vmem:[%s1352_s7 + $0x8] sm:$0xff]   ;;  %v1253_v12 = vld [vmem:[%s1352_s7 + $0x10] sm:$0xff]  }
  0x12   : > { %v1250_v5 = vld [vmem:[%s1352_s7 + $0x40] sm:$0xff]   ;;  %1169 = vmatprep.mubr.bf16.mxu0 %v1249_v4  ;;  %v1252_v11 = vld [vmem:[%s1352_s7 + $0x48] sm:$0xff]   ;;  %v1254_v13 = vld [vmem:[%s1352_s7 + $0x50] sm:$0xff]  }
  0x13   : > { %1185 = vmatprep.mubr.bf16.mxu1 %v1250_v5  ;;  %v1255_v14 = vld [vmem:[%s1352_s7 + $0x18] sm:$0xff]   ;;  %v1257_v16 = vld [vmem:[%s1352_s7 + $0x20] sm:$0xff]   ;;  %v1259_v18 = vld [vmem:[%s1352_s7 + $0x28] sm:$0xff]  }
  0x14   : > { %1160 = vmatpush3.bf16.msra.mxu0 %v1244_v3  ;;  %1212 = vmatpush3.bf16.msra.mxu1 %v1244_v3  ;;  %v1256_v15 = vld [vmem:[%s1352_s7 + $0x58] sm:$0xff]   ;;  %v1258_v17 = vld [vmem:[%s1352_s7 + $0x60] sm:$0xff]   ;;  %v1260_v19 = vld [vmem:[%s1352_s7 + $0x68] sm:$0xff]  }
  0x15   : > { %1161 = vmatprep.subr.bf16.mxu0 %v1245_v6  ;;  %1205 = vmatprep.subr.bf16.mxu1 %v1245_v6  ;;  %v1261_v20 = vld [vmem:[%s1352_s7 + $0x30] sm:$0xff]   ;;  %v1263_v22 = vld [vmem:[%s1352_s7 + $0x38] sm:$0xff]  }
  0x16   : > { %v1262_v21 = vld [vmem:[%s1352_s7 + $0x70] sm:$0xff]   ;;  %v1264_v23 = vld [vmem:[%s1352_s7 + $0x78] sm:$0xff]  }
  0x18   : > { %1162 = vmatpush3.bf16.msra.mxu0 %v1245_v6  ;;  %1213 = vmatpush3.bf16.msra.mxu1 %v1245_v6 }
  0x19   : > { %1163 = vmatprep.subr.bf16.mxu0 %v1246_v7  ;;  %1206 = vmatprep.subr.bf16.mxu1 %v1246_v7 }
  0x1c   : > { %1164 = vmatpush3.bf16.msra.mxu0 %v1246_v7  ;;  %1214 = vmatpush3.bf16.msra.mxu1 %v1246_v7 }
  0x1d   : > { %1165 = vmatprep.subr.bf16.mxu0 %v1247_v8  ;;  %1207 = vmatprep.subr.bf16.mxu1 %v1247_v8 }
  0x20   : > { %1166 = vmatpush3.bf16.msra.mxu0 %v1247_v8  ;;  %1215 = vmatpush3.bf16.msra.mxu1 %v1247_v8 }
  0x21   : > { %1167 = vmatprep.subr.bf16.mxu0 %v1248_v9  ;;  %1208 = vmatprep.subr.bf16.mxu1 %v1248_v9 }
  0x24   : > { %1168 = vmatpush3.bf16.msra.mxu0 %v1248_v9  ;;  %1216 = vmatpush3.bf16.msra.mxu1 %v1248_v9 }
  0x27   : > { %1170 = vmatmul.mubr.bf16.vlgmr.msra.gmra.mrb[0].mxu0 %v1251_v10  ;;  %1186 = vmatmul.mubr.bf16.vlgmr.msra.gmra.mrb[0].mxu1 %v1252_v11 }
  0x28   : > { %1173 = vmatprep.mubr.bf16.mxu0 %v1253_v12  ;;  %1189 = vmatprep.mubr.bf16.mxu1 %v1254_v13 }
  0x2f   : > { %1174 = vmatmul.mubr.bf16.gmra.mrb[4].mxu0 %v1255_v14  ;;  %1190 = vmatmul.mubr.bf16.gmra.mrb[4].mxu1 %v1256_v15 }
  0x30   : > { %1177 = vmatprep.mubr.bf16.mxu0 %v1257_v16  ;;  %1193 = vmatprep.mubr.bf16.mxu1 %v1258_v17 }
  0x37   : > { %1178 = vmatmul.mubr.bf16.gmra.mrb[8].mxu0 %v1259_v18  ;;  %1194 = vmatmul.mubr.bf16.gmra.mrb[8].mxu1 %v1260_v19 }
  0x38   : > { %1181 = vmatprep.mubr.bf16.mxu0 %v1261_v20  ;;  %1197 = vmatprep.mubr.bf16.mxu1 %v1262_v21 }
  0x3f   : > { %1182 = vmatmul.mubr.bf16.gmra.mrb[12].mxu0 %v1263_v22  ;;  %1198 = vmatmul.mubr.bf16.gmra.mrb[12].mxu1 %v1264_v23 }
  0xfa   : > { %v1171_v25 = vpop.f32.mrb[0].mxu0  ;;  %v1187_v27 = vpop.f32.mrb[0].mxu1 }
  0xfb   : > { %v803_v28 = vmul.f32 %v1171_v25, %v1388_v24  ;;  %v819_v29 = vmul.f32 %v1187_v27, %v1388_v24  ;;  %v568_v30 = vpop.f32.mrb[1].mxu0  ;;  %v632_v31 = vpop.f32.mrb[1].mxu1 }
  0xfc   : > { %v801_v33 = vmul.f32 %v1388_v24, %v568_v30  ;;  %v817_v34 = vmul.f32 %v1388_v24, %v632_v31  ;;  %v1172_v35 = vpop.f32.mrb[2].mxu0  ;;  %v1188_v36 = vpop.f32.mrb[2].mxu1 }
  0xfd   : > { %v842_v37 = vadd.f32 %v1393_v26, %v803_v28  ;;  %v858_v38 = vadd.f32 %v1393_v26, %v819_v29  ;;  %v804_v39 = vmul.f32 %v1172_v35, %v1388_v24  ;;  %v820_v40 = vmul.f32 %v1188_v36, %v1388_v24  ;;  %v571_v41 = vpop.f32.mrb[3].mxu0  ;;  %v635_v42 = vpop.f32.mrb[3].mxu1 }
  0xfe   : > { %v840_v43 = vadd.f32 %v1393_v26, %v801_v33  ;;  %v856_v44 = vadd.f32 %v1393_v26, %v817_v34  ;;  %v802_v45 = vmul.f32 %v1388_v24, %v571_v41  ;;  %v818_v46 = vmul.f32 %v1388_v24, %v635_v42 }
  0xff   : > { %vm874_vm0 = vcmp.ge.f32.partialorder %v842_v37, 0.0  ;;  %v913_v47 = vmul.f32 %v1401_v32, %v842_v37  ;;  %vm890_vm1 = vcmp.ge.f32.partialorder %v858_v38, 0.0  ;;  %v929_v48 = vmul.f32 %v1401_v32, %v858_v38 }
 0x100   : > { %vm872_vm2 = vcmp.ge.f32.partialorder %v840_v43, 0.0  ;;  %v911_v49 = vmul.f32 %v1401_v32, %v840_v43  ;;  %vm888_vm3 = vcmp.ge.f32.partialorder %v856_v44, 0.0  ;;  %v927_v50 = vmul.f32 %v1401_v32, %v856_v44 }
 0x101   : > { %v945_v51 = vsel %vm874_vm0, %v842_v37, %v913_v47  ;;  %v961_v52 = vsel %vm890_vm1, %v858_v38, %v929_v48  ;;  %v843_v53 = vadd.f32 %v1393_v26, %v804_v39  ;;  %v859_v54 = vadd.f32 %v1393_v26, %v820_v40 }
 0x102   : > { %977 = vst [vmem:[%s1416_s30 + $0x10] sm:$0xff] %v945_v51  ;;  %993 = vst [vmem:[%s1416_s30 + $0x90] sm:$0xff] %v961_v52  ;;  %v943_v55 = vsel %vm872_vm2, %v840_v43, %v911_v49  ;;  %v959_v56 = vsel %vm888_vm3, %v856_v44, %v927_v50  ;;  %v841_v57 = vadd.f32 %v1393_v26, %v802_v45  ;;  %v1175_v59 = vpop.f32.mrb[4].mxu0  ;;  %v1191_v60 = vpop.f32.mrb[4].mxu1 }
 0x103   : > { %v857_v58 = vadd.f32 %v1393_v26, %v818_v46  ;;  %975 = vst [vmem:[%s1416_s30] sm:$0xff] %v943_v55  ;;  %991 = vst [vmem:[%s1416_s30 + $0x80] sm:$0xff] %v959_v56  ;;  %vm875_vm4 = vcmp.ge.f32.partialorder %v843_v53, 0.0  ;;  %v914_v61 = vmul.f32 %v1401_v32, %v843_v53  ;;  %vm891_vm5 = vcmp.ge.f32.partialorder %v859_v54, 0.0  ;;  %v584_v63 = vpop.f32.mrb[5].mxu0  ;;  %v648_v0 = vpop.f32.mrb[5].mxu1 }
 0x104   : > { %v930_v62 = vmul.f32 %v1401_v32, %v859_v54  ;;  %vm873_vm6 = vcmp.ge.f32.partialorder %v841_v57, 0.0  ;;  %v912_v1 = vmul.f32 %v1401_v32, %v841_v57  ;;  %v1176_v3 = vpop.f32.mrb[6].mxu0  ;;  %v1192_v4 = vpop.f32.mrb[6].mxu1  ;;  %v807_v7 = vmul.f32 %v1175_v59, %v1388_v24 }
 0x105   : > { %vm889_vm7 = vcmp.ge.f32.partialorder %v857_v58, 0.0  ;;  %v928_v2 = vmul.f32 %v1401_v32, %v857_v58  ;;  %v946_v5 = vsel %vm875_vm4, %v843_v53, %v914_v61  ;;  %v823_v8 = vmul.f32 %v1191_v60, %v1388_v24  ;;  %v587_v9 = vpop.f32.mrb[7].mxu0  ;;  %v651_v10 = vpop.f32.mrb[7].mxu1 }
 0x106   : > { %v962_v6 = vsel %vm891_vm5, %v859_v54, %v930_v62  ;;  %978 = vst [vmem:[%s1416_s30 + $0x18] sm:$0xff] %v946_v5  ;;  %v944_v11 = vsel %vm873_vm6, %v841_v57, %v912_v1  ;;  %v805_v13 = vmul.f32 %v1388_v24, %v584_v63  ;;  %v821_v14 = vmul.f32 %v1388_v24, %v648_v0 }
 0x107   : > { %994 = vst [vmem:[%s1416_s30 + $0x98] sm:$0xff] %v962_v6  ;;  %v960_v12 = vsel %vm889_vm7, %v857_v58, %v928_v2  ;;  %976 = vst [vmem:[%s1416_s30 + $0x8] sm:$0xff] %v944_v11  ;;  %v846_v15 = vadd.f32 %v1393_v26, %v807_v7  ;;  %v862_v16 = vadd.f32 %v1393_v26, %v823_v8 }
 0x108   : > { %992 = vst [vmem:[%s1416_s30 + $0x88] sm:$0xff] %v960_v12  ;;  %v808_v17 = vmul.f32 %v1176_v3, %v1388_v24  ;;  %v824_v18 = vmul.f32 %v1192_v4, %v1388_v24  ;;  %v844_v19 = vadd.f32 %v1393_v26, %v805_v13  ;;  %v860_v20 = vadd.f32 %v1393_v26, %v821_v14 }
 0x109   : > { %v806_v21 = vmul.f32 %v1388_v24, %v587_v9  ;;  %v822_v22 = vmul.f32 %v1388_v24, %v651_v10  ;;  %vm878_vm8 = vcmp.ge.f32.partialorder %v846_v15, 0.0  ;;  %v917_v23 = vmul.f32 %v1401_v32, %v846_v15 }
 0x10a   : > { %vm894_vm9 = vcmp.ge.f32.partialorder %v862_v16, 0.0  ;;  %v933_v25 = vmul.f32 %v1401_v32, %v862_v16  ;;  %vm876_vm10 = vcmp.ge.f32.partialorder %v844_v19, 0.0  ;;  %v915_v27 = vmul.f32 %v1401_v32, %v844_v19  ;;  %v1179_v29 = vpop.f32.mrb[8].mxu0  ;;  %v1195_v30 = vpop.f32.mrb[8].mxu1 }
 0x10b   : > { %vm892_vm11 = vcmp.ge.f32.partialorder %v860_v20, 0.0  ;;  %v931_v28 = vmul.f32 %v1401_v32, %v860_v20  ;;  %v949_v31 = vsel %vm878_vm8, %v846_v15, %v917_v23  ;;  %v847_v34 = vadd.f32 %v1393_v26, %v808_v17  ;;  %v600_v36 = vpop.f32.mrb[9].mxu0  ;;  %v664_v37 = vpop.f32.mrb[9].mxu1 }
 0x10c   : > { %v965_v33 = vsel %vm894_vm9, %v862_v16, %v933_v25  ;;  %v863_v35 = vadd.f32 %v1393_v26, %v824_v18  ;;  %981 = vst [vmem:[%s1416_s30 + $0x30] sm:$0xff] %v949_v31  ;;  %v947_v38 = vsel %vm876_vm10, %v844_v19, %v915_v27  ;;  %v845_v40 = vadd.f32 %v1393_v26, %v806_v21  ;;  %v1180_v42 = vpop.f32.mrb[10].mxu0  ;;  %v1196_v43 = vpop.f32.mrb[10].mxu1 }
 0x10d   : > { %997 = vst [vmem:[%s1416_s30 + $0xb0] sm:$0xff] %v965_v33  ;;  %v963_v39 = vsel %vm892_vm11, %v860_v20, %v931_v28  ;;  %v861_v41 = vadd.f32 %v1393_v26, %v822_v22  ;;  %979 = vst [vmem:[%s1416_s30 + $0x20] sm:$0xff] %v947_v38  ;;  %vm879_vm12 = vcmp.ge.f32.partialorder %v847_v34, 0.0  ;;  %v918_v44 = vmul.f32 %v1401_v32, %v847_v34  ;;  %v603_v46 = vpop.f32.mrb[11].mxu0  ;;  %v667_v47 = vpop.f32.mrb[11].mxu1 }
 0x10e   : > { %995 = vst [vmem:[%s1416_s30 + $0xa0] sm:$0xff] %v963_v39  ;;  %vm895_vm13 = vcmp.ge.f32.partialorder %v863_v35, 0.0  ;;  %v934_v45 = vmul.f32 %v1401_v32, %v863_v35  ;;  %vm877_vm14 = vcmp.ge.f32.partialorder %v845_v40, 0.0  ;;  %v916_v48 = vmul.f32 %v1401_v32, %v845_v40 }
 0x10f   : > { %vm893_vm15 = vcmp.ge.f32.partialorder %v861_v41, 0.0  ;;  %v932_v49 = vmul.f32 %v1401_v32, %v861_v41  ;;  %v950_v50 = vsel %vm879_vm12, %v847_v34, %v918_v44  ;;  %v811_v52 = vmul.f32 %v1179_v29, %v1388_v24 }
 0x110   : > { %v966_v51 = vsel %vm895_vm13, %v863_v35, %v934_v45  ;;  %v827_v53 = vmul.f32 %v1195_v30, %v1388_v24  ;;  %982 = vst [vmem:[%s1416_s30 + $0x38] sm:$0xff] %v950_v50  ;;  %v948_v54 = vsel %vm877_vm14, %v845_v40, %v916_v48  ;;  %v809_v56 = vmul.f32 %v1388_v24, %v600_v36 }
 0x111   : > { %998 = vst [vmem:[%s1416_s30 + $0xb8] sm:$0xff] %v966_v51  ;;  %v964_v55 = vsel %vm893_vm15, %v861_v41, %v932_v49  ;;  %v825_v57 = vmul.f32 %v1388_v24, %v664_v37  ;;  %980 = vst [vmem:[%s1416_s30 + $0x28] sm:$0xff] %v948_v54  ;;  %v850_v58 = vadd.f32 %v1393_v26, %v811_v52 }
 0x112   : > { %996 = vst [vmem:[%s1416_s30 + $0xa8] sm:$0xff] %v964_v55  ;;  %v866_v59 = vadd.f32 %v1393_v26, %v827_v53  ;;  %v812_v60 = vmul.f32 %v1180_v42, %v1388_v24  ;;  %v828_v61 = vmul.f32 %v1196_v43, %v1388_v24  ;;  %v848_v62 = vadd.f32 %v1393_v26, %v809_v56  ;;  %v1183_v2 = vpop.f32.mrb[12].mxu0  ;;  %v1199_v3 = vpop.f32.mrb[12].mxu1 }
 0x113   : > { %v864_v63 = vadd.f32 %v1393_v26, %v825_v57  ;;  %v810_v0 = vmul.f32 %v1388_v24, %v603_v46  ;;  %v826_v1 = vmul.f32 %v1388_v24, %v667_v47  ;;  %vm882_vm0 = vcmp.ge.f32.partialorder %v850_v58, 0.0  ;;  %v616_v6 = vpop.f32.mrb[13].mxu0  ;;  %v680_v7 = vpop.f32.mrb[13].mxu1 }
 0x114   : > { %v921_v4 = vmul.f32 %v1401_v32, %v850_v58  ;;  %vm898_vm1 = vcmp.ge.f32.partialorder %v866_v59, 0.0  ;;  %v937_v5 = vmul.f32 %v1401_v32, %v866_v59  ;;  %vm880_vm2 = vcmp.ge.f32.partialorder %v848_v62, 0.0  ;;  %v1184_v10 = vpop.f32.mrb[14].mxu0  ;;  %v1200_v11 = vpop.f32.mrb[14].mxu1 }
 0x115   : > { %v919_v8 = vmul.f32 %v1401_v32, %v848_v62  ;;  %vm896_vm3 = vcmp.ge.f32.partialorder %v864_v63, 0.0  ;;  %v935_v9 = vmul.f32 %v1401_v32, %v864_v63  ;;  %v851_v14 = vadd.f32 %v1393_v26, %v812_v60  ;;  %v619_v16 = vpop.f32.mrb[15].mxu0  ;;  %v683_v17 = vpop.f32.mrb[15].mxu1 }
 0x116   : > { %v953_v12 = vsel %vm882_vm0, %v850_v58, %v921_v4  ;;  %v969_v13 = vsel %vm898_vm1, %v866_v59, %v937_v5  ;;  %v867_v15 = vadd.f32 %v1393_v26, %v828_v61  ;;  %v849_v20 = vadd.f32 %v1393_v26, %v810_v0 }
 0x117   : > { %985 = vst [vmem:[%s1416_s30 + $0x50] sm:$0xff] %v953_v12  ;;  %1001 = vst [vmem:[%s1416_s30 + $0xd0] sm:$0xff] %v969_v13  ;;  %v951_v18 = vsel %vm880_vm2, %v848_v62, %v919_v8  ;;  %v967_v19 = vsel %vm896_vm3, %v864_v63, %v935_v9  ;;  %v865_v21 = vadd.f32 %v1393_v26, %v826_v1  ;;  %vm883_vm4 = vcmp.ge.f32.partialorder %v851_v14, 0.0 }
 0x118   : > { %983 = vst [vmem:[%s1416_s30 + $0x40] sm:$0xff] %v951_v18  ;;  %999 = vst [vmem:[%s1416_s30 + $0xc0] sm:$0xff] %v967_v19  ;;  %v922_v22 = vmul.f32 %v1401_v32, %v851_v14  ;;  %vm899_vm5 = vcmp.ge.f32.partialorder %v867_v15, 0.0  ;;  %v938_v23 = vmul.f32 %v1401_v32, %v867_v15  ;;  %vm881_vm6 = vcmp.ge.f32.partialorder %v849_v20, 0.0 }
 0x119   : > { %v920_v25 = vmul.f32 %v1401_v32, %v849_v20  ;;  %vm897_vm7 = vcmp.ge.f32.partialorder %v865_v21, 0.0  ;;  %v936_v27 = vmul.f32 %v1401_v32, %v865_v21  ;;  %v815_v30 = vmul.f32 %v1183_v2, %v1388_v24 }
 0x11a   : > { %v954_v28 = vsel %vm883_vm4, %v851_v14, %v922_v22  ;;  %v970_v29 = vsel %vm899_vm5, %v867_v15, %v938_v23  ;;  %v831_v31 = vmul.f32 %v1199_v3, %v1388_v24  ;;  %v813_v35 = vmul.f32 %v1388_v24, %v616_v6 }
 0x11b   : > { %986 = vst [vmem:[%s1416_s30 + $0x58] sm:$0xff] %v954_v28  ;;  %1002 = vst [vmem:[%s1416_s30 + $0xd8] sm:$0xff] %v970_v29  ;;  %v952_v33 = vsel %vm881_vm6, %v849_v20, %v920_v25  ;;  %v968_v34 = vsel %vm897_vm7, %v865_v21, %v936_v27  ;;  %v829_v36 = vmul.f32 %v1388_v24, %v680_v7 }
 0x11c   : > { %984 = vst [vmem:[%s1416_s30 + $0x48] sm:$0xff] %v952_v33  ;;  %1000 = vst [vmem:[%s1416_s30 + $0xc8] sm:$0xff] %v968_v34  ;;  %v854_v37 = vadd.f32 %v1393_v26, %v815_v30  ;;  %v870_v38 = vadd.f32 %v1393_v26, %v831_v31  ;;  %v816_v39 = vmul.f32 %v1184_v10, %v1388_v24 }
 0x11d   : > { %v832_v40 = vmul.f32 %v1200_v11, %v1388_v24  ;;  %v852_v41 = vadd.f32 %v1393_v26, %v813_v35  ;;  %v868_v42 = vadd.f32 %v1393_v26, %v829_v36  ;;  %v814_v43 = vmul.f32 %v1388_v24, %v619_v16 }
 0x11e   : > { %v830_v44 = vmul.f32 %v1388_v24, %v683_v17  ;;  %vm886_vm8 = vcmp.ge.f32.partialorder %v854_v37, 0.0  ;;  %v925_v45 = vmul.f32 %v1401_v32, %v854_v37  ;;  %vm902_vm9 = vcmp.ge.f32.partialorder %v870_v38, 0.0 }
 0x11f   : > { %v941_v46 = vmul.f32 %v1401_v32, %v870_v38  ;;  %vm884_vm10 = vcmp.ge.f32.partialorder %v852_v41, 0.0  ;;  %v923_v47 = vmul.f32 %v1401_v32, %v852_v41  ;;  %vm900_vm11 = vcmp.ge.f32.partialorder %v868_v42, 0.0 }
 0x120   : > { %v939_v48 = vmul.f32 %v1401_v32, %v868_v42  ;;  %v957_v49 = vsel %vm886_vm8, %v854_v37, %v925_v45  ;;  %v855_v51 = vadd.f32 %v1393_v26, %v816_v39  ;;  %v871_v24 = vadd.f32 %v1393_v26, %v832_v40 }
 0x121   : > { %v973_v50 = vsel %vm902_vm9, %v870_v38, %v941_v46  ;;  %989 = vst [vmem:[%s1416_s30 + $0x70] sm:$0xff] %v957_v49  ;;  %v955_v52 = vsel %vm884_vm10, %v852_v41, %v923_v47  ;;  %v853_v54 = vadd.f32 %v1393_v26, %v814_v43  ;;  %v869_v55 = vadd.f32 %v1393_v26, %v830_v44 }
 0x122   : > { %1005 = vst [vmem:[%s1416_s30 + $0xf0] sm:$0xff] %v973_v50  ;;  %v971_v53 = vsel %vm900_vm11, %v868_v42, %v939_v48  ;;  %987 = vst [vmem:[%s1416_s30 + $0x60] sm:$0xff] %v955_v52  ;;  %vm887_vm12 = vcmp.ge.f32.partialorder %v855_v51, 0.0  ;;  %v926_v56 = vmul.f32 %v1401_v32, %v855_v51  ;;  %vm903_vm13 = vcmp.ge.f32.partialorder %v871_v24, 0.0 }
 0x123   : > { %1003 = vst [vmem:[%s1416_s30 + $0xe0] sm:$0xff] %v971_v53  ;;  %v942_v57 = vmul.f32 %v1401_v32, %v871_v24  ;;  %vm885_vm14 = vcmp.ge.f32.partialorder %v853_v54, 0.0  ;;  %v924_v58 = vmul.f32 %v1401_v32, %v853_v54  ;;  %vm901_vm15 = vcmp.ge.f32.partialorder %v869_v55, 0.0 }
 0x124   : > { %v940_v59 = vmul.f32 %v1401_v32, %v869_v55  ;;  %v958_v60 = vsel %vm887_vm12, %v855_v51, %v926_v56 }
 0x125   : > { %v974_v61 = vsel %vm903_vm13, %v871_v24, %v942_v57  ;;  %990 = vst [vmem:[%s1416_s30 + $0x78] sm:$0xff] %v958_v60  ;;  %v956_v26 = vsel %vm885_vm14, %v853_v54, %v924_v58 }
 0x126   : > { %1006 = vst [vmem:[%s1416_s30 + $0xf8] sm:$0xff] %v974_v61  ;;  %v972_v62 = vsel %vm901_vm15, %v869_v55, %v940_v59  ;;  %988 = vst [vmem:[%s1416_s30 + $0x68] sm:$0xff] %v956_v26 }
 0x127   : > { %1004 = vst [vmem:[%s1416_s30 + $0xe8] sm:$0xff] %v972_v62 }
 0x128 PF: > { %s15_s20 = sadd.s32 1, %s1287_s20   ;;  %s1549_s18 = smov %s1283_s19 }
 0x129   : > { %p12_p5 = scmp.ge.s32.totalorder %s15_s20, 10   ;;  %s1550_s19 = smov %s1552_s21 }
 0x12b   :  { %14 = sbr.rel (!%p12_p5) target bundleno = 2 (0x2), region = 81 }

// kernel: encoder_forward.143
= control target key start
LH: loop header
LB: loop body
LE: loop exit
PB: predicated region body
PF: predicated region fallthrough
CT: control target
= control target key end

     0   :  { %s1319_s18 = smov 0   ;;  %s1321_s19 = smov 0   ;;  %s1543_s0 = inlined_call_operand.vmem [shape: bf16[512,128], index: 0, kind: input, shape index: {}]   ;;  %s1544_s1 = inlined_call_operand.vmem [shape: bf16[128,128], index: 1, kind: input, shape index: {}]   ;;  %s1545_s2 = inlined_call_operand.vmem [shape: f32[1,128], index: 2, kind: input, shape index: {}]   ;;  %s1546_s3 = inlined_call_operand.vmem [shape: f32[1,128], index: 3, kind: input, shape index: {}]   ;;  %s1547_s4 = inlined_call_operand.vmem [shape: f32[1,128], index: 4, kind: input, shape index: {}]   ;;  %s1548_s5 = inlined_call_operand.vmem [shape: f32[512,128], index: 5, kind: output, shape index: {}]  }
   0x1   :  { %s1323_s20 = smov 0  }
   0x2 LB: > { %s27_s21 = sadd.s32 1, %s1283_s19  ;;  %p1095_p0 = scmp.ge.s32.totalorder %s1287_s20, 1  ;;  %s1287_s20 = sphi %s1323_s20, %s15_s20   ;;  %s1283_s19 = sphi %s1321_s19, %s1550_s19   ;;  %s1279_s18 = sphi %s1319_s18, %s1549_s18  }
   0x3   : > { %p29_p1 = scmp.ge.s32.totalorder %s27_s21, 2  ;;  %p216_p2 = scmp.lt.s32.totalorder %s1287_s20, 3 }
   0x5   : > { %s1552_s21 = smov (%p29_p1, %s27_s21), 0  ;;  %p217_p3 = pnand %p1095_p0, %p216_p2 }
   0x6   : > { %v1241_v0 = vld [vmem:[%s1544_s1] sm:$0xff] (!%p217_p3)   ;;  %s1096_s24 = sshll.u32 (!%p217_p3), %s1279_s18, 5  ;;  %v1242_v1 = vld [vmem:[%s1544_s1 + $0x8] sm:$0xff] (!%p217_p3)   ;;  %v1243_v2 = vld [vmem:[%s1544_s1 + $0x10] sm:$0xff] (!%p217_p3)  }
   0x7   : > { %220 = sbr.rel (%p217_p3) target bundleno = 296 (0x128), region = 40  ;;  %p253_p4 = scmp.lt.s32.totalorder (!%p217_p3), %s1096_s24, 63  ;;  %1153 = vmatprep.subr.bf16.mxu0 (!%p217_p3), %v1241_v0  ;;  %1201 = vmatprep.subr.bf16.mxu1 (!%p217_p3), %v1241_v0  ;;  %v1244_v3 = vld [vmem:[%s1544_s1 + $0x18] sm:$0xff] (!%p217_p3)   ;;  %v1245_v6 = vld [vmem:[%s1544_s1 + $0x20] sm:$0xff] (!%p217_p3)   ;;  %v1246_v7 = vld [vmem:[%s1544_s1 + $0x28] sm:$0xff] (!%p217_p3)  }
   0x8   : > { %1154 = vmatpush3.bf16.msra.mxu0 (!%p217_p3), %v1241_v0  ;;  %1209 = vmatpush3.bf16.msra.mxu1 (!%p217_p3), %v1241_v0  ;;  %v1247_v8 = vld [vmem:[%s1544_s1 + $0x30] sm:$0xff] (!%p217_p3)   ;;  %v1248_v9 = vld [vmem:[%s1544_s1 + $0x38] sm:$0xff] (!%p217_p3)   ;;  %v1388_v24 = vld [vmem:[%s1545_s2] ss:$0 sm:$0xff] (!%p217_p3) }
   0x9   : > { %1155 = vmatprep.subr.bf16.mxu0 (!%p217_p3), %v1242_v1  ;;  %1202 = vmatprep.subr.bf16.mxu1 (!%p217_p3), %v1242_v1  ;;  %v1393_v26 = vld [vmem:[%s1546_s3] ss:$0 sm:$0xff] (!%p217_p3) }
   0xa   : > { %v1401_v32 = vld [vmem:[%s1547_s4] ss:$0 sm:$0xff] (!%p217_p3) }
   0xc   : > { %1156 = vmatpush3.bf16.msra.mxu0 (!%p217_p3), %v1242_v1  ;;  %1210 = vmatpush3.bf16.msra.mxu1 (!%p217_p3), %v1242_v1 }
   0xd   : > { %1157 = vmatprep.subr.bf16.mxu0 (!%p217_p3), %v1243_v2  ;;  %1203 = vmatprep.subr.bf16.mxu1 (!%p217_p3), %v1243_v2 }
   0xe   : > { %s1554_s24 = smov (!%p253_p4, %s1096_s24), 63 }
   0xf   : > { %s1097_s29 = sshll.u32 %s1554_s24, 2  ;;  %s1099_s26 = sshll.u32 %s1554_s24, 3 }
  0x10   : > { %s1352_s7 = scalar_lea.vmem %s1543_s0, %s1097_s29  ;;  %1158 = vmatpush3.bf16.msra.mxu0 %v1243_v2  ;;  %1211 = vmatpush3.bf16.msra.mxu1 %v1243_v2  ;;  %s1416_s30 = scalar_lea.vmem %s1548_s5, %s1099_s26 }
  0x11   : > { %v1249_v4 = vld [vmem:[%s1352_s7] sm:$0xff]   ;;  %1159 = vmatprep.subr.bf16.mxu0 %v1244_v3  ;;  %1204 = vmatprep.subr.bf16.mxu1 %v1244_v3  ;;  %v1251_v10 = vld [vmem:[%s1352_s7 + $0x8] sm:$0xff]   ;;  %v1253_v12 = vld [vmem:[%s1352_s7 + $0x10] sm:$0xff]  }
  0x12   : > { %v1250_v5 = vld [vmem:[%s1352_s7 + $0x40] sm:$0xff]   ;;  %1169 = vmatprep.mubr.bf16.mxu0 %v1249_v4  ;;  %v1252_v11 = vld [vmem:[%s1352_s7 + $0x48] sm:$0xff]   ;;  %v1254_v13 = vld [vmem:[%s1352_s7 + $0x50] sm:$0xff]  }
  0x13   : > { %1185 = vmatprep.mubr.bf16.mxu1 %v1250_v5  ;;  %v1255_v14 = vld [vmem:[%s1352_s7 + $0x18] sm:$0xff]   ;;  %v1257_v16 = vld [vmem:[%s1352_s7 + $0x20] sm:$0xff]   ;;  %v1259_v18 = vld [vmem:[%s1352_s7 + $0x28] sm:$0xff]  }
  0x14   : > { %1160 = vmatpush3.bf16.msra.mxu0 %v1244_v3  ;;  %1212 = vmatpush3.bf16.msra.mxu1 %v1244_v3  ;;  %v1256_v15 = vld [vmem:[%s1352_s7 + $0x58] sm:$0xff]   ;;  %v1258_v17 = vld [vmem:[%s1352_s7 + $0x60] sm:$0xff]   ;;  %v1260_v19 = vld [vmem:[%s1352_s7 + $0x68] sm:$0xff]  }
  0x15   : > { %1161 = vmatprep.subr.bf16.mxu0 %v1245_v6  ;;  %1205 = vmatprep.subr.bf16.mxu1 %v1245_v6  ;;  %v1261_v20 = vld [vmem:[%s1352_s7 + $0x30] sm:$0xff]   ;;  %v1263_v22 = vld [vmem:[%s1352_s7 + $0x38] sm:$0xff]  }
  0x16   : > { %v1262_v21 = vld [vmem:[%s1352_s7 + $0x70] sm:$0xff]   ;;  %v1264_v23 = vld [vmem:[%s1352_s7 + $0x78] sm:$0xff]  }
  0x18   : > { %1162 = vmatpush3.bf16.msra.mxu0 %v1245_v6  ;;  %1213 = vmatpush3.bf16.msra.mxu1 %v1245_v6 }
  0x19   : > { %1163 = vmatprep.subr.bf16.mxu0 %v1246_v7  ;;  %1206 = vmatprep.subr.bf16.mxu1 %v1246_v7 }
  0x1c   : > { %1164 = vmatpush3.bf16.msra.mxu0 %v1246_v7  ;;  %1214 = vmatpush3.bf16.msra.mxu1 %v1246_v7 }
  0x1d   : > { %1165 = vmatprep.subr.bf16.mxu0 %v1247_v8  ;;  %1207 = vmatprep.subr.bf16.mxu1 %v1247_v8 }
  0x20   : > { %1166 = vmatpush3.bf16.msra.mxu0 %v1247_v8  ;;  %1215 = vmatpush3.bf16.msra.mxu1 %v1247_v8 }
  0x21   : > { %1167 = vmatprep.subr.bf16.mxu0 %v1248_v9  ;;  %1208 = vmatprep.subr.bf16.mxu1 %v1248_v9 }
  0x24   : > { %1168 = vmatpush3.bf16.msra.mxu0 %v1248_v9  ;;  %1216 = vmatpush3.bf16.msra.mxu1 %v1248_v9 }
  0x27   : > { %1170 = vmatmul.mubr.bf16.vlgmr.msra.gmra.mrb[0].mxu0 %v1251_v10  ;;  %1186 = vmatmul.mubr.bf16.vlgmr.msra.gmra.mrb[0].mxu1 %v1252_v11 }
  0x28   : > { %1173 = vmatprep.mubr.bf16.mxu0 %v1253_v12  ;;  %1189 = vmatprep.mubr.bf16.mxu1 %v1254_v13 }
  0x2f   : > { %1174 = vmatmul.mubr.bf16.gmra.mrb[4].mxu0 %v1255_v14  ;;  %1190 = vmatmul.mubr.bf16.gmra.mrb[4].mxu1 %v1256_v15 }
  0x30   : > { %1177 = vmatprep.mubr.bf16.mxu0 %v1257_v16  ;;  %1193 = vmatprep.mubr.bf16.mxu1 %v1258_v17 }
  0x37   : > { %1178 = vmatmul.mubr.bf16.gmra.mrb[8].mxu0 %v1259_v18  ;;  %1194 = vmatmul.mubr.bf16.gmra.mrb[8].mxu1 %v1260_v19 }
  0x38   : > { %1181 = vmatprep.mubr.bf16.mxu0 %v1261_v20  ;;  %1197 = vmatprep.mubr.bf16.mxu1 %v1262_v21 }
  0x3f   : > { %1182 = vmatmul.mubr.bf16.gmra.mrb[12].mxu0 %v1263_v22  ;;  %1198 = vmatmul.mubr.bf16.gmra.mrb[12].mxu1 %v1264_v23 }
  0xfa   : > { %v1171_v25 = vpop.f32.mrb[0].mxu0  ;;  %v1187_v27 = vpop.f32.mrb[0].mxu1 }
  0xfb   : > { %v803_v28 = vmul.f32 %v1171_v25, %v1388_v24  ;;  %v819_v29 = vmul.f32 %v1187_v27, %v1388_v24  ;;  %v568_v30 = vpop.f32.mrb[1].mxu0  ;;  %v632_v31 = vpop.f32.mrb[1].mxu1 }
  0xfc   : > { %v801_v33 = vmul.f32 %v1388_v24, %v568_v30  ;;  %v817_v34 = vmul.f32 %v1388_v24, %v632_v31  ;;  %v1172_v35 = vpop.f32.mrb[2].mxu0  ;;  %v1188_v36 = vpop.f32.mrb[2].mxu1 }
  0xfd   : > { %v842_v37 = vadd.f32 %v1393_v26, %v803_v28  ;;  %v858_v38 = vadd.f32 %v1393_v26, %v819_v29  ;;  %v804_v39 = vmul.f32 %v1172_v35, %v1388_v24  ;;  %v820_v40 = vmul.f32 %v1188_v36, %v1388_v24  ;;  %v571_v41 = vpop.f32.mrb[3].mxu0  ;;  %v635_v42 = vpop.f32.mrb[3].mxu1 }
  0xfe   : > { %v840_v43 = vadd.f32 %v1393_v26, %v801_v33  ;;  %v856_v44 = vadd.f32 %v1393_v26, %v817_v34  ;;  %v802_v45 = vmul.f32 %v1388_v24, %v571_v41  ;;  %v818_v46 = vmul.f32 %v1388_v24, %v635_v42 }
  0xff   : > { %vm874_vm0 = vcmp.ge.f32.partialorder %v842_v37, 0.0  ;;  %v913_v47 = vmul.f32 %v1401_v32, %v842_v37  ;;  %vm890_vm1 = vcmp.ge.f32.partialorder %v858_v38, 0.0  ;;  %v929_v48 = vmul.f32 %v1401_v32, %v858_v38 }
 0x100   : > { %vm872_vm2 = vcmp.ge.f32.partialorder %v840_v43, 0.0  ;;  %v911_v49 = vmul.f32 %v1401_v32, %v840_v43  ;;  %vm888_vm3 = vcmp.ge.f32.partialorder %v856_v44, 0.0  ;;  %v927_v50 = vmul.f32 %v1401_v32, %v856_v44 }
 0x101   : > { %v945_v51 = vsel %vm874_vm0, %v842_v37, %v913_v47  ;;  %v961_v52 = vsel %vm890_vm1, %v858_v38, %v929_v48  ;;  %v843_v53 = vadd.f32 %v1393_v26, %v804_v39  ;;  %v859_v54 = vadd.f32 %v1393_v26, %v820_v40 }
 0x102   : > { %977 = vst [vmem:[%s1416_s30 + $0x10] sm:$0xff] %v945_v51  ;;  %993 = vst [vmem:[%s1416_s30 + $0x90] sm:$0xff] %v961_v52  ;;  %v943_v55 = vsel %vm872_vm2, %v840_v43, %v911_v49  ;;  %v959_v56 = vsel %vm888_vm3, %v856_v44, %v927_v50  ;;  %v841_v57 = vadd.f32 %v1393_v26, %v802_v45  ;;  %v1175_v59 = vpop.f32.mrb[4].mxu0  ;;  %v1191_v60 = vpop.f32.mrb[4].mxu1 }
 0x103   : > { %v857_v58 = vadd.f32 %v1393_v26, %v818_v46  ;;  %975 = vst [vmem:[%s1416_s30] sm:$0xff] %v943_v55  ;;  %991 = vst [vmem:[%s1416_s30 + $0x80] sm:$0xff] %v959_v56  ;;  %vm875_vm4 = vcmp.ge.f32.partialorder %v843_v53, 0.0  ;;  %v914_v61 = vmul.f32 %v1401_v32, %v843_v53  ;;  %vm891_vm5 = vcmp.ge.f32.partialorder %v859_v54, 0.0  ;;  %v584_v63 = vpop.f32.mrb[5].mxu0  ;;  %v648_v0 = vpop.f32.mrb[5].mxu1 }
 0x104   : > { %v930_v62 = vmul.f32 %v1401_v32, %v859_v54  ;;  %vm873_vm6 = vcmp.ge.f32.partialorder %v841_v57, 0.0  ;;  %v912_v1 = vmul.f32 %v1401_v32, %v841_v57  ;;  %v1176_v3 = vpop.f32.mrb[6].mxu0  ;;  %v1192_v4 = vpop.f32.mrb[6].mxu1  ;;  %v807_v7 = vmul.f32 %v1175_v59, %v1388_v24 }
 0x105   : > { %vm889_vm7 = vcmp.ge.f32.partialorder %v857_v58, 0.0  ;;  %v928_v2 = vmul.f32 %v1401_v32, %v857_v58  ;;  %v946_v5 = vsel %vm875_vm4, %v843_v53, %v914_v61  ;;  %v823_v8 = vmul.f32 %v1191_v60, %v1388_v24  ;;  %v587_v9 = vpop.f32.mrb[7].mxu0  ;;  %v651_v10 = vpop.f32.mrb[7].mxu1 }
 0x106   : > { %v962_v6 = vsel %vm891_vm5, %v859_v54, %v930_v62  ;;  %978 = vst [vmem:[%s1416_s30 + $0x18] sm:$0xff] %v946_v5  ;;  %v944_v11 = vsel %vm873_vm6, %v841_v57, %v912_v1  ;;  %v805_v13 = vmul.f32 %v1388_v24, %v584_v63  ;;  %v821_v14 = vmul.f32 %v1388_v24, %v648_v0 }
 0x107   : > { %994 = vst [vmem:[%s1416_s30 + $0x98] sm:$0xff] %v962_v6  ;;  %v960_v12 = vsel %vm889_vm7, %v857_v58, %v928_v2  ;;  %976 = vst [vmem:[%s1416_s30 + $0x8] sm:$0xff] %v944_v11  ;;  %v846_v15 = vadd.f32 %v1393_v26, %v807_v7  ;;  %v862_v16 = vadd.f32 %v1393_v26, %v823_v8 }
 0x108   : > { %992 = vst [vmem:[%s1416_s30 + $0x88] sm:$0xff] %v960_v12  ;;  %v808_v17 = vmul.f32 %v1176_v3, %v1388_v24  ;;  %v824_v18 = vmul.f32 %v1192_v4, %v1388_v24  ;;  %v844_v19 = vadd.f32 %v1393_v26, %v805_v13  ;;  %v860_v20 = vadd.f32 %v1393_v26, %v821_v14 }
 0x109   : > { %v806_v21 = vmul.f32 %v1388_v24, %v587_v9  ;;  %v822_v22 = vmul.f32 %v1388_v24, %v651_v10  ;;  %vm878_vm8 = vcmp.ge.f32.partialorder %v846_v15, 0.0  ;;  %v917_v23 = vmul.f32 %v1401_v32, %v846_v15 }
 0x10a   : > { %vm894_vm9 = vcmp.ge.f32.partialorder %v862_v16, 0.0  ;;  %v933_v25 = vmul.f32 %v1401_v32, %v862_v16  ;;  %vm876_vm10 = vcmp.ge.f32.partialorder %v844_v19, 0.0  ;;  %v915_v27 = vmul.f32 %v1401_v32, %v844_v19  ;;  %v1179_v29 = vpop.f32.mrb[8].mxu0  ;;  %v1195_v30 = vpop.f32.mrb[8].mxu1 }
 0x10b   : > { %vm892_vm11 = vcmp.ge.f32.partialorder %v860_v20, 0.0  ;;  %v931_v28 = vmul.f32 %v1401_v32, %v860_v20  ;;  %v949_v31 = vsel %vm878_vm8, %v846_v15, %v917_v23  ;;  %v847_v34 = vadd.f32 %v1393_v26, %v808_v17  ;;  %v600_v36 = vpop.f32.mrb[9].mxu0  ;;  %v664_v37 = vpop.f32.mrb[9].mxu1 }
 0x10c   : > { %v965_v33 = vsel %vm894_vm9, %v862_v16, %v933_v25  ;;  %v863_v35 = vadd.f32 %v1393_v26, %v824_v18  ;;  %981 = vst [vmem:[%s1416_s30 + $0x30] sm:$0xff] %v949_v31  ;;  %v947_v38 = vsel %vm876_vm10, %v844_v19, %v915_v27  ;;  %v845_v40 = vadd.f32 %v1393_v26, %v806_v21  ;;  %v1180_v42 = vpop.f32.mrb[10].mxu0  ;;  %v1196_v43 = vpop.f32.mrb[10].mxu1 }
 0x10d   : > { %997 = vst [vmem:[%s1416_s30 + $0xb0] sm:$0xff] %v965_v33  ;;  %v963_v39 = vsel %vm892_vm11, %v860_v20, %v931_v28  ;;  %v861_v41 = vadd.f32 %v1393_v26, %v822_v22  ;;  %979 = vst [vmem:[%s1416_s30 + $0x20] sm:$0xff] %v947_v38  ;;  %vm879_vm12 = vcmp.ge.f32.partialorder %v847_v34, 0.0  ;;  %v918_v44 = vmul.f32 %v1401_v32, %v847_v34  ;;  %v603_v46 = vpop.f32.mrb[11].mxu0  ;;  %v667_v47 = vpop.f32.mrb[11].mxu1 }
 0x10e   : > { %995 = vst [vmem:[%s1416_s30 + $0xa0] sm:$0xff] %v963_v39  ;;  %vm895_vm13 = vcmp.ge.f32.partialorder %v863_v35, 0.0  ;;  %v934_v45 = vmul.f32 %v1401_v32, %v863_v35  ;;  %vm877_vm14 = vcmp.ge.f32.partialorder %v845_v40, 0.0  ;;  %v916_v48 = vmul.f32 %v1401_v32, %v845_v40 }
 0x10f   : > { %vm893_vm15 = vcmp.ge.f32.partialorder %v861_v41, 0.0  ;;  %v932_v49 = vmul.f32 %v1401_v32, %v861_v41  ;;  %v950_v50 = vsel %vm879_vm12, %v847_v34, %v918_v44  ;;  %v811_v52 = vmul.f32 %v1179_v29, %v1388_v24 }
 0x110   : > { %v966_v51 = vsel %vm895_vm13, %v863_v35, %v934_v45  ;;  %v827_v53 = vmul.f32 %v1195_v30, %v1388_v24  ;;  %982 = vst [vmem:[%s1416_s30 + $0x38] sm:$0xff] %v950_v50  ;;  %v948_v54 = vsel %vm877_vm14, %v845_v40, %v916_v48  ;;  %v809_v56 = vmul.f32 %v1388_v24, %v600_v36 }
 0x111   : > { %998 = vst [vmem:[%s1416_s30 + $0xb8] sm:$0xff] %v966_v51  ;;  %v964_v55 = vsel %vm893_vm15, %v861_v41, %v932_v49  ;;  %v825_v57 = vmul.f32 %v1388_v24, %v664_v37  ;;  %980 = vst [vmem:[%s1416_s30 + $0x28] sm:$0xff] %v948_v54  ;;  %v850_v58 = vadd.f32 %v1393_v26, %v811_v52 }
 0x112   : > { %996 = vst [vmem:[%s1416_s30 + $0xa8] sm:$0xff] %v964_v55  ;;  %v866_v59 = vadd.f32 %v1393_v26, %v827_v53  ;;  %v812_v60 = vmul.f32 %v1180_v42, %v1388_v24  ;;  %v828_v61 = vmul.f32 %v1196_v43, %v1388_v24  ;;  %v848_v62 = vadd.f32 %v1393_v26, %v809_v56  ;;  %v1183_v2 = vpop.f32.mrb[12].mxu0  ;;  %v1199_v3 = vpop.f32.mrb[12].mxu1 }
 0x113   : > { %v864_v63 = vadd.f32 %v1393_v26, %v825_v57  ;;  %v810_v0 = vmul.f32 %v1388_v24, %v603_v46  ;;  %v826_v1 = vmul.f32 %v1388_v24, %v667_v47  ;;  %vm882_vm0 = vcmp.ge.f32.partialorder %v850_v58, 0.0  ;;  %v616_v6 = vpop.f32.mrb[13].mxu0  ;;  %v680_v7 = vpop.f32.mrb[13].mxu1 }
 0x114   : > { %v921_v4 = vmul.f32 %v1401_v32, %v850_v58  ;;  %vm898_vm1 = vcmp.ge.f32.partialorder %v866_v59, 0.0  ;;  %v937_v5 = vmul.f32 %v1401_v32, %v866_v59  ;;  %vm880_vm2 = vcmp.ge.f32.partialorder %v848_v62, 0.0  ;;  %v1184_v10 = vpop.f32.mrb[14].mxu0  ;;  %v1200_v11 = vpop.f32.mrb[14].mxu1 }
 0x115   : > { %v919_v8 = vmul.f32 %v1401_v32, %v848_v62  ;;  %vm896_vm3 = vcmp.ge.f32.partialorder %v864_v63, 0.0  ;;  %v935_v9 = vmul.f32 %v1401_v32, %v864_v63  ;;  %v851_v14 = vadd.f32 %v1393_v26, %v812_v60  ;;  %v619_v16 = vpop.f32.mrb[15].mxu0  ;;  %v683_v17 = vpop.f32.mrb[15].mxu1 }
 0x116   : > { %v953_v12 = vsel %vm882_vm0, %v850_v58, %v921_v4  ;;  %v969_v13 = vsel %vm898_vm1, %v866_v59, %v937_v5  ;;  %v867_v15 = vadd.f32 %v1393_v26, %v828_v61  ;;  %v849_v20 = vadd.f32 %v1393_v26, %v810_v0 }
 0x117   : > { %985 = vst [vmem:[%s1416_s30 + $0x50] sm:$0xff] %v953_v12  ;;  %1001 = vst [vmem:[%s1416_s30 + $0xd0] sm:$0xff] %v969_v13  ;;  %v951_v18 = vsel %vm880_vm2, %v848_v62, %v919_v8  ;;  %v967_v19 = vsel %vm896_vm3, %v864_v63, %v935_v9  ;;  %v865_v21 = vadd.f32 %v1393_v26, %v826_v1  ;;  %vm883_vm4 = vcmp.ge.f32.partialorder %v851_v14, 0.0 }
 0x118   : > { %983 = vst [vmem:[%s1416_s30 + $0x40] sm:$0xff] %v951_v18  ;;  %999 = vst [vmem:[%s1416_s30 + $0xc0] sm:$0xff] %v967_v19  ;;  %v922_v22 = vmul.f32 %v1401_v32, %v851_v14  ;;  %vm899_vm5 = vcmp.ge.f32.partialorder %v867_v15, 0.0  ;;  %v938_v23 = vmul.f32 %v1401_v32, %v867_v15  ;;  %vm881_vm6 = vcmp.ge.f32.partialorder %v849_v20, 0.0 }
 0x119   : > { %v920_v25 = vmul.f32 %v1401_v32, %v849_v20  ;;  %vm897_vm7 = vcmp.ge.f32.partialorder %v865_v21, 0.0  ;;  %v936_v27 = vmul.f32 %v1401_v32, %v865_v21  ;;  %v815_v30 = vmul.f32 %v1183_v2, %v1388_v24 }
 0x11a   : > { %v954_v28 = vsel %vm883_vm4, %v851_v14, %v922_v22  ;;  %v970_v29 = vsel %vm899_vm5, %v867_v15, %v938_v23  ;;  %v831_v31 = vmul.f32 %v1199_v3, %v1388_v24  ;;  %v813_v35 = vmul.f32 %v1388_v24, %v616_v6 }
 0x11b   : > { %986 = vst [vmem:[%s1416_s30 + $0x58] sm:$0xff] %v954_v28  ;;  %1002 = vst [vmem:[%s1416_s30 + $0xd8] sm:$0xff] %v970_v29  ;;  %v952_v33 = vsel %vm881_vm6, %v849_v20, %v920_v25  ;;  %v968_v34 = vsel %vm897_vm7, %v865_v21, %v936_v27  ;;  %v829_v36 = vmul.f32 %v1388_v24, %v680_v7 }
 0x11c   : > { %984 = vst [vmem:[%s1416_s30 + $0x48] sm:$0xff] %v952_v33  ;;  %1000 = vst [vmem:[%s1416_s30 + $0xc8] sm:$0xff] %v968_v34  ;;  %v854_v37 = vadd.f32 %v1393_v26, %v815_v30  ;;  %v870_v38 = vadd.f32 %v1393_v26, %v831_v31  ;;  %v816_v39 = vmul.f32 %v1184_v10, %v1388_v24 }
 0x11d   : > { %v832_v40 = vmul.f32 %v1200_v11, %v1388_v24  ;;  %v852_v41 = vadd.f32 %v1393_v26, %v813_v35  ;;  %v868_v42 = vadd.f32 %v1393_v26, %v829_v36  ;;  %v814_v43 = vmul.f32 %v1388_v24, %v619_v16 }
 0x11e   : > { %v830_v44 = vmul.f32 %v1388_v24, %v683_v17  ;;  %vm886_vm8 = vcmp.ge.f32.partialorder %v854_v37, 0.0  ;;  %v925_v45 = vmul.f32 %v1401_v32, %v854_v37  ;;  %vm902_vm9 = vcmp.ge.f32.partialorder %v870_v38, 0.0 }
 0x11f   : > { %v941_v46 = vmul.f32 %v1401_v32, %v870_v38  ;;  %vm884_vm10 = vcmp.ge.f32.partialorder %v852_v41, 0.0  ;;  %v923_v47 = vmul.f32 %v1401_v32, %v852_v41  ;;  %vm900_vm11 = vcmp.ge.f32.partialorder %v868_v42, 0.0 }
 0x120   : > { %v939_v48 = vmul.f32 %v1401_v32, %v868_v42  ;;  %v957_v49 = vsel %vm886_vm8, %v854_v37, %v925_v45  ;;  %v855_v51 = vadd.f32 %v1393_v26, %v816_v39  ;;  %v871_v24 = vadd.f32 %v1393_v26, %v832_v40 }
 0x121   : > { %v973_v50 = vsel %vm902_vm9, %v870_v38, %v941_v46  ;;  %989 = vst [vmem:[%s1416_s30 + $0x70] sm:$0xff] %v957_v49  ;;  %v955_v52 = vsel %vm884_vm10, %v852_v41, %v923_v47  ;;  %v853_v54 = vadd.f32 %v1393_v26, %v814_v43  ;;  %v869_v55 = vadd.f32 %v1393_v26, %v830_v44 }
 0x122   : > { %1005 = vst [vmem:[%s1416_s30 + $0xf0] sm:$0xff] %v973_v50  ;;  %v971_v53 = vsel %vm900_vm11, %v868_v42, %v939_v48  ;;  %987 = vst [vmem:[%s1416_s30 + $0x60] sm:$0xff] %v955_v52  ;;  %vm887_vm12 = vcmp.ge.f32.partialorder %v855_v51, 0.0  ;;  %v926_v56 = vmul.f32 %v1401_v32, %v855_v51  ;;  %vm903_vm13 = vcmp.ge.f32.partialorder %v871_v24, 0.0 }
 0x123   : > { %1003 = vst [vmem:[%s1416_s30 + $0xe0] sm:$0xff] %v971_v53  ;;  %v942_v57 = vmul.f32 %v1401_v32, %v871_v24  ;;  %vm885_vm14 = vcmp.ge.f32.partialorder %v853_v54, 0.0  ;;  %v924_v58 = vmul.f32 %v1401_v32, %v853_v54  ;;  %vm901_vm15 = vcmp.ge.f32.partialorder %v869_v55, 0.0 }
 0x124   : > { %v940_v59 = vmul.f32 %v1401_v32, %v869_v55  ;;  %v958_v60 = vsel %vm887_vm12, %v855_v51, %v926_v56 }
 0x125   : > { %v974_v61 = vsel %vm903_vm13, %v871_v24, %v942_v57  ;;  %990 = vst [vmem:[%s1416_s30 + $0x78] sm:$0xff] %v958_v60  ;;  %v956_v26 = vsel %vm885_vm14, %v853_v54, %v924_v58 }
 0x126   : > { %1006 = vst [vmem:[%s1416_s30 + $0xf8] sm:$0xff] %v974_v61  ;;  %v972_v62 = vsel %vm901_vm15, %v869_v55, %v940_v59  ;;  %988 = vst [vmem:[%s1416_s30 + $0x68] sm:$0xff] %v956_v26 }
 0x127   : > { %1004 = vst [vmem:[%s1416_s30 + $0xe8] sm:$0xff] %v972_v62 }
 0x128 PF: > { %s15_s20 = sadd.s32 1, %s1287_s20   ;;  %s1549_s18 = smov %s1283_s19 }
 0x129   : > { %p12_p5 = scmp.ge.s32.totalorder %s15_s20, 4   ;;  %s1550_s19 = smov %s1552_s21 }
 0x12b   :  { %14 = sbr.rel (!%p12_p5) target bundleno = 2 (0x2), region = 81 }

// kernel: encoder_forward.145
= control target key start
LH: loop header
LB: loop body
LE: loop exit
PB: predicated region body
PF: predicated region fallthrough
CT: control target
= control target key end

     0   :  { %s1696_s21 = smov 0   ;;  %s1698_s22 = smov 0   ;;  %s1998_s0 = inlined_call_operand.vmem [shape: bf16[512,256], index: 0, kind: input, shape index: {}]   ;;  %s1999_s1 = inlined_call_operand.vmem [shape: bf16[256,128], index: 1, kind: input, shape index: {}]   ;;  %s2000_s2 = inlined_call_operand.vmem [shape: f32[1,128], index: 2, kind: input, shape index: {}]   ;;  %s2001_s3 = inlined_call_operand.vmem [shape: f32[1,128], index: 3, kind: input, shape index: {}]   ;;  %s2002_s4 = inlined_call_operand.vmem [shape: f32[1,128], index: 4, kind: input, shape index: {}]   ;;  %s2003_s5 = inlined_call_operand.vmem [shape: f32[512,128], index: 5, kind: input, shape index: {}]   ;;  %s2004_s6 = inlined_call_operand.vmem [shape: f32[512,128], index: 6, kind: output, shape index: {}]  }
   0x1   :  { %s1700_s23 = smov 0  }
   0x2 LB: > { %s28_s24 = sadd.s32 1, %s1655_s22  ;;  %p1359_p0 = scmp.ge.s32.totalorder %s1659_s23, 1  ;;  %s1659_s23 = sphi %s1700_s23, %s16_s23   ;;  %s1655_s22 = sphi %s1698_s22, %s2006_s22   ;;  %s1651_s21 = sphi %s1696_s21, %s2005_s21  }
   0x3   : > { %p30_p1 = scmp.ge.s32.totalorder %s28_s24, 2  ;;  %p255_p2 = scmp.lt.s32.totalorder %s1659_s23, 3 }
   0x5   : > { %s2008_s24 = smov (%p30_p1, %s28_s24), 0  ;;  %p256_p3 = pnand %p1359_p0, %p255_p2 }
   0x6   : > { %v1573_v0 = vld [vmem:[%s1999_s1 + $0x40] sm:$0xff] (!%p256_p3)   ;;  %s1360_s27 = sshll.u32 (!%p256_p3), %s1651_s21, 5  ;;  %v1575_v2 = vld [vmem:[%s1999_s1 + $0x48] sm:$0xff] (!%p256_p3)   ;;  %v1577_v4 = vld [vmem:[%s1999_s1 + $0x50] sm:$0xff] (!%p256_p3)  }
   0x7   : > { %259 = sbr.rel (%p256_p3) target bundleno = 324 (0x144), region = 44  ;;  %v1574_v1 = vld [vmem:[%s1999_s1] sm:$0xff] (!%p256_p3)   ;;  %1421 = vmatprep.subr.bf16.mxu0 (!%p256_p3), %v1573_v0  ;;  %1533 = vmatprep.subr.bf16.mxu1 (!%p256_p3), %v1573_v0  ;;  %v1576_v3 = vld [vmem:[%s1999_s1 + $0x8] sm:$0xff] (!%p256_p3)   ;;  %p302_p4 = scmp.lt.s32.totalorder (!%p256_p3), %s1360_s27, 63  ;;  %v1578_v5 = vld [vmem:[%s1999_s1 + $0x10] sm:$0xff] (!%p256_p3)  }
   0x8   : > { %1422 = vmatpush3.bf16.msra.mxu0 (!%p256_p3), %v1574_v1  ;;  %1541 = vmatpush3.bf16.msra.mxu1 (!%p256_p3), %v1574_v1  ;;  %v1579_v6 = vld [vmem:[%s1999_s1 + $0x58] sm:$0xff] (!%p256_p3)   ;;  %v1581_v8 = vld [vmem:[%s1999_s1 + $0x60] sm:$0xff] (!%p256_p3)   ;;  %v1583_v10 = vld [vmem:[%s1999_s1 + $0x68] sm:$0xff] (!%p256_p3)  }
   0x9   : > { %1423 = vmatprep.subr.bf16.mxu0 (!%p256_p3), %v1575_v2  ;;  %1534 = vmatprep.subr.bf16.mxu1 (!%p256_p3), %v1575_v2  ;;  %v1580_v7 = vld [vmem:[%s1999_s1 + $0x18] sm:$0xff] (!%p256_p3)   ;;  %v1582_v9 = vld [vmem:[%s1999_s1 + $0x20] sm:$0xff] (!%p256_p3)   ;;  %v1584_v13 = vld [vmem:[%s1999_s1 + $0x28] sm:$0xff] (!%p256_p3)  }
   0xa   : > { %v1585_v14 = vld [vmem:[%s1999_s1 + $0x70] sm:$0xff] (!%p256_p3)   ;;  %v1587_v16 = vld [vmem:[%s1999_s1 + $0x78] sm:$0xff] (!%p256_p3)   ;;  %v1805_v51 = vld [vmem:[%s2000_s2] ss:$0 sm:$0xff] (!%p256_p3) }
   0xb   : > { %v1586_v15 = vld [vmem:[%s1999_s1 + $0x30] sm:$0xff] (!%p256_p3)   ;;  %v1588_v17 = vld [vmem:[%s1999_s1 + $0x38] sm:$0xff] (!%p256_p3)   ;;  %v1810_v57 = vld [vmem:[%s2001_s3] ss:$0 sm:$0xff] (!%p256_p3) }
   0xc   : > { %1424 = vmatpush3.bf16.msra.mxu0 (!%p256_p3), %v1576_v3  ;;  %1542 = vmatpush3.bf16.msra.mxu1 (!%p256_p3), %v1576_v3  ;;  %v1823_v0 = vld [vmem:[%s2002_s4] ss:$0 sm:$0xff] (!%p256_p3) }
   0xd   : > { %1425 = vmatprep.subr.bf16.mxu0 (!%p256_p3), %v1577_v4  ;;  %1535 = vmatprep.subr.bf16.mxu1 (!%p256_p3), %v1577_v4 }
   0xe   : > { %s2010_s27 = smov (!%p302_p4, %s1360_s27), 63 }
   0xf   : > { %s1738_s18 = sshll.u32 %s2010_s27, 3 }
  0x10   : > { %1426 = vmatpush3.bf16.msra.mxu0 %v1578_v5  ;;  %1543 = vmatpush3.bf16.msra.mxu1 %v1578_v5  ;;  %s1747_s26 = scalar_lea.vmem %s1998_s0, %s1738_s18  ;;  %s1818_s28 = scalar_lea.vmem %s2003_s5, %s1738_s18 }
  0x11   : > { %1427 = vmatprep.subr.bf16.mxu0 %v1579_v6  ;;  %1536 = vmatprep.subr.bf16.mxu1 %v1579_v6  ;;  %v1591_v11 = vld [vmem:[%s1747_s26 + $0x4] ss:$8 sps:$4 sm:$0xff]   ;;  %v1589_v18 = vld [vmem:[%s1747_s26] ss:$8 sps:$4 sm:$0xff]   ;;  %v1595_v20 = vld [vmem:[%s1747_s26 + $0x14] ss:$8 sps:$4 sm:$0xff]   ;;  %s1839_s8 = scalar_lea.vmem %s2004_s6, %s1738_s18 }
  0x12   : > { %v1594_v12 = vld [vmem:[%s1747_s26 + $0x84] ss:$8 sps:$4 sm:$0xff]   ;;  %751 = vmatprep.mubr.bf16.mxu0 %v1591_v11  ;;  %v1592_v19 = vld [vmem:[%s1747_s26 + $0x80] ss:$8 sps:$4 sm:$0xff]   ;;  %v1597_v21 = vld [vmem:[%s1747_s26 + $0x94] ss:$8 sps:$4 sm:$0xff]  }
  0x13   : > { %815 = vmatprep.mubr.bf16.mxu1 %v1594_v12  ;;  %v1599_v22 = vld [vmem:[%s1747_s26 + $0x10] ss:$8 sps:$4 sm:$0xff]   ;;  %v1601_v24 = vld [vmem:[%s1747_s26 + $0x24] ss:$8 sps:$4 sm:$0xff]   ;;  %v1605_v26 = vld [vmem:[%s1747_s26 + $0x20] ss:$8 sps:$4 sm:$0xff]  }
  0x14   : > { %1428 = vmatpush3.bf16.msra.mxu0 %v1580_v7  ;;  %1544 = vmatpush3.bf16.msra.mxu1 %v1580_v7  ;;  %v1600_v23 = vld [vmem:[%s1747_s26 + $0x90] ss:$8 sps:$4 sm:$0xff]   ;;  %v1603_v25 = vld [vmem:[%s1747_s26 + $0xa4] ss:$8 sps:$4 sm:$0xff]   ;;  %v1606_v27 = vld [vmem:[%s1747_s26 + $0xa0] ss:$8 sps:$4 sm:$0xff]  }
  0x15   : > { %1429 = vmatprep.subr.bf16.mxu0 %v1581_v8  ;;  %1537 = vmatprep.subr.bf16.mxu1 %v1581_v8  ;;  %v1607_v28 = vld [vmem:[%s1747_s26 + $0x34] ss:$8 sps:$4 sm:$0xff]   ;;  %v1611_v30 = vld [vmem:[%s1747_s26 + $0x30] ss:$8 sps:$4 sm:$0xff]   ;;  %v1613_v32 = vld [vmem:[%s1747_s26 + $0x44] ss:$8 sps:$4 sm:$0xff]  }
  0x16   : > { %v1609_v29 = vld [vmem:[%s1747_s26 + $0xb4] ss:$8 sps:$4 sm:$0xff]   ;;  %v1612_v31 = vld [vmem:[%s1747_s26 + $0xb0] ss:$8 sps:$4 sm:$0xff]   ;;  %v1615_v33 = vld [vmem:[%s1747_s26 + $0xc4] ss:$8 sps:$4 sm:$0xff]  }
  0x17   : > { %v1617_v34 = vld [vmem:[%s1747_s26 + $0x40] ss:$8 sps:$4 sm:$0xff]   ;;  %v1619_v36 = vld [vmem:[%s1747_s26 + $0x54] ss:$8 sps:$4 sm:$0xff]   ;;  %v1623_v38 = vld [vmem:[%s1747_s26 + $0x50] ss:$8 sps:$4 sm:$0xff]  }
  0x18   : > { %1430 = vmatpush3.bf16.msra.mxu0 %v1582_v9  ;;  %1545 = vmatpush3.bf16.msra.mxu1 %v1582_v9  ;;  %v1618_v35 = vld [vmem:[%s1747_s26 + $0xc0] ss:$8 sps:$4 sm:$0xff]   ;;  %v1621_v37 = vld [vmem:[%s1747_s26 + $0xd4] ss:$8 sps:$4 sm:$0xff]   ;;  %v1624_v39 = vld [vmem:[%s1747_s26 + $0xd0] ss:$8 sps:$4 sm:$0xff]  }
  0x19   : > { %1431 = vmatprep.subr.bf16.mxu0 %v1583_v10  ;;  %1538 = vmatprep.subr.bf16.mxu1 %v1583_v10  ;;  %v1625_v40 = vld [vmem:[%s1747_s26 + $0x64] ss:$8 sps:$4 sm:$0xff]   ;;  %v1629_v42 = vld [vmem:[%s1747_s26 + $0x60] ss:$8 sps:$4 sm:$0xff]   ;;  %v1631_v44 = vld [vmem:[%s1747_s26 + $0x74] ss:$8 sps:$4 sm:$0xff]  }
  0x1a   : > { %v1627_v41 = vld [vmem:[%s1747_s26 + $0xe4] ss:$8 sps:$4 sm:$0xff]   ;;  %v1630_v43 = vld [vmem:[%s1747_s26 + $0xe0] ss:$8 sps:$4 sm:$0xff]   ;;  %v1633_v45 = vld [vmem:[%s1747_s26 + $0xf4] ss:$8 sps:$4 sm:$0xff]  }
  0x1b   : > { %v1635_v46 = vld [vmem:[%s1747_s26 + $0x70] ss:$8 sps:$4 sm:$0xff]   ;;  %v1160_v6 = vld [vmem:[%s1818_s28] sm:$0xff] }
  0x1c   : > { %1432 = vmatpush3.bf16.msra.mxu0 %v1584_v13  ;;  %1546 = vmatpush3.bf16.msra.mxu1 %v1584_v13  ;;  %v1636_v47 = vld [vmem:[%s1747_s26 + $0xf0] ss:$8 sps:$4 sm:$0xff]   ;;  %v1176_v8 = vld [vmem:[%s1818_s28 + $0x80] sm:$0xff] }
  0x1d   : > { %1433 = vmatprep.subr.bf16.mxu0 %v1585_v14  ;;  %1539 = vmatprep.subr.bf16.mxu1 %v1585_v14 }
  0x20   : > { %1434 = vmatpush3.bf16.msra.mxu0 %v1586_v15  ;;  %1547 = vmatpush3.bf16.msra.mxu1 %v1586_v15 }
  0x21   : > { %1435 = vmatprep.subr.bf16.mxu0 %v1587_v16  ;;  %1540 = vmatprep.subr.bf16.mxu1 %v1587_v16 }
  0x24   : > { %1436 = vmatpush3.bf16.msra.mxu0 %v1588_v17  ;;  %1548 = vmatpush3.bf16.msra.mxu1 %v1588_v17 }
  0x27   : > { %752 = vmatmul.mubr.bf16.vlgmr.msra.gmra.mrb[0].mxu0 %v1589_v18  ;;  %816 = vmatmul.mubr.bf16.vlgmr.msra.gmra.mrb[0].mxu1 %v1592_v19 }
  0x28   : > { %759 = vmatprep.mubr.bf16.mxu0 %v1595_v20  ;;  %823 = vmatprep.mubr.bf16.mxu1 %v1597_v21 }
  0x2f   : > { %760 = vmatmul.mubr.bf16.gmra.mrb[4].mxu0 %v1599_v22  ;;  %824 = vmatmul.mubr.bf16.gmra.mrb[4].mxu1 %v1600_v23 }
  0x30   : > { %767 = vmatprep.mubr.bf16.mxu0 %v1601_v24  ;;  %831 = vmatprep.mubr.bf16.mxu1 %v1603_v25  ;;  %v1161_v24 = vld [vmem:[%s1818_s28 + $0x8] sm:$0xff] }
  0x37   : > { %768 = vmatmul.mubr.bf16.gmra.mrb[8].mxu0 %v1605_v26  ;;  %832 = vmatmul.mubr.bf16.gmra.mrb[8].mxu1 %v1606_v27 }
  0x38   : > { %775 = vmatprep.mubr.bf16.mxu0 %v1607_v28  ;;  %839 = vmatprep.mubr.bf16.mxu1 %v1609_v29  ;;  %v1177_v28 = vld [vmem:[%s1818_s28 + $0x88] sm:$0xff] }
  0x3f   : > { %776 = vmatmul.mubr.bf16.gmra.mrb[12].mxu0 %v1611_v30  ;;  %840 = vmatmul.mubr.bf16.gmra.mrb[12].mxu1 %v1612_v31 }
  0x40   : > { %783 = vmatprep.mubr.bf16.mxu0 %v1613_v32  ;;  %847 = vmatprep.mubr.bf16.mxu1 %v1615_v33 }
  0x47   : > { %784 = vmatmul.mubr.bf16.gmra.mrb[16].mxu0 %v1617_v34  ;;  %848 = vmatmul.mubr.bf16.gmra.mrb[16].mxu1 %v1618_v35 }
  0x48   : > { %791 = vmatprep.mubr.bf16.mxu0 %v1619_v36  ;;  %855 = vmatprep.mubr.bf16.mxu1 %v1621_v37 }
  0x4f   : > { %792 = vmatmul.mubr.bf16.gmra.mrb[20].mxu0 %v1623_v38  ;;  %856 = vmatmul.mubr.bf16.gmra.mrb[20].mxu1 %v1624_v39 }
  0x50   : > { %799 = vmatprep.mubr.bf16.mxu0 %v1625_v40  ;;  %863 = vmatprep.mubr.bf16.mxu1 %v1627_v41 }
  0x57   : > { %800 = vmatmul.mubr.bf16.gmra.mrb[24].mxu0 %v1629_v42  ;;  %864 = vmatmul.mubr.bf16.gmra.mrb[24].mxu1 %v1630_v43  ;;  %v1162_v42 = vld [vmem:[%s1818_s28 + $0x10] sm:$0xff] }
  0x58   : > { %807 = vmatprep.mubr.bf16.mxu0 %v1631_v44  ;;  %871 = vmatprep.mubr.bf16.mxu1 %v1633_v45  ;;  %v1178_v44 = vld [vmem:[%s1818_s28 + $0x90] sm:$0xff] }
  0x5f   : > { %808 = vmatmul.mubr.bf16.gmra.mrb[28].mxu0 %v1635_v46  ;;  %872 = vmatmul.mubr.bf16.gmra.mrb[28].mxu1 %v1636_v47 }
  0xfa   : > { %v1437_v48 = vpop.f32.mrb[0].mxu0  ;;  %v1485_v49 = vpop.f32.mrb[0].mxu1 }
  0xfb   : > { %v1438_v50 = vpop.f32.mrb[1].mxu0  ;;  %v1486_v52 = vpop.f32.mrb[1].mxu1 }
  0xfc   : > { %v1439_v53 = vadd.f32 %v1438_v50, %v1437_v48  ;;  %v1487_v54 = vadd.f32 %v1486_v52, %v1485_v49  ;;  %v1440_v55 = vpop.f32.mrb[2].mxu0  ;;  %v1488_v56 = vpop.f32.mrb[2].mxu1 }
  0xfd   : > { %v1441_v58 = vpop.f32.mrb[3].mxu0  ;;  %v1489_v59 = vpop.f32.mrb[3].mxu1 }
  0xfe   : > { %v986_v60 = vmul.f32 %v1439_v53, %v1805_v51  ;;  %v1002_v61 = vmul.f32 %v1487_v54, %v1805_v51  ;;  %v1442_v62 = vadd.f32 %v1441_v58, %v1440_v55  ;;  %v1490_v63 = vadd.f32 %v1489_v59, %v1488_v56 }
 0x100   : > { %v1025_v1 = vadd.f32 %v1810_v57, %v986_v60  ;;  %v1041_v2 = vadd.f32 %v1810_v57, %v1002_v61  ;;  %v987_v3 = vmul.f32 %v1442_v62, %v1805_v51  ;;  %v1003_v4 = vmul.f32 %v1490_v63, %v1805_v51  ;;  %v1163_v62 = vld [vmem:[%s1818_s28 + $0x18] sm:$0xff] }
 0x102   : > { %vm1057_vm0 = vcmp.ge.f32.partialorder %v1025_v1, 0.0  ;;  %v1096_v5 = vmul.f32 %v1823_v0, %v1025_v1  ;;  %vm1073_vm1 = vcmp.ge.f32.partialorder %v1041_v2, 0.0  ;;  %v1112_v7 = vmul.f32 %v1823_v0, %v1041_v2  ;;  %v1443_v9 = vpop.f32.mrb[4].mxu0  ;;  %v1491_v10 = vpop.f32.mrb[4].mxu1 }
 0x103   : > { %v1026_v11 = vadd.f32 %v1810_v57, %v987_v3  ;;  %v1042_v12 = vadd.f32 %v1810_v57, %v1003_v4  ;;  %v1444_v13 = vpop.f32.mrb[5].mxu0  ;;  %v1492_v14 = vpop.f32.mrb[5].mxu1  ;;  %v1179_v3 = vld [vmem:[%s1818_s28 + $0x98] sm:$0xff] }
 0x104   : > { %v1128_v15 = vsel %vm1057_vm0, %v1025_v1, %v1096_v5  ;;  %v1144_v16 = vsel %vm1073_vm1, %v1041_v2, %v1112_v7  ;;  %v1445_v17 = vadd.f32 %v1444_v13, %v1443_v9  ;;  %v1493_v18 = vadd.f32 %v1492_v14, %v1491_v10  ;;  %v1446_v19 = vpop.f32.mrb[6].mxu0  ;;  %v1494_v20 = vpop.f32.mrb[6].mxu1 }
 0x105   : > { %v1192_v21 = vadd.f32 %v1160_v6, %v1128_v15  ;;  %v1208_v22 = vadd.f32 %v1176_v8, %v1144_v16  ;;  %vm1058_vm2 = vcmp.ge.f32.partialorder %v1026_v11, 0.0  ;;  %v1097_v23 = vmul.f32 %v1823_v0, %v1026_v11  ;;  %v1447_v25 = vpop.f32.mrb[7].mxu0  ;;  %v1495_v26 = vpop.f32.mrb[7].mxu1 }
 0x106   : > { %vm1074_vm3 = vcmp.ge.f32.partialorder %v1042_v12, 0.0  ;;  %v1113_v27 = vmul.f32 %v1823_v0, %v1042_v12  ;;  %v988_v29 = vmul.f32 %v1445_v17, %v1805_v51  ;;  %v1004_v30 = vmul.f32 %v1493_v18, %v1805_v51  ;;  %v1164_v17 = vld [vmem:[%s1818_s28 + $0x20] sm:$0xff] }
 0x107   : > { %1224 = vst [vmem:[%s1839_s8] sm:$0xff] %v1192_v21  ;;  %1240 = vst [vmem:[%s1839_s8 + $0x80] sm:$0xff] %v1208_v22  ;;  %v1129_v31 = vsel %vm1058_vm2, %v1026_v11, %v1097_v23  ;;  %v1448_v32 = vadd.f32 %v1447_v25, %v1446_v19  ;;  %v1496_v33 = vadd.f32 %v1495_v26, %v1494_v20  ;;  %v1180_v19 = vld [vmem:[%s1818_s28 + $0xa0] sm:$0xff] }
 0x108   : > { %v1193_v34 = vadd.f32 %v1161_v24, %v1129_v31  ;;  %v1145_v35 = vsel %vm1074_vm3, %v1042_v12, %v1113_v27  ;;  %v1027_v36 = vadd.f32 %v1810_v57, %v988_v29  ;;  %v1043_v37 = vadd.f32 %v1810_v57, %v1004_v30 }
 0x109   : > { %v1209_v38 = vadd.f32 %v1177_v28, %v1145_v35  ;;  %v989_v39 = vmul.f32 %v1448_v32, %v1805_v51  ;;  %v1005_v40 = vmul.f32 %v1496_v33, %v1805_v51  ;;  %v1165_v35 = vld [vmem:[%s1818_s28 + $0x28] sm:$0xff] }
 0x10a   : > { %1225 = vst [vmem:[%s1839_s8 + $0x8] sm:$0xff] %v1193_v34  ;;  %vm1059_vm4 = vcmp.ge.f32.partialorder %v1027_v36, 0.0  ;;  %v1098_v41 = vmul.f32 %v1823_v0, %v1027_v36  ;;  %vm1075_vm5 = vcmp.ge.f32.partialorder %v1043_v37, 0.0  ;;  %v1114_v43 = vmul.f32 %v1823_v0, %v1043_v37  ;;  %v1449_v45 = vpop.f32.mrb[8].mxu0  ;;  %v1497_v46 = vpop.f32.mrb[8].mxu1 }
 0x10b   : > { %1241 = vst [vmem:[%s1839_s8 + $0x88] sm:$0xff] %v1209_v38  ;;  %v1028_v47 = vadd.f32 %v1810_v57, %v989_v39  ;;  %v1044_v48 = vadd.f32 %v1810_v57, %v1005_v40  ;;  %v1450_v49 = vpop.f32.mrb[9].mxu0  ;;  %v1498_v50 = vpop.f32.mrb[9].mxu1  ;;  %v1181_v39 = vld [vmem:[%s1818_s28 + $0xa8] sm:$0xff] }
 0x10c   : > { %v1130_v52 = vsel %vm1059_vm4, %v1027_v36, %v1098_v41  ;;  %v1146_v53 = vsel %vm1075_vm5, %v1043_v37, %v1114_v43  ;;  %v1451_v54 = vadd.f32 %v1450_v49, %v1449_v45  ;;  %v1499_v55 = vadd.f32 %v1498_v50, %v1497_v46  ;;  %v1452_v56 = vpop.f32.mrb[10].mxu0  ;;  %v1500_v58 = vpop.f32.mrb[10].mxu1 }
 0x10d   : > { %v1194_v59 = vadd.f32 %v1162_v42, %v1130_v52  ;;  %v1210_v60 = vadd.f32 %v1178_v44, %v1146_v53  ;;  %vm1060_vm6 = vcmp.ge.f32.partialorder %v1028_v47, 0.0  ;;  %v1099_v61 = vmul.f32 %v1823_v0, %v1028_v47  ;;  %v1453_v63 = vpop.f32.mrb[11].mxu0  ;;  %v1501_v1 = vpop.f32.mrb[11].mxu1 }
 0x10e   : > { %vm1076_vm7 = vcmp.ge.f32.partialorder %v1044_v48, 0.0  ;;  %v1115_v2 = vmul.f32 %v1823_v0, %v1044_v48  ;;  %v990_v4 = vmul.f32 %v1451_v54, %v1805_v51  ;;  %v1006_v5 = vmul.f32 %v1499_v55, %v1805_v51  ;;  %v1166_v54 = vld [vmem:[%s1818_s28 + $0x30] sm:$0xff] }
 0x10f   : > { %1226 = vst [vmem:[%s1839_s8 + $0x10] sm:$0xff] %v1194_v59  ;;  %1242 = vst [vmem:[%s1839_s8 + $0x90] sm:$0xff] %v1210_v60  ;;  %v1131_v6 = vsel %vm1060_vm6, %v1028_v47, %v1099_v61  ;;  %v1454_v7 = vadd.f32 %v1453_v63, %v1452_v56  ;;  %v1502_v8 = vadd.f32 %v1501_v1, %v1500_v58  ;;  %v1182_v56 = vld [vmem:[%s1818_s28 + $0xb0] sm:$0xff] }
 0x110   : > { %v1195_v9 = vadd.f32 %v1163_v62, %v1131_v6  ;;  %v1147_v10 = vsel %vm1076_vm7, %v1044_v48, %v1115_v2  ;;  %v1029_v11 = vadd.f32 %v1810_v57, %v990_v4  ;;  %v1045_v12 = vadd.f32 %v1810_v57, %v1006_v5 }
 0x111   : > { %v1211_v13 = vadd.f32 %v1179_v3, %v1147_v10  ;;  %v991_v14 = vmul.f32 %v1454_v7, %v1805_v51  ;;  %v1007_v15 = vmul.f32 %v1502_v8, %v1805_v51  ;;  %v1167_v10 = vld [vmem:[%s1818_s28 + $0x38] sm:$0xff] }
 0x112   : > { %1227 = vst [vmem:[%s1839_s8 + $0x18] sm:$0xff] %v1195_v9  ;;  %vm1061_vm8 = vcmp.ge.f32.partialorder %v1029_v11, 0.0  ;;  %v1100_v16 = vmul.f32 %v1823_v0, %v1029_v11  ;;  %vm1077_vm9 = vcmp.ge.f32.partialorder %v1045_v12, 0.0  ;;  %v1116_v18 = vmul.f32 %v1823_v0, %v1045_v12  ;;  %v1455_v20 = vpop.f32.mrb[12].mxu0  ;;  %v1503_v21 = vpop.f32.mrb[12].mxu1 }
 0x113   : > { %1243 = vst [vmem:[%s1839_s8 + $0x98] sm:$0xff] %v1211_v13  ;;  %v1030_v22 = vadd.f32 %v1810_v57, %v991_v14  ;;  %v1046_v23 = vadd.f32 %v1810_v57, %v1007_v15  ;;  %v1456_v24 = vpop.f32.mrb[13].mxu0  ;;  %v1504_v25 = vpop.f32.mrb[13].mxu1  ;;  %v1183_v14 = vld [vmem:[%s1818_s28 + $0xb8] sm:$0xff] }
 0x114   : > { %v1132_v26 = vsel %vm1061_vm8, %v1029_v11, %v1100_v16  ;;  %v1148_v27 = vsel %vm1077_vm9, %v1045_v12, %v1116_v18  ;;  %v1457_v28 = vadd.f32 %v1456_v24, %v1455_v20  ;;  %v1505_v29 = vadd.f32 %v1504_v25, %v1503_v21  ;;  %v1458_v30 = vpop.f32.mrb[14].mxu0  ;;  %v1506_v31 = vpop.f32.mrb[14].mxu1 }
 0x115   : > { %v1196_v32 = vadd.f32 %v1164_v17, %v1132_v26  ;;  %v1212_v33 = vadd.f32 %v1180_v19, %v1148_v27  ;;  %vm1062_vm10 = vcmp.ge.f32.partialorder %v1030_v22, 0.0  ;;  %v1101_v34 = vmul.f32 %v1823_v0, %v1030_v22  ;;  %v1459_v36 = vpop.f32.mrb[15].mxu0  ;;  %v1507_v37 = vpop.f32.mrb[15].mxu1 }
 0x116   : > { %vm1078_vm11 = vcmp.ge.f32.partialorder %v1046_v23, 0.0  ;;  %v1117_v38 = vmul.f32 %v1823_v0, %v1046_v23  ;;  %v992_v40 = vmul.f32 %v1457_v28, %v1805_v51  ;;  %v1008_v41 = vmul.f32 %v1505_v29, %v1805_v51  ;;  %v1168_v28 = vld [vmem:[%s1818_s28 + $0x40] sm:$0xff] }
 0x117   : > { %1228 = vst [vmem:[%s1839_s8 + $0x20] sm:$0xff] %v1196_v32  ;;  %1244 = vst [vmem:[%s1839_s8 + $0xa0] sm:$0xff] %v1212_v33  ;;  %v1133_v42 = vsel %vm1062_vm10, %v1030_v22, %v1101_v34  ;;  %v1460_v43 = vadd.f32 %v1459_v36, %v1458_v30  ;;  %v1508_v44 = vadd.f32 %v1507_v37, %v1506_v31  ;;  %v1184_v30 = vld [vmem:[%s1818_s28 + $0xc0] sm:$0xff] }
 0x118   : > { %v1197_v45 = vadd.f32 %v1165_v35, %v1133_v42  ;;  %v1149_v46 = vsel %vm1078_vm11, %v1046_v23, %v1117_v38  ;;  %v1031_v47 = vadd.f32 %v1810_v57, %v992_v40  ;;  %v1047_v48 = vadd.f32 %v1810_v57, %v1008_v41 }
 0x119   : > { %v1213_v49 = vadd.f32 %v1181_v39, %v1149_v46  ;;  %v993_v50 = vmul.f32 %v1460_v43, %v1805_v51  ;;  %v1009_v52 = vmul.f32 %v1508_v44, %v1805_v51  ;;  %v1169_v46 = vld [vmem:[%s1818_s28 + $0x48] sm:$0xff] }
 0x11a   : > { %1229 = vst [vmem:[%s1839_s8 + $0x28] sm:$0xff] %v1197_v45  ;;  %vm1063_vm12 = vcmp.ge.f32.partialorder %v1031_v47, 0.0  ;;  %v1102_v53 = vmul.f32 %v1823_v0, %v1031_v47  ;;  %vm1079_vm13 = vcmp.ge.f32.partialorder %v1047_v48, 0.0  ;;  %v1118_v55 = vmul.f32 %v1823_v0, %v1047_v48  ;;  %v1461_v58 = vpop.f32.mrb[16].mxu0  ;;  %v1509_v59 = vpop.f32.mrb[16].mxu1 }
 0x11b   : > { %1245 = vst [vmem:[%s1839_s8 + $0xa8] sm:$0xff] %v1213_v49  ;;  %v1032_v60 = vadd.f32 %v1810_v57, %v993_v50  ;;  %v1048_v61 = vadd.f32 %v1810_v57, %v1009_v52  ;;  %v1462_v62 = vpop.f32.mrb[17].mxu0  ;;  %v1510_v63 = vpop.f32.mrb[17].mxu1  ;;  %v1185_v50 = vld [vmem:[%s1818_s28 + $0xc8] sm:$0xff] }
 0x11c   : > { %v1134_v1 = vsel %vm1063_vm12, %v1031_v47, %v1102_v53  ;;  %v1150_v2 = vsel %vm1079_vm13, %v1047_v48, %v1118_v55  ;;  %v1463_v3 = vadd.f32 %v1462_v62, %v1461_v58  ;;  %v1511_v4 = vadd.f32 %v1510_v63, %v1509_v59  ;;  %v1464_v5 = vpop.f32.mrb[18].mxu0  ;;  %v1512_v6 = vpop.f32.mrb[18].mxu1 }
 0x11d   : > { %v1198_v7 = vadd.f32 %v1166_v54, %v1134_v1  ;;  %v1214_v8 = vadd.f32 %v1182_v56, %v1150_v2  ;;  %vm1064_vm14 = vcmp.ge.f32.partialorder %v1032_v60, 0.0  ;;  %v1103_v9 = vmul.f32 %v1823_v0, %v1032_v60  ;;  %v1465_v11 = vpop.f32.mrb[19].mxu0  ;;  %v1513_v12 = vpop.f32.mrb[19].mxu1 }
 0x11e   : > { %vm1080_vm15 = vcmp.ge.f32.partialorder %v1048_v61, 0.0  ;;  %v1119_v13 = vmul.f32 %v1823_v0, %v1048_v61  ;;  %v994_v15 = vmul.f32 %v1463_v3, %v1805_v51  ;;  %v1010_v16 = vmul.f32 %v1511_v4, %v1805_v51  ;;  %v1170_v3 = vld [vmem:[%s1818_s28 + $0x50] sm:$0xff] }
 0x11f   : > { %1230 = vst [vmem:[%s1839_s8 + $0x30] sm:$0xff] %v1198_v7  ;;  %1246 = vst [vmem:[%s1839_s8 + $0xb0] sm:$0xff] %v1214_v8  ;;  %v1135_v17 = vsel %vm1064_vm14, %v1032_v60, %v1103_v9  ;;  %v1466_v18 = vadd.f32 %v1465_v11, %v1464_v5  ;;  %v1514_v19 = vadd.f32 %v1513_v12, %v1512_v6  ;;  %v1186_v5 = vld [vmem:[%s1818_s28 + $0xd0] sm:$0xff] }
 0x120   : > { %v1199_v20 = vadd.f32 %v1167_v10, %v1135_v17  ;;  %v1151_v21 = vsel %vm1080_vm15, %v1048_v61, %v1119_v13  ;;  %v1033_v22 = vadd.f32 %v1810_v57, %v994_v15  ;;  %v1049_v23 = vadd.f32 %v1810_v57, %v1010_v16 }
 0x121   : > { %v1215_v24 = vadd.f32 %v1183_v14, %v1151_v21  ;;  %v995_v25 = vmul.f32 %v1466_v18, %v1805_v51  ;;  %v1011_v26 = vmul.f32 %v1514_v19, %v1805_v51  ;;  %v1171_v21 = vld [vmem:[%s1818_s28 + $0x58] sm:$0xff] }
 0x122   : > { %1231 = vst [vmem:[%s1839_s8 + $0x38] sm:$0xff] %v1199_v20  ;;  %vm1065_vm0 = vcmp.ge.f32.partialorder %v1033_v22, 0.0  ;;  %v1104_v27 = vmul.f32 %v1823_v0, %v1033_v22  ;;  %vm1081_vm1 = vcmp.ge.f32.partialorder %v1049_v23, 0.0  ;;  %v1120_v29 = vmul.f32 %v1823_v0, %v1049_v23  ;;  %v1467_v31 = vpop.f32.mrb[20].mxu0  ;;  %v1515_v32 = vpop.f32.mrb[20].mxu1 }
 0x123   : > { %1247 = vst [vmem:[%s1839_s8 + $0xb8] sm:$0xff] %v1215_v24  ;;  %v1034_v33 = vadd.f32 %v1810_v57, %v995_v25  ;;  %v1050_v34 = vadd.f32 %v1810_v57, %v1011_v26  ;;  %v1468_v35 = vpop.f32.mrb[21].mxu0  ;;  %v1516_v36 = vpop.f32.mrb[21].mxu1  ;;  %v1187_v25 = vld [vmem:[%s1818_s28 + $0xd8] sm:$0xff] }
 0x124   : > { %v1136_v37 = vsel %vm1065_vm0, %v1033_v22, %v1104_v27  ;;  %v1152_v38 = vsel %vm1081_vm1, %v1049_v23, %v1120_v29  ;;  %v1469_v39 = vadd.f32 %v1468_v35, %v1467_v31  ;;  %v1517_v40 = vadd.f32 %v1516_v36, %v1515_v32  ;;  %v1470_v41 = vpop.f32.mrb[22].mxu0  ;;  %v1518_v42 = vpop.f32.mrb[22].mxu1 }
 0x125   : > { %v1200_v43 = vadd.f32 %v1168_v28, %v1136_v37  ;;  %v1216_v44 = vadd.f32 %v1184_v30, %v1152_v38  ;;  %vm1066_vm2 = vcmp.ge.f32.partialorder %v1034_v33, 0.0  ;;  %v1105_v45 = vmul.f32 %v1823_v0, %v1034_v33  ;;  %v1471_v47 = vpop.f32.mrb[23].mxu0  ;;  %v1519_v48 = vpop.f32.mrb[23].mxu1 }
 0x126   : > { %vm1082_vm3 = vcmp.ge.f32.partialorder %v1050_v34, 0.0  ;;  %v1121_v49 = vmul.f32 %v1823_v0, %v1050_v34  ;;  %v996_v52 = vmul.f32 %v1469_v39, %v1805_v51  ;;  %v1012_v53 = vmul.f32 %v1517_v40, %v1805_v51  ;;  %v1172_v39 = vld [vmem:[%s1818_s28 + $0x60] sm:$0xff] }
 0x127   : > { %1232 = vst [vmem:[%s1839_s8 + $0x40] sm:$0xff] %v1200_v43  ;;  %1248 = vst [vmem:[%s1839_s8 + $0xc0] sm:$0xff] %v1216_v44  ;;  %v1137_v54 = vsel %vm1066_vm2, %v1034_v33, %v1105_v45  ;;  %v1472_v55 = vadd.f32 %v1471_v47, %v1470_v41  ;;  %v1520_v56 = vadd.f32 %v1519_v48, %v1518_v42  ;;  %v1188_v41 = vld [vmem:[%s1818_s28 + $0xe0] sm:$0xff] }
 0x128   : > { %v1201_v58 = vadd.f32 %v1169_v46, %v1137_v54  ;;  %v1153_v59 = vsel %vm1082_vm3, %v1050_v34, %v1121_v49  ;;  %v1035_v60 = vadd.f32 %v1810_v57, %v996_v52  ;;  %v1051_v61 = vadd.f32 %v1810_v57, %v1012_v53 }
 0x129   : > { %v1217_v62 = vadd.f32 %v1185_v50, %v1153_v59  ;;  %v997_v63 = vmul.f32 %v1472_v55, %v1805_v51  ;;  %v1013_v1 = vmul.f32 %v1520_v56, %v1805_v51  ;;  %v1173_v59 = vld [vmem:[%s1818_s28 + $0x68] sm:$0xff] }
 0x12a   : > { %1233 = vst [vmem:[%s1839_s8 + $0x48] sm:$0xff] %v1201_v58  ;;  %vm1067_vm4 = vcmp.ge.f32.partialorder %v1035_v60, 0.0  ;;  %v1106_v2 = vmul.f32 %v1823_v0, %v1035_v60  ;;  %vm1083_vm5 = vcmp.ge.f32.partialorder %v1051_v61, 0.0  ;;  %v1122_v4 = vmul.f32 %v1823_v0, %v1051_v61  ;;  %v1473_v6 = vpop.f32.mrb[24].mxu0  ;;  %v1521_v7 = vpop.f32.mrb[24].mxu1 }
 0x12b   : > { %1249 = vst [vmem:[%s1839_s8 + $0xc8] sm:$0xff] %v1217_v62  ;;  %v1036_v8 = vadd.f32 %v1810_v57, %v997_v63  ;;  %v1052_v9 = vadd.f32 %v1810_v57, %v1013_v1  ;;  %v1474_v10 = vpop.f32.mrb[25].mxu0  ;;  %v1522_v11 = vpop.f32.mrb[25].mxu1  ;;  %v1189_v63 = vld [vmem:[%s1818_s28 + $0xe8] sm:$0xff] }
 0x12c   : > { %v1138_v12 = vsel %vm1067_vm4, %v1035_v60, %v1106_v2  ;;  %v1154_v13 = vsel %vm1083_vm5, %v1051_v61, %v1122_v4  ;;  %v1475_v14 = vadd.f32 %v1474_v10, %v1473_v6  ;;  %v1523_v15 = vadd.f32 %v1522_v11, %v1521_v7  ;;  %v1476_v16 = vpop.f32.mrb[26].mxu0  ;;  %v1524_v17 = vpop.f32.mrb[26].mxu1 }
 0x12d   : > { %v1202_v18 = vadd.f32 %v1170_v3, %v1138_v12  ;;  %v1218_v19 = vadd.f32 %v1186_v5, %v1154_v13  ;;  %vm1068_vm6 = vcmp.ge.f32.partialorder %v1036_v8, 0.0  ;;  %v1107_v20 = vmul.f32 %v1823_v0, %v1036_v8  ;;  %v1477_v22 = vpop.f32.mrb[27].mxu0  ;;  %v1525_v23 = vpop.f32.mrb[27].mxu1 }
 0x12e   : > { %vm1084_vm7 = vcmp.ge.f32.partialorder %v1052_v9, 0.0  ;;  %v1123_v24 = vmul.f32 %v1823_v0, %v1052_v9  ;;  %v998_v26 = vmul.f32 %v1475_v14, %v1805_v51  ;;  %v1014_v27 = vmul.f32 %v1523_v15, %v1805_v51  ;;  %v1174_v14 = vld [vmem:[%s1818_s28 + $0x70] sm:$0xff] }
 0x12f   : > { %1234 = vst [vmem:[%s1839_s8 + $0x50] sm:$0xff] %v1202_v18  ;;  %1250 = vst [vmem:[%s1839_s8 + $0xd0] sm:$0xff] %v1218_v19  ;;  %v1139_v28 = vsel %vm1068_vm6, %v1036_v8, %v1107_v20  ;;  %v1478_v29 = vadd.f32 %v1477_v22, %v1476_v16  ;;  %v1526_v30 = vadd.f32 %v1525_v23, %v1524_v17  ;;  %v1190_v16 = vld [vmem:[%s1818_s28 + $0xf0] sm:$0xff]  ;;  %v1175_v23 = vld [vmem:[%s1818_s28 + $0x78] sm:$0xff] }
 0x130   : > { %v1203_v31 = vadd.f32 %v1171_v21, %v1139_v28  ;;  %v1155_v32 = vsel %vm1084_vm7, %v1052_v9, %v1123_v24  ;;  %v1037_v33 = vadd.f32 %v1810_v57, %v998_v26  ;;  %v1053_v34 = vadd.f32 %v1810_v57, %v1014_v27 }
 0x131   : > { %v1219_v35 = vadd.f32 %v1187_v25, %v1155_v32  ;;  %v999_v36 = vmul.f32 %v1478_v29, %v1805_v51  ;;  %v1015_v37 = vmul.f32 %v1526_v30, %v1805_v51  ;;  %v1191_v25 = vld [vmem:[%s1818_s28 + $0xf8] sm:$0xff] }
 0x132   : > { %1235 = vst [vmem:[%s1839_s8 + $0x58] sm:$0xff] %v1203_v31  ;;  %vm1069_vm8 = vcmp.ge.f32.partialorder %v1037_v33, 0.0  ;;  %v1108_v38 = vmul.f32 %v1823_v0, %v1037_v33  ;;  %vm1085_vm9 = vcmp.ge.f32.partialorder %v1053_v34, 0.0  ;;  %v1124_v40 = vmul.f32 %v1823_v0, %v1053_v34  ;;  %v1479_v42 = vpop.f32.mrb[28].mxu0  ;;  %v1527_v43 = vpop.f32.mrb[28].mxu1 }
 0x133   : > { %1251 = vst [vmem:[%s1839_s8 + $0xd8] sm:$0xff] %v1219_v35  ;;  %v1038_v44 = vadd.f32 %v1810_v57, %v999_v36  ;;  %v1054_v45 = vadd.f32 %v1810_v57, %v1015_v37  ;;  %v1480_v46 = vpop.f32.mrb[29].mxu0  ;;  %v1528_v47 = vpop.f32.mrb[29].mxu1 }
 0x134   : > { %v1140_v48 = vsel %vm1069_vm8, %v1037_v33, %v1108_v38  ;;  %v1156_v49 = vsel %vm1085_vm9, %v1053_v34, %v1124_v40  ;;  %v1481_v50 = vadd.f32 %v1480_v46, %v1479_v42  ;;  %v1529_v52 = vadd.f32 %v1528_v47, %v1527_v43  ;;  %v1482_v53 = vpop.f32.mrb[30].mxu0  ;;  %v1530_v54 = vpop.f32.mrb[30].mxu1 }
 0x135   : > { %v1204_v55 = vadd.f32 %v1172_v39, %v1140_v48  ;;  %v1220_v56 = vadd.f32 %v1188_v41, %v1156_v49  ;;  %vm1070_vm10 = vcmp.ge.f32.partialorder %v1038_v44, 0.0  ;;  %v1109_v58 = vmul.f32 %v1823_v0, %v1038_v44  ;;  %v1483_v60 = vpop.f32.mrb[31].mxu0  ;;  %v1531_v61 = vpop.f32.mrb[31].mxu1 }
 0x136   : > { %vm1086_vm11 = vcmp.ge.f32.partialorder %v1054_v45, 0.0  ;;  %v1125_v62 = vmul.f32 %v1823_v0, %v1054_v45  ;;  %v1000_v1 = vmul.f32 %v1481_v50, %v1805_v51  ;;  %v1016_v2 = vmul.f32 %v1529_v52, %v1805_v51 }
 0x137   : > { %1236 = vst [vmem:[%s1839_s8 + $0x60] sm:$0xff] %v1204_v55  ;;  %1252 = vst [vmem:[%s1839_s8 + $0xe0] sm:$0xff] %v1220_v56  ;;  %v1141_v3 = vsel %vm1070_vm10, %v1038_v44, %v1109_v58  ;;  %v1484_v4 = vadd.f32 %v1483_v60, %v1482_v53  ;;  %v1532_v5 = vadd.f32 %v1531_v61, %v1530_v54 }
 0x138   : > { %v1205_v6 = vadd.f32 %v1173_v59, %v1141_v3  ;;  %v1157_v7 = vsel %vm1086_vm11, %v1054_v45, %v1125_v62  ;;  %v1039_v8 = vadd.f32 %v1810_v57, %v1000_v1  ;;  %v1055_v9 = vadd.f32 %v1810_v57, %v1016_v2 }
 0x139   : > { %v1221_v10 = vadd.f32 %v1189_v63, %v1157_v7  ;;  %v1001_v11 = vmul.f32 %v1484_v4, %v1805_v51  ;;  %v1017_v12 = vmul.f32 %v1532_v5, %v1805_v51 }
 0x13a   : > { %1237 = vst [vmem:[%s1839_s8 + $0x68] sm:$0xff] %v1205_v6  ;;  %vm1071_vm12 = vcmp.ge.f32.partialorder %v1039_v8, 0.0  ;;  %v1110_v13 = vmul.f32 %v1823_v0, %v1039_v8  ;;  %vm1087_vm13 = vcmp.ge.f32.partialorder %v1055_v9, 0.0  ;;  %v1126_v15 = vmul.f32 %v1823_v0, %v1055_v9 }
 0x13b   : > { %1253 = vst [vmem:[%s1839_s8 + $0xe8] sm:$0xff] %v1221_v10  ;;  %v1040_v17 = vadd.f32 %v1810_v57, %v1001_v11  ;;  %v1056_v18 = vadd.f32 %v1810_v57, %v1017_v12 }
 0x13c   : > { %v1142_v19 = vsel %vm1071_vm12, %v1039_v8, %v1110_v13  ;;  %v1158_v51 = vsel %vm1087_vm13, %v1055_v9, %v1126_v15 }
 0x13d   : > { %v1206_v20 = vadd.f32 %v1174_v14, %v1142_v19  ;;  %v1222_v21 = vadd.f32 %v1190_v16, %v1158_v51  ;;  %vm1072_vm14 = vcmp.ge.f32.partialorder %v1040_v17, 0.0  ;;  %v1111_v22 = vmul.f32 %v1823_v0, %v1040_v17 }
 0x13e   : > { %vm1088_vm15 = vcmp.ge.f32.partialorder %v1056_v18, 0.0  ;;  %v1127_v24 = vmul.f32 %v1823_v0, %v1056_v18 }
 0x13f   : > { %1238 = vst [vmem:[%s1839_s8 + $0x70] sm:$0xff] %v1206_v20  ;;  %1254 = vst [vmem:[%s1839_s8 + $0xf0] sm:$0xff] %v1222_v21  ;;  %v1143_v26 = vsel %vm1072_vm14, %v1040_v17, %v1111_v22 }
 0x140   : > { %v1207_v27 = vadd.f32 %v1175_v23, %v1143_v26  ;;  %v1159_v28 = vsel %vm1088_vm15, %v1056_v18, %v1127_v24 }
 0x141   : > { %v1223_v57 = vadd.f32 %v1191_v25, %v1159_v28 }
 0x142   : > { %1239 = vst [vmem:[%s1839_s8 + $0x78] sm:$0xff] %v1207_v27 }
 0x143   : > { %1255 = vst [vmem:[%s1839_s8 + $0xf8] sm:$0xff] %v1223_v57 }
 0x144 PF: > { %s16_s23 = sadd.s32 1, %s1659_s23   ;;  %s2005_s21 = smov %s1655_s22 }
 0x145   : > { %p13_p5 = scmp.ge.s32.totalorder %s16_s23, 4   ;;  %s2006_s22 = smov %s2008_s24 }
 0x147   :  { %15 = sbr.rel (!%p13_p5) target bundleno = 2 (0x2), region = 88 }

// kernel: encoder_forward.146
= control target key start
LH: loop header
LB: loop body
LE: loop exit
PB: predicated region body
PF: predicated region fallthrough
CT: control target
= control target key end

     0   :  { %s1564_s18 = smov 0   ;;  %s1566_s19 = smov 0   ;;  %s1831_s0 = inlined_call_operand.vmem [shape: bf16[512,256], index: 0, kind: input, shape index: {}]   ;;  %s1832_s1 = inlined_call_operand.vmem [shape: bf16[256,128], index: 1, kind: input, shape index: {}]   ;;  %s1833_s2 = inlined_call_operand.vmem [shape: f32[1,128], index: 2, kind: input, shape index: {}]   ;;  %s1834_s3 = inlined_call_operand.vmem [shape: f32[1,128], index: 3, kind: input, shape index: {}]   ;;  %s1835_s4 = inlined_call_operand.vmem [shape: f32[1,128], index: 4, kind: input, shape index: {}]   ;;  %s1836_s5 = inlined_call_operand.vmem [shape: f32[512,128], index: 5, kind: output, shape index: {}]  }
   0x1   :  { %s1568_s20 = smov 0  }
   0x2 LB: > { %s27_s21 = sadd.s32 1, %s1528_s19  ;;  %p1234_p0 = scmp.ge.s32.totalorder %s1532_s20, 1  ;;  %s1532_s20 = sphi %s1568_s20, %s15_s20   ;;  %s1528_s19 = sphi %s1566_s19, %s1838_s19   ;;  %s1524_s18 = sphi %s1564_s18, %s1837_s18  }
   0x3   : > { %p29_p1 = scmp.ge.s32.totalorder %s27_s21, 2  ;;  %p219_p2 = scmp.lt.s32.totalorder %s1532_s20, 3 }
   0x5   : > { %s1840_s21 = smov (%p29_p1, %s27_s21), 0  ;;  %p220_p3 = pnand %p1234_p0, %p219_p2 }
   0x6   : > { %v1446_v0 = vld [vmem:[%s1832_s1 + $0x40] sm:$0xff] (!%p220_p3)   ;;  %s1235_s24 = sshll.u32 (!%p220_p3), %s1524_s18, 5  ;;  %v1448_v2 = vld [vmem:[%s1832_s1 + $0x48] sm:$0xff] (!%p220_p3)   ;;  %v1450_v4 = vld [vmem:[%s1832_s1 + $0x50] sm:$0xff] (!%p220_p3)  }
   0x7   : > { %223 = sbr.rel (%p220_p3) target bundleno = 321 (0x141), region = 40  ;;  %v1447_v1 = vld [vmem:[%s1832_s1] sm:$0xff] (!%p220_p3)   ;;  %1294 = vmatprep.subr.bf16.mxu0 (!%p220_p3), %v1446_v0  ;;  %1406 = vmatprep.subr.bf16.mxu1 (!%p220_p3), %v1446_v0  ;;  %v1449_v3 = vld [vmem:[%s1832_s1 + $0x8] sm:$0xff] (!%p220_p3)   ;;  %p259_p4 = scmp.lt.s32.totalorder (!%p220_p3), %s1235_s24, 63  ;;  %v1451_v5 = vld [vmem:[%s1832_s1 + $0x10] sm:$0xff] (!%p220_p3)  }
   0x8   : > { %1295 = vmatpush3.bf16.msra.mxu0 (!%p220_p3), %v1447_v1  ;;  %1414 = vmatpush3.bf16.msra.mxu1 (!%p220_p3), %v1447_v1  ;;  %v1452_v6 = vld [vmem:[%s1832_s1 + $0x58] sm:$0xff] (!%p220_p3)   ;;  %v1454_v8 = vld [vmem:[%s1832_s1 + $0x60] sm:$0xff] (!%p220_p3)   ;;  %v1456_v10 = vld [vmem:[%s1832_s1 + $0x68] sm:$0xff] (!%p220_p3)  }
   0x9   : > { %1296 = vmatprep.subr.bf16.mxu0 (!%p220_p3), %v1448_v2  ;;  %1407 = vmatprep.subr.bf16.mxu1 (!%p220_p3), %v1448_v2  ;;  %v1453_v7 = vld [vmem:[%s1832_s1 + $0x18] sm:$0xff] (!%p220_p3)   ;;  %v1455_v9 = vld [vmem:[%s1832_s1 + $0x20] sm:$0xff] (!%p220_p3)   ;;  %v1457_v13 = vld [vmem:[%s1832_s1 + $0x28] sm:$0xff] (!%p220_p3)  }
   0xa   : > { %v1458_v14 = vld [vmem:[%s1832_s1 + $0x70] sm:$0xff] (!%p220_p3)   ;;  %v1460_v16 = vld [vmem:[%s1832_s1 + $0x78] sm:$0xff] (!%p220_p3)   ;;  %v1675_v51 = vld [vmem:[%s1833_s2] ss:$0 sm:$0xff] (!%p220_p3) }
   0xb   : > { %v1459_v15 = vld [vmem:[%s1832_s1 + $0x30] sm:$0xff] (!%p220_p3)   ;;  %v1461_v17 = vld [vmem:[%s1832_s1 + $0x38] sm:$0xff] (!%p220_p3)   ;;  %v1680_v57 = vld [vmem:[%s1834_s3] ss:$0 sm:$0xff] (!%p220_p3) }
   0xc   : > { %1297 = vmatpush3.bf16.msra.mxu0 (!%p220_p3), %v1449_v3  ;;  %1415 = vmatpush3.bf16.msra.mxu1 (!%p220_p3), %v1449_v3  ;;  %v1687_v0 = vld [vmem:[%s1835_s4] ss:$0 sm:$0xff] (!%p220_p3) }
   0xd   : > { %1298 = vmatprep.subr.bf16.mxu0 (!%p220_p3), %v1450_v4  ;;  %1408 = vmatprep.subr.bf16.mxu1 (!%p220_p3), %v1450_v4 }
   0xe   : > { %s1842_s24 = smov (!%p259_p4, %s1235_s24), 63 }
   0xf   : > { %s1293_s14 = sshll.u32 %s1842_s24, 3 }
  0x10   : > { %1299 = vmatpush3.bf16.msra.mxu0 %v1451_v5  ;;  %1416 = vmatpush3.bf16.msra.mxu1 %v1451_v5  ;;  %s1617_s22 = scalar_lea.vmem %s1831_s0, %s1293_s14  ;;  %s1698_s26 = scalar_lea.vmem %s1836_s5, %s1293_s14 }
  0x11   : > { %1300 = vmatprep.subr.bf16.mxu0 %v1452_v6  ;;  %1409 = vmatprep.subr.bf16.mxu1 %v1452_v6  ;;  %v1464_v11 = vld [vmem:[%s1617_s22 + $0x4] ss:$8 sps:$4 sm:$0xff]   ;;  %v1462_v18 = vld [vmem:[%s1617_s22] ss:$8 sps:$4 sm:$0xff]   ;;  %v1468_v20 = vld [vmem:[%s1617_s22 + $0x14] ss:$8 sps:$4 sm:$0xff]  }
  0x12   : > { %v1467_v12 = vld [vmem:[%s1617_s22 + $0x84] ss:$8 sps:$4 sm:$0xff]   ;;  %702 = vmatprep.mubr.bf16.mxu0 %v1464_v11  ;;  %v1465_v19 = vld [vmem:[%s1617_s22 + $0x80] ss:$8 sps:$4 sm:$0xff]   ;;  %v1470_v21 = vld [vmem:[%s1617_s22 + $0x94] ss:$8 sps:$4 sm:$0xff]  }
  0x13   : > { %766 = vmatprep.mubr.bf16.mxu1 %v1467_v12  ;;  %v1472_v22 = vld [vmem:[%s1617_s22 + $0x10] ss:$8 sps:$4 sm:$0xff]   ;;  %v1474_v24 = vld [vmem:[%s1617_s22 + $0x24] ss:$8 sps:$4 sm:$0xff]   ;;  %v1478_v26 = vld [vmem:[%s1617_s22 + $0x20] ss:$8 sps:$4 sm:$0xff]  }
  0x14   : > { %1301 = vmatpush3.bf16.msra.mxu0 %v1453_v7  ;;  %1417 = vmatpush3.bf16.msra.mxu1 %v1453_v7  ;;  %v1473_v23 = vld [vmem:[%s1617_s22 + $0x90] ss:$8 sps:$4 sm:$0xff]   ;;  %v1476_v25 = vld [vmem:[%s1617_s22 + $0xa4] ss:$8 sps:$4 sm:$0xff]   ;;  %v1479_v27 = vld [vmem:[%s1617_s22 + $0xa0] ss:$8 sps:$4 sm:$0xff]  }
  0x15   : > { %1302 = vmatprep.subr.bf16.mxu0 %v1454_v8  ;;  %1410 = vmatprep.subr.bf16.mxu1 %v1454_v8  ;;  %v1480_v28 = vld [vmem:[%s1617_s22 + $0x34] ss:$8 sps:$4 sm:$0xff]   ;;  %v1484_v30 = vld [vmem:[%s1617_s22 + $0x30] ss:$8 sps:$4 sm:$0xff]   ;;  %v1486_v32 = vld [vmem:[%s1617_s22 + $0x44] ss:$8 sps:$4 sm:$0xff]  }
  0x16   : > { %v1482_v29 = vld [vmem:[%s1617_s22 + $0xb4] ss:$8 sps:$4 sm:$0xff]   ;;  %v1485_v31 = vld [vmem:[%s1617_s22 + $0xb0] ss:$8 sps:$4 sm:$0xff]   ;;  %v1488_v33 = vld [vmem:[%s1617_s22 + $0xc4] ss:$8 sps:$4 sm:$0xff]  }
  0x17   : > { %v1490_v34 = vld [vmem:[%s1617_s22 + $0x40] ss:$8 sps:$4 sm:$0xff]   ;;  %v1492_v36 = vld [vmem:[%s1617_s22 + $0x54] ss:$8 sps:$4 sm:$0xff]   ;;  %v1496_v38 = vld [vmem:[%s1617_s22 + $0x50] ss:$8 sps:$4 sm:$0xff]  }
  0x18   : > { %1303 = vmatpush3.bf16.msra.mxu0 %v1455_v9  ;;  %1418 = vmatpush3.bf16.msra.mxu1 %v1455_v9  ;;  %v1491_v35 = vld [vmem:[%s1617_s22 + $0xc0] ss:$8 sps:$4 sm:$0xff]   ;;  %v1494_v37 = vld [vmem:[%s1617_s22 + $0xd4] ss:$8 sps:$4 sm:$0xff]   ;;  %v1497_v39 = vld [vmem:[%s1617_s22 + $0xd0] ss:$8 sps:$4 sm:$0xff]  }
  0x19   : > { %1304 = vmatprep.subr.bf16.mxu0 %v1456_v10  ;;  %1411 = vmatprep.subr.bf16.mxu1 %v1456_v10  ;;  %v1498_v40 = vld [vmem:[%s1617_s22 + $0x64] ss:$8 sps:$4 sm:$0xff]   ;;  %v1502_v42 = vld [vmem:[%s1617_s22 + $0x60] ss:$8 sps:$4 sm:$0xff]   ;;  %v1504_v44 = vld [vmem:[%s1617_s22 + $0x74] ss:$8 sps:$4 sm:$0xff]  }
  0x1a   : > { %v1500_v41 = vld [vmem:[%s1617_s22 + $0xe4] ss:$8 sps:$4 sm:$0xff]   ;;  %v1503_v43 = vld [vmem:[%s1617_s22 + $0xe0] ss:$8 sps:$4 sm:$0xff]   ;;  %v1506_v45 = vld [vmem:[%s1617_s22 + $0xf4] ss:$8 sps:$4 sm:$0xff]  }
  0x1b   : > { %v1508_v46 = vld [vmem:[%s1617_s22 + $0x70] ss:$8 sps:$4 sm:$0xff]  }
  0x1c   : > { %1305 = vmatpush3.bf16.msra.mxu0 %v1457_v13  ;;  %1419 = vmatpush3.bf16.msra.mxu1 %v1457_v13  ;;  %v1509_v47 = vld [vmem:[%s1617_s22 + $0xf0] ss:$8 sps:$4 sm:$0xff]  }
  0x1d   : > { %1306 = vmatprep.subr.bf16.mxu0 %v1458_v14  ;;  %1412 = vmatprep.subr.bf16.mxu1 %v1458_v14 }
  0x20   : > { %1307 = vmatpush3.bf16.msra.mxu0 %v1459_v15  ;;  %1420 = vmatpush3.bf16.msra.mxu1 %v1459_v15 }
  0x21   : > { %1308 = vmatprep.subr.bf16.mxu0 %v1460_v16  ;;  %1413 = vmatprep.subr.bf16.mxu1 %v1460_v16 }
  0x24   : > { %1309 = vmatpush3.bf16.msra.mxu0 %v1461_v17  ;;  %1421 = vmatpush3.bf16.msra.mxu1 %v1461_v17 }
  0x27   : > { %703 = vmatmul.mubr.bf16.vlgmr.msra.gmra.mrb[0].mxu0 %v1462_v18  ;;  %767 = vmatmul.mubr.bf16.vlgmr.msra.gmra.mrb[0].mxu1 %v1465_v19 }
  0x28   : > { %710 = vmatprep.mubr.bf16.mxu0 %v1468_v20  ;;  %774 = vmatprep.mubr.bf16.mxu1 %v1470_v21 }
  0x2f   : > { %711 = vmatmul.mubr.bf16.gmra.mrb[4].mxu0 %v1472_v22  ;;  %775 = vmatmul.mubr.bf16.gmra.mrb[4].mxu1 %v1473_v23 }
  0x30   : > { %718 = vmatprep.mubr.bf16.mxu0 %v1474_v24  ;;  %782 = vmatprep.mubr.bf16.mxu1 %v1476_v25 }
  0x37   : > { %719 = vmatmul.mubr.bf16.gmra.mrb[8].mxu0 %v1478_v26  ;;  %783 = vmatmul.mubr.bf16.gmra.mrb[8].mxu1 %v1479_v27 }
  0x38   : > { %726 = vmatprep.mubr.bf16.mxu0 %v1480_v28  ;;  %790 = vmatprep.mubr.bf16.mxu1 %v1482_v29 }
  0x3f   : > { %727 = vmatmul.mubr.bf16.gmra.mrb[12].mxu0 %v1484_v30  ;;  %791 = vmatmul.mubr.bf16.gmra.mrb[12].mxu1 %v1485_v31 }
  0x40   : > { %734 = vmatprep.mubr.bf16.mxu0 %v1486_v32  ;;  %798 = vmatprep.mubr.bf16.mxu1 %v1488_v33 }
  0x47   : > { %735 = vmatmul.mubr.bf16.gmra.mrb[16].mxu0 %v1490_v34  ;;  %799 = vmatmul.mubr.bf16.gmra.mrb[16].mxu1 %v1491_v35 }
  0x48   : > { %742 = vmatprep.mubr.bf16.mxu0 %v1492_v36  ;;  %806 = vmatprep.mubr.bf16.mxu1 %v1494_v37 }
  0x4f   : > { %743 = vmatmul.mubr.bf16.gmra.mrb[20].mxu0 %v1496_v38  ;;  %807 = vmatmul.mubr.bf16.gmra.mrb[20].mxu1 %v1497_v39 }
  0x50   : > { %750 = vmatprep.mubr.bf16.mxu0 %v1498_v40  ;;  %814 = vmatprep.mubr.bf16.mxu1 %v1500_v41 }
  0x57   : > { %751 = vmatmul.mubr.bf16.gmra.mrb[24].mxu0 %v1502_v42  ;;  %815 = vmatmul.mubr.bf16.gmra.mrb[24].mxu1 %v1503_v43 }
  0x58   : > { %758 = vmatprep.mubr.bf16.mxu0 %v1504_v44  ;;  %822 = vmatprep.mubr.bf16.mxu1 %v1506_v45 }
  0x5f   : > { %759 = vmatmul.mubr.bf16.gmra.mrb[28].mxu0 %v1508_v46  ;;  %823 = vmatmul.mubr.bf16.gmra.mrb[28].mxu1 %v1509_v47 }
  0xfa   : > { %v1310_v48 = vpop.f32.mrb[0].mxu0  ;;  %v1358_v49 = vpop.f32.mrb[0].mxu1 }
  0xfb   : > { %v1311_v50 = vpop.f32.mrb[1].mxu0  ;;  %v1359_v52 = vpop.f32.mrb[1].mxu1 }
  0xfc   : > { %v1312_v53 = vadd.f32 %v1311_v50, %v1310_v48  ;;  %v1360_v54 = vadd.f32 %v1359_v52, %v1358_v49  ;;  %v1313_v55 = vpop.f32.mrb[2].mxu0  ;;  %v1361_v56 = vpop.f32.mrb[2].mxu1 }
  0xfd   : > { %v1314_v58 = vpop.f32.mrb[3].mxu0  ;;  %v1362_v59 = vpop.f32.mrb[3].mxu1 }
  0xfe   : > { %v937_v60 = vmul.f32 %v1312_v53, %v1675_v51  ;;  %v953_v61 = vmul.f32 %v1360_v54, %v1675_v51  ;;  %v1315_v62 = vadd.f32 %v1314_v58, %v1313_v55  ;;  %v1363_v63 = vadd.f32 %v1362_v59, %v1361_v56 }
 0x100   : > { %v976_v1 = vadd.f32 %v1680_v57, %v937_v60  ;;  %v992_v2 = vadd.f32 %v1680_v57, %v953_v61  ;;  %v938_v3 = vmul.f32 %v1315_v62, %v1675_v51  ;;  %v954_v4 = vmul.f32 %v1363_v63, %v1675_v51 }
 0x102   : > { %vm1008_vm0 = vcmp.ge.f32.partialorder %v976_v1, 0.0  ;;  %v1047_v5 = vmul.f32 %v1687_v0, %v976_v1  ;;  %vm1024_vm1 = vcmp.ge.f32.partialorder %v992_v2, 0.0  ;;  %v1063_v6 = vmul.f32 %v1687_v0, %v992_v2  ;;  %v1316_v7 = vpop.f32.mrb[4].mxu0  ;;  %v1364_v8 = vpop.f32.mrb[4].mxu1 }
 0x103   : > { %v977_v9 = vadd.f32 %v1680_v57, %v938_v3  ;;  %v993_v10 = vadd.f32 %v1680_v57, %v954_v4  ;;  %v1317_v11 = vpop.f32.mrb[5].mxu0  ;;  %v1365_v12 = vpop.f32.mrb[5].mxu1 }
 0x104   : > { %v1079_v13 = vsel %vm1008_vm0, %v976_v1, %v1047_v5  ;;  %v1095_v14 = vsel %vm1024_vm1, %v992_v2, %v1063_v6  ;;  %v1318_v15 = vadd.f32 %v1317_v11, %v1316_v7  ;;  %v1366_v16 = vadd.f32 %v1365_v12, %v1364_v8  ;;  %v1319_v17 = vpop.f32.mrb[6].mxu0  ;;  %v1367_v18 = vpop.f32.mrb[6].mxu1 }
 0x105   : > { %1111 = vst [vmem:[%s1698_s26] sm:$0xff] %v1079_v13  ;;  %1127 = vst [vmem:[%s1698_s26 + $0x80] sm:$0xff] %v1095_v14  ;;  %vm1009_vm2 = vcmp.ge.f32.partialorder %v977_v9, 0.0  ;;  %v1048_v19 = vmul.f32 %v1687_v0, %v977_v9  ;;  %vm1025_vm3 = vcmp.ge.f32.partialorder %v993_v10, 0.0  ;;  %v1064_v20 = vmul.f32 %v1687_v0, %v993_v10  ;;  %v1320_v21 = vpop.f32.mrb[7].mxu0  ;;  %v1368_v22 = vpop.f32.mrb[7].mxu1 }
 0x106   : > { %v939_v23 = vmul.f32 %v1318_v15, %v1675_v51  ;;  %v955_v24 = vmul.f32 %v1366_v16, %v1675_v51  ;;  %v1321_v25 = vadd.f32 %v1320_v21, %v1319_v17  ;;  %v1369_v26 = vadd.f32 %v1368_v22, %v1367_v18 }
 0x107   : > { %v1080_v27 = vsel %vm1009_vm2, %v977_v9, %v1048_v19  ;;  %v1096_v28 = vsel %vm1025_vm3, %v993_v10, %v1064_v20 }
 0x108   : > { %1112 = vst [vmem:[%s1698_s26 + $0x8] sm:$0xff] %v1080_v27  ;;  %1128 = vst [vmem:[%s1698_s26 + $0x88] sm:$0xff] %v1096_v28  ;;  %v978_v29 = vadd.f32 %v1680_v57, %v939_v23  ;;  %v994_v30 = vadd.f32 %v1680_v57, %v955_v24  ;;  %v940_v31 = vmul.f32 %v1321_v25, %v1675_v51 }
 0x109   : > { %v956_v32 = vmul.f32 %v1369_v26, %v1675_v51 }
 0x10a   : > { %vm1010_vm4 = vcmp.ge.f32.partialorder %v978_v29, 0.0  ;;  %v1049_v33 = vmul.f32 %v1687_v0, %v978_v29  ;;  %vm1026_vm5 = vcmp.ge.f32.partialorder %v994_v30, 0.0  ;;  %v1065_v34 = vmul.f32 %v1687_v0, %v994_v30  ;;  %v1322_v35 = vpop.f32.mrb[8].mxu0  ;;  %v1370_v36 = vpop.f32.mrb[8].mxu1 }
 0x10b   : > { %v979_v37 = vadd.f32 %v1680_v57, %v940_v31  ;;  %v995_v38 = vadd.f32 %v1680_v57, %v956_v32  ;;  %v1323_v39 = vpop.f32.mrb[9].mxu0  ;;  %v1371_v40 = vpop.f32.mrb[9].mxu1 }
 0x10c   : > { %v1081_v41 = vsel %vm1010_vm4, %v978_v29, %v1049_v33  ;;  %v1097_v42 = vsel %vm1026_vm5, %v994_v30, %v1065_v34  ;;  %v1324_v43 = vadd.f32 %v1323_v39, %v1322_v35  ;;  %v1372_v44 = vadd.f32 %v1371_v40, %v1370_v36  ;;  %v1325_v45 = vpop.f32.mrb[10].mxu0  ;;  %v1373_v46 = vpop.f32.mrb[10].mxu1 }
 0x10d   : > { %1113 = vst [vmem:[%s1698_s26 + $0x10] sm:$0xff] %v1081_v41  ;;  %1129 = vst [vmem:[%s1698_s26 + $0x90] sm:$0xff] %v1097_v42  ;;  %vm1011_vm6 = vcmp.ge.f32.partialorder %v979_v37, 0.0  ;;  %v1050_v47 = vmul.f32 %v1687_v0, %v979_v37  ;;  %vm1027_vm7 = vcmp.ge.f32.partialorder %v995_v38, 0.0  ;;  %v1066_v48 = vmul.f32 %v1687_v0, %v995_v38  ;;  %v1326_v49 = vpop.f32.mrb[11].mxu0  ;;  %v1374_v50 = vpop.f32.mrb[11].mxu1 }
 0x10e   : > { %v941_v52 = vmul.f32 %v1324_v43, %v1675_v51  ;;  %v957_v53 = vmul.f32 %v1372_v44, %v1675_v51  ;;  %v1327_v54 = vadd.f32 %v1326_v49, %v1325_v45  ;;  %v1375_v55 = vadd.f32 %v1374_v50, %v1373_v46 }
 0x10f   : > { %v1082_v56 = vsel %vm1011_vm6, %v979_v37, %v1050_v47  ;;  %v1098_v58 = vsel %vm1027_vm7, %v995_v38, %v1066_v48 }
 0x110   : > { %1114 = vst [vmem:[%s1698_s26 + $0x18] sm:$0xff] %v1082_v56  ;;  %1130 = vst [vmem:[%s1698_s26 + $0x98] sm:$0xff] %v1098_v58  ;;  %v980_v59 = vadd.f32 %v1680_v57, %v941_v52  ;;  %v996_v60 = vadd.f32 %v1680_v57, %v957_v53  ;;  %v942_v61 = vmul.f32 %v1327_v54, %v1675_v51 }
 0x111   : > { %v958_v62 = vmul.f32 %v1375_v55, %v1675_v51 }
 0x112   : > { %vm1012_vm8 = vcmp.ge.f32.partialorder %v980_v59, 0.0  ;;  %v1051_v63 = vmul.f32 %v1687_v0, %v980_v59  ;;  %vm1028_vm9 = vcmp.ge.f32.partialorder %v996_v60, 0.0  ;;  %v1067_v1 = vmul.f32 %v1687_v0, %v996_v60  ;;  %v1328_v2 = vpop.f32.mrb[12].mxu0  ;;  %v1376_v3 = vpop.f32.mrb[12].mxu1 }
 0x113   : > { %v981_v4 = vadd.f32 %v1680_v57, %v942_v61  ;;  %v997_v5 = vadd.f32 %v1680_v57, %v958_v62  ;;  %v1329_v6 = vpop.f32.mrb[13].mxu0  ;;  %v1377_v7 = vpop.f32.mrb[13].mxu1 }
 0x114   : > { %v1083_v8 = vsel %vm1012_vm8, %v980_v59, %v1051_v63  ;;  %v1099_v9 = vsel %vm1028_vm9, %v996_v60, %v1067_v1  ;;  %v1330_v10 = vadd.f32 %v1329_v6, %v1328_v2  ;;  %v1378_v11 = vadd.f32 %v1377_v7, %v1376_v3  ;;  %v1331_v12 = vpop.f32.mrb[14].mxu0  ;;  %v1379_v13 = vpop.f32.mrb[14].mxu1 }
 0x115   : > { %1115 = vst [vmem:[%s1698_s26 + $0x20] sm:$0xff] %v1083_v8  ;;  %1131 = vst [vmem:[%s1698_s26 + $0xa0] sm:$0xff] %v1099_v9  ;;  %vm1013_vm10 = vcmp.ge.f32.partialorder %v981_v4, 0.0  ;;  %v1052_v14 = vmul.f32 %v1687_v0, %v981_v4  ;;  %vm1029_vm11 = vcmp.ge.f32.partialorder %v997_v5, 0.0  ;;  %v1068_v15 = vmul.f32 %v1687_v0, %v997_v5  ;;  %v1332_v16 = vpop.f32.mrb[15].mxu0  ;;  %v1380_v17 = vpop.f32.mrb[15].mxu1 }
 0x116   : > { %v943_v18 = vmul.f32 %v1330_v10, %v1675_v51  ;;  %v959_v19 = vmul.f32 %v1378_v11, %v1675_v51  ;;  %v1333_v20 = vadd.f32 %v1332_v16, %v1331_v12  ;;  %v1381_v21 = vadd.f32 %v1380_v17, %v1379_v13 }
 0x117   : > { %v1084_v22 = vsel %vm1013_vm10, %v981_v4, %v1052_v14  ;;  %v1100_v23 = vsel %vm1029_vm11, %v997_v5, %v1068_v15 }
 0x118   : > { %1116 = vst [vmem:[%s1698_s26 + $0x28] sm:$0xff] %v1084_v22  ;;  %1132 = vst [vmem:[%s1698_s26 + $0xa8] sm:$0xff] %v1100_v23  ;;  %v982_v24 = vadd.f32 %v1680_v57, %v943_v18  ;;  %v998_v25 = vadd.f32 %v1680_v57, %v959_v19  ;;  %v944_v26 = vmul.f32 %v1333_v20, %v1675_v51 }
 0x119   : > { %v960_v27 = vmul.f32 %v1381_v21, %v1675_v51 }
 0x11a   : > { %vm1014_vm12 = vcmp.ge.f32.partialorder %v982_v24, 0.0  ;;  %v1053_v28 = vmul.f32 %v1687_v0, %v982_v24  ;;  %vm1030_vm13 = vcmp.ge.f32.partialorder %v998_v25, 0.0  ;;  %v1069_v29 = vmul.f32 %v1687_v0, %v998_v25  ;;  %v1334_v30 = vpop.f32.mrb[16].mxu0  ;;  %v1382_v31 = vpop.f32.mrb[16].mxu1 }
 0x11b   : > { %v983_v32 = vadd.f32 %v1680_v57, %v944_v26  ;;  %v999_v33 = vadd.f32 %v1680_v57, %v960_v27  ;;  %v1335_v34 = vpop.f32.mrb[17].mxu0  ;;  %v1383_v35 = vpop.f32.mrb[17].mxu1 }
 0x11c   : > { %v1085_v36 = vsel %vm1014_vm12, %v982_v24, %v1053_v28  ;;  %v1101_v37 = vsel %vm1030_vm13, %v998_v25, %v1069_v29  ;;  %v1336_v38 = vadd.f32 %v1335_v34, %v1334_v30  ;;  %v1384_v39 = vadd.f32 %v1383_v35, %v1382_v31  ;;  %v1337_v40 = vpop.f32.mrb[18].mxu0  ;;  %v1385_v41 = vpop.f32.mrb[18].mxu1 }
 0x11d   : > { %1117 = vst [vmem:[%s1698_s26 + $0x30] sm:$0xff] %v1085_v36  ;;  %1133 = vst [vmem:[%s1698_s26 + $0xb0] sm:$0xff] %v1101_v37  ;;  %vm1015_vm14 = vcmp.ge.f32.partialorder %v983_v32, 0.0  ;;  %v1054_v42 = vmul.f32 %v1687_v0, %v983_v32  ;;  %vm1031_vm15 = vcmp.ge.f32.partialorder %v999_v33, 0.0  ;;  %v1070_v43 = vmul.f32 %v1687_v0, %v999_v33  ;;  %v1338_v44 = vpop.f32.mrb[19].mxu0  ;;  %v1386_v45 = vpop.f32.mrb[19].mxu1 }
 0x11e   : > { %v945_v46 = vmul.f32 %v1336_v38, %v1675_v51  ;;  %v961_v47 = vmul.f32 %v1384_v39, %v1675_v51  ;;  %v1339_v48 = vadd.f32 %v1338_v44, %v1337_v40  ;;  %v1387_v49 = vadd.f32 %v1386_v45, %v1385_v41 }
 0x11f   : > { %v1086_v50 = vsel %vm1015_vm14, %v983_v32, %v1054_v42  ;;  %v1102_v52 = vsel %vm1031_vm15, %v999_v33, %v1070_v43 }
 0x120   : > { %1118 = vst [vmem:[%s1698_s26 + $0x38] sm:$0xff] %v1086_v50  ;;  %1134 = vst [vmem:[%s1698_s26 + $0xb8] sm:$0xff] %v1102_v52  ;;  %v984_v53 = vadd.f32 %v1680_v57, %v945_v46  ;;  %v1000_v54 = vadd.f32 %v1680_v57, %v961_v47  ;;  %v946_v55 = vmul.f32 %v1339_v48, %v1675_v51 }
 0x121   : > { %v962_v56 = vmul.f32 %v1387_v49, %v1675_v51 }
 0x122   : > { %vm1016_vm0 = vcmp.ge.f32.partialorder %v984_v53, 0.0  ;;  %v1055_v58 = vmul.f32 %v1687_v0, %v984_v53  ;;  %vm1032_vm1 = vcmp.ge.f32.partialorder %v1000_v54, 0.0  ;;  %v1071_v59 = vmul.f32 %v1687_v0, %v1000_v54  ;;  %v1340_v60 = vpop.f32.mrb[20].mxu0  ;;  %v1388_v61 = vpop.f32.mrb[20].mxu1 }
 0x123   : > { %v985_v62 = vadd.f32 %v1680_v57, %v946_v55  ;;  %v1001_v63 = vadd.f32 %v1680_v57, %v962_v56  ;;  %v1341_v1 = vpop.f32.mrb[21].mxu0  ;;  %v1389_v2 = vpop.f32.mrb[21].mxu1 }
 0x124   : > { %v1087_v3 = vsel %vm1016_vm0, %v984_v53, %v1055_v58  ;;  %v1103_v4 = vsel %vm1032_vm1, %v1000_v54, %v1071_v59  ;;  %v1342_v5 = vadd.f32 %v1341_v1, %v1340_v60  ;;  %v1390_v6 = vadd.f32 %v1389_v2, %v1388_v61  ;;  %v1343_v7 = vpop.f32.mrb[22].mxu0  ;;  %v1391_v8 = vpop.f32.mrb[22].mxu1 }
 0x125   : > { %1119 = vst [vmem:[%s1698_s26 + $0x40] sm:$0xff] %v1087_v3  ;;  %1135 = vst [vmem:[%s1698_s26 + $0xc0] sm:$0xff] %v1103_v4  ;;  %vm1017_vm2 = vcmp.ge.f32.partialorder %v985_v62, 0.0  ;;  %v1056_v9 = vmul.f32 %v1687_v0, %v985_v62  ;;  %vm1033_vm3 = vcmp.ge.f32.partialorder %v1001_v63, 0.0  ;;  %v1072_v10 = vmul.f32 %v1687_v0, %v1001_v63  ;;  %v1344_v11 = vpop.f32.mrb[23].mxu0  ;;  %v1392_v12 = vpop.f32.mrb[23].mxu1 }
 0x126   : > { %v947_v13 = vmul.f32 %v1342_v5, %v1675_v51  ;;  %v963_v14 = vmul.f32 %v1390_v6, %v1675_v51  ;;  %v1345_v15 = vadd.f32 %v1344_v11, %v1343_v7  ;;  %v1393_v16 = vadd.f32 %v1392_v12, %v1391_v8 }
 0x127   : > { %v1088_v17 = vsel %vm1017_vm2, %v985_v62, %v1056_v9  ;;  %v1104_v18 = vsel %vm1033_vm3, %v1001_v63, %v1072_v10 }
 0x128   : > { %1120 = vst [vmem:[%s1698_s26 + $0x48] sm:$0xff] %v1088_v17  ;;  %1136 = vst [vmem:[%s1698_s26 + $0xc8] sm:$0xff] %v1104_v18  ;;  %v986_v19 = vadd.f32 %v1680_v57, %v947_v13  ;;  %v1002_v20 = vadd.f32 %v1680_v57, %v963_v14  ;;  %v948_v21 = vmul.f32 %v1345_v15, %v1675_v51 }
 0x129   : > { %v964_v22 = vmul.f32 %v1393_v16, %v1675_v51 }
 0x12a   : > { %vm1018_vm4 = vcmp.ge.f32.partialorder %v986_v19, 0.0  ;;  %v1057_v23 = vmul.f32 %v1687_v0, %v986_v19  ;;  %vm1034_vm5 = vcmp.ge.f32.partialorder %v1002_v20, 0.0  ;;  %v1073_v24 = vmul.f32 %v1687_v0, %v1002_v20  ;;  %v1346_v25 = vpop.f32.mrb[24].mxu0  ;;  %v1394_v26 = vpop.f32.mrb[24].mxu1 }
 0x12b   : > { %v987_v27 = vadd.f32 %v1680_v57, %v948_v21  ;;  %v1003_v28 = vadd.f32 %v1680_v57, %v964_v22  ;;  %v1347_v29 = vpop.f32.mrb[25].mxu0  ;;  %v1395_v30 = vpop.f32.mrb[25].mxu1 }
 0x12c   : > { %v1089_v31 = vsel %vm1018_vm4, %v986_v19, %v1057_v23  ;;  %v1105_v32 = vsel %vm1034_vm5, %v1002_v20, %v1073_v24  ;;  %v1348_v33 = vadd.f32 %v1347_v29, %v1346_v25  ;;  %v1396_v34 = vadd.f32 %v1395_v30, %v1394_v26  ;;  %v1349_v35 = vpop.f32.mrb[26].mxu0  ;;  %v1397_v36 = vpop.f32.mrb[26].mxu1 }
 0x12d   : > { %1121 = vst [vmem:[%s1698_s26 + $0x50] sm:$0xff] %v1089_v31  ;;  %1137 = vst [vmem:[%s1698_s26 + $0xd0] sm:$0xff] %v1105_v32  ;;  %vm1019_vm6 = vcmp.ge.f32.partialorder %v987_v27, 0.0  ;;  %v1058_v37 = vmul.f32 %v1687_v0, %v987_v27  ;;  %vm1035_vm7 = vcmp.ge.f32.partialorder %v1003_v28, 0.0  ;;  %v1074_v38 = vmul.f32 %v1687_v0, %v1003_v28  ;;  %v1350_v39 = vpop.f32.mrb[27].mxu0  ;;  %v1398_v40 = vpop.f32.mrb[27].mxu1 }
 0x12e   : > { %v949_v41 = vmul.f32 %v1348_v33, %v1675_v51  ;;  %v965_v42 = vmul.f32 %v1396_v34, %v1675_v51  ;;  %v1351_v43 = vadd.f32 %v1350_v39, %v1349_v35  ;;  %v1399_v44 = vadd.f32 %v1398_v40, %v1397_v36 }
 0x12f   : > { %v1090_v45 = vsel %vm1019_vm6, %v987_v27, %v1058_v37  ;;  %v1106_v46 = vsel %vm1035_vm7, %v1003_v28, %v1074_v38 }
 0x130   : > { %1122 = vst [vmem:[%s1698_s26 + $0x58] sm:$0xff] %v1090_v45  ;;  %1138 = vst [vmem:[%s1698_s26 + $0xd8] sm:$0xff] %v1106_v46  ;;  %v988_v47 = vadd.f32 %v1680_v57, %v949_v41  ;;  %v1004_v48 = vadd.f32 %v1680_v57, %v965_v42  ;;  %v950_v49 = vmul.f32 %v1351_v43, %v1675_v51 }
 0x131   : > { %v966_v50 = vmul.f32 %v1399_v44, %v1675_v51 }
 0x132   : > { %vm1020_vm8 = vcmp.ge.f32.partialorder %v988_v47, 0.0  ;;  %v1059_v52 = vmul.f32 %v1687_v0, %v988_v47  ;;  %vm1036_vm9 = vcmp.ge.f32.partialorder %v1004_v48, 0.0  ;;  %v1075_v53 = vmul.f32 %v1687_v0, %v1004_v48  ;;  %v1352_v54 = vpop.f32.mrb[28].mxu0  ;;  %v1400_v55 = vpop.f32.mrb[28].mxu1 }
 0x133   : > { %v989_v56 = vadd.f32 %v1680_v57, %v950_v49  ;;  %v1005_v58 = vadd.f32 %v1680_v57, %v966_v50  ;;  %v1353_v59 = vpop.f32.mrb[29].mxu0  ;;  %v1401_v60 = vpop.f32.mrb[29].mxu1 }
 0x134   : > { %v1091_v61 = vsel %vm1020_vm8, %v988_v47, %v1059_v52  ;;  %v1107_v62 = vsel %vm1036_vm9, %v1004_v48, %v1075_v53  ;;  %v1354_v63 = vadd.f32 %v1353_v59, %v1352_v54  ;;  %v1402_v1 = vadd.f32 %v1401_v60, %v1400_v55  ;;  %v1355_v2 = vpop.f32.mrb[30].mxu0  ;;  %v1403_v3 = vpop.f32.mrb[30].mxu1 }
 0x135   : > { %1123 = vst [vmem:[%s1698_s26 + $0x60] sm:$0xff] %v1091_v61  ;;  %1139 = vst [vmem:[%s1698_s26 + $0xe0] sm:$0xff] %v1107_v62  ;;  %vm1021_vm10 = vcmp.ge.f32.partialorder %v989_v56, 0.0  ;;  %v1060_v4 = vmul.f32 %v1687_v0, %v989_v56  ;;  %vm1037_vm11 = vcmp.ge.f32.partialorder %v1005_v58, 0.0  ;;  %v1076_v5 = vmul.f32 %v1687_v0, %v1005_v58  ;;  %v1356_v6 = vpop.f32.mrb[31].mxu0  ;;  %v1404_v7 = vpop.f32.mrb[31].mxu1 }
 0x136   : > { %v951_v8 = vmul.f32 %v1354_v63, %v1675_v51  ;;  %v967_v9 = vmul.f32 %v1402_v1, %v1675_v51  ;;  %v1357_v10 = vadd.f32 %v1356_v6, %v1355_v2  ;;  %v1405_v11 = vadd.f32 %v1404_v7, %v1403_v3 }
 0x137   : > { %v1092_v12 = vsel %vm1021_vm10, %v989_v56, %v1060_v4  ;;  %v1108_v13 = vsel %vm1037_vm11, %v1005_v58, %v1076_v5 }
 0x138   : > { %1124 = vst [vmem:[%s1698_s26 + $0x68] sm:$0xff] %v1092_v12  ;;  %1140 = vst [vmem:[%s1698_s26 + $0xe8] sm:$0xff] %v1108_v13  ;;  %v990_v14 = vadd.f32 %v1680_v57, %v951_v8  ;;  %v1006_v15 = vadd.f32 %v1680_v57, %v967_v9  ;;  %v952_v16 = vmul.f32 %v1357_v10, %v1675_v51 }
 0x139   : > { %v968_v17 = vmul.f32 %v1405_v11, %v1675_v51 }
 0x13a   : > { %vm1022_vm12 = vcmp.ge.f32.partialorder %v990_v14, 0.0  ;;  %v1061_v18 = vmul.f32 %v1687_v0, %v990_v14  ;;  %vm1038_vm13 = vcmp.ge.f32.partialorder %v1006_v15, 0.0  ;;  %v1077_v19 = vmul.f32 %v1687_v0, %v1006_v15 }
 0x13b   : > { %v991_v20 = vadd.f32 %v1680_v57, %v952_v16  ;;  %v1007_v21 = vadd.f32 %v1680_v57, %v968_v17 }
 0x13c   : > { %v1093_v22 = vsel %vm1022_vm12, %v990_v14, %v1061_v18  ;;  %v1109_v23 = vsel %vm1038_vm13, %v1006_v15, %v1077_v19 }
 0x13d   : > { %1125 = vst [vmem:[%s1698_s26 + $0x70] sm:$0xff] %v1093_v22  ;;  %1141 = vst [vmem:[%s1698_s26 + $0xf0] sm:$0xff] %v1109_v23  ;;  %vm1023_vm14 = vcmp.ge.f32.partialorder %v991_v20, 0.0  ;;  %v1062_v24 = vmul.f32 %v1687_v0, %v991_v20  ;;  %vm1039_vm15 = vcmp.ge.f32.partialorder %v1007_v21, 0.0  ;;  %v1078_v51 = vmul.f32 %v1687_v0, %v1007_v21 }
 0x13f   : > { %v1094_v25 = vsel %vm1023_vm14, %v991_v20, %v1062_v24  ;;  %v1110_v26 = vsel %vm1039_vm15, %v1007_v21, %v1078_v51 }
 0x140   : > { %1126 = vst [vmem:[%s1698_s26 + $0x78] sm:$0xff] %v1094_v25  ;;  %1142 = vst [vmem:[%s1698_s26 + $0xf8] sm:$0xff] %v1110_v26 }
 0x141 PF: > { %s15_s20 = sadd.s32 1, %s1532_s20   ;;  %s1837_s18 = smov %s1528_s19 }
 0x142   : > { %p12_p5 = scmp.ge.s32.totalorder %s15_s20, 4   ;;  %s1838_s19 = smov %s1840_s21 }
 0x144   :  { %14 = sbr.rel (!%p12_p5) target bundleno = 2 (0x2), region = 81 }

// kernel: encoder_forward.152
= control target key start
LH: loop header
LB: loop body
LE: loop exit
PB: predicated region body
PF: predicated region fallthrough
CT: control target
= control target key end

     0   :  { %s742_s1 = inlined_call_operand.vmem [shape: bf16[128,128], index: 1, kind: input, shape index: {}]   ;;  %s743_s0 = inlined_call_operand.vmem [shape: bf16[128,128], index: 0, kind: input, shape index: {}]   ;;  %s744_s2 = inlined_call_operand.vmem [shape: f32[1,128], index: 2, kind: input, shape index: {}]   ;;  %s745_s3 = inlined_call_operand.vmem [shape: f32[1,128], index: 3, kind: input, shape index: {}]   ;;  %s746_s4 = inlined_call_operand.vmem [shape: f32[1,128], index: 4, kind: input, shape index: {}]   ;;  %s747_s5 = inlined_call_operand.vmem [shape: f32[128,128], index: 5, kind: output, shape index: {}]  }
   0x1   :  { %v537_v0 = vld [vmem:[%s742_s1] sm:$0xff]   ;;  %v538_v1 = vld [vmem:[%s742_s1 + $0x8] sm:$0xff]   ;;  %v539_v2 = vld [vmem:[%s742_s1 + $0x10] sm:$0xff]  }
   0x2   :  { %489 = vmatprep.subr.bf16.mxu0 %v537_v0  ;;  %521 = vmatprep.subr.bf16.mxu1 %v537_v0  ;;  %v540_v3 = vld [vmem:[%s742_s1 + $0x18] sm:$0xff]   ;;  %v545_v4 = vld [vmem:[%s743_s0] sm:$0xff]   ;;  %v542_v7 = vld [vmem:[%s742_s1 + $0x28] sm:$0xff]  }
   0x3   :  { %490 = vmatpush3.bf16.msra.mxu0 %v537_v0  ;;  %529 = vmatpush3.bf16.msra.mxu1 %v537_v0  ;;  %v546_v5 = vld [vmem:[%s743_s0 + $0x20] sm:$0xff]   ;;  %v543_v8 = vld [vmem:[%s742_s1 + $0x30] sm:$0xff]   ;;  %v544_v9 = vld [vmem:[%s742_s1 + $0x38] sm:$0xff]  }
   0x4   :  { %491 = vmatprep.subr.bf16.mxu0 %v538_v1  ;;  %522 = vmatprep.subr.bf16.mxu1 %v538_v1  ;;  %v541_v6 = vld [vmem:[%s742_s1 + $0x20] sm:$0xff]   ;;  %v547_v10 = vld [vmem:[%s743_s0 + $0x8] sm:$0xff]   ;;  %v549_v12 = vld [vmem:[%s743_s0 + $0x10] sm:$0xff]  }
   0x5   :  { %505 = vmatprep.mubr.bf16.mxu0 %v545_v4  ;;  %513 = vmatprep.mubr.bf16.mxu1 %v546_v5  ;;  %v548_v11 = vld [vmem:[%s743_s0 + $0x28] sm:$0xff]   ;;  %v550_v13 = vld [vmem:[%s743_s0 + $0x30] sm:$0xff]   ;;  %v551_v14 = vld [vmem:[%s743_s0 + $0x18] sm:$0xff]  }
   0x6   :  { %v552_v15 = vld [vmem:[%s743_s0 + $0x38] sm:$0xff]   ;;  %v634_v16 = vld [vmem:[%s744_s2] ss:$0 sm:$0xff] }
   0x7   :  { %492 = vmatpush3.bf16.msra.mxu0 %v538_v1  ;;  %530 = vmatpush3.bf16.msra.mxu1 %v538_v1  ;;  %v639_v18 = vld [vmem:[%s745_s3] ss:$0 sm:$0xff] }
   0x8   :  { %493 = vmatprep.subr.bf16.mxu0 %v539_v2  ;;  %523 = vmatprep.subr.bf16.mxu1 %v539_v2  ;;  %v646_v24 = vld [vmem:[%s746_s4] ss:$0 sm:$0xff] }
   0xb   :  { %494 = vmatpush3.bf16.msra.mxu0 %v539_v2  ;;  %531 = vmatpush3.bf16.msra.mxu1 %v539_v2 }
   0xc   :  { %495 = vmatprep.subr.bf16.mxu0 %v540_v3  ;;  %524 = vmatprep.subr.bf16.mxu1 %v540_v3 }
   0xf   :  { %496 = vmatpush3.bf16.msra.mxu0 %v540_v3  ;;  %532 = vmatpush3.bf16.msra.mxu1 %v540_v3 }
  0x10   :  { %497 = vmatprep.subr.bf16.mxu0 %v541_v6  ;;  %525 = vmatprep.subr.bf16.mxu1 %v541_v6 }
  0x13   :  { %498 = vmatpush3.bf16.msra.mxu0 %v541_v6  ;;  %533 = vmatpush3.bf16.msra.mxu1 %v541_v6 }
  0x14   :  { %499 = vmatprep.subr.bf16.mxu0 %v542_v7  ;;  %526 = vmatprep.subr.bf16.mxu1 %v542_v7 }
  0x17   :  { %500 = vmatpush3.bf16.msra.mxu0 %v542_v7  ;;  %534 = vmatpush3.bf16.msra.mxu1 %v542_v7 }
  0x18   :  { %501 = vmatprep.subr.bf16.mxu0 %v543_v8  ;;  %527 = vmatprep.subr.bf16.mxu1 %v543_v8 }
  0x1b   :  { %502 = vmatpush3.bf16.msra.mxu0 %v543_v8  ;;  %535 = vmatpush3.bf16.msra.mxu1 %v543_v8 }
  0x1c   :  { %503 = vmatprep.subr.bf16.mxu0 %v544_v9  ;;  %528 = vmatprep.subr.bf16.mxu1 %v544_v9 }
  0x1f   :  { %504 = vmatpush3.bf16.msra.mxu0 %v544_v9  ;;  %536 = vmatpush3.bf16.msra.mxu1 %v544_v9 }
  0x22   :  { %506 = vmatmul.mubr.bf16.vlgmr.msra.gmra.mrb[0].mxu0 %v547_v10  ;;  %514 = vmatmul.mubr.bf16.vlgmr.msra.gmra.mrb[0].mxu1 %v548_v11 }
  0x23   :  { %509 = vmatprep.mubr.bf16.mxu0 %v549_v12  ;;  %517 = vmatprep.mubr.bf16.mxu1 %v550_v13 }
  0x2a   :  { %510 = vmatmul.mubr.bf16.gmra.mrb[4].mxu0 %v551_v14  ;;  %518 = vmatmul.mubr.bf16.gmra.mrb[4].mxu1 %v552_v15 }
  0xf5   :  { %v507_v17 = vpop.f32.mrb[0].mxu0  ;;  %v515_v19 = vpop.f32.mrb[0].mxu1 }
  0xf6   :  { %v342_v20 = vmul.f32 %v507_v17, %v634_v16  ;;  %v350_v21 = vmul.f32 %v515_v19, %v634_v16  ;;  %v219_v22 = vpop.f32.mrb[1].mxu0  ;;  %v251_v23 = vpop.f32.mrb[1].mxu1 }
  0xf7   :  { %v340_v25 = vmul.f32 %v634_v16, %v219_v22  ;;  %v348_v26 = vmul.f32 %v634_v16, %v251_v23  ;;  %v508_v27 = vpop.f32.mrb[2].mxu0  ;;  %v516_v28 = vpop.f32.mrb[2].mxu1 }
  0xf8   :  { %v365_v29 = vadd.f32 %v639_v18, %v342_v20  ;;  %v373_v30 = vadd.f32 %v639_v18, %v350_v21  ;;  %v343_v31 = vmul.f32 %v508_v27, %v634_v16  ;;  %v351_v32 = vmul.f32 %v516_v28, %v634_v16  ;;  %v222_v33 = vpop.f32.mrb[3].mxu0  ;;  %v254_v34 = vpop.f32.mrb[3].mxu1 }
  0xf9   :  { %v363_v35 = vadd.f32 %v639_v18, %v340_v25  ;;  %v371_v36 = vadd.f32 %v639_v18, %v348_v26  ;;  %v341_v37 = vmul.f32 %v634_v16, %v222_v33  ;;  %v349_v38 = vmul.f32 %v634_v16, %v254_v34 }
  0xfa   :  { %vm381_vm0 = vcmp.ge.f32.partialorder %v365_v29, 0.0  ;;  %v404_v39 = vmul.f32 %v646_v24, %v365_v29  ;;  %vm389_vm1 = vcmp.ge.f32.partialorder %v373_v30, 0.0  ;;  %v412_v40 = vmul.f32 %v646_v24, %v373_v30 }
  0xfb   :  { %vm379_vm2 = vcmp.ge.f32.partialorder %v363_v35, 0.0  ;;  %v402_v41 = vmul.f32 %v646_v24, %v363_v35  ;;  %vm387_vm3 = vcmp.ge.f32.partialorder %v371_v36, 0.0  ;;  %v410_v42 = vmul.f32 %v646_v24, %v371_v36 }
  0xfc   :  { %v420_v43 = vsel %vm381_vm0, %v365_v29, %v404_v39  ;;  %v428_v44 = vsel %vm389_vm1, %v373_v30, %v412_v40  ;;  %v366_v45 = vadd.f32 %v639_v18, %v343_v31  ;;  %v374_v46 = vadd.f32 %v639_v18, %v351_v32 }
  0xfd   :  { %436 = vst [vmem:[%s747_s5 + $0x10] sm:$0xff] %v420_v43  ;;  %444 = vst [vmem:[%s747_s5 + $0x50] sm:$0xff] %v428_v44  ;;  %v418_v47 = vsel %vm379_vm2, %v363_v35, %v402_v41  ;;  %v426_v48 = vsel %vm387_vm3, %v371_v36, %v410_v42  ;;  %v364_v49 = vadd.f32 %v639_v18, %v341_v37  ;;  %v511_v51 = vpop.f32.mrb[4].mxu0  ;;  %v519_v52 = vpop.f32.mrb[4].mxu1 }
  0xfe   :  { %v372_v50 = vadd.f32 %v639_v18, %v349_v38  ;;  %434 = vst [vmem:[%s747_s5] sm:$0xff] %v418_v47  ;;  %442 = vst [vmem:[%s747_s5 + $0x40] sm:$0xff] %v426_v48  ;;  %vm382_vm4 = vcmp.ge.f32.partialorder %v366_v45, 0.0  ;;  %v405_v53 = vmul.f32 %v646_v24, %v366_v45  ;;  %vm390_vm5 = vcmp.ge.f32.partialorder %v374_v46, 0.0  ;;  %v235_v55 = vpop.f32.mrb[5].mxu0  ;;  %v267_v56 = vpop.f32.mrb[5].mxu1 }
  0xff   :  { %v413_v54 = vmul.f32 %v646_v24, %v374_v46  ;;  %vm380_vm6 = vcmp.ge.f32.partialorder %v364_v49, 0.0  ;;  %v403_v57 = vmul.f32 %v646_v24, %v364_v49  ;;  %v512_v59 = vpop.f32.mrb[6].mxu0  ;;  %v520_v60 = vpop.f32.mrb[6].mxu1  ;;  %v346_v63 = vmul.f32 %v511_v51, %v634_v16 }
 0x100   :  { %vm388_vm7 = vcmp.ge.f32.partialorder %v372_v50, 0.0  ;;  %v411_v58 = vmul.f32 %v646_v24, %v372_v50  ;;  %v421_v61 = vsel %vm382_vm4, %v366_v45, %v405_v53  ;;  %v354_v0 = vmul.f32 %v519_v52, %v634_v16  ;;  %v238_v1 = vpop.f32.mrb[7].mxu0  ;;  %v270_v2 = vpop.f32.mrb[7].mxu1 }
 0x101   :  { %v429_v62 = vsel %vm390_vm5, %v374_v46, %v413_v54  ;;  %437 = vst [vmem:[%s747_s5 + $0x18] sm:$0xff] %v421_v61  ;;  %v419_v3 = vsel %vm380_vm6, %v364_v49, %v403_v57  ;;  %v344_v5 = vmul.f32 %v634_v16, %v235_v55  ;;  %v352_v6 = vmul.f32 %v634_v16, %v267_v56 }
 0x102   :  { %445 = vst [vmem:[%s747_s5 + $0x58] sm:$0xff] %v429_v62  ;;  %v427_v4 = vsel %vm388_vm7, %v372_v50, %v411_v58  ;;  %435 = vst [vmem:[%s747_s5 + $0x8] sm:$0xff] %v419_v3  ;;  %v369_v7 = vadd.f32 %v639_v18, %v346_v63  ;;  %v377_v8 = vadd.f32 %v639_v18, %v354_v0 }
 0x103   :  { %443 = vst [vmem:[%s747_s5 + $0x48] sm:$0xff] %v427_v4  ;;  %v347_v9 = vmul.f32 %v512_v59, %v634_v16  ;;  %v355_v10 = vmul.f32 %v520_v60, %v634_v16  ;;  %v367_v11 = vadd.f32 %v639_v18, %v344_v5  ;;  %v375_v12 = vadd.f32 %v639_v18, %v352_v6 }
 0x104   :  { %v345_v13 = vmul.f32 %v634_v16, %v238_v1  ;;  %v353_v14 = vmul.f32 %v634_v16, %v270_v2  ;;  %vm385_vm8 = vcmp.ge.f32.partialorder %v369_v7, 0.0  ;;  %v408_v15 = vmul.f32 %v646_v24, %v369_v7 }
 0x105   :  { %vm393_vm9 = vcmp.ge.f32.partialorder %v377_v8, 0.0  ;;  %v416_v17 = vmul.f32 %v646_v24, %v377_v8  ;;  %vm383_vm10 = vcmp.ge.f32.partialorder %v367_v11, 0.0  ;;  %v406_v19 = vmul.f32 %v646_v24, %v367_v11 }
 0x106   :  { %vm391_vm11 = vcmp.ge.f32.partialorder %v375_v12, 0.0  ;;  %v414_v20 = vmul.f32 %v646_v24, %v375_v12  ;;  %v424_v21 = vsel %vm385_vm8, %v369_v7, %v408_v15  ;;  %v370_v23 = vadd.f32 %v639_v18, %v347_v9 }
 0x107   :  { %v432_v22 = vsel %vm393_vm9, %v377_v8, %v416_v17  ;;  %v378_v25 = vadd.f32 %v639_v18, %v355_v10  ;;  %440 = vst [vmem:[%s747_s5 + $0x30] sm:$0xff] %v424_v21  ;;  %v422_v16 = vsel %vm383_vm10, %v367_v11, %v406_v19  ;;  %v368_v27 = vadd.f32 %v639_v18, %v345_v13 }
 0x108   :  { %448 = vst [vmem:[%s747_s5 + $0x70] sm:$0xff] %v432_v22  ;;  %v430_v26 = vsel %vm391_vm11, %v375_v12, %v414_v20  ;;  %v376_v28 = vadd.f32 %v639_v18, %v353_v14  ;;  %438 = vst [vmem:[%s747_s5 + $0x20] sm:$0xff] %v422_v16  ;;  %vm386_vm12 = vcmp.ge.f32.partialorder %v370_v23, 0.0  ;;  %v409_v29 = vmul.f32 %v646_v24, %v370_v23 }
 0x109   :  { %446 = vst [vmem:[%s747_s5 + $0x60] sm:$0xff] %v430_v26  ;;  %vm394_vm13 = vcmp.ge.f32.partialorder %v378_v25, 0.0  ;;  %v417_v30 = vmul.f32 %v646_v24, %v378_v25  ;;  %vm384_vm14 = vcmp.ge.f32.partialorder %v368_v27, 0.0  ;;  %v407_v31 = vmul.f32 %v646_v24, %v368_v27 }
 0x10a   :  { %vm392_vm15 = vcmp.ge.f32.partialorder %v376_v28, 0.0  ;;  %v415_v18 = vmul.f32 %v646_v24, %v376_v28  ;;  %v425_v32 = vsel %vm386_vm12, %v370_v23, %v409_v29 }
 0x10b   :  { %v433_v33 = vsel %vm394_vm13, %v378_v25, %v417_v30  ;;  %441 = vst [vmem:[%s747_s5 + $0x38] sm:$0xff] %v425_v32  ;;  %v423_v34 = vsel %vm384_vm14, %v368_v27, %v407_v31 }
 0x10c   :  { %449 = vst [vmem:[%s747_s5 + $0x78] sm:$0xff] %v433_v33  ;;  %v431_v35 = vsel %vm392_vm15, %v376_v28, %v415_v18  ;;  %439 = vst [vmem:[%s747_s5 + $0x28] sm:$0xff] %v423_v34 }
 0x10d   :  { %447 = vst [vmem:[%s747_s5 + $0x68] sm:$0xff] %v431_v35 }

// kernel: encoder_forward.154
= control target key start
LH: loop header
LB: loop body
LE: loop exit
PB: predicated region body
PF: predicated region fallthrough
CT: control target
= control target key end

     0   :  { %s1391_s1 = inlined_call_operand.vmem [shape: bf16[384,128], index: 1, kind: input, shape index: {}]   ;;  %s1392_s0 = inlined_call_operand.vmem [shape: bf16[128,384], index: 0, kind: input, shape index: {}]   ;;  %s1393_s2 = inlined_call_operand.vmem [shape: f32[1,128], index: 2, kind: input, shape index: {}]   ;;  %s1394_s3 = inlined_call_operand.vmem [shape: f32[1,128], index: 3, kind: input, shape index: {}]   ;;  %s1395_s4 = inlined_call_operand.vmem [shape: f32[1,128], index: 4, kind: input, shape index: {}]   ;;  %s1396_s5 = inlined_call_operand.vmem [shape: f32[128,128], index: 5, kind: input, shape index: {}]   ;;  %s1397_s6 = inlined_call_operand.vmem [shape: f32[128,128], index: 6, kind: output, shape index: {}]  }
   0x1   :  { %v973_v0 = vld [vmem:[%s1391_s1 + $0x40] sm:$0xff]   ;;  %v976_v3 = vld [vmem:[%s1391_s1 + $0x48] sm:$0xff]   ;;  %v979_v6 = vld [vmem:[%s1391_s1 + $0x50] sm:$0xff]  }
   0x2   :  { %v974_v1 = vld [vmem:[%s1391_s1] sm:$0xff]   ;;  %861 = vmatprep.subr.bf16.mxu0 %v973_v0  ;;  %v977_v4 = vld [vmem:[%s1391_s1 + $0x8] sm:$0xff]   ;;  %v980_v7 = vld [vmem:[%s1391_s1 + $0x10] sm:$0xff]  }
   0x3   :  { %v975_v2 = vld [vmem:[%s1391_s1 + $0x80] sm:$0xff]   ;;  %862 = vmatpush3.bf16.msra.mxu0 %v974_v1  ;;  %v978_v5 = vld [vmem:[%s1391_s1 + $0x88] sm:$0xff]   ;;  %v981_v8 = vld [vmem:[%s1391_s1 + $0x90] sm:$0xff]  }
   0x4   :  { %941 = vmatprep.subr.bf16.mxu1 %v975_v2  ;;  %863 = vmatprep.subr.bf16.mxu0 %v976_v3  ;;  %v982_v9 = vld [vmem:[%s1391_s1 + $0x58] sm:$0xff]   ;;  %v985_v12 = vld [vmem:[%s1391_s1 + $0x60] sm:$0xff]   ;;  %v988_v15 = vld [vmem:[%s1391_s1 + $0x68] sm:$0xff]  }
   0x5   :  { %942 = vmatpush3.bf16.msra.mxu1 %v975_v2  ;;  %v983_v10 = vld [vmem:[%s1391_s1 + $0x18] sm:$0xff]   ;;  %v987_v13 = vld [vmem:[%s1391_s1 + $0xa0] sm:$0xff]   ;;  %v990_v16 = vld [vmem:[%s1391_s1 + $0xa8] sm:$0xff]  }
   0x6   :  { %943 = vmatprep.subr.bf16.mxu1 %v978_v5  ;;  %v984_v11 = vld [vmem:[%s1391_s1 + $0x98] sm:$0xff]   ;;  %v986_v14 = vld [vmem:[%s1391_s1 + $0x20] sm:$0xff]   ;;  %v989_v17 = vld [vmem:[%s1391_s1 + $0x28] sm:$0xff]  }
   0x7   :  { %864 = vmatpush3.bf16.msra.mxu0 %v977_v4  ;;  %v991_v18 = vld [vmem:[%s1391_s1 + $0x70] sm:$0xff]   ;;  %v994_v21 = vld [vmem:[%s1391_s1 + $0x78] sm:$0xff]   ;;  %v997_v26 = vld [vmem:[%s1392_s0] ss:$12 sps:$4 sm:$0xff]  }
   0x8   :  { %865 = vmatprep.subr.bf16.mxu0 %v979_v6  ;;  %v992_v19 = vld [vmem:[%s1391_s1 + $0x30] sm:$0xff]   ;;  %v996_v22 = vld [vmem:[%s1391_s1 + $0xb8] sm:$0xff]   ;;  %v1001_v28 = vld [vmem:[%s1392_s0 + $0x20] ss:$12 sps:$4 sm:$0xff]  }
   0x9   :  { %944 = vmatpush3.bf16.msra.mxu1 %v978_v5  ;;  %v993_v20 = vld [vmem:[%s1391_s1 + $0xb0] sm:$0xff]   ;;  %v995_v25 = vld [vmem:[%s1391_s1 + $0x38] sm:$0xff]   ;;  %v1017_v36 = vld [vmem:[%s1392_s0 + $0x80] ss:$12 sps:$4 sm:$0xff]  }
   0xa   :  { %945 = vmatprep.subr.bf16.mxu1 %v981_v8  ;;  %v999_v23 = vld [vmem:[%s1392_s0 + $0x4] ss:$12 sps:$4 sm:$0xff]   ;;  %v1000_v24 = vld [vmem:[%s1392_s0 + $0x8] ss:$12 sps:$4 sm:$0xff]   ;;  %v1010_v35 = vld [vmem:[%s1392_s0 + $0x4c] ss:$12 sps:$4 sm:$0xff]  }
   0xb   :  { %866 = vmatpush3.bf16.msra.mxu0 %v980_v7  ;;  %444 = vmatprep.mubr.bf16.mxu0 %v999_v23  ;;  %v1002_v27 = vld [vmem:[%s1392_s0 + $0x1c] ss:$12 sps:$4 sm:$0xff]   ;;  %v1008_v29 = vld [vmem:[%s1392_s0 + $0x38] ss:$12 sps:$4 sm:$0xff]   ;;  %v1005_v31 = vld [vmem:[%s1392_s0 + $0x34] ss:$12 sps:$4 sm:$0xff]  }
   0xc   :  { %867 = vmatprep.subr.bf16.mxu0 %v982_v9  ;;  %957 = vmatprep.mubr.bf16.mxu1 %v1000_v24  ;;  %v1004_v30 = vld [vmem:[%s1392_s0 + $0x18] ss:$12 sps:$4 sm:$0xff]   ;;  %v1009_v32 = vld [vmem:[%s1392_s0 + $0x50] ss:$12 sps:$4 sm:$0xff]   ;;  %v1016_v33 = vld [vmem:[%s1392_s0 + $0x68] ss:$12 sps:$4 sm:$0xff]  }
   0xd   :  { %946 = vmatpush3.bf16.msra.mxu1 %v981_v8  ;;  %v1007_v34 = vld [vmem:[%s1392_s0 + $0x30] ss:$12 sps:$4 sm:$0xff]   ;;  %v1024_v37 = vld [vmem:[%s1392_s0 + $0x98] ss:$12 sps:$4 sm:$0xff]   ;;  %v1012_v38 = vld [vmem:[%s1392_s0 + $0x48] ss:$12 sps:$4 sm:$0xff]  }
   0xe   :  { %947 = vmatprep.subr.bf16.mxu1 %v984_v11  ;;  %v1013_v39 = vld [vmem:[%s1392_s0 + $0x64] ss:$12 sps:$4 sm:$0xff]   ;;  %v1015_v41 = vld [vmem:[%s1392_s0 + $0x60] ss:$12 sps:$4 sm:$0xff]   ;;  %v1018_v42 = vld [vmem:[%s1392_s0 + $0x7c] ss:$12 sps:$4 sm:$0xff]  }
   0xf   :  { %868 = vmatpush3.bf16.msra.mxu0 %v983_v10  ;;  %v1025_v40 = vld [vmem:[%s1392_s0 + $0xb0] ss:$12 sps:$4 sm:$0xff]   ;;  %v1020_v43 = vld [vmem:[%s1392_s0 + $0x78] ss:$12 sps:$4 sm:$0xff]   ;;  %v1021_v44 = vld [vmem:[%s1392_s0 + $0x94] ss:$12 sps:$4 sm:$0xff]  }
  0x10   :  { %869 = vmatprep.subr.bf16.mxu0 %v985_v12  ;;  %v1023_v45 = vld [vmem:[%s1392_s0 + $0x90] ss:$12 sps:$4 sm:$0xff]   ;;  %v1026_v46 = vld [vmem:[%s1392_s0 + $0xac] ss:$12 sps:$4 sm:$0xff]   ;;  %v1028_v47 = vld [vmem:[%s1392_s0 + $0xa8] ss:$12 sps:$4 sm:$0xff]  }
  0x11   :  { %948 = vmatpush3.bf16.msra.mxu1 %v984_v11  ;;  %v1211_v55 = vld [vmem:[%s1393_s2] ss:$0 sm:$0xff] }
  0x12   :  { %949 = vmatprep.subr.bf16.mxu1 %v987_v13  ;;  %v1216_v59 = vld [vmem:[%s1394_s3] ss:$0 sm:$0xff] }
  0x13   :  { %870 = vmatpush3.bf16.msra.mxu0 %v986_v14  ;;  %v1222_v63 = vld [vmem:[%s1395_s4] ss:$0 sm:$0xff]  ;;  %v759_v14 = vld [vmem:[%s1396_s5 + $0x8] sm:$0xff] }
  0x14   :  { %871 = vmatprep.subr.bf16.mxu0 %v988_v15  ;;  %v758_v5 = vld [vmem:[%s1396_s5] sm:$0xff] }
  0x15   :  { %950 = vmatpush3.bf16.msra.mxu1 %v987_v13 }
  0x16   :  { %951 = vmatprep.subr.bf16.mxu1 %v990_v16 }
  0x17   :  { %872 = vmatpush3.bf16.msra.mxu0 %v989_v17 }
  0x18   :  { %873 = vmatprep.subr.bf16.mxu0 %v991_v18 }
  0x19   :  { %952 = vmatpush3.bf16.msra.mxu1 %v990_v16 }
  0x1a   :  { %953 = vmatprep.subr.bf16.mxu1 %v993_v20 }
  0x1b   :  { %874 = vmatpush3.bf16.msra.mxu0 %v992_v19 }
  0x1c   :  { %875 = vmatprep.subr.bf16.mxu0 %v994_v21 }
  0x1d   :  { %954 = vmatpush3.bf16.msra.mxu1 %v993_v20 }
  0x1e   :  { %955 = vmatprep.subr.bf16.mxu1 %v996_v22 }
  0x1f   :  { %876 = vmatpush3.bf16.msra.mxu0 %v995_v25 }
  0x21   :  { %956 = vmatpush3.bf16.msra.mxu1 %v996_v22 }
  0x22   :  { %445 = vmatmul.mubr.bf16.vlgmr.msra.gmra.mrb[0].mxu0 %v997_v26 }
  0x23   :  { %452 = vmatprep.mubr.bf16.mxu0 %v1002_v27 }
  0x24   :  { %958 = vmatmul.mubr.bf16.vlgmr.msra.gmra.mrb[0].mxu1 %v1001_v28 }
  0x25   :  { %961 = vmatprep.mubr.bf16.mxu1 %v1008_v29  ;;  %v760_v29 = vld [vmem:[%s1396_s5 + $0x10] sm:$0xff] }
  0x2a   :  { %453 = vmatmul.mubr.bf16.gmra.mrb[4].mxu0 %v1004_v30 }
  0x2b   :  { %460 = vmatprep.mubr.bf16.mxu0 %v1005_v31 }
  0x2c   :  { %962 = vmatmul.mubr.bf16.gmra.mrb[4].mxu1 %v1009_v32 }
  0x2d   :  { %965 = vmatprep.mubr.bf16.mxu1 %v1016_v33 }
  0x32   :  { %461 = vmatmul.mubr.bf16.gmra.mrb[8].mxu0 %v1007_v34 }
  0x33   :  { %468 = vmatprep.mubr.bf16.mxu0 %v1010_v35 }
  0x34   :  { %966 = vmatmul.mubr.bf16.gmra.mrb[8].mxu1 %v1017_v36 }
  0x35   :  { %969 = vmatprep.mubr.bf16.mxu1 %v1024_v37 }
  0x3a   :  { %469 = vmatmul.mubr.bf16.gmra.mrb[12].mxu0 %v1012_v38 }
  0x3b   :  { %476 = vmatprep.mubr.bf16.mxu0 %v1013_v39 }
  0x3c   :  { %970 = vmatmul.mubr.bf16.gmra.mrb[12].mxu1 %v1025_v40 }
  0x42   :  { %477 = vmatmul.mubr.bf16.gmra.mrb[16].mxu0 %v1015_v41 }
  0x43   :  { %484 = vmatprep.mubr.bf16.mxu0 %v1018_v42  ;;  %v761_v42 = vld [vmem:[%s1396_s5 + $0x18] sm:$0xff] }
  0x4a   :  { %485 = vmatmul.mubr.bf16.gmra.mrb[20].mxu0 %v1020_v43 }
  0x4b   :  { %492 = vmatprep.mubr.bf16.mxu0 %v1021_v44 }
  0x52   :  { %493 = vmatmul.mubr.bf16.gmra.mrb[24].mxu0 %v1023_v45 }
  0x53   :  { %500 = vmatprep.mubr.bf16.mxu0 %v1026_v46 }
  0x5a   :  { %501 = vmatmul.mubr.bf16.gmra.mrb[28].mxu0 %v1028_v47 }
  0xf5   :  { %v877_v48 = vpop.f32.mrb[0].mxu0 }
  0xf6   :  { %v878_v49 = vpop.f32.mrb[1].mxu0 }
  0xf7   :  { %v879_v50 = vadd.f32 %v878_v49, %v877_v48  ;;  %v880_v51 = vpop.f32.mrb[2].mxu0  ;;  %v959_v52 = vpop.f32.mrb[0].mxu1 }
  0xf8   :  { %v881_v53 = vpop.f32.mrb[3].mxu0  ;;  %v543_v54 = vpop.f32.mrb[1].mxu1 }
  0xf9   :  { %v882_v56 = vadd.f32 %v881_v53, %v880_v51  ;;  %v544_v57 = vadd.f32 %v879_v50, %v543_v54  ;;  %v960_v58 = vpop.f32.mrb[2].mxu1  ;;  %v762_v53 = vld [vmem:[%s1396_s5 + $0x20] sm:$0xff] }
  0xfa   :  { %v546_v60 = vpop.f32.mrb[3].mxu1 }
  0xfb   :  { %v664_v61 = vmul.f32 %v1211_v55, %v544_v57  ;;  %v547_v62 = vadd.f32 %v882_v56, %v546_v60 }
  0xfd   :  { %v687_v0 = vadd.f32 %v1216_v59, %v664_v61  ;;  %v665_v1 = vmul.f32 %v1211_v55, %v547_v62  ;;  %v883_v2 = vpop.f32.mrb[4].mxu0 }
  0xfe   :  { %v884_v3 = vpop.f32.mrb[5].mxu0 }
  0xff   :  { %vm703_vm0 = vcmp.ge.f32.partialorder %v687_v0, 0.0  ;;  %v726_v4 = vmul.f32 %v1222_v63, %v687_v0  ;;  %v688_v6 = vadd.f32 %v1216_v59, %v665_v1  ;;  %v885_v7 = vadd.f32 %v884_v3, %v883_v2  ;;  %v886_v8 = vpop.f32.mrb[6].mxu0  ;;  %v1231_v9 = vpop.f32.mrb[4].mxu1  ;;  %v763_v1 = vld [vmem:[%s1396_s5 + $0x28] sm:$0xff] }
 0x100   :  { %v887_v10 = vpop.f32.mrb[7].mxu0  ;;  %v559_v11 = vpop.f32.mrb[5].mxu1 }
 0x101   :  { %v742_v12 = vsel %vm703_vm0, %v687_v0, %v726_v4  ;;  %vm704_vm1 = vcmp.ge.f32.partialorder %v688_v6, 0.0  ;;  %v727_v13 = vmul.f32 %v1222_v63, %v688_v6  ;;  %v552_v15 = vadd.f32 %v959_v52, %v885_v7  ;;  %v1237_v16 = vpop.f32.mrb[6].mxu1 }
 0x102   :  { %v774_v17 = vadd.f32 %v758_v5, %v742_v12  ;;  %v888_v18 = vadd.f32 %v887_v10, %v886_v8  ;;  %v562_v19 = vpop.f32.mrb[7].mxu1 }
 0x103   :  { %v743_v20 = vsel %vm704_vm1, %v688_v6, %v727_v13  ;;  %v666_v21 = vmul.f32 %v1211_v55, %v552_v15 }
 0x104   :  { %790 = vst [vmem:[%s1397_s6] sm:$0xff] %v774_v17  ;;  %v775_v22 = vadd.f32 %v759_v14, %v743_v20  ;;  %v555_v23 = vadd.f32 %v960_v58, %v888_v18  ;;  %v764_v17 = vld [vmem:[%s1396_s5 + $0x30] sm:$0xff] }
 0x105   :  { %v689_v24 = vadd.f32 %v1216_v59, %v666_v21  ;;  %v889_v25 = vpop.f32.mrb[8].mxu0 }
 0x106   :  { %791 = vst [vmem:[%s1397_s6 + $0x8] sm:$0xff] %v775_v22  ;;  %v667_v26 = vmul.f32 %v1211_v55, %v555_v23  ;;  %v890_v27 = vpop.f32.mrb[9].mxu0 }
 0x107   :  { %vm705_vm2 = vcmp.ge.f32.partialorder %v689_v24, 0.0  ;;  %v728_v28 = vmul.f32 %v1222_v63, %v689_v24  ;;  %v891_v30 = vadd.f32 %v890_v27, %v889_v25  ;;  %v892_v31 = vpop.f32.mrb[10].mxu0  ;;  %v1252_v32 = vpop.f32.mrb[8].mxu1 }
 0x108   :  { %v690_v33 = vadd.f32 %v1216_v59, %v667_v26  ;;  %v893_v34 = vpop.f32.mrb[11].mxu0  ;;  %v575_v35 = vpop.f32.mrb[9].mxu1  ;;  %v765_v26 = vld [vmem:[%s1396_s5 + $0x38] sm:$0xff] }
 0x109   :  { %v744_v36 = vsel %vm705_vm2, %v689_v24, %v728_v28  ;;  %v894_v37 = vadd.f32 %v893_v34, %v892_v31  ;;  %v560_v38 = vadd.f32 %v891_v30, %v559_v11  ;;  %v1255_v39 = vpop.f32.mrb[10].mxu1 }
 0x10a   :  { %v776_v40 = vadd.f32 %v760_v29, %v744_v36  ;;  %vm706_vm3 = vcmp.ge.f32.partialorder %v690_v33, 0.0  ;;  %v729_v41 = vmul.f32 %v1222_v63, %v690_v33  ;;  %v578_v43 = vpop.f32.mrb[11].mxu1 }
 0x10b   :  { %v668_v44 = vmul.f32 %v1211_v55, %v560_v38  ;;  %v563_v45 = vadd.f32 %v894_v37, %v562_v19  ;;  %v766_v37 = vld [vmem:[%s1396_s5 + $0x40] sm:$0xff] }
 0x10c   :  { %792 = vst [vmem:[%s1397_s6 + $0x10] sm:$0xff] %v776_v40  ;;  %v745_v46 = vsel %vm706_vm3, %v690_v33, %v729_v41 }
 0x10d   :  { %v777_v47 = vadd.f32 %v761_v42, %v745_v46  ;;  %v691_v48 = vadd.f32 %v1216_v59, %v668_v44  ;;  %v669_v49 = vmul.f32 %v1211_v55, %v563_v45  ;;  %v895_v50 = vpop.f32.mrb[12].mxu0  ;;  %v767_v45 = vld [vmem:[%s1396_s5 + $0x48] sm:$0xff] }
 0x10e   :  { %v896_v51 = vpop.f32.mrb[13].mxu0 }
 0x10f   :  { %793 = vst [vmem:[%s1397_s6 + $0x18] sm:$0xff] %v777_v47  ;;  %vm707_vm4 = vcmp.ge.f32.partialorder %v691_v48, 0.0  ;;  %v730_v52 = vmul.f32 %v1222_v63, %v691_v48  ;;  %v692_v54 = vadd.f32 %v1216_v59, %v669_v49  ;;  %v897_v56 = vadd.f32 %v896_v51, %v895_v50  ;;  %v898_v57 = vpop.f32.mrb[14].mxu0  ;;  %v1275_v58 = vpop.f32.mrb[12].mxu1 }
 0x110   :  { %v899_v60 = vpop.f32.mrb[15].mxu0  ;;  %v1277_v61 = vpop.f32.mrb[13].mxu1 }
 0x111   :  { %v746_v62 = vsel %vm707_vm4, %v691_v48, %v730_v52  ;;  %vm708_vm5 = vcmp.ge.f32.partialorder %v692_v54, 0.0  ;;  %v731_v0 = vmul.f32 %v1222_v63, %v692_v54  ;;  %v568_v2 = vadd.f32 %v1231_v9, %v897_v56  ;;  %v1284_v3 = vpop.f32.mrb[14].mxu1 }
 0x112   :  { %v778_v4 = vadd.f32 %v762_v53, %v746_v62  ;;  %v900_v5 = vadd.f32 %v899_v60, %v898_v57  ;;  %v1286_v6 = vpop.f32.mrb[15].mxu1  ;;  %v768_v60 = vld [vmem:[%s1396_s5 + $0x50] sm:$0xff] }
 0x113   :  { %v747_v7 = vsel %vm708_vm5, %v692_v54, %v731_v0  ;;  %v670_v8 = vmul.f32 %v1211_v55, %v568_v2 }
 0x114   :  { %794 = vst [vmem:[%s1397_s6 + $0x20] sm:$0xff] %v778_v4  ;;  %v779_v10 = vadd.f32 %v763_v1, %v747_v7  ;;  %v571_v11 = vadd.f32 %v1237_v16, %v900_v5 }
 0x115   :  { %v693_v12 = vadd.f32 %v1216_v59, %v670_v8  ;;  %v901_v13 = vpop.f32.mrb[16].mxu0 }
 0x116   :  { %795 = vst [vmem:[%s1397_s6 + $0x28] sm:$0xff] %v779_v10  ;;  %v671_v9 = vmul.f32 %v1211_v55, %v571_v11  ;;  %v902_v14 = vpop.f32.mrb[17].mxu0  ;;  %v769_v10 = vld [vmem:[%s1396_s5 + $0x58] sm:$0xff] }
 0x117   :  { %vm709_vm6 = vcmp.ge.f32.partialorder %v693_v12, 0.0  ;;  %v732_v15 = vmul.f32 %v1222_v63, %v693_v12  ;;  %v903_v18 = vadd.f32 %v902_v14, %v901_v13  ;;  %v904_v19 = vpop.f32.mrb[18].mxu0 }
 0x118   :  { %v694_v16 = vadd.f32 %v1216_v59, %v671_v9  ;;  %v905_v20 = vpop.f32.mrb[19].mxu0 }
 0x119   :  { %v748_v21 = vsel %vm709_vm6, %v693_v12, %v732_v15  ;;  %v906_v22 = vadd.f32 %v905_v20, %v904_v19  ;;  %v576_v23 = vadd.f32 %v903_v18, %v575_v35 }
 0x11a   :  { %v780_v24 = vadd.f32 %v764_v17, %v748_v21  ;;  %vm710_vm7 = vcmp.ge.f32.partialorder %v694_v16, 0.0  ;;  %v733_v25 = vmul.f32 %v1222_v63, %v694_v16 }
 0x11b   :  { %v672_v27 = vmul.f32 %v1211_v55, %v576_v23  ;;  %v579_v28 = vadd.f32 %v906_v22, %v578_v43 }
 0x11c   :  { %796 = vst [vmem:[%s1397_s6 + $0x30] sm:$0xff] %v780_v24  ;;  %v749_v29 = vsel %vm710_vm7, %v694_v16, %v733_v25  ;;  %v771_v24 = vld [vmem:[%s1396_s5 + $0x68] sm:$0xff] }
 0x11d   :  { %v781_v30 = vadd.f32 %v765_v26, %v749_v29  ;;  %v695_v31 = vadd.f32 %v1216_v59, %v672_v27  ;;  %v673_v33 = vmul.f32 %v1211_v55, %v579_v28  ;;  %v907_v34 = vpop.f32.mrb[20].mxu0 }
 0x11e   :  { %v908_v35 = vpop.f32.mrb[21].mxu0 }
 0x11f   :  { %797 = vst [vmem:[%s1397_s6 + $0x38] sm:$0xff] %v781_v30  ;;  %vm711_vm8 = vcmp.ge.f32.partialorder %v695_v31, 0.0  ;;  %v734_v36 = vmul.f32 %v1222_v63, %v695_v31  ;;  %v696_v38 = vadd.f32 %v1216_v59, %v673_v33  ;;  %v909_v40 = vadd.f32 %v908_v35, %v907_v34  ;;  %v910_v41 = vpop.f32.mrb[22].mxu0  ;;  %v772_v35 = vld [vmem:[%s1396_s5 + $0x70] sm:$0xff] }
 0x120   :  { %v911_v42 = vpop.f32.mrb[23].mxu0 }
 0x121   :  { %v750_v43 = vsel %vm711_vm8, %v695_v31, %v734_v36  ;;  %vm712_vm9 = vcmp.ge.f32.partialorder %v696_v38, 0.0  ;;  %v735_v44 = vmul.f32 %v1222_v63, %v696_v38  ;;  %v584_v46 = vadd.f32 %v1252_v32, %v909_v40  ;;  %v773_v40 = vld [vmem:[%s1396_s5 + $0x78] sm:$0xff] }
 0x122   :  { %v782_v47 = vadd.f32 %v766_v37, %v750_v43  ;;  %v912_v48 = vadd.f32 %v911_v42, %v910_v41 }
 0x123   :  { %v751_v49 = vsel %vm712_vm9, %v696_v38, %v735_v44  ;;  %v674_v50 = vmul.f32 %v1211_v55, %v584_v46 }
 0x124   :  { %798 = vst [vmem:[%s1397_s6 + $0x40] sm:$0xff] %v782_v47  ;;  %v783_v51 = vadd.f32 %v767_v45, %v751_v49  ;;  %v587_v52 = vadd.f32 %v1255_v39, %v912_v48 }
 0x125   :  { %v697_v53 = vadd.f32 %v1216_v59, %v674_v50  ;;  %v913_v54 = vpop.f32.mrb[24].mxu0 }
 0x126   :  { %799 = vst [vmem:[%s1397_s6 + $0x48] sm:$0xff] %v783_v51  ;;  %v675_v32 = vmul.f32 %v1211_v55, %v587_v52  ;;  %v914_v56 = vpop.f32.mrb[25].mxu0 }
 0x127   :  { %vm713_vm10 = vcmp.ge.f32.partialorder %v697_v53, 0.0  ;;  %v736_v57 = vmul.f32 %v1222_v63, %v697_v53  ;;  %v915_v62 = vadd.f32 %v914_v56, %v913_v54  ;;  %v916_v0 = vpop.f32.mrb[26].mxu0 }
 0x128   :  { %v698_v39 = vadd.f32 %v1216_v59, %v675_v32  ;;  %v917_v1 = vpop.f32.mrb[27].mxu0 }
 0x129   :  { %v752_v2 = vsel %vm713_vm10, %v697_v53, %v736_v57  ;;  %v918_v4 = vadd.f32 %v917_v1, %v916_v0  ;;  %v592_v5 = vadd.f32 %v915_v62, %v1277_v61 }
 0x12a   :  { %v784_v7 = vadd.f32 %v768_v60, %v752_v2  ;;  %vm714_vm11 = vcmp.ge.f32.partialorder %v698_v39, 0.0  ;;  %v737_v8 = vmul.f32 %v1222_v63, %v698_v39 }
 0x12b   :  { %v676_v11 = vmul.f32 %v1211_v55, %v592_v5  ;;  %v595_v12 = vadd.f32 %v918_v4, %v1286_v6  ;;  %v770_v6 = vld [vmem:[%s1396_s5 + $0x60] sm:$0xff] }
 0x12c   :  { %800 = vst [vmem:[%s1397_s6 + $0x50] sm:$0xff] %v784_v7  ;;  %v753_v13 = vsel %vm714_vm11, %v698_v39, %v737_v8 }
 0x12d   :  { %v785_v9 = vadd.f32 %v769_v10, %v753_v13  ;;  %v699_v61 = vadd.f32 %v1216_v59, %v676_v11  ;;  %v677_v14 = vmul.f32 %v1211_v55, %v595_v12  ;;  %v919_v15 = vpop.f32.mrb[28].mxu0 }
 0x12e   :  { %v920_v17 = vpop.f32.mrb[29].mxu0 }
 0x12f   :  { %801 = vst [vmem:[%s1397_s6 + $0x58] sm:$0xff] %v785_v9  ;;  %vm715_vm12 = vcmp.ge.f32.partialorder %v699_v61, 0.0  ;;  %v738_v18 = vmul.f32 %v1222_v63, %v699_v61  ;;  %v700_v19 = vadd.f32 %v1216_v59, %v677_v14  ;;  %v921_v16 = vadd.f32 %v920_v17, %v919_v15  ;;  %v922_v20 = vpop.f32.mrb[30].mxu0 }
 0x130   :  { %v923_v21 = vpop.f32.mrb[31].mxu0 }
 0x131   :  { %v754_v22 = vsel %vm715_vm12, %v699_v61, %v738_v18  ;;  %vm716_vm13 = vcmp.ge.f32.partialorder %v700_v19, 0.0  ;;  %v739_v23 = vmul.f32 %v1222_v63, %v700_v19  ;;  %v600_v25 = vadd.f32 %v1275_v58, %v921_v16 }
 0x132   :  { %v786_v26 = vadd.f32 %v770_v6, %v754_v22  ;;  %v924_v27 = vadd.f32 %v923_v21, %v922_v20 }
 0x133   :  { %v755_v28 = vsel %vm716_vm13, %v700_v19, %v739_v23  ;;  %v678_v29 = vmul.f32 %v1211_v55, %v600_v25 }
 0x134   :  { %802 = vst [vmem:[%s1397_s6 + $0x60] sm:$0xff] %v786_v26  ;;  %v787_v30 = vadd.f32 %v771_v24, %v755_v28  ;;  %v603_v31 = vadd.f32 %v1284_v3, %v924_v27 }
 0x135   :  { %v701_v33 = vadd.f32 %v1216_v59, %v678_v29 }
 0x136   :  { %803 = vst [vmem:[%s1397_s6 + $0x68] sm:$0xff] %v787_v30  ;;  %v679_v58 = vmul.f32 %v1211_v55, %v603_v31 }
 0x137   :  { %vm717_vm14 = vcmp.ge.f32.partialorder %v701_v33, 0.0  ;;  %v740_v34 = vmul.f32 %v1222_v63, %v701_v33 }
 0x138   :  { %v702_v36 = vadd.f32 %v1216_v59, %v679_v58 }
 0x139   :  { %v756_v37 = vsel %vm717_vm14, %v701_v33, %v740_v34 }
 0x13a   :  { %v788_v38 = vadd.f32 %v772_v35, %v756_v37  ;;  %vm718_vm15 = vcmp.ge.f32.partialorder %v702_v36, 0.0  ;;  %v741_v3 = vmul.f32 %v1222_v63, %v702_v36 }
 0x13c   :  { %804 = vst [vmem:[%s1397_s6 + $0x70] sm:$0xff] %v788_v38  ;;  %v757_v55 = vsel %vm718_vm15, %v702_v36, %v741_v3 }
 0x13d   :  { %v789_v41 = vadd.f32 %v773_v40, %v757_v55 }
 0x13f   :  { %805 = vst [vmem:[%s1397_s6 + $0x78] sm:$0xff] %v789_v41 }

// kernel: encoder_forward.155
= control target key start
LH: loop header
LB: loop body
LE: loop exit
PB: predicated region body
PF: predicated region fallthrough
CT: control target
= control target key end

     0   :  { %s1294_s1 = inlined_call_operand.vmem [shape: bf16[384,128], index: 1, kind: input, shape index: {}]   ;;  %s1295_s0 = inlined_call_operand.vmem [shape: bf16[128,384], index: 0, kind: input, shape index: {}]   ;;  %s1296_s2 = inlined_call_operand.vmem [shape: f32[1,128], index: 2, kind: input, shape index: {}]   ;;  %s1297_s3 = inlined_call_operand.vmem [shape: f32[1,128], index: 3, kind: input, shape index: {}]   ;;  %s1298_s4 = inlined_call_operand.vmem [shape: f32[1,128], index: 4, kind: input, shape index: {}]   ;;  %s1299_s5 = inlined_call_operand.vmem [shape: f32[128,128], index: 5, kind: output, shape index: {}]  }
   0x1   :  { %v938_v0 = vld [vmem:[%s1294_s1 + $0x40] sm:$0xff]   ;;  %v941_v3 = vld [vmem:[%s1294_s1 + $0x48] sm:$0xff]   ;;  %v944_v6 = vld [vmem:[%s1294_s1 + $0x50] sm:$0xff]  }
   0x2   :  { %v939_v1 = vld [vmem:[%s1294_s1] sm:$0xff]   ;;  %826 = vmatprep.subr.bf16.mxu0 %v938_v0  ;;  %v942_v4 = vld [vmem:[%s1294_s1 + $0x8] sm:$0xff]   ;;  %v945_v7 = vld [vmem:[%s1294_s1 + $0x10] sm:$0xff]  }
   0x3   :  { %v940_v2 = vld [vmem:[%s1294_s1 + $0x80] sm:$0xff]   ;;  %827 = vmatpush3.bf16.msra.mxu0 %v939_v1  ;;  %v943_v5 = vld [vmem:[%s1294_s1 + $0x88] sm:$0xff]   ;;  %v946_v8 = vld [vmem:[%s1294_s1 + $0x90] sm:$0xff]  }
   0x4   :  { %906 = vmatprep.subr.bf16.mxu1 %v940_v2  ;;  %828 = vmatprep.subr.bf16.mxu0 %v941_v3  ;;  %v947_v9 = vld [vmem:[%s1294_s1 + $0x58] sm:$0xff]   ;;  %v950_v12 = vld [vmem:[%s1294_s1 + $0x60] sm:$0xff]   ;;  %v953_v15 = vld [vmem:[%s1294_s1 + $0x68] sm:$0xff]  }
   0x5   :  { %907 = vmatpush3.bf16.msra.mxu1 %v940_v2  ;;  %v948_v10 = vld [vmem:[%s1294_s1 + $0x18] sm:$0xff]   ;;  %v952_v13 = vld [vmem:[%s1294_s1 + $0xa0] sm:$0xff]   ;;  %v955_v16 = vld [vmem:[%s1294_s1 + $0xa8] sm:$0xff]  }
   0x6   :  { %908 = vmatprep.subr.bf16.mxu1 %v943_v5  ;;  %v949_v11 = vld [vmem:[%s1294_s1 + $0x98] sm:$0xff]   ;;  %v951_v14 = vld [vmem:[%s1294_s1 + $0x20] sm:$0xff]   ;;  %v954_v17 = vld [vmem:[%s1294_s1 + $0x28] sm:$0xff]  }
   0x7   :  { %829 = vmatpush3.bf16.msra.mxu0 %v942_v4  ;;  %v956_v18 = vld [vmem:[%s1294_s1 + $0x70] sm:$0xff]   ;;  %v959_v21 = vld [vmem:[%s1294_s1 + $0x78] sm:$0xff]   ;;  %v962_v26 = vld [vmem:[%s1295_s0] ss:$12 sps:$4 sm:$0xff]  }
   0x8   :  { %830 = vmatprep.subr.bf16.mxu0 %v944_v6  ;;  %v957_v19 = vld [vmem:[%s1294_s1 + $0x30] sm:$0xff]   ;;  %v961_v22 = vld [vmem:[%s1294_s1 + $0xb8] sm:$0xff]   ;;  %v966_v28 = vld [vmem:[%s1295_s0 + $0x20] ss:$12 sps:$4 sm:$0xff]  }
   0x9   :  { %909 = vmatpush3.bf16.msra.mxu1 %v943_v5  ;;  %v958_v20 = vld [vmem:[%s1294_s1 + $0xb0] sm:$0xff]   ;;  %v960_v25 = vld [vmem:[%s1294_s1 + $0x38] sm:$0xff]   ;;  %v982_v36 = vld [vmem:[%s1295_s0 + $0x80] ss:$12 sps:$4 sm:$0xff]  }
   0xa   :  { %910 = vmatprep.subr.bf16.mxu1 %v946_v8  ;;  %v964_v23 = vld [vmem:[%s1295_s0 + $0x4] ss:$12 sps:$4 sm:$0xff]   ;;  %v965_v24 = vld [vmem:[%s1295_s0 + $0x8] ss:$12 sps:$4 sm:$0xff]   ;;  %v975_v35 = vld [vmem:[%s1295_s0 + $0x4c] ss:$12 sps:$4 sm:$0xff]  }
   0xb   :  { %831 = vmatpush3.bf16.msra.mxu0 %v945_v7  ;;  %441 = vmatprep.mubr.bf16.mxu0 %v964_v23  ;;  %v967_v27 = vld [vmem:[%s1295_s0 + $0x1c] ss:$12 sps:$4 sm:$0xff]   ;;  %v973_v29 = vld [vmem:[%s1295_s0 + $0x38] ss:$12 sps:$4 sm:$0xff]   ;;  %v970_v31 = vld [vmem:[%s1295_s0 + $0x34] ss:$12 sps:$4 sm:$0xff]  }
   0xc   :  { %832 = vmatprep.subr.bf16.mxu0 %v947_v9  ;;  %922 = vmatprep.mubr.bf16.mxu1 %v965_v24  ;;  %v969_v30 = vld [vmem:[%s1295_s0 + $0x18] ss:$12 sps:$4 sm:$0xff]   ;;  %v974_v32 = vld [vmem:[%s1295_s0 + $0x50] ss:$12 sps:$4 sm:$0xff]   ;;  %v981_v33 = vld [vmem:[%s1295_s0 + $0x68] ss:$12 sps:$4 sm:$0xff]  }
   0xd   :  { %911 = vmatpush3.bf16.msra.mxu1 %v946_v8  ;;  %v972_v34 = vld [vmem:[%s1295_s0 + $0x30] ss:$12 sps:$4 sm:$0xff]   ;;  %v989_v37 = vld [vmem:[%s1295_s0 + $0x98] ss:$12 sps:$4 sm:$0xff]   ;;  %v977_v38 = vld [vmem:[%s1295_s0 + $0x48] ss:$12 sps:$4 sm:$0xff]  }
   0xe   :  { %912 = vmatprep.subr.bf16.mxu1 %v949_v11  ;;  %v978_v39 = vld [vmem:[%s1295_s0 + $0x64] ss:$12 sps:$4 sm:$0xff]   ;;  %v980_v41 = vld [vmem:[%s1295_s0 + $0x60] ss:$12 sps:$4 sm:$0xff]   ;;  %v983_v42 = vld [vmem:[%s1295_s0 + $0x7c] ss:$12 sps:$4 sm:$0xff]  }
   0xf   :  { %833 = vmatpush3.bf16.msra.mxu0 %v948_v10  ;;  %v990_v40 = vld [vmem:[%s1295_s0 + $0xb0] ss:$12 sps:$4 sm:$0xff]   ;;  %v985_v43 = vld [vmem:[%s1295_s0 + $0x78] ss:$12 sps:$4 sm:$0xff]   ;;  %v986_v44 = vld [vmem:[%s1295_s0 + $0x94] ss:$12 sps:$4 sm:$0xff]  }
  0x10   :  { %834 = vmatprep.subr.bf16.mxu0 %v950_v12  ;;  %v988_v45 = vld [vmem:[%s1295_s0 + $0x90] ss:$12 sps:$4 sm:$0xff]   ;;  %v991_v46 = vld [vmem:[%s1295_s0 + $0xac] ss:$12 sps:$4 sm:$0xff]   ;;  %v993_v47 = vld [vmem:[%s1295_s0 + $0xa8] ss:$12 sps:$4 sm:$0xff]  }
  0x11   :  { %913 = vmatpush3.bf16.msra.mxu1 %v949_v11  ;;  %v1171_v55 = vld [vmem:[%s1296_s2] ss:$0 sm:$0xff] }
  0x12   :  { %914 = vmatprep.subr.bf16.mxu1 %v952_v13  ;;  %v1176_v59 = vld [vmem:[%s1297_s3] ss:$0 sm:$0xff] }
  0x13   :  { %835 = vmatpush3.bf16.msra.mxu0 %v951_v14  ;;  %v1182_v63 = vld [vmem:[%s1298_s4] ss:$0 sm:$0xff] }
  0x14   :  { %836 = vmatprep.subr.bf16.mxu0 %v953_v15 }
  0x15   :  { %915 = vmatpush3.bf16.msra.mxu1 %v952_v13 }
  0x16   :  { %916 = vmatprep.subr.bf16.mxu1 %v955_v16 }
  0x17   :  { %837 = vmatpush3.bf16.msra.mxu0 %v954_v17 }
  0x18   :  { %838 = vmatprep.subr.bf16.mxu0 %v956_v18 }
  0x19   :  { %917 = vmatpush3.bf16.msra.mxu1 %v955_v16 }
  0x1a   :  { %918 = vmatprep.subr.bf16.mxu1 %v958_v20 }
  0x1b   :  { %839 = vmatpush3.bf16.msra.mxu0 %v957_v19 }
  0x1c   :  { %840 = vmatprep.subr.bf16.mxu0 %v959_v21 }
  0x1d   :  { %919 = vmatpush3.bf16.msra.mxu1 %v958_v20 }
  0x1e   :  { %920 = vmatprep.subr.bf16.mxu1 %v961_v22 }
  0x1f   :  { %841 = vmatpush3.bf16.msra.mxu0 %v960_v25 }
  0x21   :  { %921 = vmatpush3.bf16.msra.mxu1 %v961_v22 }
  0x22   :  { %442 = vmatmul.mubr.bf16.vlgmr.msra.gmra.mrb[0].mxu0 %v962_v26 }
  0x23   :  { %449 = vmatprep.mubr.bf16.mxu0 %v967_v27 }
  0x24   :  { %923 = vmatmul.mubr.bf16.vlgmr.msra.gmra.mrb[0].mxu1 %v966_v28 }
  0x25   :  { %926 = vmatprep.mubr.bf16.mxu1 %v973_v29 }
  0x2a   :  { %450 = vmatmul.mubr.bf16.gmra.mrb[4].mxu0 %v969_v30 }
  0x2b   :  { %457 = vmatprep.mubr.bf16.mxu0 %v970_v31 }
  0x2c   :  { %927 = vmatmul.mubr.bf16.gmra.mrb[4].mxu1 %v974_v32 }
  0x2d   :  { %930 = vmatprep.mubr.bf16.mxu1 %v981_v33 }
  0x32   :  { %458 = vmatmul.mubr.bf16.gmra.mrb[8].mxu0 %v972_v34 }
  0x33   :  { %465 = vmatprep.mubr.bf16.mxu0 %v975_v35 }
  0x34   :  { %931 = vmatmul.mubr.bf16.gmra.mrb[8].mxu1 %v982_v36 }
  0x35   :  { %934 = vmatprep.mubr.bf16.mxu1 %v989_v37 }
  0x3a   :  { %466 = vmatmul.mubr.bf16.gmra.mrb[12].mxu0 %v977_v38 }
  0x3b   :  { %473 = vmatprep.mubr.bf16.mxu0 %v978_v39 }
  0x3c   :  { %935 = vmatmul.mubr.bf16.gmra.mrb[12].mxu1 %v990_v40 }
  0x42   :  { %474 = vmatmul.mubr.bf16.gmra.mrb[16].mxu0 %v980_v41 }
  0x43   :  { %481 = vmatprep.mubr.bf16.mxu0 %v983_v42 }
  0x4a   :  { %482 = vmatmul.mubr.bf16.gmra.mrb[20].mxu0 %v985_v43 }
  0x4b   :  { %489 = vmatprep.mubr.bf16.mxu0 %v986_v44 }
  0x52   :  { %490 = vmatmul.mubr.bf16.gmra.mrb[24].mxu0 %v988_v45 }
  0x53   :  { %497 = vmatprep.mubr.bf16.mxu0 %v991_v46 }
  0x5a   :  { %498 = vmatmul.mubr.bf16.gmra.mrb[28].mxu0 %v993_v47 }
  0xf5   :  { %v842_v48 = vpop.f32.mrb[0].mxu0 }
  0xf6   :  { %v843_v49 = vpop.f32.mrb[1].mxu0 }
  0xf7   :  { %v844_v50 = vadd.f32 %v843_v49, %v842_v48  ;;  %v845_v51 = vpop.f32.mrb[2].mxu0  ;;  %v924_v52 = vpop.f32.mrb[0].mxu1 }
  0xf8   :  { %v846_v53 = vpop.f32.mrb[3].mxu0  ;;  %v540_v54 = vpop.f32.mrb[1].mxu1 }
  0xf9   :  { %v847_v56 = vadd.f32 %v846_v53, %v845_v51  ;;  %v541_v57 = vadd.f32 %v844_v50, %v540_v54  ;;  %v925_v58 = vpop.f32.mrb[2].mxu1 }
  0xfa   :  { %v543_v60 = vpop.f32.mrb[3].mxu1 }
  0xfb   :  { %v661_v61 = vmul.f32 %v1171_v55, %v541_v57  ;;  %v544_v62 = vadd.f32 %v847_v56, %v543_v60 }
  0xfd   :  { %v684_v0 = vadd.f32 %v1176_v59, %v661_v61  ;;  %v662_v1 = vmul.f32 %v1171_v55, %v544_v62  ;;  %v848_v2 = vpop.f32.mrb[4].mxu0 }
  0xfe   :  { %v849_v3 = vpop.f32.mrb[5].mxu0 }
  0xff   :  { %vm700_vm0 = vcmp.ge.f32.partialorder %v684_v0, 0.0  ;;  %v723_v4 = vmul.f32 %v1182_v63, %v684_v0  ;;  %v685_v5 = vadd.f32 %v1176_v59, %v662_v1  ;;  %v850_v6 = vadd.f32 %v849_v3, %v848_v2  ;;  %v851_v7 = vpop.f32.mrb[6].mxu0  ;;  %v928_v8 = vpop.f32.mrb[4].mxu1 }
 0x100   :  { %v852_v9 = vpop.f32.mrb[7].mxu0  ;;  %v556_v10 = vpop.f32.mrb[5].mxu1 }
 0x101   :  { %v739_v11 = vsel %vm700_vm0, %v684_v0, %v723_v4  ;;  %vm701_vm1 = vcmp.ge.f32.partialorder %v685_v5, 0.0  ;;  %v724_v12 = vmul.f32 %v1182_v63, %v685_v5  ;;  %v549_v13 = vadd.f32 %v924_v52, %v850_v6  ;;  %v929_v14 = vpop.f32.mrb[6].mxu1 }
 0x102   :  { %755 = vst [vmem:[%s1299_s5] sm:$0xff] %v739_v11  ;;  %v853_v15 = vadd.f32 %v852_v9, %v851_v7  ;;  %v559_v16 = vpop.f32.mrb[7].mxu1 }
 0x103   :  { %v740_v17 = vsel %vm701_vm1, %v685_v5, %v724_v12  ;;  %v663_v18 = vmul.f32 %v1171_v55, %v549_v13 }
 0x104   :  { %756 = vst [vmem:[%s1299_s5 + $0x8] sm:$0xff] %v740_v17  ;;  %v552_v19 = vadd.f32 %v925_v58, %v853_v15 }
 0x105   :  { %v686_v20 = vadd.f32 %v1176_v59, %v663_v18  ;;  %v854_v21 = vpop.f32.mrb[8].mxu0 }
 0x106   :  { %v664_v22 = vmul.f32 %v1171_v55, %v552_v19  ;;  %v855_v23 = vpop.f32.mrb[9].mxu0 }
 0x107   :  { %vm702_vm2 = vcmp.ge.f32.partialorder %v686_v20, 0.0  ;;  %v725_v24 = vmul.f32 %v1182_v63, %v686_v20  ;;  %v856_v25 = vadd.f32 %v855_v23, %v854_v21  ;;  %v857_v26 = vpop.f32.mrb[10].mxu0  ;;  %v1199_v27 = vpop.f32.mrb[8].mxu1 }
 0x108   :  { %v687_v28 = vadd.f32 %v1176_v59, %v664_v22  ;;  %v858_v29 = vpop.f32.mrb[11].mxu0  ;;  %v572_v30 = vpop.f32.mrb[9].mxu1 }
 0x109   :  { %v741_v31 = vsel %vm702_vm2, %v686_v20, %v725_v24  ;;  %v859_v32 = vadd.f32 %v858_v29, %v857_v26  ;;  %v557_v33 = vadd.f32 %v856_v25, %v556_v10  ;;  %v1202_v34 = vpop.f32.mrb[10].mxu1 }
 0x10a   :  { %757 = vst [vmem:[%s1299_s5 + $0x10] sm:$0xff] %v741_v31  ;;  %vm703_vm3 = vcmp.ge.f32.partialorder %v687_v28, 0.0  ;;  %v726_v35 = vmul.f32 %v1182_v63, %v687_v28  ;;  %v575_v36 = vpop.f32.mrb[11].mxu1 }
 0x10b   :  { %v665_v37 = vmul.f32 %v1171_v55, %v557_v33  ;;  %v560_v38 = vadd.f32 %v859_v32, %v559_v16 }
 0x10c   :  { %v742_v39 = vsel %vm703_vm3, %v687_v28, %v726_v35 }
 0x10d   :  { %758 = vst [vmem:[%s1299_s5 + $0x18] sm:$0xff] %v742_v39  ;;  %v688_v40 = vadd.f32 %v1176_v59, %v665_v37  ;;  %v666_v41 = vmul.f32 %v1171_v55, %v560_v38  ;;  %v860_v42 = vpop.f32.mrb[12].mxu0 }
 0x10e   :  { %v861_v43 = vpop.f32.mrb[13].mxu0 }
 0x10f   :  { %vm704_vm4 = vcmp.ge.f32.partialorder %v688_v40, 0.0  ;;  %v727_v44 = vmul.f32 %v1182_v63, %v688_v40  ;;  %v689_v45 = vadd.f32 %v1176_v59, %v666_v41  ;;  %v862_v46 = vadd.f32 %v861_v43, %v860_v42  ;;  %v863_v47 = vpop.f32.mrb[14].mxu0  ;;  %v1216_v48 = vpop.f32.mrb[12].mxu1 }
 0x110   :  { %v864_v49 = vpop.f32.mrb[15].mxu0  ;;  %v1218_v50 = vpop.f32.mrb[13].mxu1 }
 0x111   :  { %v743_v51 = vsel %vm704_vm4, %v688_v40, %v727_v44  ;;  %vm705_vm5 = vcmp.ge.f32.partialorder %v689_v45, 0.0  ;;  %v728_v52 = vmul.f32 %v1182_v63, %v689_v45  ;;  %v565_v53 = vadd.f32 %v928_v8, %v862_v46  ;;  %v1221_v54 = vpop.f32.mrb[14].mxu1 }
 0x112   :  { %759 = vst [vmem:[%s1299_s5 + $0x20] sm:$0xff] %v743_v51  ;;  %v865_v56 = vadd.f32 %v864_v49, %v863_v47  ;;  %v591_v57 = vpop.f32.mrb[15].mxu1 }
 0x113   :  { %v744_v58 = vsel %vm705_vm5, %v689_v45, %v728_v52  ;;  %v667_v60 = vmul.f32 %v1171_v55, %v565_v53 }
 0x114   :  { %760 = vst [vmem:[%s1299_s5 + $0x28] sm:$0xff] %v744_v58  ;;  %v568_v61 = vadd.f32 %v929_v14, %v865_v56 }
 0x115   :  { %v690_v62 = vadd.f32 %v1176_v59, %v667_v60  ;;  %v866_v0 = vpop.f32.mrb[16].mxu0 }
 0x116   :  { %v668_v1 = vmul.f32 %v1171_v55, %v568_v61  ;;  %v867_v2 = vpop.f32.mrb[17].mxu0 }
 0x117   :  { %vm706_vm6 = vcmp.ge.f32.partialorder %v690_v62, 0.0  ;;  %v729_v3 = vmul.f32 %v1182_v63, %v690_v62  ;;  %v868_v4 = vadd.f32 %v867_v2, %v866_v0  ;;  %v869_v5 = vpop.f32.mrb[18].mxu0 }
 0x118   :  { %v691_v6 = vadd.f32 %v1176_v59, %v668_v1  ;;  %v870_v7 = vpop.f32.mrb[19].mxu0 }
 0x119   :  { %v745_v8 = vsel %vm706_vm6, %v690_v62, %v729_v3  ;;  %v871_v9 = vadd.f32 %v870_v7, %v869_v5  ;;  %v573_v10 = vadd.f32 %v868_v4, %v572_v30 }
 0x11a   :  { %761 = vst [vmem:[%s1299_s5 + $0x30] sm:$0xff] %v745_v8  ;;  %vm707_vm7 = vcmp.ge.f32.partialorder %v691_v6, 0.0  ;;  %v730_v11 = vmul.f32 %v1182_v63, %v691_v6 }
 0x11b   :  { %v669_v12 = vmul.f32 %v1171_v55, %v573_v10  ;;  %v576_v13 = vadd.f32 %v871_v9, %v575_v36 }
 0x11c   :  { %v746_v14 = vsel %vm707_vm7, %v691_v6, %v730_v11 }
 0x11d   :  { %762 = vst [vmem:[%s1299_s5 + $0x38] sm:$0xff] %v746_v14  ;;  %v692_v15 = vadd.f32 %v1176_v59, %v669_v12  ;;  %v670_v16 = vmul.f32 %v1171_v55, %v576_v13  ;;  %v872_v17 = vpop.f32.mrb[20].mxu0 }
 0x11e   :  { %v873_v18 = vpop.f32.mrb[21].mxu0 }
 0x11f   :  { %vm708_vm8 = vcmp.ge.f32.partialorder %v692_v15, 0.0  ;;  %v731_v19 = vmul.f32 %v1182_v63, %v692_v15  ;;  %v693_v20 = vadd.f32 %v1176_v59, %v670_v16  ;;  %v874_v21 = vadd.f32 %v873_v18, %v872_v17  ;;  %v875_v22 = vpop.f32.mrb[22].mxu0 }
 0x120   :  { %v876_v23 = vpop.f32.mrb[23].mxu0 }
 0x121   :  { %v747_v24 = vsel %vm708_vm8, %v692_v15, %v731_v19  ;;  %vm709_vm9 = vcmp.ge.f32.partialorder %v693_v20, 0.0  ;;  %v732_v25 = vmul.f32 %v1182_v63, %v693_v20  ;;  %v581_v26 = vadd.f32 %v1199_v27, %v874_v21 }
 0x122   :  { %763 = vst [vmem:[%s1299_s5 + $0x40] sm:$0xff] %v747_v24  ;;  %v877_v28 = vadd.f32 %v876_v23, %v875_v22 }
 0x123   :  { %v748_v29 = vsel %vm709_vm9, %v693_v20, %v732_v25  ;;  %v671_v30 = vmul.f32 %v1171_v55, %v581_v26 }
 0x124   :  { %764 = vst [vmem:[%s1299_s5 + $0x48] sm:$0xff] %v748_v29  ;;  %v584_v31 = vadd.f32 %v1202_v34, %v877_v28 }
 0x125   :  { %v694_v32 = vadd.f32 %v1176_v59, %v671_v30  ;;  %v878_v33 = vpop.f32.mrb[24].mxu0 }
 0x126   :  { %v672_v35 = vmul.f32 %v1171_v55, %v584_v31  ;;  %v879_v27 = vpop.f32.mrb[25].mxu0 }
 0x127   :  { %vm710_vm10 = vcmp.ge.f32.partialorder %v694_v32, 0.0  ;;  %v733_v36 = vmul.f32 %v1182_v63, %v694_v32  ;;  %v880_v37 = vadd.f32 %v879_v27, %v878_v33  ;;  %v881_v38 = vpop.f32.mrb[26].mxu0 }
 0x128   :  { %v695_v39 = vadd.f32 %v1176_v59, %v672_v35  ;;  %v882_v40 = vpop.f32.mrb[27].mxu0 }
 0x129   :  { %v749_v41 = vsel %vm710_vm10, %v694_v32, %v733_v36  ;;  %v883_v42 = vadd.f32 %v882_v40, %v881_v38  ;;  %v589_v43 = vadd.f32 %v880_v37, %v1218_v50 }
 0x12a   :  { %765 = vst [vmem:[%s1299_s5 + $0x50] sm:$0xff] %v749_v41  ;;  %vm711_vm11 = vcmp.ge.f32.partialorder %v695_v39, 0.0  ;;  %v734_v34 = vmul.f32 %v1182_v63, %v695_v39 }
 0x12b   :  { %v673_v44 = vmul.f32 %v1171_v55, %v589_v43  ;;  %v592_v45 = vadd.f32 %v883_v42, %v591_v57 }
 0x12c   :  { %v750_v46 = vsel %vm711_vm11, %v695_v39, %v734_v34 }
 0x12d   :  { %766 = vst [vmem:[%s1299_s5 + $0x58] sm:$0xff] %v750_v46  ;;  %v696_v47 = vadd.f32 %v1176_v59, %v673_v44  ;;  %v674_v49 = vmul.f32 %v1171_v55, %v592_v45  ;;  %v884_v50 = vpop.f32.mrb[28].mxu0 }
 0x12e   :  { %v885_v51 = vpop.f32.mrb[29].mxu0 }
 0x12f   :  { %vm712_vm12 = vcmp.ge.f32.partialorder %v696_v47, 0.0  ;;  %v735_v52 = vmul.f32 %v1182_v63, %v696_v47  ;;  %v697_v53 = vadd.f32 %v1176_v59, %v674_v49  ;;  %v886_v56 = vadd.f32 %v885_v51, %v884_v50  ;;  %v887_v58 = vpop.f32.mrb[30].mxu0 }
 0x130   :  { %v888_v60 = vpop.f32.mrb[31].mxu0 }
 0x131   :  { %v751_v57 = vsel %vm712_vm12, %v696_v47, %v735_v52  ;;  %vm713_vm13 = vcmp.ge.f32.partialorder %v697_v53, 0.0  ;;  %v736_v61 = vmul.f32 %v1182_v63, %v697_v53  ;;  %v597_v62 = vadd.f32 %v1216_v48, %v886_v56 }
 0x132   :  { %767 = vst [vmem:[%s1299_s5 + $0x60] sm:$0xff] %v751_v57  ;;  %v889_v0 = vadd.f32 %v888_v60, %v887_v58 }
 0x133   :  { %v752_v1 = vsel %vm713_vm13, %v697_v53, %v736_v61  ;;  %v675_v2 = vmul.f32 %v1171_v55, %v597_v62 }
 0x134   :  { %768 = vst [vmem:[%s1299_s5 + $0x68] sm:$0xff] %v752_v1  ;;  %v600_v3 = vadd.f32 %v1221_v54, %v889_v0 }
 0x135   :  { %v698_v4 = vadd.f32 %v1176_v59, %v675_v2 }
 0x136   :  { %v676_v5 = vmul.f32 %v1171_v55, %v600_v3 }
 0x137   :  { %vm714_vm14 = vcmp.ge.f32.partialorder %v698_v4, 0.0  ;;  %v737_v48 = vmul.f32 %v1182_v63, %v698_v4 }
 0x138   :  { %v699_v6 = vadd.f32 %v1176_v59, %v676_v5 }
 0x139   :  { %v753_v7 = vsel %vm714_vm14, %v698_v4, %v737_v48 }
 0x13a   :  { %769 = vst [vmem:[%s1299_s5 + $0x70] sm:$0xff] %v753_v7  ;;  %vm715_vm15 = vcmp.ge.f32.partialorder %v699_v6, 0.0  ;;  %v738_v8 = vmul.f32 %v1182_v63, %v699_v6 }
 0x13c   :  { %v754_v9 = vsel %vm715_vm15, %v699_v6, %v738_v8 }
 0x13d   :  { %770 = vst [vmem:[%s1299_s5 + $0x78] sm:$0xff] %v754_v9 }

// kernel: encoder_forward.181
= control target key start
LH: loop header
LB: loop body
LE: loop exit
PB: predicated region body
PF: predicated region fallthrough
CT: control target
= control target key end

     0   :  { %s360_s1 = inlined_call_operand.vmem [shape: bf16[128,128], index: 1, kind: input, shape index: {}]   ;;  %s361_s0 = inlined_call_operand.vmem [shape: bf16[32,128], index: 0, kind: input, shape index: {}]   ;;  %s362_s2 = inlined_call_operand.vmem [shape: f32[1,128], index: 2, kind: input, shape index: {}]   ;;  %s363_s3 = inlined_call_operand.vmem [shape: f32[1,128], index: 3, kind: input, shape index: {}]   ;;  %s364_s4 = inlined_call_operand.vmem [shape: f32[1,128], index: 4, kind: input, shape index: {}]   ;;  %s365_s5 = inlined_call_operand.vmem [shape: f32[32,128], index: 5, kind: output, shape index: {}]  }
   0x1   :  { %v269_v0 = vld [vmem:[%s360_s1] sm:$0xff]   ;;  %v270_v1 = vld [vmem:[%s360_s1 + $0x8] sm:$0xff]   ;;  %v271_v2 = vld [vmem:[%s360_s1 + $0x10] sm:$0xff]  }
   0x2   :  { %249 = vmatprep.subr.bf16.mxu0 %v269_v0  ;;  %v272_v3 = vld [vmem:[%s360_s1 + $0x18] sm:$0xff]   ;;  %v277_v4 = vld [vmem:[%s361_s0] sm:$0xff]   ;;  %v274_v6 = vld [vmem:[%s360_s1 + $0x28] sm:$0xff]  }
   0x3   :  { %250 = vmatpush3.bf16.msra.mxu0 %v269_v0  ;;  %265 = vmatprep.mubr.bf16.mxu0 %v277_v4  ;;  %v273_v5 = vld [vmem:[%s360_s1 + $0x20] sm:$0xff]   ;;  %v275_v7 = vld [vmem:[%s360_s1 + $0x30] sm:$0xff]   ;;  %v276_v8 = vld [vmem:[%s360_s1 + $0x38] sm:$0xff]  }
   0x4   :  { %251 = vmatprep.subr.bf16.mxu0 %v270_v1  ;;  %v278_v9 = vld [vmem:[%s361_s0 + $0x8] sm:$0xff]   ;;  %v236_v10 = vld [vmem:[%s362_s2] ss:$0 sm:$0xff] }
   0x5   :  { %v237_v12 = vld [vmem:[%s363_s3] ss:$0 sm:$0xff] }
   0x6   :  { %v238_v15 = vld [vmem:[%s364_s4] ss:$0 sm:$0xff] }
   0x7   :  { %252 = vmatpush3.bf16.msra.mxu0 %v270_v1 }
   0x8   :  { %253 = vmatprep.subr.bf16.mxu0 %v271_v2 }
   0xb   :  { %254 = vmatpush3.bf16.msra.mxu0 %v271_v2 }
   0xc   :  { %255 = vmatprep.subr.bf16.mxu0 %v272_v3 }
   0xf   :  { %256 = vmatpush3.bf16.msra.mxu0 %v272_v3 }
  0x10   :  { %257 = vmatprep.subr.bf16.mxu0 %v273_v5 }
  0x13   :  { %258 = vmatpush3.bf16.msra.mxu0 %v273_v5 }
  0x14   :  { %259 = vmatprep.subr.bf16.mxu0 %v274_v6 }
  0x17   :  { %260 = vmatpush3.bf16.msra.mxu0 %v274_v6 }
  0x18   :  { %261 = vmatprep.subr.bf16.mxu0 %v275_v7 }
  0x1b   :  { %262 = vmatpush3.bf16.msra.mxu0 %v275_v7 }
  0x1c   :  { %263 = vmatprep.subr.bf16.mxu0 %v276_v8 }
  0x1f   :  { %264 = vmatpush3.bf16.msra.mxu0 %v276_v8 }
  0x22   :  { %266 = vmatmul.mubr.bf16.vlgmr.msra.gmra.mrb[0].mxu0 %v278_v9 }
  0xf5   :  { %v267_v11 = vpop.f32.mrb[0].mxu0 }
  0xf6   :  { %v186_v13 = vmul.f32 %v267_v11, %v236_v10  ;;  %v147_v14 = vpop.f32.mrb[1].mxu0 }
  0xf7   :  { %v184_v16 = vmul.f32 %v236_v10, %v147_v14  ;;  %v268_v17 = vpop.f32.mrb[2].mxu0 }
  0xf8   :  { %v197_v18 = vadd.f32 %v237_v12, %v186_v13  ;;  %v187_v19 = vmul.f32 %v268_v17, %v236_v10  ;;  %v150_v20 = vpop.f32.mrb[3].mxu0 }
  0xf9   :  { %v195_v21 = vadd.f32 %v237_v12, %v184_v16  ;;  %v185_v22 = vmul.f32 %v236_v10, %v150_v20 }
  0xfa   :  { %vm201_vm0 = vcmp.ge.f32.partialorder %v197_v18, 0.0  ;;  %v212_v23 = vmul.f32 %v238_v15, %v197_v18  ;;  %v198_v24 = vadd.f32 %v237_v12, %v187_v19 }
  0xfb   :  { %vm199_vm1 = vcmp.ge.f32.partialorder %v195_v21, 0.0  ;;  %v210_v25 = vmul.f32 %v238_v15, %v195_v21  ;;  %v196_v26 = vadd.f32 %v237_v12, %v185_v22 }
  0xfc   :  { %v216_v27 = vsel %vm201_vm0, %v197_v18, %v212_v23  ;;  %vm202_vm2 = vcmp.ge.f32.partialorder %v198_v24, 0.0  ;;  %v213_v28 = vmul.f32 %v238_v15, %v198_v24 }
  0xfd   :  { %220 = vst [vmem:[%s365_s5 + $0x10] sm:$0xff] %v216_v27  ;;  %v214_v29 = vsel %vm199_vm1, %v195_v21, %v210_v25  ;;  %vm200_vm3 = vcmp.ge.f32.partialorder %v196_v26, 0.0  ;;  %v211_v30 = vmul.f32 %v238_v15, %v196_v26 }
  0xfe   :  { %218 = vst [vmem:[%s365_s5] sm:$0xff] %v214_v29  ;;  %v217_v31 = vsel %vm202_vm2, %v198_v24, %v213_v28 }
  0xff   :  { %221 = vst [vmem:[%s365_s5 + $0x18] sm:$0xff] %v217_v31  ;;  %v215_v32 = vsel %vm200_vm3, %v196_v26, %v211_v30 }
 0x100   :  { %219 = vst [vmem:[%s365_s5 + $0x8] sm:$0xff] %v215_v32 }

// kernel: encoder_forward.183
= control target key start
LH: loop header
LB: loop body
LE: loop exit
PB: predicated region body
PF: predicated region fallthrough
CT: control target
= control target key end

     0   :  { %s1050_s1 = inlined_call_operand.vmem [shape: bf16[640,128], index: 1, kind: input, shape index: {}]   ;;  %s1051_s0 = inlined_call_operand.vmem [shape: bf16[32,640], index: 0, kind: input, shape index: {}]   ;;  %s1052_s2 = inlined_call_operand.vmem [shape: f32[1,128], index: 2, kind: input, shape index: {}]   ;;  %s1053_s3 = inlined_call_operand.vmem [shape: f32[1,128], index: 3, kind: input, shape index: {}]   ;;  %s1054_s4 = inlined_call_operand.vmem [shape: f32[1,128], index: 4, kind: input, shape index: {}]   ;;  %s1055_s5 = inlined_call_operand.vmem [shape: f32[32,128], index: 5, kind: input, shape index: {}]   ;;  %s1056_s6 = inlined_call_operand.vmem [shape: f32[32,128], index: 6, kind: output, shape index: {}]  }
   0x1   :  { %v778_v0 = vld [vmem:[%s1050_s1 + $0x40] sm:$0xff]   ;;  %v782_v4 = vld [vmem:[%s1050_s1 + $0x48] sm:$0xff]   ;;  %v786_v8 = vld [vmem:[%s1050_s1 + $0x50] sm:$0xff]  }
   0x2   :  { %v779_v1 = vld [vmem:[%s1050_s1 + $0xc0] sm:$0xff]   ;;  %692 = vmatprep.subr.bf16.mxu0 %v778_v0  ;;  %v783_v5 = vld [vmem:[%s1050_s1 + $0xc8] sm:$0xff]   ;;  %v787_v9 = vld [vmem:[%s1050_s1 + $0xd0] sm:$0xff]  }
   0x3   :  { %v780_v2 = vld [vmem:[%s1050_s1] sm:$0xff]   ;;  %720 = vmatprep.subr.bf16.mxu1 %v779_v1  ;;  %v784_v6 = vld [vmem:[%s1050_s1 + $0x8] sm:$0xff]   ;;  %v788_v10 = vld [vmem:[%s1050_s1 + $0x10] sm:$0xff]  }
   0x4   :  { %v781_v3 = vld [vmem:[%s1050_s1 + $0x80] sm:$0xff]   ;;  %693 = vmatpush3.bf16.msra.mxu0 %v780_v2  ;;  %v785_v7 = vld [vmem:[%s1050_s1 + $0x88] sm:$0xff]   ;;  %v789_v11 = vld [vmem:[%s1050_s1 + $0x90] sm:$0xff]  }
   0x5   :  { %721 = vmatpush3.bf16.msra.mxu1 %v781_v3  ;;  %694 = vmatprep.subr.bf16.mxu0 %v782_v4  ;;  %v790_v12 = vld [vmem:[%s1050_s1 + $0x58] sm:$0xff]   ;;  %v794_v16 = vld [vmem:[%s1050_s1 + $0x60] sm:$0xff]   ;;  %v798_v20 = vld [vmem:[%s1050_s1 + $0x68] sm:$0xff]  }
   0x6   :  { %722 = vmatprep.subr.bf16.mxu1 %v783_v5  ;;  %v791_v13 = vld [vmem:[%s1050_s1 + $0xd8] sm:$0xff]   ;;  %v795_v17 = vld [vmem:[%s1050_s1 + $0xe0] sm:$0xff]   ;;  %v799_v21 = vld [vmem:[%s1050_s1 + $0xe8] sm:$0xff]  }
   0x7   :  { %v792_v14 = vld [vmem:[%s1050_s1 + $0x18] sm:$0xff]   ;;  %v796_v18 = vld [vmem:[%s1050_s1 + $0x20] sm:$0xff]   ;;  %v800_v22 = vld [vmem:[%s1050_s1 + $0x28] sm:$0xff]  }
   0x8   :  { %695 = vmatpush3.bf16.msra.mxu0 %v784_v6  ;;  %v793_v15 = vld [vmem:[%s1050_s1 + $0x98] sm:$0xff]   ;;  %v797_v19 = vld [vmem:[%s1050_s1 + $0xa0] sm:$0xff]   ;;  %v801_v23 = vld [vmem:[%s1050_s1 + $0xa8] sm:$0xff]  }
   0x9   :  { %723 = vmatpush3.bf16.msra.mxu1 %v785_v7  ;;  %696 = vmatprep.subr.bf16.mxu0 %v786_v8  ;;  %v802_v24 = vld [vmem:[%s1050_s1 + $0x70] sm:$0xff]   ;;  %v806_v28 = vld [vmem:[%s1050_s1 + $0x78] sm:$0xff]   ;;  %v815_v35 = vld [vmem:[%s1051_s0 + $0xc] ss:$20 sps:$4 sm:$0xff]  }
   0xa   :  { %724 = vmatprep.subr.bf16.mxu1 %v787_v9  ;;  %v803_v25 = vld [vmem:[%s1050_s1 + $0xf0] sm:$0xff]   ;;  %v807_v29 = vld [vmem:[%s1050_s1 + $0xf8] sm:$0xff]   ;;  %v816_v36 = vld [vmem:[%s1050_s1 + $0x100] sm:$0xff]   ;;  %501 = vmatprep.mubr.bf16.mxu1 %v815_v35 }
   0xb   :  { %v804_v26 = vld [vmem:[%s1050_s1 + $0x30] sm:$0xff]   ;;  %v808_v30 = vld [vmem:[%s1050_s1 + $0x38] sm:$0xff]   ;;  %v817_v37 = vld [vmem:[%s1050_s1 + $0x108] sm:$0xff]  }
   0xc   :  { %697 = vmatpush3.bf16.msra.mxu0 %v788_v10  ;;  %v805_v27 = vld [vmem:[%s1050_s1 + $0xb0] sm:$0xff]   ;;  %v809_v31 = vld [vmem:[%s1050_s1 + $0xb8] sm:$0xff]   ;;  %v821_v39 = vld [vmem:[%s1051_s0 + $0x2c] ss:$20 sps:$4 sm:$0xff]  }
   0xd   :  { %725 = vmatpush3.bf16.msra.mxu1 %v789_v11  ;;  %698 = vmatprep.subr.bf16.mxu0 %v790_v12  ;;  %v810_v32 = vld [vmem:[%s1051_s0] ss:$20 sps:$4 sm:$0xff]   ;;  %v812_v33 = vld [vmem:[%s1051_s0 + $0x4] ss:$20 sps:$4 sm:$0xff]   ;;  %v813_v34 = vld [vmem:[%s1051_s0 + $0x8] ss:$20 sps:$4 sm:$0xff]  }
   0xe   :  { %726 = vmatprep.subr.bf16.mxu1 %v791_v13  ;;  %452 = vmatprep.mubr.bf16.mxu0 %v812_v33  ;;  %v818_v38 = vld [vmem:[%s1050_s1 + $0x110] sm:$0xff]   ;;  %v819_v41 = vld [vmem:[%s1050_s1 + $0x118] sm:$0xff]   ;;  %v820_v45 = vld [vmem:[%s1050_s1 + $0x120] sm:$0xff]  }
   0xf   :  { %v823_v40 = vld [vmem:[%s1051_s0 + $0x34] ss:$20 sps:$4 sm:$0xff]   ;;  %v827_v43 = vld [vmem:[%s1051_s0 + $0x30] ss:$20 sps:$4 sm:$0xff]   ;;  %v829_v48 = vld [vmem:[%s1050_s1 + $0x138] sm:$0xff]  }
  0x10   :  { %699 = vmatpush3.bf16.msra.mxu0 %v792_v14  ;;  %v826_v42 = vld [vmem:[%s1051_s0 + $0x28] ss:$20 sps:$4 sm:$0xff]   ;;  %v830_v44 = vld [vmem:[%s1051_s0 + $0x10] ss:$20 sps:$4 sm:$0xff]   ;;  %v831_v49 = vld [vmem:[%s1051_s0 + $0x38] ss:$20 sps:$4 sm:$0xff]  }
  0x11   :  { %727 = vmatpush3.bf16.msra.mxu1 %v793_v15  ;;  %700 = vmatprep.subr.bf16.mxu0 %v794_v16  ;;  %v825_v46 = vld [vmem:[%s1050_s1 + $0x128] sm:$0xff]   ;;  %v828_v47 = vld [vmem:[%s1050_s1 + $0x130] sm:$0xff]   ;;  %v689_v15 = vld [vmem:[%s1052_s2] ss:$0 sm:$0xff] }
  0x12   :  { %728 = vmatprep.subr.bf16.mxu1 %v795_v17  ;;  %v623_v35 = vld [vmem:[%s1055_s5] sm:$0xff] }
  0x14   :  { %701 = vmatpush3.bf16.msra.mxu0 %v796_v18  ;;  %v690_v18 = vld [vmem:[%s1053_s3] ss:$0 sm:$0xff] }
  0x15   :  { %729 = vmatpush3.bf16.msra.mxu1 %v797_v19  ;;  %702 = vmatprep.subr.bf16.mxu0 %v798_v20 }
  0x16   :  { %730 = vmatprep.subr.bf16.mxu1 %v799_v21 }
  0x18   :  { %703 = vmatpush3.bf16.msra.mxu0 %v800_v22 }
  0x19   :  { %731 = vmatpush3.bf16.msra.mxu1 %v801_v23  ;;  %704 = vmatprep.subr.bf16.mxu0 %v802_v24  ;;  %v691_v24 = vld [vmem:[%s1054_s4] ss:$0 sm:$0xff] }
  0x1a   :  { %732 = vmatprep.subr.bf16.mxu1 %v803_v25 }
  0x1c   :  { %705 = vmatpush3.bf16.msra.mxu0 %v804_v26 }
  0x1d   :  { %733 = vmatpush3.bf16.msra.mxu1 %v805_v27  ;;  %706 = vmatprep.subr.bf16.mxu0 %v806_v28 }
  0x1e   :  { %734 = vmatprep.subr.bf16.mxu1 %v807_v29 }
  0x20   :  { %707 = vmatpush3.bf16.msra.mxu0 %v808_v30 }
  0x21   :  { %735 = vmatpush3.bf16.msra.mxu1 %v809_v31  ;;  %758 = vmatprep.subr.bf16.mxu0 %v816_v36 }
  0x23   :  { %453 = vmatmul.mubr.bf16.vlgmr.msra.gmra.mrb[0].mxu0 %v810_v32  ;;  %v625_v32 = vld [vmem:[%s1055_s5 + $0x10] sm:$0xff] }
  0x24   :  { %502 = vmatmul.mubr.bf16.vlgmr.msra.gmra.mrb[0].mxu1 %v813_v34  ;;  %759 = vmatpush3.bf16.msra.mxu0 %v816_v36 }
  0x25   :  { %760 = vmatprep.subr.bf16.mxu0 %v817_v37  ;;  %460 = vmatprep.mubr.bf16.mxu0 %v821_v39  ;;  %v626_v39 = vld [vmem:[%s1055_s5 + $0x18] sm:$0xff] }
  0x26   :  { %509 = vmatprep.mubr.bf16.mxu1 %v823_v40 }
  0x28   :  { %761 = vmatpush3.bf16.msra.mxu0 %v817_v37 }
  0x29   :  { %762 = vmatprep.subr.bf16.mxu0 %v818_v38 }
  0x2b   :  { %461 = vmatmul.mubr.bf16.gmra.mrb[4].mxu0 %v826_v42 }
  0x2c   :  { %510 = vmatmul.mubr.bf16.gmra.mrb[4].mxu1 %v827_v43  ;;  %763 = vmatpush3.bf16.msra.mxu0 %v818_v38  ;;  %v624_v43 = vld [vmem:[%s1055_s5 + $0x8] sm:$0xff] }
  0x2d   :  { %764 = vmatprep.subr.bf16.mxu0 %v819_v41  ;;  %774 = vmatprep.mubr.bf16.mxu0 %v830_v44 }
  0x30   :  { %765 = vmatpush3.bf16.msra.mxu0 %v819_v41 }
  0x31   :  { %766 = vmatprep.subr.bf16.mxu0 %v820_v45 }
  0x34   :  { %767 = vmatpush3.bf16.msra.mxu0 %v820_v45 }
  0x35   :  { %768 = vmatprep.subr.bf16.mxu0 %v825_v46 }
  0x38   :  { %769 = vmatpush3.bf16.msra.mxu0 %v825_v46 }
  0x39   :  { %770 = vmatprep.subr.bf16.mxu0 %v828_v47 }
  0x3c   :  { %771 = vmatpush3.bf16.msra.mxu0 %v828_v47 }
  0x3d   :  { %772 = vmatprep.subr.bf16.mxu0 %v829_v48 }
  0x40   :  { %773 = vmatpush3.bf16.msra.mxu0 %v829_v48 }
  0x43   :  { %775 = vmatmul.mubr.bf16.vlgmr.msra.gmra.mrb[8].mxu0 %v831_v49 }
  0xf6   :  { %v708_v50 = vpop.f32.mrb[0].mxu0 }
  0xf7   :  { %v736_v51 = vpop.f32.mrb[0].mxu1  ;;  %v709_v52 = vpop.f32.mrb[1].mxu0 }
  0xf8   :  { %v710_v53 = vadd.f32 %v709_v52, %v708_v50  ;;  %v737_v54 = vpop.f32.mrb[1].mxu1  ;;  %v711_v55 = vpop.f32.mrb[2].mxu0 }
  0xf9   :  { %v738_v56 = vadd.f32 %v737_v54, %v736_v51  ;;  %v739_v57 = vpop.f32.mrb[2].mxu1  ;;  %v712_v58 = vpop.f32.mrb[3].mxu0 }
  0xfa   :  { %v713_v59 = vadd.f32 %v712_v58, %v711_v55  ;;  %v740_v60 = vpop.f32.mrb[3].mxu1 }
  0xfb   :  { %v741_v61 = vadd.f32 %v740_v60, %v739_v57  ;;  %v504_v62 = vadd.f32 %v738_v56, %v710_v53 }
  0xfd   :  { %v507_v63 = vadd.f32 %v741_v61, %v713_v59 }
  0xfe   :  { %v714_v0 = vpop.f32.mrb[4].mxu0 }
  0xff   :  { %v742_v1 = vpop.f32.mrb[4].mxu1  ;;  %v715_v2 = vpop.f32.mrb[5].mxu0 }
 0x100   :  { %v716_v3 = vadd.f32 %v715_v2, %v714_v0  ;;  %v743_v4 = vpop.f32.mrb[5].mxu1  ;;  %v717_v5 = vpop.f32.mrb[6].mxu0 }
 0x101   :  { %v744_v6 = vadd.f32 %v743_v4, %v742_v1  ;;  %v745_v7 = vpop.f32.mrb[6].mxu1  ;;  %v718_v8 = vpop.f32.mrb[7].mxu0 }
 0x102   :  { %v719_v9 = vadd.f32 %v718_v8, %v717_v5  ;;  %v746_v10 = vpop.f32.mrb[7].mxu1 }
 0x103   :  { %v747_v11 = vadd.f32 %v746_v10, %v745_v7  ;;  %v512_v12 = vadd.f32 %v744_v6, %v716_v3 }
 0x105   :  { %v515_v13 = vadd.f32 %v747_v11, %v719_v9 }
 0x116   :  { %v776_v14 = vpop.f32.mrb[8].mxu0 }
 0x117   :  { %v561_v16 = vadd.f32 %v776_v14, %v512_v12  ;;  %v552_v17 = vpop.f32.mrb[9].mxu0 }
 0x118   :  { %v553_v19 = vadd.f32 %v552_v17, %v504_v62  ;;  %v777_v20 = vpop.f32.mrb[10].mxu0 }
 0x119   :  { %v591_v21 = vmul.f32 %v689_v15, %v561_v16  ;;  %v564_v22 = vadd.f32 %v777_v20, %v515_v13  ;;  %v555_v23 = vpop.f32.mrb[11].mxu0 }
 0x11a   :  { %v589_v25 = vmul.f32 %v689_v15, %v553_v19  ;;  %v556_v26 = vadd.f32 %v555_v23, %v507_v63 }
 0x11b   :  { %v602_v27 = vadd.f32 %v690_v18, %v591_v21  ;;  %v592_v28 = vmul.f32 %v689_v15, %v564_v22 }
 0x11c   :  { %v600_v29 = vadd.f32 %v690_v18, %v589_v25  ;;  %v590_v30 = vmul.f32 %v689_v15, %v556_v26 }
 0x11d   :  { %vm606_vm0 = vcmp.ge.f32.partialorder %v602_v27, 0.0  ;;  %v617_v31 = vmul.f32 %v691_v24, %v602_v27  ;;  %v603_v33 = vadd.f32 %v690_v18, %v592_v28 }
 0x11e   :  { %vm604_vm1 = vcmp.ge.f32.partialorder %v600_v29, 0.0  ;;  %v615_v34 = vmul.f32 %v691_v24, %v600_v29  ;;  %v601_v36 = vadd.f32 %v690_v18, %v590_v30 }
 0x11f   :  { %v621_v37 = vsel %vm606_vm0, %v602_v27, %v617_v31  ;;  %vm607_vm2 = vcmp.ge.f32.partialorder %v603_v33, 0.0  ;;  %v618_v38 = vmul.f32 %v691_v24, %v603_v33 }
 0x120   :  { %v629_v40 = vadd.f32 %v625_v32, %v621_v37  ;;  %v619_v41 = vsel %vm604_vm1, %v600_v29, %v615_v34  ;;  %vm605_vm3 = vcmp.ge.f32.partialorder %v601_v36, 0.0  ;;  %v616_v42 = vmul.f32 %v691_v24, %v601_v36 }
 0x121   :  { %v627_v44 = vadd.f32 %v623_v35, %v619_v41  ;;  %v622_v45 = vsel %vm607_vm2, %v603_v33, %v618_v38 }
 0x122   :  { %633 = vst [vmem:[%s1056_s6 + $0x10] sm:$0xff] %v629_v40  ;;  %v630_v46 = vadd.f32 %v626_v39, %v622_v45  ;;  %v620_v47 = vsel %vm605_vm3, %v601_v36, %v616_v42 }
 0x123   :  { %631 = vst [vmem:[%s1056_s6] sm:$0xff] %v627_v44  ;;  %v628_v48 = vadd.f32 %v624_v43, %v620_v47 }
 0x124   :  { %634 = vst [vmem:[%s1056_s6 + $0x18] sm:$0xff] %v630_v46 }
 0x125   :  { %632 = vst [vmem:[%s1056_s6 + $0x8] sm:$0xff] %v628_v48 }

// kernel: encoder_forward.198
= control target key start
LH: loop header
LB: loop body
LE: loop exit
PB: predicated region body
PF: predicated region fallthrough
CT: control target
= control target key end

     0   :  { %s672_s0 = inlined_call_operand.vmem [shape: s32[16], index: 0, kind: input, shape index: {}]   ;;  %s673_s2 = inlined_call_operand.vmem [shape: f32[8,4,64], index: 2, kind: input, shape index: {}, may-alias: {2,3}]   ;;  %s674_s3 = inlined_call_operand.vmem [shape: f32[8,4,64], index: 3, kind: input, shape index: {}, may-alias: {2,3}]   ;;  %s675_s4 = inlined_call_operand.vmem [shape: f32[8,4], index: 4, kind: input, shape index: {}]   ;;  %s676_s5 = inlined_call_operand.vmem [shape: f32[16], index: 5, kind: input, shape index: {}]   ;;  %s677_s6 = inlined_call_operand.vmem [shape: f32[16,8,64], index: 6, kind: input, shape index: {}]   ;;  %s678_s7 = inlined_call_operand.vmem [shape: f32[16,8,64], index: 7, kind: output, shape index: {}]   ;;  %s679_s1 = inlined_call_operand.vmem [shape: s32[16], index: 1, kind: input, shape index: {}]  }
   0x1   :  { %s12_s26 = sshll.u32 %s672_s0, 4  ;;  %s16_s29 = sshll.u32 %s679_s1, 4  ;;  %s13_s26 = int_to_ptr.vmem [resolvable:$true] %s12_s26  ;;  %s17_s29 = int_to_ptr.vmem [resolvable:$true] %s16_s29 }
   0x2   :  { %s517_s30 = scalar_lea.vmem %s13_s26, 16  ;;  %p522_p1 = scmp.lt.s32.totalorder %s13_s26, %s13_s26 }
   0x3   :  { %p518_p0 = scmp.ne.s32.totalorder %s13_s26, %s517_s30  ;;  %p523_p2 = scmp.lt.s32.totalorder %s517_s30, %s517_s30 }
   0x5   :  { %p524_p3 = por %p523_p2, %p522_p1 }
   0x7   :  { %p525_p4 = pnand %p524_p3, %p518_p0 }
   0x9   :  { %528 = shalt.err (!%p525_p4)  }
   0xa   :  { %s570_s8 = smov [#allocation3]   ;;  %s529_s9 = scalar_lea.vmem %s17_s29, 16 }
   0xb   :  { %15 = dma.vmem_to_smem %s13_s26, 16, %s570_s8, [#allocation2] }
   0xc   :  { %p530_p5 = scmp.ne.s32.totalorder %s17_s29, %s529_s9  ;;  %p534_p6 = scmp.lt.s32.totalorder %s17_s29, %s17_s29 }
   0xd   :  { %p535_p7 = scmp.lt.s32.totalorder %s529_s9, %s529_s9 }
   0xf   :  { %p536_p8 = por %p535_p7, %p534_p6 }
  0x11   :  { %p537_p9 = pnand %p536_p8, %p530_p5 }
  0x13   :  { %540 = shalt.err (!%p537_p9)  }
  0x14   :  { %s571_s0 = smov [#allocation4]  }
  0x15   :  { %19 = dma.vmem_to_smem %s17_s29, 16, %s571_s0, [#allocation2] }
  0x16   :  { %560 = dma.done.wait [#allocation2], 32 }
  0x17   :  { %561 = vsyncadd [#allocation2], 4294967264 }
  0x18   :  { %21 = sfence }
  0x19   :  { %22 = vsyncpa [#allocation6], 0  ;;  %s621_s1 = smov 0  }
  0x1a LB: > { %s627_s10 = sadd.s32 4294967295, %s568_s1   ;;  %p474_p10 = scmp.ge.s32.totalorder %s568_s1, 1  ;;  %s568_s1 = sphi %s621_s1, %s28_s1  }
  0x1b   : > { %p183_p11 = scmp.lt.s32.totalorder %s568_s1, 17  ;;  %s199_s13 = sshll.u32 %s676_s5, 4  ;;  %s200_s13 = int_to_ptr.vmem [resolvable:$true] %s199_s13 }
  0x1c   : > { %p502_p13 = scmp.eq.s32.totalorder %s627_s10, 0  ;;  %s541_s15 = scalar_lea.vmem %s200_s13, 16 }
  0x1d   : > { %p634_p12 = pnand %p474_p10, %p183_p11  ;;  %p542_p2 = scmp.ne.s32.totalorder %s200_s13, %s541_s15 }
  0x1e   : > { %p549_p6 = scmp.lt.s32.totalorder %s200_s13, %s200_s13  ;;  %p550_p7 = scmp.lt.s32.totalorder %s541_s15, %s541_s15 }
  0x1f   : > { %p498_p0 = pneg %p634_p12 }
  0x20   : > { %p551_p8 = por %p550_p7, %p549_p6 }
  0x21   : > { %p499_p1 = pnand %p502_p13, %p498_p0 }
  0x23   : > { %p543_p3 = pneg %p499_p1 }
  0x25   : > { %p544_p4 = pnand %p543_p3, %p542_p2 }
  0x27   : > { %p545_p5 = pneg %p544_p4 }
  0x29   : > { %p552_p9 = pnand %p551_p8, %p545_p5 }
  0x2b   : > { %555 = shalt.err (!%p552_p9)
}
  0x2c   : > { %s572_s16 = smov [#allocation5]   ;;  %237 = sbr.rel (%p634_p12) target bundleno = 289 (0x121), region = 40 }
  0x2d   : > { %501 = dma.vmem_to_smem (!%p499_p1), %s200_s13, 16, %s572_s16, [#allocation6]  }
  0x33   : > { %563 = dma.done.wait (%p502_p13), [#allocation6], 16  }
  0x34   : > { %565 = vsyncadd (%p502_p13), [#allocation6], 4294967280 }
  0x35   : > { %243 = sfence }
  0x36   : > { %s274_s17 = sld [smem:[#allocation3 + %s627_s10]]  ;;  %v573_v0 = vmov 0.0   ;;  %vm574_vm0 = vmmov 0   ;;  %vm307_vm1 = vcmask 1043456   ;;  %v301_v7 = vld [vmem:[%s675_s4] sm:$0xff]  ;;  %vm303_vm2 = vcmask 31744  }
  0x37   : > { %s280_s18 = sld [smem:[#allocation4 + %s627_s10]]  ;;  %489 = vmatprep.subr.mxu0 %v573_v0  ;;  %491 = vmatprep.mubr.msk.f32.mxu0 %vm574_vm0, %v573_v0  ;;  %p286_p12 = scmp.lt.s32.totalorder %s627_s10, 15  ;;  %vm381_vm3 = vcmask 523264  }
  0x38   : > { %s294_s19 = sld [smem:[#allocation5 + %s627_s10]] }
  0x39   : > { %s686_s10 = smov (!%p286_p12, %s627_s10), 15 }
  0x3a   : > { %s481_s30 = sshll.u32 %s686_s10, 3 }
  0x3b   : > { %s289_s0 = scalar_lea.vmem %s677_s6, %s481_s30  ;;  %s293_s13 = scalar_lea.vmem %s678_s7, %s481_s30 }
  0x3c   : > { %p275_p10 = scmp.lt.s32.totalorder %s274_s17, 7  ;;  %v302_v8 = vld [vmem:[%s289_s0] sm:$0xff] }
  0x3d   : > { %p281_p11 = scmp.lt.s32.totalorder %s280_s18, 7 }
  0x3e   : > { %s682_s17 = smov (!%p275_p10, %s274_s17), 7  ;;  %v298_v3 = vstv %s294_s19 }
  0x3f   : > { %s684_s18 = smov (!%p281_p11, %s280_s18), 7  ;;  %s479_s20 = sshll.u32 %s682_s17, 2 }
  0x40   : > { %s278_s23 = scalar_lea.vmem %s673_s2, %s479_s20  ;;  %s480_s24 = sshll.u32 %s684_s18, 2 }
  0x41   : > { %s284_s27 = scalar_lea.vmem %s674_s3, %s480_s24  ;;  %v295_v1 = vld [vmem:[%s278_s23] sm:$0xf] }
  0x42   : > { %v296_v2 = vld [vmem:[%s284_s27] sm:$0xf] }
  0x43   : > { %v297_v4 = vsub.f32 %v296_v2, %v295_v1 }
  0x45   : > { %v299_v5 = vmul.f32 %v298_v3, %v297_v4 }
  0x47   : > { %v300_v6 = vadd.f32 %v299_v5, %v295_v1 }
  0x49   : > { %490 = vmatpush3.msk.msra.mxu0 %vm307_vm1, %v300_v6 }
  0x4a   : > { %492 = vmatmul.mubr.msk.f32.vlgmr.msra.gmra.mrb[0].mxu0 %vm303_vm2, %v301_v7 }
 0x11d   : > { %v377_v9 = vpop.f32.mrb[0].mxu0 }
 0x11e   : > { %v378_v10 = vadd.f32 %v377_v9, %v302_v8  ;;  %v493_v11 = vpop.f32.mrb[1].mxu0 }
 0x120   : > { %382 = vst.msk [vmem:[%s293_s13] sm:$0xff] %vm381_vm3, %v378_v10 }
 0x121 PF: > { %s28_s1 = sadd.s32 1, %s568_s1  }
 0x122   : > { %p25_p13 = scmp.ge.s32.totalorder %s28_s1, 18  }
 0x124   :  { %27 = sbr.rel (!%p25_p13) target bundleno = 26 (0x1a), region = 81 }
 0x12b   :  { %402 = vsyncpa [#allocation6], 1 }
 0x12c   :  { %404 = vsyncpa [#allocation6 + $0x1], 1 }

// kernel: encoder_forward.216
= control target key start
LH: loop header
LB: loop body
LE: loop exit
PB: predicated region body
PF: predicated region fallthrough
CT: control target
= control target key end

     0   :  { %s692_s0 = inlined_call_operand.vmem [shape: s32[32], index: 0, kind: input, shape index: {}]   ;;  %s693_s2 = inlined_call_operand.vmem [shape: f32[16,8,64], index: 2, kind: input, shape index: {}, may-alias: {2,3}]   ;;  %s694_s3 = inlined_call_operand.vmem [shape: f32[16,8,64], index: 3, kind: input, shape index: {}, may-alias: {2,3}]   ;;  %s695_s4 = inlined_call_operand.vmem [shape: f32[16,8], index: 4, kind: input, shape index: {}]   ;;  %s696_s5 = inlined_call_operand.vmem [shape: f32[32], index: 5, kind: input, shape index: {}]   ;;  %s697_s6 = inlined_call_operand.vmem [shape: f32[32,16,64], index: 6, kind: input, shape index: {}]   ;;  %s698_s7 = inlined_call_operand.vmem [shape: f32[32,16,64], index: 7, kind: output, shape index: {}]   ;;  %s699_s1 = inlined_call_operand.vmem [shape: s32[32], index: 1, kind: input, shape index: {}]  }
   0x1   :  { %s12_s26 = sshll.u32 %s692_s0, 4  ;;  %s16_s29 = sshll.u32 %s699_s1, 4  ;;  %s13_s26 = int_to_ptr.vmem [resolvable:$true] %s12_s26  ;;  %s17_s29 = int_to_ptr.vmem [resolvable:$true] %s16_s29 }
   0x2   :  { %s534_s30 = scalar_lea.vmem %s13_s26, 16  ;;  %p539_p1 = scmp.lt.s32.totalorder %s13_s26, %s13_s26 }
   0x3   :  { %p535_p0 = scmp.ne.s32.totalorder %s13_s26, %s534_s30  ;;  %p540_p2 = scmp.lt.s32.totalorder %s534_s30, %s534_s30 }
   0x5   :  { %p541_p3 = por %p540_p2, %p539_p1 }
   0x7   :  { %p542_p4 = pnand %p541_p3, %p535_p0 }
   0x9   :  { %545 = shalt.err (!%p542_p4)  }
   0xa   :  { %s587_s8 = smov [#allocation3]   ;;  %s546_s9 = scalar_lea.vmem %s17_s29, 16 }
   0xb   :  { %15 = dma.vmem_to_smem %s13_s26, 16, %s587_s8, [#allocation2] }
   0xc   :  { %p547_p5 = scmp.ne.s32.totalorder %s17_s29, %s546_s9  ;;  %p551_p6 = scmp.lt.s32.totalorder %s17_s29, %s17_s29 }
   0xd   :  { %p552_p7 = scmp.lt.s32.totalorder %s546_s9, %s546_s9 }
   0xf   :  { %p553_p8 = por %p552_p7, %p551_p6 }
  0x11   :  { %p554_p9 = pnand %p553_p8, %p547_p5 }
  0x13   :  { %557 = shalt.err (!%p554_p9)  }
  0x14   :  { %s588_s0 = smov [#allocation4]  }
  0x15   :  { %19 = dma.vmem_to_smem %s17_s29, 16, %s588_s0, [#allocation2] }
  0x16   :  { %577 = dma.done.wait [#allocation2], 32 }
  0x17   :  { %578 = vsyncadd [#allocation2], 4294967264 }
  0x18   :  { %21 = sfence }
  0x19   :  { %22 = vsyncpa [#allocation6], 0  ;;  %s636_s1 = smov 0  }
  0x1a LB: > { %s642_s10 = sadd.s32 4294967295, %s585_s1   ;;  %p488_p10 = scmp.ge.s32.totalorder %s585_s1, 1  ;;  %s585_s1 = sphi %s636_s1, %s28_s1  }
  0x1b   : > { %p183_p11 = scmp.lt.s32.totalorder %s585_s1, 33  ;;  %s199_s13 = sshll.u32 %s696_s5, 4  ;;  %s200_s13 = int_to_ptr.vmem [resolvable:$true] %s199_s13 }
  0x1c   : > { %p521_p13 = scmp.eq.s32.totalorder %s642_s10, 0  ;;  %s558_s15 = scalar_lea.vmem %s200_s13, 16 }
  0x1d   : > { %p649_p12 = pnand %p488_p10, %p183_p11  ;;  %p559_p2 = scmp.ne.s32.totalorder %s200_s13, %s558_s15 }
  0x1e   : > { %p566_p6 = scmp.lt.s32.totalorder %s200_s13, %s200_s13  ;;  %p567_p7 = scmp.lt.s32.totalorder %s558_s15, %s558_s15 }
  0x1f   : > { %p517_p0 = pneg %p649_p12 }
  0x20   : > { %p568_p8 = por %p567_p7, %p566_p6 }
  0x21   : > { %p518_p1 = pnand %p521_p13, %p517_p0 }
  0x23   : > { %p560_p3 = pneg %p518_p1 }
  0x25   : > { %p561_p4 = pnand %p560_p3, %p559_p2 }
  0x27   : > { %p562_p5 = pneg %p561_p4 }
  0x29   : > { %p569_p9 = pnand %p568_p8, %p562_p5 }
  0x2b   : > { %572 = shalt.err (!%p569_p9)
}
  0x2c   : > { %s589_s16 = smov [#allocation5]   ;;  %238 = sbr.rel (%p649_p12) target bundleno = 291 (0x123), region = 40 }
  0x2d   : > { %520 = dma.vmem_to_smem (!%p518_p1), %s200_s13, 16, %s589_s16, [#allocation6]  }
  0x33   : > { %580 = dma.done.wait (%p521_p13), [#allocation6], 16  }
  0x34   : > { %582 = vsyncadd (%p521_p13), [#allocation6], 4294967280 }
  0x35   : > { %244 = sfence }
  0x36   : > { %s277_s17 = sld [smem:[#allocation3 + %s642_s10]]  ;;  %v306_v0 = vld [vmem:[%s695_s4] sm:$0xff]  ;;  %vm310_vm0 = vcmask 64512   ;;  %v307_v7 = vld [vmem:[%s695_s4 + $0x8] sm:$0xff]  ;;  %p289_p12 = scmp.lt.s32.totalorder %s642_s10, 31  ;;  %vm392_vm1 = vcmask 523264  }
  0x37   : > { %s283_s18 = sld [smem:[#allocation4 + %s642_s10]]  ;;  %510 = vmatprep.mubr.msk.f32.mxu0 %vm310_vm0, %v306_v0 }
  0x38   : > { %s299_s21 = sld [smem:[#allocation5 + %s642_s10]]  ;;  %s706_s10 = smov (!%p289_p12, %s642_s10), 31 }
  0x39   : > { %s503_s9 = sshll.u32 %s706_s10, 4 }
  0x3a   : > { %s293_s12 = scalar_lea.vmem %s697_s6, %s503_s9  ;;  %s298_s15 = scalar_lea.vmem %s698_s7, %s503_s9 }
  0x3b   : > { %v309_v8 = vld [vmem:[%s293_s12 + $0x8] sm:$0xff]  ;;  %v308_v9 = vld [vmem:[%s293_s12] sm:$0xff] }
  0x3c   : > { %p278_p10 = scmp.lt.s32.totalorder %s277_s17, 15 }
  0x3d   : > { %p284_p11 = scmp.lt.s32.totalorder %s283_s18, 15 }
  0x3e   : > { %s702_s17 = smov (!%p278_p10, %s277_s17), 15  ;;  %v303_v3 = vstv %s299_s21 }
  0x3f   : > { %s704_s18 = smov (!%p284_p11, %s283_s18), 15  ;;  %s493_s22 = sshll.u32 %s702_s17, 3 }
  0x40   : > { %s281_s25 = scalar_lea.vmem %s693_s2, %s493_s22  ;;  %s494_s26 = sshll.u32 %s704_s18, 3 }
  0x41   : > { %s287_s29 = scalar_lea.vmem %s694_s3, %s494_s26  ;;  %v300_v1 = vld [vmem:[%s281_s25] sm:$0xff] }
  0x42   : > { %v301_v2 = vld [vmem:[%s287_s29] sm:$0xff] }
  0x43   : > { %v302_v4 = vsub.f32 %v301_v2, %v300_v1 }
  0x45   : > { %v304_v5 = vmul.f32 %v303_v3, %v302_v4 }
  0x47   : > { %v305_v6 = vadd.f32 %v304_v5, %v300_v1 }
  0x49   : > { %508 = vmatprep.subr.mxu0 %v305_v6 }
  0x4a   : > { %509 = vmatpush3.msra.mxu0 %v305_v6 }
  0x4b   : > { %511 = vmatmul.mubr.msk.f32.vlgmr.msra.gmra.mrb[0].mxu0 %vm310_vm0, %v307_v7 }
 0x11e   : > { %v512_v10 = vpop.f32.mrb[0].mxu0 }
 0x11f   : > { %v389_v11 = vadd.f32 %v512_v10, %v309_v8  ;;  %v383_v12 = vpop.f32.mrb[1].mxu0 }
 0x120   : > { %v384_v13 = vadd.f32 %v383_v12, %v308_v9 }
 0x121   : > { %394 = vst.msk [vmem:[%s298_s15 + $0x8] sm:$0xff] %vm392_vm1, %v389_v11 }
 0x122   : > { %393 = vst.msk [vmem:[%s298_s15] sm:$0xff] %vm392_vm1, %v384_v13 }
 0x123 PF: > { %s28_s1 = sadd.s32 1, %s585_s1  }
 0x124   : > { %p25_p13 = scmp.ge.s32.totalorder %s28_s1, 34  }
 0x126   :  { %27 = sbr.rel (!%p25_p13) target bundleno = 26 (0x1a), region = 81 }
 0x12d   :  { %416 = vsyncpa [#allocation6], 1 }
 0x12e   :  { %418 = vsyncpa [#allocation6 + $0x1], 1 }

// kernel: encoder_forward.184
= control target key start
LH: loop header
LB: loop body
LE: loop exit
PB: predicated region body
PF: predicated region fallthrough
CT: control target
= control target key end

     0   :  { %s1022_s1 = inlined_call_operand.vmem [shape: bf16[640,128], index: 1, kind: input, shape index: {}]   ;;  %s1023_s0 = inlined_call_operand.vmem [shape: bf16[32,640], index: 0, kind: input, shape index: {}]   ;;  %s1024_s2 = inlined_call_operand.vmem [shape: f32[1,128], index: 2, kind: input, shape index: {}]   ;;  %s1025_s3 = inlined_call_operand.vmem [shape: f32[1,128], index: 3, kind: input, shape index: {}]   ;;  %s1026_s4 = inlined_call_operand.vmem [shape: f32[1,128], index: 4, kind: input, shape index: {}]   ;;  %s1027_s5 = inlined_call_operand.vmem [shape: f32[32,128], index: 5, kind: output, shape index: {}]  }
   0x1   :  { %v767_v0 = vld [vmem:[%s1022_s1 + $0x40] sm:$0xff]   ;;  %v771_v4 = vld [vmem:[%s1022_s1 + $0x48] sm:$0xff]   ;;  %v775_v8 = vld [vmem:[%s1022_s1 + $0x50] sm:$0xff]  }
   0x2   :  { %v768_v1 = vld [vmem:[%s1022_s1 + $0xc0] sm:$0xff]   ;;  %681 = vmatprep.subr.bf16.mxu0 %v767_v0  ;;  %v772_v5 = vld [vmem:[%s1022_s1 + $0xc8] sm:$0xff]   ;;  %v776_v9 = vld [vmem:[%s1022_s1 + $0xd0] sm:$0xff]  }
   0x3   :  { %v769_v2 = vld [vmem:[%s1022_s1] sm:$0xff]   ;;  %709 = vmatprep.subr.bf16.mxu1 %v768_v1  ;;  %v773_v6 = vld [vmem:[%s1022_s1 + $0x8] sm:$0xff]   ;;  %v777_v10 = vld [vmem:[%s1022_s1 + $0x10] sm:$0xff]  }
   0x4   :  { %v770_v3 = vld [vmem:[%s1022_s1 + $0x80] sm:$0xff]   ;;  %682 = vmatpush3.bf16.msra.mxu0 %v769_v2  ;;  %v774_v7 = vld [vmem:[%s1022_s1 + $0x88] sm:$0xff]   ;;  %v778_v11 = vld [vmem:[%s1022_s1 + $0x90] sm:$0xff]  }
   0x5   :  { %710 = vmatpush3.bf16.msra.mxu1 %v770_v3  ;;  %683 = vmatprep.subr.bf16.mxu0 %v771_v4  ;;  %v779_v12 = vld [vmem:[%s1022_s1 + $0x58] sm:$0xff]   ;;  %v783_v16 = vld [vmem:[%s1022_s1 + $0x60] sm:$0xff]   ;;  %v787_v20 = vld [vmem:[%s1022_s1 + $0x68] sm:$0xff]  }
   0x6   :  { %711 = vmatprep.subr.bf16.mxu1 %v772_v5  ;;  %v780_v13 = vld [vmem:[%s1022_s1 + $0xd8] sm:$0xff]   ;;  %v784_v17 = vld [vmem:[%s1022_s1 + $0xe0] sm:$0xff]   ;;  %v788_v21 = vld [vmem:[%s1022_s1 + $0xe8] sm:$0xff]  }
   0x7   :  { %v781_v14 = vld [vmem:[%s1022_s1 + $0x18] sm:$0xff]   ;;  %v785_v18 = vld [vmem:[%s1022_s1 + $0x20] sm:$0xff]   ;;  %v789_v22 = vld [vmem:[%s1022_s1 + $0x28] sm:$0xff]  }
   0x8   :  { %684 = vmatpush3.bf16.msra.mxu0 %v773_v6  ;;  %v782_v15 = vld [vmem:[%s1022_s1 + $0x98] sm:$0xff]   ;;  %v786_v19 = vld [vmem:[%s1022_s1 + $0xa0] sm:$0xff]   ;;  %v790_v23 = vld [vmem:[%s1022_s1 + $0xa8] sm:$0xff]  }
   0x9   :  { %712 = vmatpush3.bf16.msra.mxu1 %v774_v7  ;;  %685 = vmatprep.subr.bf16.mxu0 %v775_v8  ;;  %v791_v24 = vld [vmem:[%s1022_s1 + $0x70] sm:$0xff]   ;;  %v795_v28 = vld [vmem:[%s1022_s1 + $0x78] sm:$0xff]   ;;  %v804_v35 = vld [vmem:[%s1023_s0 + $0xc] ss:$20 sps:$4 sm:$0xff]  }
   0xa   :  { %713 = vmatprep.subr.bf16.mxu1 %v776_v9  ;;  %v792_v25 = vld [vmem:[%s1022_s1 + $0xf0] sm:$0xff]   ;;  %v796_v29 = vld [vmem:[%s1022_s1 + $0xf8] sm:$0xff]   ;;  %v805_v36 = vld [vmem:[%s1022_s1 + $0x100] sm:$0xff]   ;;  %498 = vmatprep.mubr.bf16.mxu1 %v804_v35 }
   0xb   :  { %v793_v26 = vld [vmem:[%s1022_s1 + $0x30] sm:$0xff]   ;;  %v797_v30 = vld [vmem:[%s1022_s1 + $0x38] sm:$0xff]   ;;  %v806_v37 = vld [vmem:[%s1022_s1 + $0x108] sm:$0xff]  }
   0xc   :  { %686 = vmatpush3.bf16.msra.mxu0 %v777_v10  ;;  %v794_v27 = vld [vmem:[%s1022_s1 + $0xb0] sm:$0xff]   ;;  %v798_v31 = vld [vmem:[%s1022_s1 + $0xb8] sm:$0xff]   ;;  %v810_v39 = vld [vmem:[%s1023_s0 + $0x2c] ss:$20 sps:$4 sm:$0xff]  }
   0xd   :  { %714 = vmatpush3.bf16.msra.mxu1 %v778_v11  ;;  %687 = vmatprep.subr.bf16.mxu0 %v779_v12  ;;  %v799_v32 = vld [vmem:[%s1023_s0] ss:$20 sps:$4 sm:$0xff]   ;;  %v801_v33 = vld [vmem:[%s1023_s0 + $0x4] ss:$20 sps:$4 sm:$0xff]   ;;  %v802_v34 = vld [vmem:[%s1023_s0 + $0x8] ss:$20 sps:$4 sm:$0xff]  }
   0xe   :  { %715 = vmatprep.subr.bf16.mxu1 %v780_v13  ;;  %449 = vmatprep.mubr.bf16.mxu0 %v801_v33  ;;  %v807_v38 = vld [vmem:[%s1022_s1 + $0x110] sm:$0xff]   ;;  %v808_v41 = vld [vmem:[%s1022_s1 + $0x118] sm:$0xff]   ;;  %v809_v45 = vld [vmem:[%s1022_s1 + $0x120] sm:$0xff]  }
   0xf   :  { %v812_v40 = vld [vmem:[%s1023_s0 + $0x34] ss:$20 sps:$4 sm:$0xff]   ;;  %v816_v43 = vld [vmem:[%s1023_s0 + $0x30] ss:$20 sps:$4 sm:$0xff]   ;;  %v818_v48 = vld [vmem:[%s1022_s1 + $0x138] sm:$0xff]  }
  0x10   :  { %688 = vmatpush3.bf16.msra.mxu0 %v781_v14  ;;  %v815_v42 = vld [vmem:[%s1023_s0 + $0x28] ss:$20 sps:$4 sm:$0xff]   ;;  %v819_v44 = vld [vmem:[%s1023_s0 + $0x10] ss:$20 sps:$4 sm:$0xff]   ;;  %v820_v49 = vld [vmem:[%s1023_s0 + $0x38] ss:$20 sps:$4 sm:$0xff]  }
  0x11   :  { %716 = vmatpush3.bf16.msra.mxu1 %v782_v15  ;;  %689 = vmatprep.subr.bf16.mxu0 %v783_v16  ;;  %v814_v46 = vld [vmem:[%s1022_s1 + $0x128] sm:$0xff]   ;;  %v817_v47 = vld [vmem:[%s1022_s1 + $0x130] sm:$0xff]   ;;  %v678_v15 = vld [vmem:[%s1024_s2] ss:$0 sm:$0xff] }
  0x12   :  { %717 = vmatprep.subr.bf16.mxu1 %v784_v17 }
  0x14   :  { %690 = vmatpush3.bf16.msra.mxu0 %v785_v18  ;;  %v679_v18 = vld [vmem:[%s1025_s3] ss:$0 sm:$0xff] }
  0x15   :  { %718 = vmatpush3.bf16.msra.mxu1 %v786_v19  ;;  %691 = vmatprep.subr.bf16.mxu0 %v787_v20 }
  0x16   :  { %719 = vmatprep.subr.bf16.mxu1 %v788_v21 }
  0x18   :  { %692 = vmatpush3.bf16.msra.mxu0 %v789_v22 }
  0x19   :  { %720 = vmatpush3.bf16.msra.mxu1 %v790_v23  ;;  %693 = vmatprep.subr.bf16.mxu0 %v791_v24  ;;  %v680_v24 = vld [vmem:[%s1026_s4] ss:$0 sm:$0xff] }
  0x1a   :  { %721 = vmatprep.subr.bf16.mxu1 %v792_v25 }
  0x1c   :  { %694 = vmatpush3.bf16.msra.mxu0 %v793_v26 }
  0x1d   :  { %722 = vmatpush3.bf16.msra.mxu1 %v794_v27  ;;  %695 = vmatprep.subr.bf16.mxu0 %v795_v28 }
  0x1e   :  { %723 = vmatprep.subr.bf16.mxu1 %v796_v29 }
  0x20   :  { %696 = vmatpush3.bf16.msra.mxu0 %v797_v30 }
  0x21   :  { %724 = vmatpush3.bf16.msra.mxu1 %v798_v31  ;;  %747 = vmatprep.subr.bf16.mxu0 %v805_v36 }
  0x23   :  { %450 = vmatmul.mubr.bf16.vlgmr.msra.gmra.mrb[0].mxu0 %v799_v32 }
  0x24   :  { %499 = vmatmul.mubr.bf16.vlgmr.msra.gmra.mrb[0].mxu1 %v802_v34  ;;  %748 = vmatpush3.bf16.msra.mxu0 %v805_v36 }
  0x25   :  { %749 = vmatprep.subr.bf16.mxu0 %v806_v37  ;;  %457 = vmatprep.mubr.bf16.mxu0 %v810_v39 }
  0x26   :  { %506 = vmatprep.mubr.bf16.mxu1 %v812_v40 }
  0x28   :  { %750 = vmatpush3.bf16.msra.mxu0 %v806_v37 }
  0x29   :  { %751 = vmatprep.subr.bf16.mxu0 %v807_v38 }
  0x2b   :  { %458 = vmatmul.mubr.bf16.gmra.mrb[4].mxu0 %v815_v42 }
  0x2c   :  { %507 = vmatmul.mubr.bf16.gmra.mrb[4].mxu1 %v816_v43  ;;  %752 = vmatpush3.bf16.msra.mxu0 %v807_v38 }
  0x2d   :  { %753 = vmatprep.subr.bf16.mxu0 %v808_v41  ;;  %763 = vmatprep.mubr.bf16.mxu0 %v819_v44 }
  0x30   :  { %754 = vmatpush3.bf16.msra.mxu0 %v808_v41 }
  0x31   :  { %755 = vmatprep.subr.bf16.mxu0 %v809_v45 }
  0x34   :  { %756 = vmatpush3.bf16.msra.mxu0 %v809_v45 }
  0x35   :  { %757 = vmatprep.subr.bf16.mxu0 %v814_v46 }
  0x38   :  { %758 = vmatpush3.bf16.msra.mxu0 %v814_v46 }
  0x39   :  { %759 = vmatprep.subr.bf16.mxu0 %v817_v47 }
  0x3c   :  { %760 = vmatpush3.bf16.msra.mxu0 %v817_v47 }
  0x3d   :  { %761 = vmatprep.subr.bf16.mxu0 %v818_v48 }
  0x40   :  { %762 = vmatpush3.bf16.msra.mxu0 %v818_v48 }
  0x43   :  { %764 = vmatmul.mubr.bf16.vlgmr.msra.gmra.mrb[8].mxu0 %v820_v49 }
  0xf6   :  { %v697_v50 = vpop.f32.mrb[0].mxu0 }
  0xf7   :  { %v725_v51 = vpop.f32.mrb[0].mxu1  ;;  %v698_v52 = vpop.f32.mrb[1].mxu0 }
  0xf8   :  { %v699_v53 = vadd.f32 %v698_v52, %v697_v50  ;;  %v726_v54 = vpop.f32.mrb[1].mxu1  ;;  %v700_v55 = vpop.f32.mrb[2].mxu0 }
  0xf9   :  { %v727_v56 = vadd.f32 %v726_v54, %v725_v51  ;;  %v728_v57 = vpop.f32.mrb[2].mxu1  ;;  %v701_v58 = vpop.f32.mrb[3].mxu0 }
  0xfa   :  { %v702_v59 = vadd.f32 %v701_v58, %v700_v55  ;;  %v729_v60 = vpop.f32.mrb[3].mxu1 }
  0xfb   :  { %v730_v61 = vadd.f32 %v729_v60, %v728_v57  ;;  %v501_v62 = vadd.f32 %v727_v56, %v699_v53 }
  0xfd   :  { %v504_v63 = vadd.f32 %v730_v61, %v702_v59 }
  0xfe   :  { %v703_v0 = vpop.f32.mrb[4].mxu0 }
  0xff   :  { %v731_v1 = vpop.f32.mrb[4].mxu1  ;;  %v704_v2 = vpop.f32.mrb[5].mxu0 }
 0x100   :  { %v705_v3 = vadd.f32 %v704_v2, %v703_v0  ;;  %v732_v4 = vpop.f32.mrb[5].mxu1  ;;  %v706_v5 = vpop.f32.mrb[6].mxu0 }
 0x101   :  { %v733_v6 = vadd.f32 %v732_v4, %v731_v1  ;;  %v734_v7 = vpop.f32.mrb[6].mxu1  ;;  %v707_v8 = vpop.f32.mrb[7].mxu0 }
 0x102   :  { %v708_v9 = vadd.f32 %v707_v8, %v706_v5  ;;  %v735_v10 = vpop.f32.mrb[7].mxu1 }
 0x103   :  { %v736_v11 = vadd.f32 %v735_v10, %v734_v7  ;;  %v509_v12 = vadd.f32 %v733_v6, %v705_v3 }
 0x105   :  { %v512_v13 = vadd.f32 %v736_v11, %v708_v9 }
 0x116   :  { %v765_v14 = vpop.f32.mrb[8].mxu0 }
 0x117   :  { %v558_v16 = vadd.f32 %v765_v14, %v509_v12  ;;  %v549_v17 = vpop.f32.mrb[9].mxu0 }
 0x118   :  { %v550_v19 = vadd.f32 %v549_v17, %v501_v62  ;;  %v766_v20 = vpop.f32.mrb[10].mxu0 }
 0x119   :  { %v588_v21 = vmul.f32 %v678_v15, %v558_v16  ;;  %v561_v22 = vadd.f32 %v766_v20, %v512_v13  ;;  %v552_v23 = vpop.f32.mrb[11].mxu0 }
 0x11a   :  { %v586_v25 = vmul.f32 %v678_v15, %v550_v19  ;;  %v553_v26 = vadd.f32 %v552_v23, %v504_v63 }
 0x11b   :  { %v599_v27 = vadd.f32 %v679_v18, %v588_v21  ;;  %v589_v28 = vmul.f32 %v678_v15, %v561_v22 }
 0x11c   :  { %v597_v29 = vadd.f32 %v679_v18, %v586_v25  ;;  %v587_v30 = vmul.f32 %v678_v15, %v553_v26 }
 0x11d   :  { %vm603_vm0 = vcmp.ge.f32.partialorder %v599_v27, 0.0  ;;  %v614_v31 = vmul.f32 %v680_v24, %v599_v27  ;;  %v600_v32 = vadd.f32 %v679_v18, %v589_v28 }
 0x11e   :  { %vm601_vm1 = vcmp.ge.f32.partialorder %v597_v29, 0.0  ;;  %v612_v33 = vmul.f32 %v680_v24, %v597_v29  ;;  %v598_v34 = vadd.f32 %v679_v18, %v587_v30 }
 0x11f   :  { %v618_v35 = vsel %vm603_vm0, %v599_v27, %v614_v31  ;;  %vm604_vm2 = vcmp.ge.f32.partialorder %v600_v32, 0.0  ;;  %v615_v36 = vmul.f32 %v680_v24, %v600_v32 }
 0x120   :  { %622 = vst [vmem:[%s1027_s5 + $0x10] sm:$0xff] %v618_v35  ;;  %v616_v37 = vsel %vm601_vm1, %v597_v29, %v612_v33  ;;  %vm602_vm3 = vcmp.ge.f32.partialorder %v598_v34, 0.0  ;;  %v613_v38 = vmul.f32 %v680_v24, %v598_v34 }
 0x121   :  { %620 = vst [vmem:[%s1027_s5] sm:$0xff] %v616_v37  ;;  %v619_v39 = vsel %vm604_vm2, %v600_v32, %v615_v36 }
 0x122   :  { %623 = vst [vmem:[%s1027_s5 + $0x18] sm:$0xff] %v619_v39  ;;  %v617_v40 = vsel %vm602_vm3, %v598_v34, %v613_v38 }
 0x123   :  { %621 = vst [vmem:[%s1027_s5 + $0x8] sm:$0xff] %v617_v40 }

// kernel: encoder_forward.267
= control target key start
LH: loop header
LB: loop body
LE: loop exit
PB: predicated region body
PF: predicated region fallthrough
CT: control target
= control target key end

     0   :  { %s1888_s1 = inlined_call_operand.vmem [shape: bf16[640,128], index: 1, kind: input, shape index: {}]   ;;  %s1889_s0 = inlined_call_operand.vmem [shape: bf16[128,640], index: 0, kind: input, shape index: {}]   ;;  %s1890_s2 = inlined_call_operand.vmem [shape: f32[1,128], index: 2, kind: input, shape index: {}]   ;;  %s1891_s3 = inlined_call_operand.vmem [shape: f32[1,128], index: 3, kind: input, shape index: {}]   ;;  %s1892_s4 = inlined_call_operand.vmem [shape: f32[1,128], index: 4, kind: input, shape index: {}]   ;;  %s1893_s5 = inlined_call_operand.vmem [shape: f32[128,128], index: 5, kind: output, shape index: {}]  }
   0x1   :  { %v1371_v0 = vld [vmem:[%s1888_s1 + $0x40] sm:$0xff]   ;;  %v1375_v4 = vld [vmem:[%s1888_s1 + $0x48] sm:$0xff]   ;;  %v1379_v8 = vld [vmem:[%s1888_s1 + $0x50] sm:$0xff]  }
   0x2   :  { %v1372_v1 = vld [vmem:[%s1888_s1 + $0xc0] sm:$0xff]   ;;  %1179 = vmatprep.subr.bf16.mxu0 %v1371_v0  ;;  %v1376_v5 = vld [vmem:[%s1888_s1 + $0xc8] sm:$0xff]   ;;  %v1380_v9 = vld [vmem:[%s1888_s1 + $0xd0] sm:$0xff]  }
   0x3   :  { %v1373_v2 = vld [vmem:[%s1888_s1] sm:$0xff]   ;;  %1243 = vmatprep.subr.bf16.mxu1 %v1372_v1  ;;  %v1377_v6 = vld [vmem:[%s1888_s1 + $0x8] sm:$0xff]   ;;  %v1381_v10 = vld [vmem:[%s1888_s1 + $0x10] sm:$0xff]  }
   0x4   :  { %v1374_v3 = vld [vmem:[%s1888_s1 + $0x80] sm:$0xff]   ;;  %1180 = vmatpush3.bf16.msra.mxu0 %v1373_v2  ;;  %v1378_v7 = vld [vmem:[%s1888_s1 + $0x88] sm:$0xff]   ;;  %v1382_v11 = vld [vmem:[%s1888_s1 + $0x90] sm:$0xff]  }
   0x5   :  { %1244 = vmatpush3.bf16.msra.mxu1 %v1374_v3  ;;  %1181 = vmatprep.subr.bf16.mxu0 %v1375_v4  ;;  %v1383_v12 = vld [vmem:[%s1888_s1 + $0x58] sm:$0xff]   ;;  %v1387_v16 = vld [vmem:[%s1888_s1 + $0x60] sm:$0xff]   ;;  %v1391_v20 = vld [vmem:[%s1888_s1 + $0x68] sm:$0xff]  }
   0x6   :  { %1245 = vmatprep.subr.bf16.mxu1 %v1376_v5  ;;  %v1384_v13 = vld [vmem:[%s1888_s1 + $0xd8] sm:$0xff]   ;;  %v1388_v17 = vld [vmem:[%s1888_s1 + $0xe0] sm:$0xff]   ;;  %v1392_v21 = vld [vmem:[%s1888_s1 + $0xe8] sm:$0xff]  }
   0x7   :  { %v1385_v14 = vld [vmem:[%s1888_s1 + $0x18] sm:$0xff]   ;;  %v1389_v18 = vld [vmem:[%s1888_s1 + $0x20] sm:$0xff]   ;;  %v1393_v22 = vld [vmem:[%s1888_s1 + $0x28] sm:$0xff]  }
   0x8   :  { %1182 = vmatpush3.bf16.msra.mxu0 %v1377_v6  ;;  %v1386_v15 = vld [vmem:[%s1888_s1 + $0x98] sm:$0xff]   ;;  %v1390_v19 = vld [vmem:[%s1888_s1 + $0xa0] sm:$0xff]   ;;  %v1394_v23 = vld [vmem:[%s1888_s1 + $0xa8] sm:$0xff]  }
   0x9   :  { %1246 = vmatpush3.bf16.msra.mxu1 %v1378_v7  ;;  %1183 = vmatprep.subr.bf16.mxu0 %v1379_v8  ;;  %v1395_v24 = vld [vmem:[%s1888_s1 + $0x70] sm:$0xff]   ;;  %v1399_v28 = vld [vmem:[%s1888_s1 + $0x78] sm:$0xff]   ;;  %v1408_v35 = vld [vmem:[%s1889_s0 + $0xc] ss:$20 sps:$4 sm:$0xff]  }
   0xa   :  { %1247 = vmatprep.subr.bf16.mxu1 %v1380_v9  ;;  %v1396_v25 = vld [vmem:[%s1888_s1 + $0xf0] sm:$0xff]   ;;  %v1400_v29 = vld [vmem:[%s1888_s1 + $0xf8] sm:$0xff]   ;;  %v1409_v36 = vld [vmem:[%s1888_s1 + $0x100] sm:$0xff]   ;;  %762 = vmatprep.mubr.bf16.mxu1 %v1408_v35 }
   0xb   :  { %v1397_v26 = vld [vmem:[%s1888_s1 + $0x30] sm:$0xff]   ;;  %v1401_v30 = vld [vmem:[%s1888_s1 + $0x38] sm:$0xff]   ;;  %v1410_v37 = vld [vmem:[%s1889_s0 + $0x2c] ss:$20 sps:$4 sm:$0xff]  }
   0xc   :  { %1184 = vmatpush3.bf16.msra.mxu0 %v1381_v10  ;;  %v1398_v27 = vld [vmem:[%s1888_s1 + $0xb0] sm:$0xff]   ;;  %v1402_v31 = vld [vmem:[%s1888_s1 + $0xb8] sm:$0xff]   ;;  %v1416_v39 = vld [vmem:[%s1888_s1 + $0x108] sm:$0xff]  }
   0xd   :  { %1248 = vmatpush3.bf16.msra.mxu1 %v1382_v11  ;;  %1185 = vmatprep.subr.bf16.mxu0 %v1383_v12  ;;  %v1403_v32 = vld [vmem:[%s1889_s0] ss:$20 sps:$4 sm:$0xff]   ;;  %v1405_v33 = vld [vmem:[%s1889_s0 + $0x4] ss:$20 sps:$4 sm:$0xff]   ;;  %v1406_v34 = vld [vmem:[%s1889_s0 + $0x8] ss:$20 sps:$4 sm:$0xff]  }
   0xe   :  { %1249 = vmatprep.subr.bf16.mxu1 %v1384_v13  ;;  %665 = vmatprep.mubr.bf16.mxu0 %v1405_v33  ;;  %v1412_v38 = vld [vmem:[%s1889_s0 + $0x34] ss:$20 sps:$4 sm:$0xff]   ;;  %v1415_v41 = vld [vmem:[%s1889_s0 + $0x30] ss:$20 sps:$4 sm:$0xff]   ;;  %v1430_v45 = vld [vmem:[%s1888_s1 + $0x118] sm:$0xff]  }
   0xf   :  { %v1414_v40 = vld [vmem:[%s1889_s0 + $0x28] ss:$20 sps:$4 sm:$0xff]   ;;  %v1423_v44 = vld [vmem:[%s1888_s1 + $0x110] sm:$0xff]   ;;  %v1422_v47 = vld [vmem:[%s1889_s0 + $0x58] ss:$20 sps:$4 sm:$0xff]  }
  0x10   :  { %1186 = vmatpush3.bf16.msra.mxu0 %v1385_v14  ;;  %v1417_v42 = vld [vmem:[%s1889_s0 + $0x54] ss:$20 sps:$4 sm:$0xff]   ;;  %v1419_v43 = vld [vmem:[%s1889_s0 + $0x5c] ss:$20 sps:$4 sm:$0xff]   ;;  %v1426_v49 = vld [vmem:[%s1889_s0 + $0x84] ss:$20 sps:$4 sm:$0xff]  }
  0x11   :  { %1250 = vmatpush3.bf16.msra.mxu1 %v1386_v15  ;;  %1187 = vmatprep.subr.bf16.mxu0 %v1387_v16  ;;  %v1421_v46 = vld [vmem:[%s1889_s0 + $0x50] ss:$20 sps:$4 sm:$0xff]   ;;  %v1444_v51 = vld [vmem:[%s1888_s1 + $0x128] sm:$0xff]   ;;  %v1429_v53 = vld [vmem:[%s1889_s0 + $0x80] ss:$20 sps:$4 sm:$0xff]  }
  0x12   :  { %1251 = vmatprep.subr.bf16.mxu1 %v1388_v17  ;;  %v1424_v48 = vld [vmem:[%s1889_s0 + $0x7c] ss:$20 sps:$4 sm:$0xff]   ;;  %v1437_v50 = vld [vmem:[%s1888_s1 + $0x120] sm:$0xff]   ;;  %v1428_v52 = vld [vmem:[%s1889_s0 + $0x78] ss:$20 sps:$4 sm:$0xff]  }
  0x13   :  { %v1431_v54 = vld [vmem:[%s1889_s0 + $0xa4] ss:$20 sps:$4 sm:$0xff]   ;;  %v1451_v55 = vld [vmem:[%s1888_s1 + $0x130] sm:$0xff]   ;;  %v1433_v56 = vld [vmem:[%s1889_s0 + $0xac] ss:$20 sps:$4 sm:$0xff]  }
  0x14   :  { %1188 = vmatpush3.bf16.msra.mxu0 %v1389_v18  ;;  %v1458_v57 = vld [vmem:[%s1888_s1 + $0x138] sm:$0xff]   ;;  %v1435_v58 = vld [vmem:[%s1889_s0 + $0xa0] ss:$20 sps:$4 sm:$0xff]   ;;  %v1443_v63 = vld [vmem:[%s1889_s0 + $0xd0] ss:$20 sps:$4 sm:$0xff]  }
  0x15   :  { %1252 = vmatpush3.bf16.msra.mxu1 %v1390_v19  ;;  %1189 = vmatprep.subr.bf16.mxu0 %v1391_v20  ;;  %v1436_v59 = vld [vmem:[%s1889_s0 + $0xa8] ss:$20 sps:$4 sm:$0xff]   ;;  %v1438_v60 = vld [vmem:[%s1889_s0 + $0xcc] ss:$20 sps:$4 sm:$0xff]   ;;  %v1449_v2 = vld [vmem:[%s1889_s0 + $0xf0] ss:$20 sps:$4 sm:$0xff]  }
  0x16   :  { %1253 = vmatprep.subr.bf16.mxu1 %v1392_v21  ;;  %v1440_v61 = vld [vmem:[%s1889_s0 + $0xd4] ss:$20 sps:$4 sm:$0xff]   ;;  %v1447_v1 = vld [vmem:[%s1889_s0 + $0xfc] ss:$20 sps:$4 sm:$0xff]   ;;  %v1450_v3 = vld [vmem:[%s1889_s0 + $0xf8] ss:$20 sps:$4 sm:$0xff]  }
  0x17   :  { %v1442_v62 = vld [vmem:[%s1889_s0 + $0xc8] ss:$20 sps:$4 sm:$0xff]   ;;  %v1454_v5 = vld [vmem:[%s1889_s0 + $0x124] ss:$20 sps:$4 sm:$0xff]   ;;  %v1457_v7 = vld [vmem:[%s1889_s0 + $0x120] ss:$20 sps:$4 sm:$0xff]  }
  0x18   :  { %1190 = vmatpush3.bf16.msra.mxu0 %v1393_v22  ;;  %v1445_v0 = vld [vmem:[%s1889_s0 + $0xf4] ss:$20 sps:$4 sm:$0xff]   ;;  %v1452_v4 = vld [vmem:[%s1889_s0 + $0x11c] ss:$20 sps:$4 sm:$0xff]   ;;  %v1456_v6 = vld [vmem:[%s1889_s0 + $0x118] ss:$20 sps:$4 sm:$0xff]  }
  0x19   :  { %1254 = vmatpush3.bf16.msra.mxu1 %v1394_v23  ;;  %1191 = vmatprep.subr.bf16.mxu0 %v1395_v24  ;;  %v1459_v8 = vld [vmem:[%s1889_s0 + $0x10] ss:$20 sps:$4 sm:$0xff]   ;;  %v1461_v10 = vld [vmem:[%s1889_s0 + $0x38] ss:$20 sps:$4 sm:$0xff]   ;;  %v1463_v12 = vld [vmem:[%s1889_s0 + $0x60] ss:$20 sps:$4 sm:$0xff]  }
  0x1a   :  { %1255 = vmatprep.subr.bf16.mxu1 %v1396_v25  ;;  %v1460_v9 = vld [vmem:[%s1889_s0 + $0xb0] ss:$20 sps:$4 sm:$0xff]   ;;  %v1462_v11 = vld [vmem:[%s1889_s0 + $0xd8] ss:$20 sps:$4 sm:$0xff]   ;;  %v1464_v13 = vld [vmem:[%s1889_s0 + $0x100] ss:$20 sps:$4 sm:$0xff]  }
  0x1b   :  { %v1465_v14 = vld [vmem:[%s1889_s0 + $0x88] ss:$20 sps:$4 sm:$0xff]  }
  0x1c   :  { %1192 = vmatpush3.bf16.msra.mxu0 %v1397_v26  ;;  %v1466_v15 = vld [vmem:[%s1889_s0 + $0x128] ss:$20 sps:$4 sm:$0xff]  }
  0x1d   :  { %1256 = vmatpush3.bf16.msra.mxu1 %v1398_v27  ;;  %1193 = vmatprep.subr.bf16.mxu0 %v1399_v28 }
  0x1e   :  { %1257 = vmatprep.subr.bf16.mxu1 %v1400_v29 }
  0x20   :  { %1194 = vmatpush3.bf16.msra.mxu0 %v1401_v30 }
  0x21   :  { %1258 = vmatpush3.bf16.msra.mxu1 %v1402_v31  ;;  %1323 = vmatprep.subr.bf16.mxu0 %v1409_v36 }
  0x22   :  { %1355 = vmatprep.subr.bf16.mxu1 %v1409_v36 }
  0x23   :  { %666 = vmatmul.mubr.bf16.vlgmr.msra.gmra.mrb[0].mxu0 %v1403_v32 }
  0x24   :  { %763 = vmatmul.mubr.bf16.vlgmr.msra.gmra.mrb[0].mxu1 %v1406_v34  ;;  %1324 = vmatpush3.bf16.msra.mxu0 %v1409_v36 }
  0x25   :  { %1363 = vmatpush3.bf16.msra.mxu1 %v1409_v36  ;;  %673 = vmatprep.mubr.bf16.mxu0 %v1410_v37 }
  0x26   :  { %770 = vmatprep.mubr.bf16.mxu1 %v1412_v38  ;;  %1325 = vmatprep.subr.bf16.mxu0 %v1416_v39 }
  0x27   :  { %1356 = vmatprep.subr.bf16.mxu1 %v1416_v39 }
  0x28   :  { %1326 = vmatpush3.bf16.msra.mxu0 %v1416_v39 }
  0x29   :  { %1364 = vmatpush3.bf16.msra.mxu1 %v1416_v39  ;;  %1327 = vmatprep.subr.bf16.mxu0 %v1423_v44 }
  0x2a   :  { %1357 = vmatprep.subr.bf16.mxu1 %v1423_v44 }
  0x2b   :  { %674 = vmatmul.mubr.bf16.gmra.mrb[4].mxu0 %v1414_v40 }
  0x2c   :  { %771 = vmatmul.mubr.bf16.gmra.mrb[4].mxu1 %v1415_v41  ;;  %681 = vmatprep.mubr.bf16.mxu0 %v1417_v42 }
  0x2d   :  { %778 = vmatprep.mubr.bf16.mxu1 %v1419_v43  ;;  %1328 = vmatpush3.bf16.msra.mxu0 %v1423_v44 }
  0x2e   :  { %1365 = vmatpush3.bf16.msra.mxu1 %v1423_v44  ;;  %1329 = vmatprep.subr.bf16.mxu0 %v1430_v45 }
  0x2f   :  { %1358 = vmatprep.subr.bf16.mxu1 %v1430_v45 }
  0x31   :  { %1330 = vmatpush3.bf16.msra.mxu0 %v1430_v45 }
  0x32   :  { %1366 = vmatpush3.bf16.msra.mxu1 %v1430_v45  ;;  %1331 = vmatprep.subr.bf16.mxu0 %v1437_v50 }
  0x33   :  { %682 = vmatmul.mubr.bf16.gmra.mrb[8].mxu0 %v1421_v46  ;;  %1359 = vmatprep.subr.bf16.mxu1 %v1437_v50 }
  0x34   :  { %779 = vmatmul.mubr.bf16.gmra.mrb[8].mxu1 %v1422_v47  ;;  %689 = vmatprep.mubr.bf16.mxu0 %v1424_v48 }
  0x35   :  { %786 = vmatprep.mubr.bf16.mxu1 %v1426_v49  ;;  %1332 = vmatpush3.bf16.msra.mxu0 %v1437_v50 }
  0x36   :  { %1367 = vmatpush3.bf16.msra.mxu1 %v1437_v50  ;;  %1333 = vmatprep.subr.bf16.mxu0 %v1444_v51 }
  0x37   :  { %1360 = vmatprep.subr.bf16.mxu1 %v1444_v51 }
  0x39   :  { %1334 = vmatpush3.bf16.msra.mxu0 %v1444_v51 }
  0x3a   :  { %1368 = vmatpush3.bf16.msra.mxu1 %v1444_v51  ;;  %1335 = vmatprep.subr.bf16.mxu0 %v1451_v55 }
  0x3b   :  { %690 = vmatmul.mubr.bf16.gmra.mrb[12].mxu0 %v1428_v52  ;;  %1361 = vmatprep.subr.bf16.mxu1 %v1451_v55 }
  0x3c   :  { %787 = vmatmul.mubr.bf16.gmra.mrb[12].mxu1 %v1429_v53  ;;  %697 = vmatprep.mubr.bf16.mxu0 %v1431_v54 }
  0x3d   :  { %794 = vmatprep.mubr.bf16.mxu1 %v1433_v56  ;;  %1336 = vmatpush3.bf16.msra.mxu0 %v1451_v55 }
  0x3e   :  { %1369 = vmatpush3.bf16.msra.mxu1 %v1451_v55  ;;  %1337 = vmatprep.subr.bf16.mxu0 %v1458_v57 }
  0x3f   :  { %1362 = vmatprep.subr.bf16.mxu1 %v1458_v57 }
  0x41   :  { %1338 = vmatpush3.bf16.msra.mxu0 %v1458_v57 }
  0x42   :  { %1370 = vmatpush3.bf16.msra.mxu1 %v1458_v57 }
  0x43   :  { %698 = vmatmul.mubr.bf16.gmra.mrb[16].mxu0 %v1435_v58 }
  0x44   :  { %795 = vmatmul.mubr.bf16.gmra.mrb[16].mxu1 %v1436_v59  ;;  %705 = vmatprep.mubr.bf16.mxu0 %v1438_v60 }
  0x45   :  { %802 = vmatprep.mubr.bf16.mxu1 %v1440_v61 }
  0x4b   :  { %706 = vmatmul.mubr.bf16.gmra.mrb[20].mxu0 %v1442_v62 }
  0x4c   :  { %803 = vmatmul.mubr.bf16.gmra.mrb[20].mxu1 %v1443_v63  ;;  %713 = vmatprep.mubr.bf16.mxu0 %v1445_v0 }
  0x4d   :  { %810 = vmatprep.mubr.bf16.mxu1 %v1447_v1 }
  0x53   :  { %714 = vmatmul.mubr.bf16.gmra.mrb[24].mxu0 %v1449_v2 }
  0x54   :  { %811 = vmatmul.mubr.bf16.gmra.mrb[24].mxu1 %v1450_v3  ;;  %721 = vmatprep.mubr.bf16.mxu0 %v1452_v4 }
  0x55   :  { %818 = vmatprep.mubr.bf16.mxu1 %v1454_v5 }
  0x5b   :  { %722 = vmatmul.mubr.bf16.gmra.mrb[28].mxu0 %v1456_v6 }
  0x5c   :  { %819 = vmatmul.mubr.bf16.gmra.mrb[28].mxu1 %v1457_v7  ;;  %1339 = vmatprep.mubr.bf16.mxu0 %v1459_v8 }
  0x5d   :  { %1347 = vmatprep.mubr.bf16.mxu1 %v1460_v9 }
  0x63   :  { %1340 = vmatmul.mubr.bf16.vlgmr.msra.gmra.mrb[32].mxu0 %v1461_v10 }
  0x64   :  { %1348 = vmatmul.mubr.bf16.vlgmr.msra.gmra.mrb[32].mxu1 %v1462_v11  ;;  %1343 = vmatprep.mubr.bf16.mxu0 %v1463_v12 }
  0x65   :  { %1351 = vmatprep.mubr.bf16.mxu1 %v1464_v13 }
  0x6b   :  { %1344 = vmatmul.mubr.bf16.gmra.mrb[36].mxu0 %v1465_v14 }
  0x6c   :  { %1352 = vmatmul.mubr.bf16.gmra.mrb[36].mxu1 %v1466_v15 }
  0xf6   :  { %v1195_v16 = vpop.f32.mrb[0].mxu0 }
  0xf7   :  { %v1259_v17 = vpop.f32.mrb[0].mxu1  ;;  %v1196_v18 = vpop.f32.mrb[1].mxu0 }
  0xf8   :  { %v1197_v19 = vadd.f32 %v1196_v18, %v1195_v16  ;;  %v1260_v20 = vpop.f32.mrb[1].mxu1  ;;  %v1198_v21 = vpop.f32.mrb[2].mxu0 }
  0xf9   :  { %v1261_v22 = vadd.f32 %v1260_v20, %v1259_v17  ;;  %v1262_v23 = vpop.f32.mrb[2].mxu1  ;;  %v1199_v24 = vpop.f32.mrb[3].mxu0 }
  0xfa   :  { %v1200_v25 = vadd.f32 %v1199_v24, %v1198_v21  ;;  %v1263_v26 = vpop.f32.mrb[3].mxu1 }
  0xfb   :  { %v1264_v27 = vadd.f32 %v1263_v26, %v1262_v23  ;;  %v1737_v28 = vadd.f32 %v1261_v22, %v1197_v19 }
  0xfd   :  { %v1739_v29 = vadd.f32 %v1264_v27, %v1200_v25 }
  0xfe   :  { %v1201_v30 = vpop.f32.mrb[4].mxu0 }
  0xff   :  { %v1265_v31 = vpop.f32.mrb[4].mxu1  ;;  %v1202_v32 = vpop.f32.mrb[5].mxu0 }
 0x100   :  { %v1203_v33 = vadd.f32 %v1202_v32, %v1201_v30  ;;  %v1266_v34 = vpop.f32.mrb[5].mxu1  ;;  %v1204_v35 = vpop.f32.mrb[6].mxu0 }
 0x101   :  { %v1267_v36 = vadd.f32 %v1266_v34, %v1265_v31  ;;  %v1268_v37 = vpop.f32.mrb[6].mxu1  ;;  %v1205_v38 = vpop.f32.mrb[7].mxu0 }
 0x102   :  { %v1206_v39 = vadd.f32 %v1205_v38, %v1204_v35  ;;  %v1269_v40 = vpop.f32.mrb[7].mxu1 }
 0x103   :  { %v1270_v41 = vadd.f32 %v1269_v40, %v1268_v37  ;;  %v1741_v42 = vadd.f32 %v1267_v36, %v1203_v33 }
 0x105   :  { %v1743_v43 = vadd.f32 %v1270_v41, %v1206_v39 }
 0x106   :  { %v1207_v44 = vpop.f32.mrb[8].mxu0 }
 0x107   :  { %v1271_v45 = vpop.f32.mrb[8].mxu1  ;;  %v1208_v46 = vpop.f32.mrb[9].mxu0 }
 0x108   :  { %v1209_v47 = vadd.f32 %v1208_v46, %v1207_v44  ;;  %v1272_v48 = vpop.f32.mrb[9].mxu1  ;;  %v1210_v49 = vpop.f32.mrb[10].mxu0 }
 0x109   :  { %v1273_v50 = vadd.f32 %v1272_v48, %v1271_v45  ;;  %v1274_v51 = vpop.f32.mrb[10].mxu1  ;;  %v1211_v52 = vpop.f32.mrb[11].mxu0 }
 0x10a   :  { %v1212_v53 = vadd.f32 %v1211_v52, %v1210_v49  ;;  %v1275_v54 = vpop.f32.mrb[11].mxu1 }
 0x10b   :  { %v1276_v55 = vadd.f32 %v1275_v54, %v1274_v51  ;;  %v1745_v56 = vadd.f32 %v1273_v50, %v1209_v47 }
 0x10d   :  { %v1747_v57 = vadd.f32 %v1276_v55, %v1212_v53 }
 0x10e   :  { %v1213_v58 = vpop.f32.mrb[12].mxu0 }
 0x10f   :  { %v1277_v59 = vpop.f32.mrb[12].mxu1  ;;  %v1214_v60 = vpop.f32.mrb[13].mxu0 }
 0x110   :  { %v1215_v61 = vadd.f32 %v1214_v60, %v1213_v58  ;;  %v1278_v62 = vpop.f32.mrb[13].mxu1  ;;  %v1216_v63 = vpop.f32.mrb[14].mxu0 }
 0x111   :  { %v1279_v0 = vadd.f32 %v1278_v62, %v1277_v59  ;;  %v1280_v1 = vpop.f32.mrb[14].mxu1  ;;  %v1217_v2 = vpop.f32.mrb[15].mxu0 }
 0x112   :  { %v1218_v3 = vadd.f32 %v1217_v2, %v1216_v63  ;;  %v1281_v4 = vpop.f32.mrb[15].mxu1 }
 0x113   :  { %v1282_v5 = vadd.f32 %v1281_v4, %v1280_v1  ;;  %v1749_v6 = vadd.f32 %v1279_v0, %v1215_v61 }
 0x115   :  { %v1751_v7 = vadd.f32 %v1282_v5, %v1218_v3 }
 0x116   :  { %v1219_v8 = vpop.f32.mrb[16].mxu0 }
 0x117   :  { %v1283_v9 = vpop.f32.mrb[16].mxu1  ;;  %v1220_v10 = vpop.f32.mrb[17].mxu0 }
 0x118   :  { %v1221_v11 = vadd.f32 %v1220_v10, %v1219_v8  ;;  %v1284_v12 = vpop.f32.mrb[17].mxu1  ;;  %v1222_v13 = vpop.f32.mrb[18].mxu0 }
 0x119   :  { %v1285_v14 = vadd.f32 %v1284_v12, %v1283_v9  ;;  %v1286_v15 = vpop.f32.mrb[18].mxu1  ;;  %v1223_v16 = vpop.f32.mrb[19].mxu0  ;;  %v1766_v9 = vld [vmem:[%s1890_s2] ss:$0 sm:$0xff] }
 0x11a   :  { %v1224_v17 = vadd.f32 %v1223_v16, %v1222_v13  ;;  %v1287_v18 = vpop.f32.mrb[19].mxu1  ;;  %v1772_v13 = vld [vmem:[%s1891_s3] ss:$0 sm:$0xff] }
 0x11b   :  { %v1288_v19 = vadd.f32 %v1287_v18, %v1286_v15  ;;  %v797_v20 = vadd.f32 %v1285_v14, %v1221_v11 }
 0x11d   :  { %v1753_v21 = vadd.f32 %v1288_v19, %v1224_v17 }
 0x11e   :  { %v1225_v22 = vpop.f32.mrb[20].mxu0 }
 0x11f   :  { %v1289_v23 = vpop.f32.mrb[20].mxu1  ;;  %v1226_v24 = vpop.f32.mrb[21].mxu0 }
 0x120   :  { %v1227_v25 = vadd.f32 %v1226_v24, %v1225_v22  ;;  %v1290_v26 = vpop.f32.mrb[21].mxu1  ;;  %v1228_v27 = vpop.f32.mrb[22].mxu0 }
 0x121   :  { %v1291_v30 = vadd.f32 %v1290_v26, %v1289_v23  ;;  %v1292_v31 = vpop.f32.mrb[22].mxu1  ;;  %v1229_v32 = vpop.f32.mrb[23].mxu0 }
 0x122   :  { %v1230_v33 = vadd.f32 %v1229_v32, %v1228_v27  ;;  %v1293_v34 = vpop.f32.mrb[23].mxu1 }
 0x123   :  { %v1294_v35 = vadd.f32 %v1293_v34, %v1292_v31  ;;  %v805_v36 = vadd.f32 %v1291_v30, %v1227_v25 }
 0x125   :  { %v808_v37 = vadd.f32 %v1294_v35, %v1230_v33 }
 0x126   :  { %v1231_v38 = vpop.f32.mrb[24].mxu0 }
 0x127   :  { %v1295_v39 = vpop.f32.mrb[24].mxu1  ;;  %v1232_v40 = vpop.f32.mrb[25].mxu0 }
 0x128   :  { %v1233_v41 = vadd.f32 %v1232_v40, %v1231_v38  ;;  %v1296_v44 = vpop.f32.mrb[25].mxu1  ;;  %v1234_v45 = vpop.f32.mrb[26].mxu0 }
 0x129   :  { %v1297_v46 = vadd.f32 %v1296_v44, %v1295_v39  ;;  %v1298_v47 = vpop.f32.mrb[26].mxu1  ;;  %v1235_v48 = vpop.f32.mrb[27].mxu0 }
 0x12a   :  { %v1236_v49 = vadd.f32 %v1235_v48, %v1234_v45  ;;  %v1299_v50 = vpop.f32.mrb[27].mxu1 }
 0x12b   :  { %v1300_v51 = vadd.f32 %v1299_v50, %v1298_v47  ;;  %v1755_v52 = vadd.f32 %v1297_v46, %v1233_v41 }
 0x12d   :  { %v1757_v53 = vadd.f32 %v1300_v51, %v1236_v49 }
 0x12e   :  { %v1237_v54 = vpop.f32.mrb[28].mxu0 }
 0x12f   :  { %v1301_v55 = vpop.f32.mrb[28].mxu1  ;;  %v1238_v58 = vpop.f32.mrb[29].mxu0 }
 0x130   :  { %v1239_v59 = vadd.f32 %v1238_v58, %v1237_v54  ;;  %v1302_v60 = vpop.f32.mrb[29].mxu1  ;;  %v1240_v61 = vpop.f32.mrb[30].mxu0 }
 0x131   :  { %v1303_v62 = vadd.f32 %v1302_v60, %v1301_v55  ;;  %v1304_v63 = vpop.f32.mrb[30].mxu1  ;;  %v1241_v0 = vpop.f32.mrb[31].mxu0 }
 0x132   :  { %v1242_v1 = vadd.f32 %v1241_v0, %v1240_v61  ;;  %v1305_v2 = vpop.f32.mrb[31].mxu1 }
 0x133   :  { %v1306_v3 = vadd.f32 %v1305_v2, %v1304_v63  ;;  %v1759_v4 = vadd.f32 %v1303_v62, %v1239_v59 }
 0x135   :  { %v1761_v5 = vadd.f32 %v1306_v3, %v1242_v1 }
 0x136   :  { %v1341_v8 = vpop.f32.mrb[32].mxu0 }
 0x137   :  { %v870_v10 = vadd.f32 %v1341_v8, %v1741_v42  ;;  %v1349_v11 = vpop.f32.mrb[32].mxu1  ;;  %v861_v12 = vpop.f32.mrb[33].mxu0  ;;  %v1780_v42 = vld [vmem:[%s1892_s4] ss:$0 sm:$0xff] }
 0x138   :  { %v902_v14 = vadd.f32 %v1349_v11, %v805_v36  ;;  %v862_v15 = vadd.f32 %v861_v12, %v1737_v28  ;;  %v893_v16 = vpop.f32.mrb[33].mxu1  ;;  %v1342_v17 = vpop.f32.mrb[34].mxu0 }
 0x139   :  { %v984_v18 = vmul.f32 %v1766_v9, %v870_v10  ;;  %v894_v19 = vadd.f32 %v893_v16, %v797_v20  ;;  %v873_v22 = vadd.f32 %v1342_v17, %v1743_v43  ;;  %v1350_v23 = vpop.f32.mrb[34].mxu1  ;;  %v864_v24 = vpop.f32.mrb[35].mxu0 }
 0x13a   :  { %v992_v25 = vmul.f32 %v1766_v9, %v902_v14  ;;  %v982_v26 = vmul.f32 %v1766_v9, %v862_v15  ;;  %v905_v27 = vadd.f32 %v1350_v23, %v808_v37  ;;  %v865_v28 = vadd.f32 %v864_v24, %v1739_v29  ;;  %v896_v30 = vpop.f32.mrb[35].mxu1 }
 0x13b   :  { %v1007_v31 = vadd.f32 %v1772_v13, %v984_v18  ;;  %v990_v20 = vmul.f32 %v1766_v9, %v894_v19  ;;  %v985_v43 = vmul.f32 %v1766_v9, %v873_v22  ;;  %v897_v32 = vadd.f32 %v896_v30, %v1753_v21 }
 0x13c   :  { %v1015_v33 = vadd.f32 %v1772_v13, %v992_v25  ;;  %v1005_v34 = vadd.f32 %v1772_v13, %v982_v26  ;;  %v993_v35 = vmul.f32 %v1766_v9, %v905_v27  ;;  %v983_v36 = vmul.f32 %v1766_v9, %v865_v28 }
 0x13d   :  { %vm1023_vm0 = vcmp.ge.f32.partialorder %v1007_v31, 0.0  ;;  %v1046_v29 = vmul.f32 %v1780_v42, %v1007_v31  ;;  %v1013_v37 = vadd.f32 %v1772_v13, %v990_v20  ;;  %v1008_v38 = vadd.f32 %v1772_v13, %v985_v43 }
 0x13e   :  { %vm1031_vm1 = vcmp.ge.f32.partialorder %v1015_v33, 0.0  ;;  %v1054_v39 = vmul.f32 %v1780_v42, %v1015_v33  ;;  %vm1021_vm2 = vcmp.ge.f32.partialorder %v1005_v34, 0.0  ;;  %v1044_v21 = vmul.f32 %v1780_v42, %v1005_v34  ;;  %v1345_v40 = vpop.f32.mrb[36].mxu0 }
 0x13f   :  { %v1062_v41 = vsel %vm1023_vm0, %v1007_v31, %v1046_v29  ;;  %vm1029_vm3 = vcmp.ge.f32.partialorder %v1013_v37, 0.0  ;;  %v1052_v44 = vmul.f32 %v1780_v42, %v1013_v37  ;;  %vm1024_vm4 = vcmp.ge.f32.partialorder %v1008_v38, 0.0  ;;  %v1353_v45 = vpop.f32.mrb[36].mxu1  ;;  %v877_v46 = vpop.f32.mrb[37].mxu0 }
 0x140   :  { %1078 = vst [vmem:[%s1893_s5 + $0x10] sm:$0xff] %v1062_v41  ;;  %v1070_v47 = vsel %vm1031_vm1, %v1015_v33, %v1054_v39  ;;  %v1060_v48 = vsel %vm1021_vm2, %v1005_v34, %v1044_v21  ;;  %v1047_v49 = vmul.f32 %v1780_v42, %v1008_v38  ;;  %v1016_v50 = vadd.f32 %v1772_v13, %v993_v35  ;;  %v909_v51 = vpop.f32.mrb[37].mxu1  ;;  %v1346_v54 = vpop.f32.mrb[38].mxu0 }
 0x141   :  { %1086 = vst [vmem:[%s1893_s5 + $0x50] sm:$0xff] %v1070_v47  ;;  %1076 = vst [vmem:[%s1893_s5] sm:$0xff] %v1060_v48  ;;  %v1068_v55 = vsel %vm1029_vm3, %v1013_v37, %v1052_v44  ;;  %v1006_v58 = vadd.f32 %v1772_v13, %v983_v36  ;;  %v991_v59 = vmul.f32 %v1766_v9, %v897_v32  ;;  %v1354_v61 = vpop.f32.mrb[38].mxu1  ;;  %v880_v62 = vpop.f32.mrb[39].mxu0 }
 0x142   :  { %v886_v60 = vadd.f32 %v1345_v40, %v1749_v6  ;;  %1084 = vst [vmem:[%s1893_s5 + $0x40] sm:$0xff] %v1068_v55  ;;  %v1063_v63 = vsel %vm1024_vm4, %v1008_v38, %v1047_v49  ;;  %vm1032_vm5 = vcmp.ge.f32.partialorder %v1016_v50, 0.0  ;;  %v1055_v0 = vmul.f32 %v1780_v42, %v1016_v50  ;;  %v912_v2 = vpop.f32.mrb[39].mxu1 }
 0x143   :  { %v918_v1 = vadd.f32 %v1353_v45, %v1759_v4  ;;  %1079 = vst [vmem:[%s1893_s5 + $0x18] sm:$0xff] %v1063_v63  ;;  %vm1022_vm6 = vcmp.ge.f32.partialorder %v1006_v58, 0.0  ;;  %v1045_v6 = vmul.f32 %v1780_v42, %v1006_v58  ;;  %v1014_v3 = vadd.f32 %v1772_v13, %v991_v59 }
 0x144   :  { %v988_v8 = vmul.f32 %v1766_v9, %v886_v60  ;;  %v1071_v10 = vsel %vm1032_vm5, %v1016_v50, %v1055_v0  ;;  %v878_v12 = vadd.f32 %v877_v46, %v1745_v56  ;;  %v910_v14 = vadd.f32 %v909_v51, %v1755_v52 }
 0x145   :  { %v996_v11 = vmul.f32 %v1766_v9, %v918_v1  ;;  %1087 = vst [vmem:[%s1893_s5 + $0x58] sm:$0xff] %v1071_v10  ;;  %v1061_v4 = vsel %vm1022_vm6, %v1006_v58, %v1045_v6  ;;  %vm1030_vm7 = vcmp.ge.f32.partialorder %v1014_v3, 0.0  ;;  %v1053_v15 = vmul.f32 %v1780_v42, %v1014_v3 }
 0x146   :  { %v1011_v16 = vadd.f32 %v1772_v13, %v988_v8  ;;  %1077 = vst [vmem:[%s1893_s5 + $0x8] sm:$0xff] %v1061_v4  ;;  %v986_v56 = vmul.f32 %v1766_v9, %v878_v12  ;;  %v994_v52 = vmul.f32 %v1766_v9, %v910_v14  ;;  %v889_v18 = vadd.f32 %v1346_v54, %v1751_v7 }
 0x147   :  { %v1019_v17 = vadd.f32 %v1772_v13, %v996_v11  ;;  %v1069_v19 = vsel %vm1030_vm7, %v1014_v3, %v1053_v15  ;;  %v921_v23 = vadd.f32 %v1354_v61, %v1761_v5  ;;  %v881_v30 = vadd.f32 %v880_v62, %v1747_v57 }
 0x148   :  { %vm1027_vm8 = vcmp.ge.f32.partialorder %v1011_v16, 0.0  ;;  %v1050_v22 = vmul.f32 %v1780_v42, %v1011_v16  ;;  %1085 = vst [vmem:[%s1893_s5 + $0x48] sm:$0xff] %v1069_v19  ;;  %v1009_v25 = vadd.f32 %v1772_v13, %v986_v56  ;;  %v1017_v26 = vadd.f32 %v1772_v13, %v994_v52 }
 0x149   :  { %vm1035_vm9 = vcmp.ge.f32.partialorder %v1019_v17, 0.0  ;;  %v1058_v24 = vmul.f32 %v1780_v42, %v1019_v17  ;;  %v989_v7 = vmul.f32 %v1766_v9, %v889_v18  ;;  %v997_v28 = vmul.f32 %v1766_v9, %v921_v23 }
 0x14a   :  { %v1066_v27 = vsel %vm1027_vm8, %v1011_v16, %v1050_v22  ;;  %vm1025_vm10 = vcmp.ge.f32.partialorder %v1009_v25, 0.0  ;;  %v1048_v31 = vmul.f32 %v1780_v42, %v1009_v25  ;;  %vm1033_vm11 = vcmp.ge.f32.partialorder %v1017_v26, 0.0 }
 0x14b   :  { %1082 = vst [vmem:[%s1893_s5 + $0x30] sm:$0xff] %v1066_v27  ;;  %v1074_v5 = vsel %vm1035_vm9, %v1019_v17, %v1058_v24  ;;  %v1056_v20 = vmul.f32 %v1780_v42, %v1017_v26  ;;  %v1012_v43 = vadd.f32 %v1772_v13, %v989_v7  ;;  %v1020_v32 = vadd.f32 %v1772_v13, %v997_v28 }
 0x14c   :  { %1090 = vst [vmem:[%s1893_s5 + $0x70] sm:$0xff] %v1074_v5  ;;  %v987_v57 = vmul.f32 %v1766_v9, %v881_v30  ;;  %v1064_v33 = vsel %vm1025_vm10, %v1009_v25, %v1048_v31  ;;  %v913_v34 = vadd.f32 %v912_v2, %v1757_v53 }
 0x14d   :  { %1080 = vst [vmem:[%s1893_s5 + $0x20] sm:$0xff] %v1064_v33  ;;  %v1072_v35 = vsel %vm1033_vm11, %v1017_v26, %v1056_v20  ;;  %vm1028_vm12 = vcmp.ge.f32.partialorder %v1012_v43, 0.0  ;;  %v1051_v36 = vmul.f32 %v1780_v42, %v1012_v43  ;;  %vm1036_vm13 = vcmp.ge.f32.partialorder %v1020_v32, 0.0 }
 0x14e   :  { %1088 = vst [vmem:[%s1893_s5 + $0x60] sm:$0xff] %v1072_v35  ;;  %v1059_v29 = vmul.f32 %v1780_v42, %v1020_v32  ;;  %v1010_v37 = vadd.f32 %v1772_v13, %v987_v57  ;;  %v995_v38 = vmul.f32 %v1766_v9, %v913_v34 }
 0x14f   :  { %v1067_v53 = vsel %vm1028_vm12, %v1012_v43, %v1051_v36 }
 0x150   :  { %1083 = vst [vmem:[%s1893_s5 + $0x38] sm:$0xff] %v1067_v53  ;;  %v1075_v39 = vsel %vm1036_vm13, %v1020_v32, %v1059_v29  ;;  %vm1026_vm14 = vcmp.ge.f32.partialorder %v1010_v37, 0.0  ;;  %v1049_v21 = vmul.f32 %v1780_v42, %v1010_v37  ;;  %v1018_v40 = vadd.f32 %v1772_v13, %v995_v38 }
 0x151   :  { %1091 = vst [vmem:[%s1893_s5 + $0x78] sm:$0xff] %v1075_v39 }
 0x152   :  { %v1065_v41 = vsel %vm1026_vm14, %v1010_v37, %v1049_v21  ;;  %vm1034_vm15 = vcmp.ge.f32.partialorder %v1018_v40, 0.0  ;;  %v1057_v44 = vmul.f32 %v1780_v42, %v1018_v40 }
 0x153   :  { %1081 = vst [vmem:[%s1893_s5 + $0x28] sm:$0xff] %v1065_v41 }
 0x154   :  { %v1073_v9 = vsel %vm1034_vm15, %v1018_v40, %v1057_v44 }
 0x155   :  { %1089 = vst [vmem:[%s1893_s5 + $0x68] sm:$0xff] %v1073_v9 }

// kernel: encoder_forward.269
= control target key start
LH: loop header
LB: loop body
LE: loop exit
PB: predicated region body
PF: predicated region fallthrough
CT: control target
= control target key end

     0   :  { %v720_v34 = vmov 0.0   ;;  %vm721_vm0 = vmmov 0   ;;  %s902_s1 = inlined_call_operand.vmem [shape: bf16[640,128], index: 1, kind: input, shape index: {}]   ;;  %s903_s0 = inlined_call_operand.vmem [shape: bf16[16,640], index: 0, kind: input, shape index: {}]   ;;  %s904_s2 = inlined_call_operand.vmem [shape: f32[1,128], index: 2, kind: input, shape index: {}]   ;;  %s905_s3 = inlined_call_operand.vmem [shape: f32[1,128], index: 3, kind: input, shape index: {}]   ;;  %s906_s4 = inlined_call_operand.vmem [shape: f32[1,128], index: 4, kind: input, shape index: {}]   ;;  %s907_s5 = inlined_call_operand.vmem [shape: f32[16,128], index: 5, kind: output, shape index: {}]  }
   0x1   :  { %v673_v0 = vld [vmem:[%s902_s1 + $0x40] sm:$0xff]   ;;  %v677_v4 = vld [vmem:[%s902_s1 + $0x48] sm:$0xff]   ;;  %v681_v8 = vld [vmem:[%s902_s1 + $0x50] sm:$0xff]  }
   0x2   :  { %v674_v1 = vld [vmem:[%s902_s1 + $0xc0] sm:$0xff]   ;;  %598 = vmatprep.subr.bf16.mxu0 %v673_v0  ;;  %v678_v5 = vld [vmem:[%s902_s1 + $0xc8] sm:$0xff]   ;;  %v682_v9 = vld [vmem:[%s902_s1 + $0xd0] sm:$0xff]  }
   0x3   :  { %v675_v2 = vld [vmem:[%s902_s1] sm:$0xff]   ;;  %620 = vmatprep.subr.bf16.mxu1 %v674_v1  ;;  %v679_v6 = vld [vmem:[%s902_s1 + $0x8] sm:$0xff]   ;;  %v683_v10 = vld [vmem:[%s902_s1 + $0x10] sm:$0xff]  }
   0x4   :  { %v676_v3 = vld [vmem:[%s902_s1 + $0x80] sm:$0xff]   ;;  %599 = vmatpush3.bf16.msra.mxu0 %v675_v2  ;;  %v680_v7 = vld [vmem:[%s902_s1 + $0x88] sm:$0xff]   ;;  %v684_v11 = vld [vmem:[%s902_s1 + $0x90] sm:$0xff]  }
   0x5   :  { %621 = vmatpush3.bf16.msra.mxu1 %v676_v3  ;;  %600 = vmatprep.subr.bf16.mxu0 %v677_v4  ;;  %v685_v12 = vld [vmem:[%s902_s1 + $0x58] sm:$0xff]   ;;  %v689_v16 = vld [vmem:[%s902_s1 + $0x60] sm:$0xff]   ;;  %v693_v20 = vld [vmem:[%s902_s1 + $0x68] sm:$0xff]  }
   0x6   :  { %622 = vmatprep.subr.bf16.mxu1 %v678_v5  ;;  %v686_v13 = vld [vmem:[%s902_s1 + $0xd8] sm:$0xff]   ;;  %v690_v17 = vld [vmem:[%s902_s1 + $0xe0] sm:$0xff]   ;;  %v694_v21 = vld [vmem:[%s902_s1 + $0xe8] sm:$0xff]  }
   0x7   :  { %v687_v14 = vld [vmem:[%s902_s1 + $0x18] sm:$0xff]   ;;  %v691_v18 = vld [vmem:[%s902_s1 + $0x20] sm:$0xff]   ;;  %v695_v22 = vld [vmem:[%s902_s1 + $0x28] sm:$0xff]  }
   0x8   :  { %601 = vmatpush3.bf16.msra.mxu0 %v679_v6  ;;  %v688_v15 = vld [vmem:[%s902_s1 + $0x98] sm:$0xff]   ;;  %v692_v19 = vld [vmem:[%s902_s1 + $0xa0] sm:$0xff]   ;;  %v696_v23 = vld [vmem:[%s902_s1 + $0xa8] sm:$0xff]  }
   0x9   :  { %623 = vmatpush3.bf16.msra.mxu1 %v680_v7  ;;  %602 = vmatprep.subr.bf16.mxu0 %v681_v8  ;;  %v697_v24 = vld [vmem:[%s902_s1 + $0x70] sm:$0xff]   ;;  %v701_v28 = vld [vmem:[%s902_s1 + $0x78] sm:$0xff]   ;;  %v710_v36 = vld [vmem:[%s903_s0 + $0xc] ss:$20 sps:$4 sm:$0xff]  }
   0xa   :  { %624 = vmatprep.subr.bf16.mxu1 %v682_v9  ;;  %v698_v25 = vld [vmem:[%s902_s1 + $0xf0] sm:$0xff]   ;;  %v702_v29 = vld [vmem:[%s902_s1 + $0xf8] sm:$0xff]   ;;  %v711_v37 = vld [vmem:[%s902_s1 + $0x100] sm:$0xff]   ;;  %454 = vmatprep.mubr.bf16.mxu1 %v710_v36 }
   0xb   :  { %v699_v26 = vld [vmem:[%s902_s1 + $0x30] sm:$0xff]   ;;  %v703_v30 = vld [vmem:[%s902_s1 + $0x38] sm:$0xff]   ;;  %v712_v38 = vld [vmem:[%s902_s1 + $0x108] sm:$0xff]  }
   0xc   :  { %603 = vmatpush3.bf16.msra.mxu0 %v683_v10  ;;  %v700_v27 = vld [vmem:[%s902_s1 + $0xb0] sm:$0xff]   ;;  %v704_v31 = vld [vmem:[%s902_s1 + $0xb8] sm:$0xff]   ;;  %v715_v41 = vld [vmem:[%s902_s1 + $0x120] sm:$0xff]  }
   0xd   :  { %625 = vmatpush3.bf16.msra.mxu1 %v684_v11  ;;  %604 = vmatprep.subr.bf16.mxu0 %v685_v12  ;;  %v705_v32 = vld [vmem:[%s903_s0] ss:$20 sps:$4 sm:$0xff]   ;;  %v707_v33 = vld [vmem:[%s903_s0 + $0x4] ss:$20 sps:$4 sm:$0xff]   ;;  %v708_v35 = vld [vmem:[%s903_s0 + $0x8] ss:$20 sps:$4 sm:$0xff]  }
   0xe   :  { %626 = vmatprep.subr.bf16.mxu1 %v686_v13  ;;  %413 = vmatprep.mubr.bf16.mxu0 %v707_v33  ;;  %v713_v39 = vld [vmem:[%s902_s1 + $0x110] sm:$0xff]   ;;  %v714_v40 = vld [vmem:[%s902_s1 + $0x118] sm:$0xff]   ;;  %v716_v42 = vld [vmem:[%s902_s1 + $0x128] sm:$0xff]  }
   0xf   :  { %v717_v43 = vld [vmem:[%s902_s1 + $0x130] sm:$0xff]   ;;  %v718_v44 = vld [vmem:[%s902_s1 + $0x138] sm:$0xff]   ;;  %v595_v61 = vld [vmem:[%s904_s2] ss:$0 sm:$0xff] }
  0x10   :  { %605 = vmatpush3.bf16.msra.mxu0 %v687_v14  ;;  %v719_v45 = vld [vmem:[%s903_s0 + $0x10] ss:$20 sps:$4 sm:$0xff]   ;;  %v596_v0 = vld [vmem:[%s905_s3] ss:$0 sm:$0xff] }
  0x11   :  { %627 = vmatpush3.bf16.msra.mxu1 %v688_v15  ;;  %606 = vmatprep.subr.bf16.mxu0 %v689_v16  ;;  %v597_v5 = vld [vmem:[%s906_s4] ss:$0 sm:$0xff] }
  0x12   :  { %628 = vmatprep.subr.bf16.mxu1 %v690_v17 }
  0x14   :  { %607 = vmatpush3.bf16.msra.mxu0 %v691_v18 }
  0x15   :  { %629 = vmatpush3.bf16.msra.mxu1 %v692_v19  ;;  %608 = vmatprep.subr.bf16.mxu0 %v693_v20 }
  0x16   :  { %630 = vmatprep.subr.bf16.mxu1 %v694_v21 }
  0x18   :  { %609 = vmatpush3.bf16.msra.mxu0 %v695_v22 }
  0x19   :  { %631 = vmatpush3.bf16.msra.mxu1 %v696_v23  ;;  %610 = vmatprep.subr.bf16.mxu0 %v697_v24 }
  0x1a   :  { %632 = vmatprep.subr.bf16.mxu1 %v698_v25 }
  0x1c   :  { %611 = vmatpush3.bf16.msra.mxu0 %v699_v26 }
  0x1d   :  { %633 = vmatpush3.bf16.msra.mxu1 %v700_v27  ;;  %612 = vmatprep.subr.bf16.mxu0 %v701_v28 }
  0x1e   :  { %634 = vmatprep.subr.bf16.mxu1 %v702_v29 }
  0x20   :  { %613 = vmatpush3.bf16.msra.mxu0 %v703_v30 }
  0x21   :  { %635 = vmatpush3.bf16.msra.mxu1 %v704_v31  ;;  %651 = vmatprep.subr.bf16.mxu0 %v720_v34 }
  0x23   :  { %414 = vmatmul.mubr.bf16.vlgmr.msra.gmra.mrb[0].mxu0 %v705_v32 }
  0x24   :  { %455 = vmatmul.mubr.bf16.vlgmr.msra.gmra.mrb[0].mxu1 %v708_v35  ;;  %652 = vmatpush3.bf16.msra.mxu0 %v711_v37 }
  0x25   :  { %653 = vmatprep.subr.bf16.mxu0 %v720_v34  ;;  %667 = vmatprep.mubr.msk.bf16.mxu0 %vm721_vm0, %v720_v34 }
  0x28   :  { %654 = vmatpush3.bf16.msra.mxu0 %v712_v38 }
  0x29   :  { %655 = vmatprep.subr.bf16.mxu0 %v720_v34 }
  0x2c   :  { %656 = vmatpush3.bf16.msra.mxu0 %v713_v39 }
  0x2d   :  { %657 = vmatprep.subr.bf16.mxu0 %v720_v34 }
  0x30   :  { %658 = vmatpush3.bf16.msra.mxu0 %v714_v40 }
  0x31   :  { %659 = vmatprep.subr.bf16.mxu0 %v720_v34 }
  0x34   :  { %660 = vmatpush3.bf16.msra.mxu0 %v715_v41 }
  0x35   :  { %661 = vmatprep.subr.bf16.mxu0 %v720_v34 }
  0x38   :  { %662 = vmatpush3.bf16.msra.mxu0 %v716_v42 }
  0x39   :  { %663 = vmatprep.subr.bf16.mxu0 %v720_v34 }
  0x3c   :  { %664 = vmatpush3.bf16.msra.mxu0 %v717_v43 }
  0x3d   :  { %665 = vmatprep.subr.bf16.mxu0 %v720_v34 }
  0x40   :  { %666 = vmatpush3.bf16.msra.mxu0 %v718_v44 }
  0x43   :  { %668 = vmatmul.mubr.bf16.vlgmr.msra.gmra.mrb[4].mxu0 %v719_v45 }
  0xf6   :  { %v614_v46 = vpop.f32.mrb[0].mxu0 }
  0xf7   :  { %v636_v47 = vpop.f32.mrb[0].mxu1  ;;  %v615_v48 = vpop.f32.mrb[1].mxu0 }
  0xf8   :  { %v616_v49 = vadd.f32 %v615_v48, %v614_v46  ;;  %v637_v50 = vpop.f32.mrb[1].mxu1  ;;  %v617_v51 = vpop.f32.mrb[2].mxu0 }
  0xf9   :  { %v638_v52 = vadd.f32 %v637_v50, %v636_v47  ;;  %v639_v53 = vpop.f32.mrb[2].mxu1  ;;  %v618_v54 = vpop.f32.mrb[3].mxu0 }
  0xfa   :  { %v619_v55 = vadd.f32 %v618_v54, %v617_v51  ;;  %v640_v56 = vpop.f32.mrb[3].mxu1 }
  0xfb   :  { %v641_v57 = vadd.f32 %v640_v56, %v639_v53  ;;  %v457_v58 = vadd.f32 %v638_v52, %v616_v49 }
  0xfd   :  { %v460_v59 = vadd.f32 %v641_v57, %v619_v55 }
 0x116   :  { %v497_v60 = vpop.f32.mrb[4].mxu0 }
 0x117   :  { %v498_v62 = vadd.f32 %v497_v60, %v457_v58  ;;  %v669_v63 = vpop.f32.mrb[5].mxu0 }
 0x118   :  { %v500_v1 = vpop.f32.mrb[6].mxu0 }
 0x119   :  { %v520_v2 = vmul.f32 %v595_v61, %v498_v62  ;;  %v501_v3 = vadd.f32 %v500_v1, %v460_v59  ;;  %v670_v4 = vpop.f32.mrb[7].mxu0 }
 0x11b   :  { %v529_v6 = vadd.f32 %v596_v0, %v520_v2  ;;  %v521_v7 = vmul.f32 %v595_v61, %v501_v3 }
 0x11d   :  { %vm531_vm1 = vcmp.ge.f32.partialorder %v529_v6, 0.0  ;;  %v540_v8 = vmul.f32 %v597_v5, %v529_v6  ;;  %v530_v9 = vadd.f32 %v596_v0, %v521_v7 }
 0x11f   :  { %v542_v10 = vsel %vm531_vm1, %v529_v6, %v540_v8  ;;  %vm532_vm2 = vcmp.ge.f32.partialorder %v530_v9, 0.0  ;;  %v541_v11 = vmul.f32 %v597_v5, %v530_v9 }
 0x120   :  { %544 = vst [vmem:[%s907_s5] sm:$0xff] %v542_v10 }
 0x121   :  { %v543_v12 = vsel %vm532_vm2, %v530_v9, %v541_v11 }
 0x122   :  { %545 = vst [vmem:[%s907_s5 + $0x8] sm:$0xff] %v543_v12 }

// kernel: encoder_forward.271
= control target key start
LH: loop header
LB: loop body
LE: loop exit
PB: predicated region body
PF: predicated region fallthrough
CT: control target
= control target key end

     0   :  { %v240_v0 = vmov 0.0   ;;  %vm241_vm0 = vmmov 0   ;;  %s314_s1 = inlined_call_operand.vmem [shape: bf16[128,128], index: 1, kind: input, shape index: {}]   ;;  %s315_s0 = inlined_call_operand.vmem [shape: bf16[16,128], index: 0, kind: input, shape index: {}]   ;;  %s316_s2 = inlined_call_operand.vmem [shape: f32[1,128], index: 2, kind: input, shape index: {}]   ;;  %s317_s3 = inlined_call_operand.vmem [shape: f32[1,128], index: 3, kind: input, shape index: {}]   ;;  %s318_s4 = inlined_call_operand.vmem [shape: f32[1,128], index: 4, kind: input, shape index: {}]   ;;  %s319_s5 = inlined_call_operand.vmem [shape: f32[16,128], index: 5, kind: output, shape index: {}]  }
   0x1   :  { %209 = vmatprep.subr.bf16.mxu0 %v240_v0  ;;  %v231_v1 = vld [vmem:[%s314_s1] sm:$0xff]   ;;  %225 = vmatprep.mubr.msk.bf16.mxu0 %vm241_vm0, %v240_v0  ;;  %v232_v2 = vld [vmem:[%s314_s1 + $0x8] sm:$0xff]   ;;  %v233_v3 = vld [vmem:[%s314_s1 + $0x10] sm:$0xff]  }
   0x2   :  { %210 = vmatpush3.bf16.msra.mxu0 %v231_v1  ;;  %v234_v4 = vld [vmem:[%s314_s1 + $0x18] sm:$0xff]   ;;  %v235_v5 = vld [vmem:[%s314_s1 + $0x20] sm:$0xff]   ;;  %v236_v6 = vld [vmem:[%s314_s1 + $0x28] sm:$0xff]  }
   0x3   :  { %211 = vmatprep.subr.bf16.mxu0 %v240_v0  ;;  %v237_v7 = vld [vmem:[%s314_s1 + $0x30] sm:$0xff]   ;;  %v238_v8 = vld [vmem:[%s314_s1 + $0x38] sm:$0xff]   ;;  %v239_v9 = vld [vmem:[%s315_s0] sm:$0xff]  }
   0x4   :  { %v197_v10 = vld [vmem:[%s316_s2] ss:$0 sm:$0xff] }
   0x5   :  { %v198_v12 = vld [vmem:[%s317_s3] ss:$0 sm:$0xff] }
   0x6   :  { %212 = vmatpush3.bf16.msra.mxu0 %v232_v2  ;;  %v199_v15 = vld [vmem:[%s318_s4] ss:$0 sm:$0xff] }
   0x7   :  { %213 = vmatprep.subr.bf16.mxu0 %v240_v0 }
   0xa   :  { %214 = vmatpush3.bf16.msra.mxu0 %v233_v3 }
   0xb   :  { %215 = vmatprep.subr.bf16.mxu0 %v240_v0 }
   0xe   :  { %216 = vmatpush3.bf16.msra.mxu0 %v234_v4 }
   0xf   :  { %217 = vmatprep.subr.bf16.mxu0 %v240_v0 }
  0x12   :  { %218 = vmatpush3.bf16.msra.mxu0 %v235_v5 }
  0x13   :  { %219 = vmatprep.subr.bf16.mxu0 %v240_v0 }
  0x16   :  { %220 = vmatpush3.bf16.msra.mxu0 %v236_v6 }
  0x17   :  { %221 = vmatprep.subr.bf16.mxu0 %v240_v0 }
  0x1a   :  { %222 = vmatpush3.bf16.msra.mxu0 %v237_v7 }
  0x1b   :  { %223 = vmatprep.subr.bf16.mxu0 %v240_v0 }
  0x1e   :  { %224 = vmatpush3.bf16.msra.mxu0 %v238_v8 }
  0x21   :  { %226 = vmatmul.mubr.bf16.vlgmr.msra.gmra.mrb[0].mxu0 %v239_v9 }
  0xf4   :  { %v135_v11 = vpop.f32.mrb[0].mxu0 }
  0xf5   :  { %v158_v13 = vmul.f32 %v197_v10, %v135_v11  ;;  %v227_v14 = vpop.f32.mrb[1].mxu0 }
  0xf6   :  { %v138_v16 = vpop.f32.mrb[2].mxu0 }
  0xf7   :  { %v167_v17 = vadd.f32 %v198_v12, %v158_v13  ;;  %v159_v18 = vmul.f32 %v197_v10, %v138_v16  ;;  %v228_v19 = vpop.f32.mrb[3].mxu0 }
  0xf9   :  { %vm169_vm1 = vcmp.ge.f32.partialorder %v167_v17, 0.0  ;;  %v178_v20 = vmul.f32 %v199_v15, %v167_v17  ;;  %v168_v21 = vadd.f32 %v198_v12, %v159_v18 }
  0xfb   :  { %v180_v22 = vsel %vm169_vm1, %v167_v17, %v178_v20  ;;  %vm170_vm2 = vcmp.ge.f32.partialorder %v168_v21, 0.0  ;;  %v179_v23 = vmul.f32 %v199_v15, %v168_v21 }
  0xfc   :  { %182 = vst [vmem:[%s319_s5] sm:$0xff] %v180_v22 }
  0xfd   :  { %v181_v24 = vsel %vm170_vm2, %v168_v21, %v179_v23 }
  0xfe   :  { %183 = vst [vmem:[%s319_s5 + $0x8] sm:$0xff] %v181_v24 }

</bundles_post_ra>
